<compile_context>
chip_gen: v7x
topology: tpu7x:2x2x1
jax: 0.10.0
libtpu: 0.0.40
codegen_flags: <defaults>
</compile_context>

<pallas_src>
from functools import partial

import numpy as np
import jax
import jax.numpy as jnp
from jax.experimental import pallas as pl
from jax.experimental.pallas import tpu as pltpu

_SQRT2_INV = float(1.0 / np.sqrt(2.0))

# ---------------------------------------------------------------------------
# near_sym_b (13,19)-tap biorthogonal level-1 filters (pytorch_wavelets
# DTCWTForward/DTCWTInverse(biort='near_sym_b', J=1)).  Synthesis filters via
# the PR modulation relations g0[n] = (-1)^(n+1) h1[n], g1[n] = (-1)^n h0[n].
# ---------------------------------------------------------------------------
_H0O = np.array(
    [-0.0017581, 0.0, 0.0222656, -0.0468750, -0.0482422, 0.2968750, 0.5554688,
     0.2968750, -0.0482422, -0.0468750, 0.0222656, 0.0, -0.0017581], np.float64)
_H1O = np.array(
    [-0.0000706, 0.0, 0.0013419, -0.0018834, -0.0071568, 0.0238560, 0.0556431,
     -0.0516881, -0.2997576, 0.5594308, -0.2997576, -0.0516881, 0.0556431,
     0.0238560, -0.0071568, -0.0018834, 0.0013419, 0.0, -0.0000706], np.float64)
_G0O = ((-1.0) ** (np.arange(_H1O.size) + 1)) * _H1O
_G1O = ((-1.0) ** np.arange(_H0O.size)) * _H0O


def _symm_reflect(idx, n):
    """Half-sample symmetric reflection of indices into [0, n)."""
    out = np.asarray(idx).copy()
    for _ in range(4):
        out = np.where(out < 0, -1 - out, out)
        out = np.where(out >= n, 2 * n - 1 - out, out)
    return out


def _filter_matrix(h, n):
    """Dense (n, n) operator equal to pytorch_wavelets' centered 1-D conv with
    symmetric padding (rowfilter/colfilter, odd-length filter)."""
    h = np.asarray(h, np.float64)
    taps = h.size
    m = taps // 2
    assert n >= m, "feat_size too small for the filter length"
    h_rev = h[::-1]  # prep_filt reverses the filter; conv2d is a correlation
    xe = _symm_reflect(np.arange(-m, n + m), n)
    t = np.zeros((n, n), np.float64)
    for p in range(n):
        for k in range(taps):
            t[p, xe[p + k]] += h_rev[k]
    return t


def _wavelet_operators(n):
    """Fixed filter operators with the even/odd (q2c / c2q) subsampling baked in."""
    th0 = _filter_matrix(_H0O, n)
    th1 = _filter_matrix(_H1O, n)
    tg0 = _filter_matrix(_G0O, n)
    tg1 = _filter_matrix(_G1O, n)
    perm = np.concatenate([np.arange(0, n, 2), np.arange(1, n, 2)])
    s = 1.0 / np.sqrt(2.0)
    return {
        "Th0": th0, "Th1": th1, "Tg0": tg0, "Tg1": tg1,
        "perm": perm.astype(np.int32),
        # analysis: row operator (right-mul) and column operator (left-mul),
        # both with [even rows | odd rows] grouping so q2c quadrants are
        # contiguous sub-blocks of the fused result.
        "Ra": np.concatenate([th0[0::2].T, th0[1::2].T,
                              th1[0::2].T, th1[1::2].T], axis=1),     # (N, 2N)
        "Ca": np.concatenate([th0[0::2], th0[1::2],
                              th1[0::2], th1[1::2]], axis=0),         # (2N, N)
        # synthesis: column-stage operators (1/sqrt2 of c2q folded into the
        # high-pass ones only) and row-stage operators.
        "Gpc": tg0[:, perm],                                          # (N, N)
        "G0e": s * tg0[:, 0::2], "G0o": s * tg0[:, 1::2],             # (N, N/2)
        "G1e": s * tg1[:, 0::2], "G1o": s * tg1[:, 1::2],             # (N, N/2)
        "Rg0": np.concatenate([tg0[:, 0::2].T, tg0[:, 1::2].T], 0),   # (N, N)
        "Rg1": np.concatenate([tg1[:, 0::2].T, tg1[:, 1::2].T], 0),   # (N, N)
    }


# ---------------------------------------------------------------------------
# Pallas kernels
# ---------------------------------------------------------------------------
def _analysis_kernel(x_ref, ra_ref, ca_ref, ll_ref, hp_ref):
    """Fused level-1 DTCWT analysis (+ q2c) for a (1, tc, N, N) channel block."""
    _, tc, n, _ = x_ref.shape
    n2 = n // 2
    x = x_ref[0]                                                    # (tc, N, N)

    # row filter: one matmul for lo & hi, even/odd output columns grouped.
    lohi = jnp.dot(x.reshape(tc * n, n), ra_ref[...],
                   preferred_element_type=jnp.float32)              # (tc*N, 2N)
    lohi = lohi.reshape(tc, n, 2 * n)

    # column filter as a batched left multiply (no transposes).
    ca = jnp.broadcast_to(ca_ref[...], (tc, 2 * n, n))
    colres = jnp.einsum('tph,thw->tpw', ca, lohi,
                        preferred_element_type=jnp.float32)         # (tc, 2N, 2N)

    # low-pass (rows & cols in even-first permuted order; the LL weight and
    # the synthesis operator are permuted to match).
    ll_ref[0] = colres[:, 0:n, 0:n]

    s = _SQRT2_INV

    def blk(r, c):
        return colres[:, r * n2:(r + 1) * n2, c * n2:(c + 1) * n2]

    # hp layout: slot k = part*6 + orientation, part 0 = real, 1 = imag,
    # orientations [15, 45, 75, 105, 135, 165].
    # lh = (Th1 col) x (lo cols): quadrants a,b,c,d -> (r2,c0),(r2,c1),(r3,c0),(r3,c1)
    qa, qb, qc, qd = blk(2, 0), blk(2, 1), blk(3, 0), blk(3, 1)
    hp_ref[0, :, 0] = s * (qa - qd)     # d15  real
    hp_ref[0, :, 6] = s * (qb + qc)     # d15  imag
    hp_ref[0, :, 5] = s * (qa + qd)     # d165 real
    hp_ref[0, :, 11] = s * (qb - qc)    # d165 imag
    # hl = (Th0 col) x (hi cols)
    qa, qb, qc, qd = blk(0, 2), blk(0, 3), blk(1, 2), blk(1, 3)
    hp_ref[0, :, 2] = s * (qa - qd)     # d75  real
    hp_ref[0, :, 8] = s * (qb + qc)     # d75  imag
    hp_ref[0, :, 3] = s * (qa + qd)     # d105 real
    hp_ref[0, :, 9] = s * (qb - qc)     # d105 imag
    # hh = (Th1 col) x (hi cols)
    qa, qb, qc, qd = blk(2, 2), blk(2, 3), blk(3, 2), blk(3, 3)
    hp_ref[0, :, 1] = s * (qa - qd)     # d45  real
    hp_ref[0, :, 7] = s * (qb + qc)     # d45  imag
    hp_ref[0, :, 4] = s * (qa + qd)     # d135 real
    hp_ref[0, :, 10] = s * (qb - qc)    # d135 imag


def _complex_mlp_kernel(x_ref, w1_ref, b1_ref, w2_ref, b2_ref, o_ref):
    """Lane-dense complex two-layer MLP: rows = tokens, lanes = [real C | imag C]."""
    x = x_ref[...]
    h = jnp.dot(x, w1_ref[...], preferred_element_type=jnp.float32) + b1_ref[...]
    h = jnp.maximum(h, 0.0)
    o_ref[...] = jnp.dot(h, w2_ref[...],
                         preferred_element_type=jnp.float32) + b2_ref[...]


def _synthesis_kernel(ll_ref, wll_ref, hp_ref, gpc_ref, g0e_ref, g0o_ref,
                      g1e_ref, g1o_ref, rg0_ref, rg1_ref, o_ref):
    """Fused level-1 DTCWT synthesis (c2q + col filter + row filter) with the
    learned low-pass scaling folded in."""
    _, tc, n, _ = ll_ref.shape
    n2 = n // 2

    def bmm(op_ref, v):
        op = jnp.broadcast_to(op_ref[...], (tc,) + tuple(op_ref.shape))
        return jnp.einsum('tph,thw->tpw', op, v,
                          preferred_element_type=jnp.float32)

    # learned LL scaling (VPU work, hidden under the MXU slot)
    ll_w = ll_ref[0] * wll_ref[...]                                 # (tc, N, N)

    hp = hp_ref[0]                                                  # (tc, 6, N/2, N) lanes = [re | im]

    def c2q_pair(o1, o2):
        p = hp[:, o1]                                               # [w1r | w1i]
        q = hp[:, o2]                                               # [w2r | w2i]
        a = p + q                                                   # [x1 | x2]
        b = jnp.concatenate([p[..., n2:] - q[..., n2:],             # x3 = w1i - w2i
                             q[..., :n2] - p[..., :n2]],            # x4 = w2r - w1r
                            axis=-1)
        return a, b

    a_lh, b_lh = c2q_pair(0, 5)
    a_hl, b_hl = c2q_pair(2, 3)
    a_hh, b_hh = c2q_pair(1, 4)

    # column stage (left multiplies); output columns stay in [even | odd] blocks
    lo = bmm(gpc_ref, ll_w) + bmm(g1e_ref, a_lh) + bmm(g1o_ref, b_lh)
    hi = (bmm(g0e_ref, a_hl) + bmm(g0o_ref, b_hl)
          + bmm(g1e_ref, a_hh) + bmm(g1o_ref, b_hh))

    # row stage (right multiplies) back to natural column order
    y = (jnp.dot(lo.reshape(tc * n, n), rg0_ref[...],
                 preferred_element_type=jnp.float32)
         + jnp.dot(hi.reshape(tc * n, n), rg1_ref[...],
                   preferred_element_type=jnp.float32))
    o_ref[0] = y.reshape(tc, n, n)


# ---------------------------------------------------------------------------
# helpers
# ---------------------------------------------------------------------------
def _channel_tile(c, n, budget_bytes=2 * 1024 * 1024):
    for t in range(c, 0, -1):
        if c % t == 0 and t * n * n * 4 <= budget_bytes:
            return t
    return 1


def _row_tile(m):
    for t in (2048, 1024, 512, 256, 128, 64, 32, 16, 8):
        if m % t == 0:
            return t
    return m


def _block_diag(w):
    """(nh, hd, hd) -> (nh*hd, nh*hd) block-diagonal."""
    nh, hd, _ = w.shape
    eye = jnp.eye(nh, dtype=w.dtype)
    t = eye[:, :, None, None] * w[:, None, :, :]
    return jnp.transpose(t, (0, 2, 1, 3)).reshape(nh * hd, nh * hd)


def _complex_block_weight(w):
    """(2, nh, hd, hd) -> (2C, 2C) so that [xr|xi] @ W = [xr@Wr - xi@Wi | xr@Wi + xi@Wr]."""
    bdr = _block_diag(w[0])
    bdi = _block_diag(w[1])
    top = jnp.concatenate([bdr, bdi], axis=1)
    bot = jnp.concatenate([-bdi, bdr], axis=1)
    return jnp.concatenate([top, bot], axis=0)


def _fixed1(shape):
    return pl.BlockSpec(shape, lambda i: (0,) * len(shape))


def _fixed2(shape):
    return pl.BlockSpec(shape, lambda bi, ci: (0,) * len(shape))


# ---------------------------------------------------------------------------
# Module forward
# ---------------------------------------------------------------------------
def dtcwt_module_forward(x, params, num_heads):
    """x: (B, H, W, C) float32 (NHWC, same as the PyTorch module's input)."""
    b, hgt, wid, c = x.shape
    n = hgt
    n2 = n // 2
    x_nchw = jnp.transpose(x, (0, 3, 1, 2))

    tc = _channel_tile(c, n)
    grid_bc = (b, c // tc)
    par2 = pltpu.CompilerParams(dimension_semantics=("parallel", "parallel"))

    # ---- fused DTCWT level-1 analysis + q2c ----
    ll, hp = pl.pallas_call(
        _analysis_kernel,
        out_shape=(jax.ShapeDtypeStruct((b, c, n, n), jnp.float32),
                   jax.ShapeDtypeStruct((b, c, 12, n2, n2), jnp.float32)),
        grid=grid_bc,
        in_specs=[pl.BlockSpec((1, tc, n, n), lambda bi, ci: (bi, ci, 0, 0)),
                  _fixed2((n, 2 * n)),
                  _fixed2((2 * n, n))],
        out_specs=(pl.BlockSpec((1, tc, n, n), lambda bi, ci: (bi, ci, 0, 0)),
                   pl.BlockSpec((1, tc, 12, n2, n2),
                                lambda bi, ci: (bi, ci, 0, 0, 0))),
        compiler_params=par2,
    )(x_nchw, params["Ra"], params["Ca"])

    # ---- per-head complex MLP on the high-pass coefficients ----
    # TODO(synk): the channels-last regroup (and its inverse) stays in XLA glue.
    m = b * 6 * n2 * n2
    xmlp = hp.reshape(b, c, 2, 6, n2, n2)
    xmlp = jnp.transpose(xmlp, (0, 3, 4, 5, 2, 1)).reshape(m, 2 * c)

    w1 = _complex_block_weight(params["complex_weight_lh_1"])
    w2 = _complex_block_weight(params["complex_weight_lh_2"])
    b1 = jnp.concatenate([params["complex_weight_lh_b1"][0].reshape(-1),
                          params["complex_weight_lh_b1"][1].reshape(-1)]).reshape(1, 2 * c)
    b2 = jnp.concatenate([params["complex_weight_lh_b2"][0].reshape(-1),
                          params["complex_weight_lh_b2"][1].reshape(-1)]).reshape(1, 2 * c)

    tm = _row_tile(m)
    out_mlp = pl.pallas_call(
        _complex_mlp_kernel,
        out_shape=jax.ShapeDtypeStruct((m, 2 * c), jnp.float32),
        grid=(m // tm,),
        in_specs=[pl.BlockSpec((tm, 2 * c), lambda i: (i, 0)),
                  _fixed1((2 * c, 2 * c)),
                  _fixed1((1, 2 * c)),
                  _fixed1((2 * c, 2 * c)),
                  _fixed1((1, 2 * c))],
        out_specs=pl.BlockSpec((tm, 2 * c), lambda i: (i, 0)),
        compiler_params=pltpu.CompilerParams(dimension_semantics=("parallel",)),
    )(xmlp, w1, b1, w2, b2)
    # softshrink(lambd=0.0) in the reference module is the identity and is skipped.

    # back to per-channel layout; lanes per (b, c, orientation, row) = [real | imag]
    hp_syn = out_mlp.reshape(b, 6, n2, n2, 2, c)
    hp_syn = jnp.transpose(hp_syn, (0, 5, 1, 2, 4, 3)).reshape(b, c, 6, n2, 2 * n2)

    # LL weight permuted to the even-first row/col order used internally
    perm = params["perm"]
    wll_p = params["complex_weight_ll"][:, perm][:, :, perm]

    # ---- fused c2q + DTCWT level-1 synthesis (with LL scaling folded in) ----
    y = pl.pallas_call(
        _synthesis_kernel,
        out_shape=jax.ShapeDtypeStruct((b, c, n, n), jnp.float32),
        grid=grid_bc,
        in_specs=[pl.BlockSpec((1, tc, n, n), lambda bi, ci: (bi, ci, 0, 0)),
                  pl.BlockSpec((tc, n, n), lambda bi, ci: (ci, 0, 0)),
                  pl.BlockSpec((1, tc, 6, n2, 2 * n2),
                               lambda bi, ci: (bi, ci, 0, 0, 0)),
                  _fixed2((n, n)),       # Gpc
                  _fixed2((n, n2)),      # G0e
                  _fixed2((n, n2)),      # G0o
                  _fixed2((n, n2)),      # G1e
                  _fixed2((n, n2)),      # G1o
                  _fixed2((n, n)),       # Rg0
                  _fixed2((n, n))],      # Rg1
        out_specs=pl.BlockSpec((1, tc, n, n), lambda bi, ci: (bi, ci, 0, 0)),
        compiler_params=par2,
    )(ll, wll_p, hp_syn, params["Gpc"], params["G0e"], params["G0o"],
      params["G1e"], params["G1o"], params["Rg0"], params["Rg1"])

    # TODO(synk): final NCHW->NHWC relayout + residual add could be folded into the
    # synthesis epilogue; kept as one fused XLA transpose+add pass.
    return x + jnp.transpose(y, (0, 2, 3, 1))


def init_params(key, dim, num_heads, feat_size):
    hd = dim // num_heads
    ks = jax.random.split(key, 5)
    params = {
        "complex_weight_ll": 0.02 * jax.random.normal(ks[0], (dim, feat_size, feat_size), jnp.float32),
        "complex_weight_lh_1": 0.02 * jax.random.normal(ks[1], (2, num_heads, hd, hd), jnp.float32),
        "complex_weight_lh_2": 0.02 * jax.random.normal(ks[2], (2, num_heads, hd, hd), jnp.float32),
        "complex_weight_lh_b1": 0.02 * jax.random.normal(ks[3], (2, num_heads, hd), jnp.float32),
        "complex_weight_lh_b2": 0.02 * jax.random.normal(ks[4], (2, num_heads, hd), jnp.float32),
    }
    ops = _wavelet_operators(feat_size)
    for k in ("Ra", "Ca", "Gpc", "G0e", "G0o", "G1e", "G1o", "Rg0", "Rg1"):
        params[k] = jnp.asarray(ops[k], jnp.float32)
    params["perm"] = jnp.asarray(ops["perm"], jnp.int32)
    return params


# ---------------------------------------------------------------------------
# Pure-JAX reference (mirrors the PyTorch module; used only for validation)
# ---------------------------------------------------------------------------
def reference_forward(x, params, dense_ops, num_heads):
    th0, th1, tg0, tg1 = (jnp.asarray(dense_ops[k], jnp.float32)
                          for k in ("Th0", "Th1", "Tg0", "Tg1"))
    b, hgt, wid, c = x.shape
    hd = c // num_heads
    h2, w2 = hgt // 2, wid // 2
    s = _SQRT2_INV
    rowf = lambda v, t: jnp.einsum('bchj,wj->bchw', v, t)
    colf = lambda v, t: jnp.einsum('bciw,hi->bchw', v, t)

    xn = jnp.transpose(x, (0, 3, 1, 2))
    lo = rowf(xn, th0)
    hi = rowf(xn, th1)
    ll = colf(lo, th0)
    lh = colf(lo, th1)
    hl = colf(hi, th0)
    hh = colf(hi, th1)

    def q2c(y):
        y = y * s
        a = y[:, :, 0::2, 0::2]
        bq = y[:, :, 0::2, 1::2]
        cq = y[:, :, 1::2, 0::2]
        d = y[:, :, 1::2, 1::2]
        return (a - d, bq + cq), (a + d, bq - cq)

    (d15r, d15i), (d165r, d165i) = q2c(lh)
    (d75r, d75i), (d105r, d105i) = q2c(hl)
    (d45r, d45i), (d135r, d135i) = q2c(hh)
    highr = jnp.stack([d15r, d45r, d75r, d105r, d135r, d165r], axis=2)
    highi = jnp.stack([d15i, d45i, d75i, d105i, d135i, d165i], axis=2)

    ll = ll * params["complex_weight_ll"][None]

    xr = jnp.transpose(highr, (0, 2, 3, 4, 1)).reshape(b, 6, h2, w2, num_heads, hd)
    xi = jnp.transpose(highi, (0, 2, 3, 4, 1)).reshape(b, 6, h2, w2, num_heads, hd)
    mult = lambda inp, wt: jnp.einsum('...bd,bdk->...bk', inp, wt)
    w1 = params["complex_weight_lh_1"]
    w2_ = params["complex_weight_lh_2"]
    b1 = params["complex_weight_lh_b1"]
    b2 = params["complex_weight_lh_b2"]
    r1 = jax.nn.relu(mult(xr, w1[0]) - mult(xi, w1[1]) + b1[0])
    i1 = jax.nn.relu(mult(xr, w1[1]) + mult(xi, w1[0]) + b1[1])
    r2 = mult(r1, w2_[0]) - mult(i1, w2_[1]) + b2[0]
    i2 = mult(r1, w2_[1]) + mult(i1, w2_[0]) + b2[1]
    hr2 = jnp.transpose(r2.reshape(b, 6, h2, w2, c), (0, 4, 1, 2, 3))
    hi2 = jnp.transpose(i2.reshape(b, 6, h2, w2, c), (0, 4, 1, 2, 3))

    def c2q(w1r, w1i, w2r, w2i):
        x1 = w1r + w2r
        x2 = w1i + w2i
        x3 = w1i - w2i
        x4 = w2r - w1r
        bb, cc, r_, c_ = w1r.shape
        y = jnp.zeros((bb, cc, 2 * r_, 2 * c_), w1r.dtype)
        y = y.at[:, :, ::2, ::2].set(x1)
        y = y.at[:, :, ::2, 1::2].set(x2)
        y = y.at[:, :, 1::2, ::2].set(x3)
        y = y.at[:, :, 1::2, 1::2].set(x4)
        return y * s

    lh2 = c2q(hr2[:, :, 0], hi2[:, :, 0], hr2[:, :, 5], hi2[:, :, 5])
    hl2 = c2q(hr2[:, :, 2], hi2[:, :, 2], hr2[:, :, 3], hi2[:, :, 3])
    hh2 = c2q(hr2[:, :, 1], hi2[:, :, 1], hr2[:, :, 4], hi2[:, :, 4])
    lo2 = colf(lh2, tg1) + colf(ll, tg0)
    hi_2 = colf(hh2, tg1) + colf(hl2, tg0)
    y = rowf(hi_2, tg1) + rowf(lo2, tg0)
    return x + jnp.transpose(y, (0, 2, 3, 1))


if __name__ == "__main__":
    B, H, W = 2, 16, 16
    dim, num_heads, feat_size = 32, 8, 16   # feat_size must equal spatial size (as in the module)

    key = jax.random.PRNGKey(0)
    kx, kp = jax.random.split(key)
    x = jax.random.normal(kx, (B, H, W, dim), jnp.float32)
    params = init_params(kp, dim, num_heads, feat_size)

    fwd = jax.jit(partial(dtcwt_module_forward, num_heads=num_heads))
    out = fwd(x, params)
    out = jax.block_until_ready(out)

    dense = _wavelet_operators(feat_size)
    ref_fn = jax.jit(partial(reference_forward, num_heads=num_heads))
    ref = jax.block_until_ready(ref_fn(x, params, dense))

    assert out.shape == (B, H, W, dim)
    assert bool(jnp.all(jnp.isfinite(out)))
    err = float(jnp.max(jnp.abs(out - ref)))
    assert err < 5e-4, f"mismatch vs pure-JAX reference: max abs err = {err}"
    print("KERNEL_OK")
</pallas_src>

<mosaic_0001>
module attributes {stable_mosaic.version = 11 : i64} {
  func.func @_analysis_kernel(%arg0: i32, %arg1: i32, %arg2: memref<1x32x16x16xf32, #tpu.memory_space<vmem>>, %arg3: memref<16x32xf32, #tpu.memory_space<vmem>>, %arg4: memref<32x16xf32, #tpu.memory_space<vmem>>, %arg5: memref<1x32x16x16xf32, #tpu.memory_space<vmem>>, %arg6: memref<1x32x12x8x8xf32, #tpu.memory_space<vmem>>) attributes {dimension_semantics = [#tpu.dimension_semantics<parallel>, #tpu.dimension_semantics<parallel>], iteration_bounds = array<i64: 2, 1>, scalar_prefetch = 0 : i64, scratch_operands = 0 : i64, tpu.core_type = #tpu.core_type<tc>, window_params = [{transform_indices = @transform_0, window_bounds = array<i64: 1, 32, 16, 16>}, {pipeline_mode = #tpu.pipeline_mode<synchronous>, transform_indices = @transform_1, window_bounds = array<i64: 16, 32>}, {pipeline_mode = #tpu.pipeline_mode<synchronous>, transform_indices = @transform_2, window_bounds = array<i64: 32, 16>}, {transform_indices = @transform_3, window_bounds = array<i64: 1, 32, 16, 16>}, {transform_indices = @transform_4, window_bounds = array<i64: 1, 32, 12, 8, 8>}]} {
    %c0 = arith.constant 0 : index
    %c0_0 = arith.constant 0 : index
    %c0_1 = arith.constant 0 : index
    %c0_2 = arith.constant 0 : index
    %0 = vector.load %arg2[%c0, %c0_0, %c0_1, %c0_2] : memref<1x32x16x16xf32, #tpu.memory_space<vmem>>, vector<1x32x16x16xf32>
    %1 = vector.shape_cast %0 : vector<1x32x16x16xf32> to vector<32x16x16xf32>
    %2 = vector.shape_cast %1 : vector<32x16x16xf32> to vector<512x16xf32>
    %c0_3 = arith.constant 0 : index
    %c0_4 = arith.constant 0 : index
    %3 = vector.load %arg3[%c0_3, %c0_4] : memref<16x32xf32, #tpu.memory_space<vmem>>, vector<16x32xf32>
    %cst = arith.constant dense<0.000000e+00> : vector<512x32xf32>
    %4 = tpu.matmul %2, %3, %cst {dimension_numbers = #tpu.dot_dimension_numbers<[1], [0], [0], [1], [0, 0, 1, 1], [], []>} : vector<512x16xf32>, vector<16x32xf32>, vector<512x32xf32> -> vector<512x32xf32>
    %5 = vector.shape_cast %4 : vector<512x32xf32> to vector<32x16x32xf32>
    %c0_5 = arith.constant 0 : index
    %c0_6 = arith.constant 0 : index
    %6 = vector.load %arg4[%c0_5, %c0_6] : memref<32x16xf32, #tpu.memory_space<vmem>>, vector<32x16xf32>
    %7 = vector.shape_cast %6 : vector<32x16xf32> to vector<1x32x16xf32>
    %8 = vector.broadcast %7 : vector<1x32x16xf32> to vector<32x32x16xf32>
    "tpu.trace_start"() <{level = 10 : i32, message = "tph,thw->tpw"}> : () -> ()
    %cst_7 = arith.constant dense<0.000000e+00> : vector<32x32x32xf32>
    %9 = tpu.matmul %8, %5, %cst_7 {dimension_numbers = #tpu.dot_dimension_numbers<[2], [1], [1], [2], [0, 0, 0, 1, 1, 2], [0], [0]>} : vector<32x32x16xf32>, vector<32x16x32xf32>, vector<32x32x32xf32> -> vector<32x32x32xf32>
    "tpu.trace_stop"() : () -> ()
    %10 = vector.extract_strided_slice %9 {offsets = [0, 0, 0], sizes = [32, 16, 16], strides = [1, 1, 1]} : vector<32x32x32xf32> to vector<32x16x16xf32>
    %c0_8 = arith.constant 0 : index
    %c0_9 = arith.constant 0 : index
    %c0_10 = arith.constant 0 : index
    %c0_11 = arith.constant 0 : index
    %11 = vector.load %arg5[%c0_8, %c0_9, %c0_10, %c0_11] : memref<1x32x16x16xf32, #tpu.memory_space<vmem>>, vector<1x32x16x16xf32>
    %12 = vector.shape_cast %11 : vector<1x32x16x16xf32> to vector<32x16x16xf32>
    %13 = vector.shape_cast %10 : vector<32x16x16xf32> to vector<1x32x16x16xf32>
    tpu.vector_store %arg5[%c0_8, %c0_9, %c0_10, %c0_11], %13 {strides = array<i32>} : memref<1x32x16x16xf32, #tpu.memory_space<vmem>>, vector<1x32x16x16xf32>,
    %14 = vector.extract_strided_slice %9 {offsets = [0, 16, 0], sizes = [32, 8, 8], strides = [1, 1, 1]} : vector<32x32x32xf32> to vector<32x8x8xf32>
    %15 = vector.extract_strided_slice %9 {offsets = [0, 16, 8], sizes = [32, 8, 8], strides = [1, 1, 1]} : vector<32x32x32xf32> to vector<32x8x8xf32>
    %16 = vector.extract_strided_slice %9 {offsets = [0, 24, 0], sizes = [32, 8, 8], strides = [1, 1, 1]} : vector<32x32x32xf32> to vector<32x8x8xf32>
    %17 = vector.extract_strided_slice %9 {offsets = [0, 24, 8], sizes = [32, 8, 8], strides = [1, 1, 1]} : vector<32x32x32xf32> to vector<32x8x8xf32>
    %18 = arith.subf %14, %17 : vector<32x8x8xf32>
    %cst_12 = arith.constant 0.707106769 : f32
    %19 = vector.broadcast %cst_12 : f32 to vector<32x8x8xf32>
    %20 = arith.mulf %19, %18 : vector<32x8x8xf32>
    %c0_13 = arith.constant 0 : index
    %c0_14 = arith.constant 0 : index
    %c0_15 = arith.constant 0 : index
    %c0_16 = arith.constant 0 : index
    %c0_17 = arith.constant 0 : index
    %21 = vector.load %arg6[%c0_13, %c0_14, %c0_15, %c0_16, %c0_17] : memref<1x32x12x8x8xf32, #tpu.memory_space<vmem>>, vector<1x32x1x8x8xf32>
    %22 = vector.shape_cast %21 : vector<1x32x1x8x8xf32> to vector<32x8x8xf32>
    %23 = vector.shape_cast %20 : vector<32x8x8xf32> to vector<1x32x1x8x8xf32>
    tpu.vector_store %arg6[%c0_13, %c0_14, %c0_15, %c0_16, %c0_17], %23 {strides = array<i32>} : memref<1x32x12x8x8xf32, #tpu.memory_space<vmem>>, vector<1x32x1x8x8xf32>,
    %24 = arith.addf %15, %16 : vector<32x8x8xf32>
    %cst_18 = arith.constant 0.707106769 : f32
    %25 = vector.broadcast %cst_18 : f32 to vector<32x8x8xf32>
    %26 = arith.mulf %25, %24 : vector<32x8x8xf32>
    %c0_19 = arith.constant 0 : index
    %c0_20 = arith.constant 0 : index
    %c6 = arith.constant 6 : index
    %c0_21 = arith.constant 0 : index
    %c0_22 = arith.constant 0 : index
    %27 = vector.load %arg6[%c0_19, %c0_20, %c6, %c0_21, %c0_22] : memref<1x32x12x8x8xf32, #tpu.memory_space<vmem>>, vector<1x32x1x8x8xf32>
    %28 = vector.shape_cast %27 : vector<1x32x1x8x8xf32> to vector<32x8x8xf32>
    %29 = vector.shape_cast %26 : vector<32x8x8xf32> to vector<1x32x1x8x8xf32>
    tpu.vector_store %arg6[%c0_19, %c0_20, %c6, %c0_21, %c0_22], %29 {strides = array<i32>} : memref<1x32x12x8x8xf32, #tpu.memory_space<vmem>>, vector<1x32x1x8x8xf32>,
    %30 = arith.addf %14, %17 : vector<32x8x8xf32>
    %cst_23 = arith.constant 0.707106769 : f32
    %31 = vector.broadcast %cst_23 : f32 to vector<32x8x8xf32>
    %32 = arith.mulf %31, %30 : vector<32x8x8xf32>
    %c0_24 = arith.constant 0 : index
    %c0_25 = arith.constant 0 : index
    %c5 = arith.constant 5 : index
    %c0_26 = arith.constant 0 : index
    %c0_27 = arith.constant 0 : index
    %33 = vector.load %arg6[%c0_24, %c0_25, %c5, %c0_26, %c0_27] : memref<1x32x12x8x8xf32, #tpu.memory_space<vmem>>, vector<1x32x1x8x8xf32>
    %34 = vector.shape_cast %33 : vector<1x32x1x8x8xf32> to vector<32x8x8xf32>
    %35 = vector.shape_cast %32 : vector<32x8x8xf32> to vector<1x32x1x8x8xf32>
    tpu.vector_store %arg6[%c0_24, %c0_25, %c5, %c0_26, %c0_27], %35 {strides = array<i32>} : memref<1x32x12x8x8xf32, #tpu.memory_space<vmem>>, vector<1x32x1x8x8xf32>,
    %36 = arith.subf %15, %16 : vector<32x8x8xf32>
    %cst_28 = arith.constant 0.707106769 : f32
    %37 = vector.broadcast %cst_28 : f32 to vector<32x8x8xf32>
    %38 = arith.mulf %37, %36 : vector<32x8x8xf32>
    %c0_29 = arith.constant 0 : index
    %c0_30 = arith.constant 0 : index
    %c11 = arith.constant 11 : index
    %c0_31 = arith.constant 0 : index
    %c0_32 = arith.constant 0 : index
    %39 = vector.load %arg6[%c0_29, %c0_30, %c11, %c0_31, %c0_32] : memref<1x32x12x8x8xf32, #tpu.memory_space<vmem>>, vector<1x32x1x8x8xf32>
    %40 = vector.shape_cast %39 : vector<1x32x1x8x8xf32> to vector<32x8x8xf32>
    %41 = vector.shape_cast %38 : vector<32x8x8xf32> to vector<1x32x1x8x8xf32>
    tpu.vector_store %arg6[%c0_29, %c0_30, %c11, %c0_31, %c0_32], %41 {strides = array<i32>} : memref<1x32x12x8x8xf32, #tpu.memory_space<vmem>>, vector<1x32x1x8x8xf32>,
    %42 = vector.extract_strided_slice %9 {offsets = [0, 0, 16], sizes = [32, 8, 8], strides = [1, 1, 1]} : vector<32x32x32xf32> to vector<32x8x8xf32>
    %43 = vector.extract_strided_slice %9 {offsets = [0, 0, 24], sizes = [32, 8, 8], strides = [1, 1, 1]} : vector<32x32x32xf32> to vector<32x8x8xf32>
    %44 = vector.extract_strided_slice %9 {offsets = [0, 8, 16], sizes = [32, 8, 8], strides = [1, 1, 1]} : vector<32x32x32xf32> to vector<32x8x8xf32>
    %45 = vector.extract_strided_slice %9 {offsets = [0, 8, 24], sizes = [32, 8, 8], strides = [1, 1, 1]} : vector<32x32x32xf32> to vector<32x8x8xf32>
    %46 = arith.subf %42, %45 : vector<32x8x8xf32>
    %cst_33 = arith.constant 0.707106769 : f32
    %47 = vector.broadcast %cst_33 : f32 to vector<32x8x8xf32>
    %48 = arith.mulf %47, %46 : vector<32x8x8xf32>
    %c0_34 = arith.constant 0 : index
    %c0_35 = arith.constant 0 : index
    %c2 = arith.constant 2 : index
    %c0_36 = arith.constant 0 : index
    %c0_37 = arith.constant 0 : index
    %49 = vector.load %arg6[%c0_34, %c0_35, %c2, %c0_36, %c0_37] : memref<1x32x12x8x8xf32, #tpu.memory_space<vmem>>, vector<1x32x1x8x8xf32>
    %50 = vector.shape_cast %49 : vector<1x32x1x8x8xf32> to vector<32x8x8xf32>
    %51 = vector.shape_cast %48 : vector<32x8x8xf32> to vector<1x32x1x8x8xf32>
    tpu.vector_store %arg6[%c0_34, %c0_35, %c2, %c0_36, %c0_37], %51 {strides = array<i32>} : memref<1x32x12x8x8xf32, #tpu.memory_space<vmem>>, vector<1x32x1x8x8xf32>,
    %52 = arith.addf %43, %44 : vector<32x8x8xf32>
    %cst_38 = arith.constant 0.707106769 : f32
    %53 = vector.broadcast %cst_38 : f32 to vector<32x8x8xf32>
    %54 = arith.mulf %53, %52 : vector<32x8x8xf32>
    %c0_39 = arith.constant 0 : index
    %c0_40 = arith.constant 0 : index
    %c8 = arith.constant 8 : index
    %c0_41 = arith.constant 0 : index
    %c0_42 = arith.constant 0 : index
    %55 = vector.load %arg6[%c0_39, %c0_40, %c8, %c0_41, %c0_42] : memref<1x32x12x8x8xf32, #tpu.memory_space<vmem>>, vector<1x32x1x8x8xf32>
    %56 = vector.shape_cast %55 : vector<1x32x1x8x8xf32> to vector<32x8x8xf32>
    %57 = vector.shape_cast %54 : vector<32x8x8xf32> to vector<1x32x1x8x8xf32>
    tpu.vector_store %arg6[%c0_39, %c0_40, %c8, %c0_41, %c0_42], %57 {strides = array<i32>} : memref<1x32x12x8x8xf32, #tpu.memory_space<vmem>>, vector<1x32x1x8x8xf32>,
    %58 = arith.addf %42, %45 : vector<32x8x8xf32>
    %cst_43 = arith.constant 0.707106769 : f32
    %59 = vector.broadcast %cst_43 : f32 to vector<32x8x8xf32>
    %60 = arith.mulf %59, %58 : vector<32x8x8xf32>
    %c0_44 = arith.constant 0 : index
    %c0_45 = arith.constant 0 : index
    %c3 = arith.constant 3 : index
    %c0_46 = arith.constant 0 : index
    %c0_47 = arith.constant 0 : index
    %61 = vector.load %arg6[%c0_44, %c0_45, %c3, %c0_46, %c0_47] : memref<1x32x12x8x8xf32, #tpu.memory_space<vmem>>, vector<1x32x1x8x8xf32>
    %62 = vector.shape_cast %61 : vector<1x32x1x8x8xf32> to vector<32x8x8xf32>
    %63 = vector.shape_cast %60 : vector<32x8x8xf32> to vector<1x32x1x8x8xf32>
    tpu.vector_store %arg6[%c0_44, %c0_45, %c3, %c0_46, %c0_47], %63 {strides = array<i32>} : memref<1x32x12x8x8xf32, #tpu.memory_space<vmem>>, vector<1x32x1x8x8xf32>,
    %64 = arith.subf %43, %44 : vector<32x8x8xf32>
    %cst_48 = arith.constant 0.707106769 : f32
    %65 = vector.broadcast %cst_48 : f32 to vector<32x8x8xf32>
    %66 = arith.mulf %65, %64 : vector<32x8x8xf32>
    %c0_49 = arith.constant 0 : index
    %c0_50 = arith.constant 0 : index
    %c9 = arith.constant 9 : index
    %c0_51 = arith.constant 0 : index
    %c0_52 = arith.constant 0 : index
    %67 = vector.load %arg6[%c0_49, %c0_50, %c9, %c0_51, %c0_52] : memref<1x32x12x8x8xf32, #tpu.memory_space<vmem>>, vector<1x32x1x8x8xf32>
    %68 = vector.shape_cast %67 : vector<1x32x1x8x8xf32> to vector<32x8x8xf32>
    %69 = vector.shape_cast %66 : vector<32x8x8xf32> to vector<1x32x1x8x8xf32>
    tpu.vector_store %arg6[%c0_49, %c0_50, %c9, %c0_51, %c0_52], %69 {strides = array<i32>} : memref<1x32x12x8x8xf32, #tpu.memory_space<vmem>>, vector<1x32x1x8x8xf32>,
    %70 = vector.extract_strided_slice %9 {offsets = [0, 16, 16], sizes = [32, 8, 8], strides = [1, 1, 1]} : vector<32x32x32xf32> to vector<32x8x8xf32>
    %71 = vector.extract_strided_slice %9 {offsets = [0, 16, 24], sizes = [32, 8, 8], strides = [1, 1, 1]} : vector<32x32x32xf32> to vector<32x8x8xf32>
    %72 = vector.extract_strided_slice %9 {offsets = [0, 24, 16], sizes = [32, 8, 8], strides = [1, 1, 1]} : vector<32x32x32xf32> to vector<32x8x8xf32>
    %73 = vector.extract_strided_slice %9 {offsets = [0, 24, 24], sizes = [32, 8, 8], strides = [1, 1, 1]} : vector<32x32x32xf32> to vector<32x8x8xf32>
    %74 = arith.subf %70, %73 : vector<32x8x8xf32>
    %cst_53 = arith.constant 0.707106769 : f32
    %75 = vector.broadcast %cst_53 : f32 to vector<32x8x8xf32>
    %76 = arith.mulf %75, %74 : vector<32x8x8xf32>
    %c0_54 = arith.constant 0 : index
    %c0_55 = arith.constant 0 : index
    %c1 = arith.constant 1 : index
    %c0_56 = arith.constant 0 : index
    %c0_57 = arith.constant 0 : index
    %77 = vector.load %arg6[%c0_54, %c0_55, %c1, %c0_56, %c0_57] : memref<1x32x12x8x8xf32, #tpu.memory_space<vmem>>, vector<1x32x1x8x8xf32>
    %78 = vector.shape_cast %77 : vector<1x32x1x8x8xf32> to vector<32x8x8xf32>
    %79 = vector.shape_cast %76 : vector<32x8x8xf32> to vector<1x32x1x8x8xf32>
    tpu.vector_store %arg6[%c0_54, %c0_55, %c1, %c0_56, %c0_57], %79 {strides = array<i32>} : memref<1x32x12x8x8xf32, #tpu.memory_space<vmem>>, vector<1x32x1x8x8xf32>,
    %80 = arith.addf %71, %72 : vector<32x8x8xf32>
    %cst_58 = arith.constant 0.707106769 : f32
    %81 = vector.broadcast %cst_58 : f32 to vector<32x8x8xf32>
    %82 = arith.mulf %81, %80 : vector<32x8x8xf32>
    %c0_59 = arith.constant 0 : index
    %c0_60 = arith.constant 0 : index
    %c7 = arith.constant 7 : index
    %c0_61 = arith.constant 0 : index
    %c0_62 = arith.constant 0 : index
    %83 = vector.load %arg6[%c0_59, %c0_60, %c7, %c0_61, %c0_62] : memref<1x32x12x8x8xf32, #tpu.memory_space<vmem>>, vector<1x32x1x8x8xf32>
    %84 = vector.shape_cast %83 : vector<1x32x1x8x8xf32> to vector<32x8x8xf32>
    %85 = vector.shape_cast %82 : vector<32x8x8xf32> to vector<1x32x1x8x8xf32>
    tpu.vector_store %arg6[%c0_59, %c0_60, %c7, %c0_61, %c0_62], %85 {strides = array<i32>} : memref<1x32x12x8x8xf32, #tpu.memory_space<vmem>>, vector<1x32x1x8x8xf32>,
    %86 = arith.addf %70, %73 : vector<32x8x8xf32>
    %cst_63 = arith.constant 0.707106769 : f32
    %87 = vector.broadcast %cst_63 : f32 to vector<32x8x8xf32>
    %88 = arith.mulf %87, %86 : vector<32x8x8xf32>
    %c0_64 = arith.constant 0 : index
    %c0_65 = arith.constant 0 : index
    %c4 = arith.constant 4 : index
    %c0_66 = arith.constant 0 : index
    %c0_67 = arith.constant 0 : index
    %89 = vector.load %arg6[%c0_64, %c0_65, %c4, %c0_66, %c0_67] : memref<1x32x12x8x8xf32, #tpu.memory_space<vmem>>, vector<1x32x1x8x8xf32>
    %90 = vector.shape_cast %89 : vector<1x32x1x8x8xf32> to vector<32x8x8xf32>
    %91 = vector.shape_cast %88 : vector<32x8x8xf32> to vector<1x32x1x8x8xf32>
    tpu.vector_store %arg6[%c0_64, %c0_65, %c4, %c0_66, %c0_67], %91 {strides = array<i32>} : memref<1x32x12x8x8xf32, #tpu.memory_space<vmem>>, vector<1x32x1x8x8xf32>,
    %92 = arith.subf %71, %72 : vector<32x8x8xf32>
    %cst_68 = arith.constant 0.707106769 : f32
    %93 = vector.broadcast %cst_68 : f32 to vector<32x8x8xf32>
    %94 = arith.mulf %93, %92 : vector<32x8x8xf32>
    %c0_69 = arith.constant 0 : index
    %c0_70 = arith.constant 0 : index
    %c10 = arith.constant 10 : index
    %c0_71 = arith.constant 0 : index
    %c0_72 = arith.constant 0 : index
    %95 = vector.load %arg6[%c0_69, %c0_70, %c10, %c0_71, %c0_72] : memref<1x32x12x8x8xf32, #tpu.memory_space<vmem>>, vector<1x32x1x8x8xf32>
    %96 = vector.shape_cast %95 : vector<1x32x1x8x8xf32> to vector<32x8x8xf32>
    %97 = vector.shape_cast %94 : vector<32x8x8xf32> to vector<1x32x1x8x8xf32>
    tpu.vector_store %arg6[%c0_69, %c0_70, %c10, %c0_71, %c0_72], %97 {strides = array<i32>} : memref<1x32x12x8x8xf32, #tpu.memory_space<vmem>>, vector<1x32x1x8x8xf32>,
    return
  }
  func.func @transform_0(%arg0: i32, %arg1: i32) -> (i32, i32, i32, i32) {
    %c0_i32 = arith.constant 0 : i32
    %c0_i32_0 = arith.constant 0 : i32
    %c0_i32_1 = arith.constant 0 : i32
    return %arg0, %arg1, %c0_i32, %c0_i32_0 : i32, i32, i32, i32
  }
  func.func @transform_1(%arg0: i32, %arg1: i32) -> (i32, i32) {
    %c0_i32 = arith.constant 0 : i32
    %c0_i32_0 = arith.constant 0 : i32
    %c0_i32_1 = arith.constant 0 : i32
    return %c0_i32, %c0_i32_0 : i32, i32
  }
  func.func @transform_2(%arg0: i32, %arg1: i32) -> (i32, i32) {
    %c0_i32 = arith.constant 0 : i32
    %c0_i32_0 = arith.constant 0 : i32
    %c0_i32_1 = arith.constant 0 : i32
    return %c0_i32, %c0_i32_0 : i32, i32
  }
  func.func @transform_3(%arg0: i32, %arg1: i32) -> (i32, i32, i32, i32) {
    %c0_i32 = arith.constant 0 : i32
    %c0_i32_0 = arith.constant 0 : i32
    %c0_i32_1 = arith.constant 0 : i32
    return %arg0, %arg1, %c0_i32, %c0_i32_0 : i32, i32, i32, i32
  }
  func.func @transform_4(%arg0: i32, %arg1: i32) -> (i32, i32, i32, i32, i32) {
    %c0_i32 = arith.constant 0 : i32
    %c0_i32_0 = arith.constant 0 : i32
    %c0_i32_1 = arith.constant 0 : i32
    %c0_i32_2 = arith.constant 0 : i32
    return %arg0, %arg1, %c0_i32, %c0_i32_0, %c0_i32_1 : i32, i32, i32, i32, i32
  }
}

module attributes {stable_mosaic.version = 11 : i64} {
  func.func @_complex_mlp_kernel(%arg0: i32, %arg1: memref<256x64xf32, #tpu.memory_space<vmem>>, %arg2: memref<64x64xf32, #tpu.memory_space<vmem>>, %arg3: memref<1x64xf32, #tpu.memory_space<vmem>>, %arg4: memref<64x64xf32, #tpu.memory_space<vmem>>, %arg5: memref<1x64xf32, #tpu.memory_space<vmem>>, %arg6: memref<256x64xf32, #tpu.memory_space<vmem>>) attributes {dimension_semantics = [#tpu.dimension_semantics<parallel>], iteration_bounds = array<i64: 3>, scalar_prefetch = 0 : i64, scratch_operands = 0 : i64, tpu.core_type = #tpu.core_type<tc>, window_params = [{transform_indices = @transform_0, window_bounds = array<i64: 256, 64>}, {pipeline_mode = #tpu.pipeline_mode<synchronous>, transform_indices = @transform_1, window_bounds = array<i64: 64, 64>}, {pipeline_mode = #tpu.pipeline_mode<synchronous>, transform_indices = @transform_2, window_bounds = array<i64: 1, 64>}, {pipeline_mode = #tpu.pipeline_mode<synchronous>, transform_indices = @transform_3, window_bounds = array<i64: 64, 64>}, {pipeline_mode = #tpu.pipeline_mode<synchronous>, transform_indices = @transform_4, window_bounds = array<i64: 1, 64>}, {transform_indices = @transform_5, window_bounds = array<i64: 256, 64>}]} {
    %c0 = arith.constant 0 : index
    %c0_0 = arith.constant 0 : index
    %0 = vector.load %arg1[%c0, %c0_0] : memref<256x64xf32, #tpu.memory_space<vmem>>, vector<256x64xf32>
    %c0_1 = arith.constant 0 : index
    %c0_2 = arith.constant 0 : index
    %1 = vector.load %arg2[%c0_1, %c0_2] : memref<64x64xf32, #tpu.memory_space<vmem>>, vector<64x64xf32>
    %cst = arith.constant dense<0.000000e+00> : vector<256x64xf32>
    %2 = tpu.matmul %0, %1, %cst {dimension_numbers = #tpu.dot_dimension_numbers<[1], [0], [0], [1], [0, 0, 1, 1], [], []>} : vector<256x64xf32>, vector<64x64xf32>, vector<256x64xf32> -> vector<256x64xf32>
    %c0_3 = arith.constant 0 : index
    %c0_4 = arith.constant 0 : index
    %3 = vector.load %arg3[%c0_3, %c0_4] : memref<1x64xf32, #tpu.memory_space<vmem>>, vector<1x64xf32>
    %4 = vector.broadcast %3 : vector<1x64xf32> to vector<256x64xf32>
    %5 = arith.addf %2, %4 : vector<256x64xf32>
    %cst_5 = arith.constant 0.000000e+00 : f32
    %6 = vector.broadcast %cst_5 : f32 to vector<256x64xf32>
    %7 = arith.maximumf %5, %6 : vector<256x64xf32>
    %c0_6 = arith.constant 0 : index
    %c0_7 = arith.constant 0 : index
    %8 = vector.load %arg4[%c0_6, %c0_7] : memref<64x64xf32, #tpu.memory_space<vmem>>, vector<64x64xf32>
    %cst_8 = arith.constant dense<0.000000e+00> : vector<256x64xf32>
    %9 = tpu.matmul %7, %8, %cst_8 {dimension_numbers = #tpu.dot_dimension_numbers<[1], [0], [0], [1], [0, 0, 1, 1], [], []>} : vector<256x64xf32>, vector<64x64xf32>, vector<256x64xf32> -> vector<256x64xf32>
    %c0_9 = arith.constant 0 : index
    %c0_10 = arith.constant 0 : index
    %10 = vector.load %arg5[%c0_9, %c0_10] : memref<1x64xf32, #tpu.memory_space<vmem>>, vector<1x64xf32>
    %11 = vector.broadcast %10 : vector<1x64xf32> to vector<256x64xf32>
    %12 = arith.addf %9, %11 : vector<256x64xf32>
    %c0_11 = arith.constant 0 : index
    %c0_12 = arith.constant 0 : index
    %13 = vector.load %arg6[%c0_11, %c0_12] : memref<256x64xf32, #tpu.memory_space<vmem>>, vector<256x64xf32>
    tpu.vector_store %arg6[%c0_11, %c0_12], %12 {strides = array<i32>} : memref<256x64xf32, #tpu.memory_space<vmem>>, vector<256x64xf32>,
    return
  }
  func.func @transform_0(%arg0: i32) -> (i32, i32) {
    %c0_i32 = arith.constant 0 : i32
    %c0_i32_0 = arith.constant 0 : i32
    return %arg0, %c0_i32 : i32, i32
  }
  func.func @transform_1(%arg0: i32) -> (i32, i32) {
    %c0_i32 = arith.constant 0 : i32
    %c0_i32_0 = arith.constant 0 : i32
    %c0_i32_1 = arith.constant 0 : i32
    return %c0_i32, %c0_i32_0 : i32, i32
  }
  func.func @transform_2(%arg0: i32) -> (i32, i32) {
    %c0_i32 = arith.constant 0 : i32
    %c0_i32_0 = arith.constant 0 : i32
    %c0_i32_1 = arith.constant 0 : i32
    return %c0_i32, %c0_i32_0 : i32, i32
  }
  func.func @transform_3(%arg0: i32) -> (i32, i32) {
    %c0_i32 = arith.constant 0 : i32
    %c0_i32_0 = arith.constant 0 : i32
    %c0_i32_1 = arith.constant 0 : i32
    return %c0_i32, %c0_i32_0 : i32, i32
  }
  func.func @transform_4(%arg0: i32) -> (i32, i32) {
    %c0_i32 = arith.constant 0 : i32
    %c0_i32_0 = arith.constant 0 : i32
    %c0_i32_1 = arith.constant 0 : i32
    return %c0_i32, %c0_i32_0 : i32, i32
  }
  func.func @transform_5(%arg0: i32) -> (i32, i32) {
    %c0_i32 = arith.constant 0 : i32
    %c0_i32_0 = arith.constant 0 : i32
    return %arg0, %c0_i32 : i32, i32
  }
}

module attributes {stable_mosaic.version = 11 : i64} {
  func.func @_synthesis_kernel(%arg0: i32, %arg1: i32, %arg2: memref<1x32x16x16xf32, #tpu.memory_space<vmem>>, %arg3: memref<32x16x16xf32, #tpu.memory_space<vmem>>, %arg4: memref<1x32x6x8x16xf32, #tpu.memory_space<vmem>>, %arg5: memref<16x16xf32, #tpu.memory_space<vmem>>, %arg6: memref<16x8xf32, #tpu.memory_space<vmem>>, %arg7: memref<16x8xf32, #tpu.memory_space<vmem>>, %arg8: memref<16x8xf32, #tpu.memory_space<vmem>>, %arg9: memref<16x8xf32, #tpu.memory_space<vmem>>, %arg10: memref<16x16xf32, #tpu.memory_space<vmem>>, %arg11: memref<16x16xf32, #tpu.memory_space<vmem>>, %arg12: memref<1x32x16x16xf32, #tpu.memory_space<vmem>>) attributes {dimension_semantics = [#tpu.dimension_semantics<parallel>, #tpu.dimension_semantics<parallel>], iteration_bounds = array<i64: 2, 1>, scalar_prefetch = 0 : i64, scratch_operands = 0 : i64, tpu.core_type = #tpu.core_type<tc>, window_params = [{transform_indices = @transform_0, window_bounds = array<i64: 1, 32, 16, 16>}, {transform_indices = @transform_1, window_bounds = array<i64: 32, 16, 16>}, {transform_indices = @transform_2, window_bounds = array<i64: 1, 32, 6, 8, 16>}, {pipeline_mode = #tpu.pipeline_mode<synchronous>, transform_indices = @transform_3, window_bounds = array<i64: 16, 16>}, {pipeline_mode = #tpu.pipeline_mode<synchronous>, transform_indices = @transform_4, window_bounds = array<i64: 16, 8>}, {pipeline_mode = #tpu.pipeline_mode<synchronous>, transform_indices = @transform_5, window_bounds = array<i64: 16, 8>}, {pipeline_mode = #tpu.pipeline_mode<synchronous>, transform_indices = @transform_6, window_bounds = array<i64: 16, 8>}, {pipeline_mode = #tpu.pipeline_mode<synchronous>, transform_indices = @transform_7, window_bounds = array<i64: 16, 8>}, {pipeline_mode = #tpu.pipeline_mode<synchronous>, transform_indices = @transform_8, window_bounds = array<i64: 16, 16>}, {pipeline_mode = #tpu.pipeline_mode<synchronous>, transform_indices = @transform_9, window_bounds = array<i64: 16, 16>}, {transform_indices = @transform_10, window_bounds = array<i64: 1, 32, 16, 16>}]} {
    %c0 = arith.constant 0 : index
    %c0_0 = arith.constant 0 : index
    %c0_1 = arith.constant 0 : index
    %c0_2 = arith.constant 0 : index
    %0 = vector.load %arg2[%c0, %c0_0, %c0_1, %c0_2] : memref<1x32x16x16xf32, #tpu.memory_space<vmem>>, vector<1x32x16x16xf32>
    %1 = vector.shape_cast %0 : vector<1x32x16x16xf32> to vector<32x16x16xf32>
    %c0_3 = arith.constant 0 : index
    %c0_4 = arith.constant 0 : index
    %c0_5 = arith.constant 0 : index
    %2 = vector.load %arg3[%c0_3, %c0_4, %c0_5] : memref<32x16x16xf32, #tpu.memory_space<vmem>>, vector<32x16x16xf32>
    %3 = arith.mulf %1, %2 : vector<32x16x16xf32>
    %c0_6 = arith.constant 0 : index
    %c0_7 = arith.constant 0 : index
    %c0_8 = arith.constant 0 : index
    %c0_9 = arith.constant 0 : index
    %c0_10 = arith.constant 0 : index
    %4 = vector.load %arg4[%c0_6, %c0_7, %c0_8, %c0_9, %c0_10] : memref<1x32x6x8x16xf32, #tpu.memory_space<vmem>>, vector<1x32x6x8x16xf32>
    %5 = vector.shape_cast %4 : vector<1x32x6x8x16xf32> to vector<32x6x8x16xf32>
    %6 = vector.extract_strided_slice %5 {offsets = [0, 0, 0, 0], sizes = [32, 1, 8, 16], strides = [1, 1, 1, 1]} : vector<32x6x8x16xf32> to vector<32x1x8x16xf32>
    %7 = vector.shape_cast %6 : vector<32x1x8x16xf32> to vector<32x8x16xf32>
    %8 = vector.extract_strided_slice %5 {offsets = [0, 5, 0, 0], sizes = [32, 1, 8, 16], strides = [1, 1, 1, 1]} : vector<32x6x8x16xf32> to vector<32x1x8x16xf32>
    %9 = vector.shape_cast %8 : vector<32x1x8x16xf32> to vector<32x8x16xf32>
    %10 = arith.addf %7, %9 : vector<32x8x16xf32>
    %11 = vector.extract_strided_slice %7 {offsets = [0, 0, 8], sizes = [32, 8, 8], strides = [1, 1, 1]} : vector<32x8x16xf32> to vector<32x8x8xf32>
    %12 = vector.extract_strided_slice %9 {offsets = [0, 0, 8], sizes = [32, 8, 8], strides = [1, 1, 1]} : vector<32x8x16xf32> to vector<32x8x8xf32>
    %13 = arith.subf %11, %12 : vector<32x8x8xf32>
    %14 = vector.extract_strided_slice %9 {offsets = [0, 0, 0], sizes = [32, 8, 8], strides = [1, 1, 1]} : vector<32x8x16xf32> to vector<32x8x8xf32>
    %15 = vector.extract_strided_slice %7 {offsets = [0, 0, 0], sizes = [32, 8, 8], strides = [1, 1, 1]} : vector<32x8x16xf32> to vector<32x8x8xf32>
    %16 = arith.subf %14, %15 : vector<32x8x8xf32>
    %17 = tpu.concatenate %13, %16 in 2 : vector<32x8x8xf32>, vector<32x8x8xf32> -> vector<32x8x16xf32>
    %18 = vector.extract_strided_slice %5 {offsets = [0, 2, 0, 0], sizes = [32, 1, 8, 16], strides = [1, 1, 1, 1]} : vector<32x6x8x16xf32> to vector<32x1x8x16xf32>
    %19 = vector.shape_cast %18 : vector<32x1x8x16xf32> to vector<32x8x16xf32>
    %20 = vector.extract_strided_slice %5 {offsets = [0, 3, 0, 0], sizes = [32, 1, 8, 16], strides = [1, 1, 1, 1]} : vector<32x6x8x16xf32> to vector<32x1x8x16xf32>
    %21 = vector.shape_cast %20 : vector<32x1x8x16xf32> to vector<32x8x16xf32>
    %22 = arith.addf %19, %21 : vector<32x8x16xf32>
    %23 = vector.extract_strided_slice %19 {offsets = [0, 0, 8], sizes = [32, 8, 8], strides = [1, 1, 1]} : vector<32x8x16xf32> to vector<32x8x8xf32>
    %24 = vector.extract_strided_slice %21 {offsets = [0, 0, 8], sizes = [32, 8, 8], strides = [1, 1, 1]} : vector<32x8x16xf32> to vector<32x8x8xf32>
    %25 = arith.subf %23, %24 : vector<32x8x8xf32>
    %26 = vector.extract_strided_slice %21 {offsets = [0, 0, 0], sizes = [32, 8, 8], strides = [1, 1, 1]} : vector<32x8x16xf32> to vector<32x8x8xf32>
    %27 = vector.extract_strided_slice %19 {offsets = [0, 0, 0], sizes = [32, 8, 8], strides = [1, 1, 1]} : vector<32x8x16xf32> to vector<32x8x8xf32>
    %28 = arith.subf %26, %27 : vector<32x8x8xf32>
    %29 = tpu.concatenate %25, %28 in 2 : vector<32x8x8xf32>, vector<32x8x8xf32> -> vector<32x8x16xf32>
    %30 = vector.extract_strided_slice %5 {offsets = [0, 1, 0, 0], sizes = [32, 1, 8, 16], strides = [1, 1, 1, 1]} : vector<32x6x8x16xf32> to vector<32x1x8x16xf32>
    %31 = vector.shape_cast %30 : vector<32x1x8x16xf32> to vector<32x8x16xf32>
    %32 = vector.extract_strided_slice %5 {offsets = [0, 4, 0, 0], sizes = [32, 1, 8, 16], strides = [1, 1, 1, 1]} : vector<32x6x8x16xf32> to vector<32x1x8x16xf32>
    %33 = vector.shape_cast %32 : vector<32x1x8x16xf32> to vector<32x8x16xf32>
    %34 = arith.addf %31, %33 : vector<32x8x16xf32>
    %35 = vector.extract_strided_slice %31 {offsets = [0, 0, 8], sizes = [32, 8, 8], strides = [1, 1, 1]} : vector<32x8x16xf32> to vector<32x8x8xf32>
    %36 = vector.extract_strided_slice %33 {offsets = [0, 0, 8], sizes = [32, 8, 8], strides = [1, 1, 1]} : vector<32x8x16xf32> to vector<32x8x8xf32>
    %37 = arith.subf %35, %36 : vector<32x8x8xf32>
    %38 = vector.extract_strided_slice %33 {offsets = [0, 0, 0], sizes = [32, 8, 8], strides = [1, 1, 1]} : vector<32x8x16xf32> to vector<32x8x8xf32>
    %39 = vector.extract_strided_slice %31 {offsets = [0, 0, 0], sizes = [32, 8, 8], strides = [1, 1, 1]} : vector<32x8x16xf32> to vector<32x8x8xf32>
    %40 = arith.subf %38, %39 : vector<32x8x8xf32>
    %41 = tpu.concatenate %37, %40 in 2 : vector<32x8x8xf32>, vector<32x8x8xf32> -> vector<32x8x16xf32>
    %c0_11 = arith.constant 0 : index
    %c0_12 = arith.constant 0 : index
    %42 = vector.load %arg5[%c0_11, %c0_12] : memref<16x16xf32, #tpu.memory_space<vmem>>, vector<16x16xf32>
    %43 = vector.shape_cast %42 : vector<16x16xf32> to vector<1x16x16xf32>
    %44 = vector.broadcast %43 : vector<1x16x16xf32> to vector<32x16x16xf32>
    "tpu.trace_start"() <{level = 10 : i32, message = "tph,thw->tpw"}> : () -> ()
    %cst = arith.constant dense<0.000000e+00> : vector<32x16x16xf32>
    %45 = tpu.matmul %44, %3, %cst {dimension_numbers = #tpu.dot_dimension_numbers<[2], [1], [1], [2], [0, 0, 0, 1, 1, 2], [0], [0]>} : vector<32x16x16xf32>, vector<32x16x16xf32>, vector<32x16x16xf32> -> vector<32x16x16xf32>
    "tpu.trace_stop"() : () -> ()
    %c0_13 = arith.constant 0 : index
    %c0_14 = arith.constant 0 : index
    %46 = vector.load %arg8[%c0_13, %c0_14] : memref<16x8xf32, #tpu.memory_space<vmem>>, vector<16x8xf32>
    %47 = vector.shape_cast %46 : vector<16x8xf32> to vector<1x16x8xf32>
    %48 = vector.broadcast %47 : vector<1x16x8xf32> to vector<32x16x8xf32>
    "tpu.trace_start"() <{level = 10 : i32, message = "tph,thw->tpw"}> : () -> ()
    %cst_15 = arith.constant dense<0.000000e+00> : vector<32x16x16xf32>
    %49 = tpu.matmul %48, %10, %cst_15 {dimension_numbers = #tpu.dot_dimension_numbers<[2], [1], [1], [2], [0, 0, 0, 1, 1, 2], [0], [0]>} : vector<32x16x8xf32>, vector<32x8x16xf32>, vector<32x16x16xf32> -> vector<32x16x16xf32>
    "tpu.trace_stop"() : () -> ()
    %50 = arith.addf %45, %49 : vector<32x16x16xf32>
    %c0_16 = arith.constant 0 : index
    %c0_17 = arith.constant 0 : index
    %51 = vector.load %arg9[%c0_16, %c0_17] : memref<16x8xf32, #tpu.memory_space<vmem>>, vector<16x8xf32>
    %52 = vector.shape_cast %51 : vector<16x8xf32> to vector<1x16x8xf32>
    %53 = vector.broadcast %52 : vector<1x16x8xf32> to vector<32x16x8xf32>
    "tpu.trace_start"() <{level = 10 : i32, message = "tph,thw->tpw"}> : () -> ()
    %cst_18 = arith.constant dense<0.000000e+00> : vector<32x16x16xf32>
    %54 = tpu.matmul %53, %17, %cst_18 {dimension_numbers = #tpu.dot_dimension_numbers<[2], [1], [1], [2], [0, 0, 0, 1, 1, 2], [0], [0]>} : vector<32x16x8xf32>, vector<32x8x16xf32>, vector<32x16x16xf32> -> vector<32x16x16xf32>
    "tpu.trace_stop"() : () -> ()
    %55 = arith.addf %50, %54 : vector<32x16x16xf32>
    %c0_19 = arith.constant 0 : index
    %c0_20 = arith.constant 0 : index
    %56 = vector.load %arg6[%c0_19, %c0_20] : memref<16x8xf32, #tpu.memory_space<vmem>>, vector<16x8xf32>
    %57 = vector.shape_cast %56 : vector<16x8xf32> to vector<1x16x8xf32>
    %58 = vector.broadcast %57 : vector<1x16x8xf32> to vector<32x16x8xf32>
    "tpu.trace_start"() <{level = 10 : i32, message = "tph,thw->tpw"}> : () -> ()
    %cst_21 = arith.constant dense<0.000000e+00> : vector<32x16x16xf32>
    %59 = tpu.matmul %58, %22, %cst_21 {dimension_numbers = #tpu.dot_dimension_numbers<[2], [1], [1], [2], [0, 0, 0, 1, 1, 2], [0], [0]>} : vector<32x16x8xf32>, vector<32x8x16xf32>, vector<32x16x16xf32> -> vector<32x16x16xf32>
    "tpu.trace_stop"() : () -> ()
    %c0_22 = arith.constant 0 : index
    %c0_23 = arith.constant 0 : index
    %60 = vector.load %arg7[%c0_22, %c0_23] : memref<16x8xf32, #tpu.memory_space<vmem>>, vector<16x8xf32>
    %61 = vector.shape_cast %60 : vector<16x8xf32> to vector<1x16x8xf32>
    %62 = vector.broadcast %61 : vector<1x16x8xf32> to vector<32x16x8xf32>
    "tpu.trace_start"() <{level = 10 : i32, message = "tph,thw->tpw"}> : () -> ()
    %cst_24 = arith.constant dense<0.000000e+00> : vector<32x16x16xf32>
    %63 = tpu.matmul %62, %29, %cst_24 {dimension_numbers = #tpu.dot_dimension_numbers<[2], [1], [1], [2], [0, 0, 0, 1, 1, 2], [0], [0]>} : vector<32x16x8xf32>, vector<32x8x16xf32>, vector<32x16x16xf32> -> vector<32x16x16xf32>
    "tpu.trace_stop"() : () -> ()
    %64 = arith.addf %59, %63 : vector<32x16x16xf32>
    %c0_25 = arith.constant 0 : index
    %c0_26 = arith.constant 0 : index
    %65 = vector.load %arg8[%c0_25, %c0_26] : memref<16x8xf32, #tpu.memory_space<vmem>>, vector<16x8xf32>
    %66 = vector.shape_cast %65 : vector<16x8xf32> to vector<1x16x8xf32>
    %67 = vector.broadcast %66 : vector<1x16x8xf32> to vector<32x16x8xf32>
    "tpu.trace_start"() <{level = 10 : i32, message = "tph,thw->tpw"}> : () -> ()
    %cst_27 = arith.constant dense<0.000000e+00> : vector<32x16x16xf32>
    %68 = tpu.matmul %67, %34, %cst_27 {dimension_numbers = #tpu.dot_dimension_numbers<[2], [1], [1], [2], [0, 0, 0, 1, 1, 2], [0], [0]>} : vector<32x16x8xf32>, vector<32x8x16xf32>, vector<32x16x16xf32> -> vector<32x16x16xf32>
    "tpu.trace_stop"() : () -> ()
    %69 = arith.addf %64, %68 : vector<32x16x16xf32>
    %c0_28 = arith.constant 0 : index
    %c0_29 = arith.constant 0 : index
    %70 = vector.load %arg9[%c0_28, %c0_29] : memref<16x8xf32, #tpu.memory_space<vmem>>, vector<16x8xf32>
    %71 = vector.shape_cast %70 : vector<16x8xf32> to vector<1x16x8xf32>
    %72 = vector.broadcast %71 : vector<1x16x8xf32> to vector<32x16x8xf32>
    "tpu.trace_start"() <{level = 10 : i32, message = "tph,thw->tpw"}> : () -> ()
    %cst_30 = arith.constant dense<0.000000e+00> : vector<32x16x16xf32>
    %73 = tpu.matmul %72, %41, %cst_30 {dimension_numbers = #tpu.dot_dimension_numbers<[2], [1], [1], [2], [0, 0, 0, 1, 1, 2], [0], [0]>} : vector<32x16x8xf32>, vector<32x8x16xf32>, vector<32x16x16xf32> -> vector<32x16x16xf32>
    "tpu.trace_stop"() : () -> ()
    %74 = arith.addf %69, %73 : vector<32x16x16xf32>
    %75 = vector.shape_cast %55 : vector<32x16x16xf32> to vector<512x16xf32>
    %c0_31 = arith.constant 0 : index
    %c0_32 = arith.constant 0 : index
    %76 = vector.load %arg10[%c0_31, %c0_32] : memref<16x16xf32, #tpu.memory_space<vmem>>, vector<16x16xf32>
    %cst_33 = arith.constant dense<0.000000e+00> : vector<512x16xf32>
    %77 = tpu.matmul %75, %76, %cst_33 {dimension_numbers = #tpu.dot_dimension_numbers<[1], [0], [0], [1], [0, 0, 1, 1], [], []>} : vector<512x16xf32>, vector<16x16xf32>, vector<512x16xf32> -> vector<512x16xf32>
    %78 = vector.shape_cast %74 : vector<32x16x16xf32> to vector<512x16xf32>
    %c0_34 = arith.constant 0 : index
    %c0_35 = arith.constant 0 : index
    %79 = vector.load %arg11[%c0_34, %c0_35] : memref<16x16xf32, #tpu.memory_space<vmem>>, vector<16x16xf32>
    %cst_36 = arith.constant dense<0.000000e+00> : vector<512x16xf32>
    %80 = tpu.matmul %78, %79, %cst_36 {dimension_numbers = #tpu.dot_dimension_numbers<[1], [0], [0], [1], [0, 0, 1, 1], [], []>} : vector<512x16xf32>, vector<16x16xf32>, vector<512x16xf32> -> vector<512x16xf32>
    %81 = arith.addf %77, %80 : vector<512x16xf32>
    %82 = vector.shape_cast %81 : vector<512x16xf32> to vector<32x16x16xf32>
    %c0_37 = arith.constant 0 : index
    %c0_38 = arith.constant 0 : index
    %c0_39 = arith.constant 0 : index
    %c0_40 = arith.constant 0 : index
    %83 = vector.load %arg12[%c0_37, %c0_38, %c0_39, %c0_40] : memref<1x32x16x16xf32, #tpu.memory_space<vmem>>, vector<1x32x16x16xf32>
    %84 = vector.shape_cast %83 : vector<1x32x16x16xf32> to vector<32x16x16xf32>
    %85 = vector.shape_cast %82 : vector<32x16x16xf32> to vector<1x32x16x16xf32>
    tpu.vector_store %arg12[%c0_37, %c0_38, %c0_39, %c0_40], %85 {strides = array<i32>} : memref<1x32x16x16xf32, #tpu.memory_space<vmem>>, vector<1x32x16x16xf32>,
    return
  }
  func.func @transform_0(%arg0: i32, %arg1: i32) -> (i32, i32, i32, i32) {
    %c0_i32 = arith.constant 0 : i32
    %c0_i32_0 = arith.constant 0 : i32
    %c0_i32_1 = arith.constant 0 : i32
    return %arg0, %arg1, %c0_i32, %c0_i32_0 : i32, i32, i32, i32
  }
  func.func @transform_1(%arg0: i32, %arg1: i32) -> (i32, i32, i32) {
    %c0_i32 = arith.constant 0 : i32
    %c0_i32_0 = arith.constant 0 : i32
    %c0_i32_1 = arith.constant 0 : i32
    return %arg1, %c0_i32, %c0_i32_0 : i32, i32, i32
  }
  func.func @transform_2(%arg0: i32, %arg1: i32) -> (i32, i32, i32, i32, i32) {
    %c0_i32 = arith.constant 0 : i32
    %c0_i32_0 = arith.constant 0 : i32
    %c0_i32_1 = arith.constant 0 : i32
    %c0_i32_2 = arith.constant 0 : i32
    return %arg0, %arg1, %c0_i32, %c0_i32_0, %c0_i32_1 : i32, i32, i32, i32, i32
  }
  func.func @transform_3(%arg0: i32, %arg1: i32) -> (i32, i32) {
    %c0_i32 = arith.constant 0 : i32
    %c0_i32_0 = arith.constant 0 : i32
    %c0_i32_1 = arith.constant 0 : i32
    return %c0_i32, %c0_i32_0 : i32, i32
  }
  func.func @transform_4(%arg0: i32, %arg1: i32) -> (i32, i32) {
    %c0_i32 = arith.constant 0 : i32
    %c0_i32_0 = arith.constant 0 : i32
    %c0_i32_1 = arith.constant 0 : i32
    return %c0_i32, %c0_i32_0 : i32, i32
  }
  func.func @transform_5(%arg0: i32, %arg1: i32) -> (i32, i32) {
    %c0_i32 = arith.constant 0 : i32
    %c0_i32_0 = arith.constant 0 : i32
    %c0_i32_1 = arith.constant 0 : i32
    return %c0_i32, %c0_i32_0 : i32, i32
  }
  func.func @transform_6(%arg0: i32, %arg1: i32) -> (i32, i32) {
    %c0_i32 = arith.constant 0 : i32
    %c0_i32_0 = arith.constant 0 : i32
    %c0_i32_1 = arith.constant 0 : i32
    return %c0_i32, %c0_i32_0 : i32, i32
  }
  func.func @transform_7(%arg0: i32, %arg1: i32) -> (i32, i32) {
    %c0_i32 = arith.constant 0 : i32
    %c0_i32_0 = arith.constant 0 : i32
    %c0_i32_1 = arith.constant 0 : i32
    return %c0_i32, %c0_i32_0 : i32, i32
  }
  func.func @transform_8(%arg0: i32, %arg1: i32) -> (i32, i32) {
    %c0_i32 = arith.constant 0 : i32
    %c0_i32_0 = arith.constant 0 : i32
    %c0_i32_1 = arith.constant 0 : i32
    return %c0_i32, %c0_i32_0 : i32, i32
  }
  func.func @transform_9(%arg0: i32, %arg1: i32) -> (i32, i32) {
    %c0_i32 = arith.constant 0 : i32
    %c0_i32_0 = arith.constant 0 : i32
    %c0_i32_1 = arith.constant 0 : i32
    return %c0_i32, %c0_i32_0 : i32, i32
  }
  func.func @transform_10(%arg0: i32, %arg1: i32) -> (i32, i32, i32, i32) {
    %c0_i32 = arith.constant 0 : i32
    %c0_i32_0 = arith.constant 0 : i32
    %c0_i32_1 = arith.constant 0 : i32
    return %arg0, %arg1, %c0_i32, %c0_i32_0 : i32, i32, i32, i32
  }
}

</mosaic_0001>

<bundles_post_ra>
// kernel: neg.2
= control target key start
LH: loop header
LB: loop body
LE: loop exit
PB: predicated region body
PF: predicated region fallthrough
CT: control target
= control target key end

     0   :  { %s72_s0 = inlined_call_operand.vmem [shape: f32[32,32], index: 0, kind: input, shape index: {}]   ;;  %s73_s1 = inlined_call_operand.vmem [shape: f32[32,32], index: 1, kind: output, shape index: {}]  }
   0x1   :  { %v2_v0 = vld [vmem:[%s72_s0] sm:$0xff]  ;;  %v32_v1 = vld [vmem:[%s72_s0 + $0x8] sm:$0xff]  ;;  %v34_v2 = vld [vmem:[%s72_s0 + $0x10] sm:$0xff] }
   0x2   :  { %v5_v3 = vxor.u32 2147483648, %v2_v0  ;;  %v12_v4 = vxor.u32 2147483648, %v32_v1  ;;  %v20_v5 = vxor.u32 2147483648, %v34_v2  ;;  %v36_v6 = vld [vmem:[%s72_s0 + $0x18] sm:$0xff] }
   0x3   :  { %v28_v7 = vxor.u32 2147483648, %v36_v6 }
   0x4   :  { %7 = vst [vmem:[%s73_s1] sm:$0xff] %v5_v3  ;;  %33 = vst [vmem:[%s73_s1 + $0x8] sm:$0xff] %v12_v4 }
   0x5   :  { %35 = vst [vmem:[%s73_s1 + $0x10] sm:$0xff] %v20_v5  ;;  %37 = vst [vmem:[%s73_s1 + $0x18] sm:$0xff] %v28_v7 }

// kernel: squeeze.12
= control target key start
LH: loop header
LB: loop body
LE: loop exit
PB: predicated region body
PF: predicated region fallthrough
CT: control target
= control target key end

     0   :  { %s67_s10 = smov 28   ;;  %s68_s11 = smov 20   ;;  %vm3_vm0 = vcmask 31744   ;;  %vm9_vm1 = vcmask 261344   ;;  %vm15_vm2 = vcmask 228544   ;;  %vm21_vm3 = vcmask 195744   ;;  %s111_s0 = inlined_call_operand.vmem [shape: f32[1,8,4], index: 0, kind: input, shape index: {}]   ;;  %s112_s1 = inlined_call_operand.vmem [shape: f32[32], index: 1, kind: output, shape index: {}]  }
   0x1   :  { %v53_v0 = vld [vmem:[%s111_s0 + $0x7] sm:$0x1]   ;;  %v55_v1 = vld [vmem:[%s111_s0 + $0x5] sm:$0x1]   ;;  %v54_v2 = vld [vmem:[%s111_s0 + $0x6] sm:$0x1]  }
   0x2   :  { %7 = vrot.lane.b32.xlu0 %v53_v0, %s67_s10  ;;  %19 = vrot.lane.b32.xlu1 %v55_v1, %s68_s11  ;;  %v56_v3 = vld [vmem:[%s111_s0 + $0x4] sm:$0x1]   ;;  %v2_v4 = vld [vmem:[%s111_s0] sm:$0x1]   ;;  %s69_s18 = smov 24   ;;  %s70_s19 = smov 16  }
   0x3   :  { %4 = vst.msk [vmem:[#allocation0] sm:$0x1] %vm3_vm0, %v2_v4   ;;  %v57_v5 = vld [vmem:[%s111_s0 + $0x3] sm:$0x1]   ;;  %v58_v6 = vld [vmem:[%s111_s0 + $0x2] sm:$0x1]  }
   0x4   :  { %s71_s24 = smov 12   ;;  %s72_s25 = smov 8   ;;  %v59_v7 = vld [vmem:[%s111_s0 + $0x1] sm:$0x1]   ;;  %vm27_vm4 = vcmask 162944   ;;  %vm33_vm5 = vcmask 130144  }
   0x5   :  { %s73_s0 = smov 4   ;;  %vm39_vm6 = vcmask 97344   ;;  %vm45_vm7 = vcmask 64544  }
   0x6   :  { %13 = vrot.lane.b32.xlu0 %v54_v2, %s69_s18  ;;  %25 = vrot.lane.b32.xlu1 %v56_v3, %s70_s19 }
   0xa   :  { %31 = vrot.lane.b32.xlu0 %v57_v5, %s71_s24  ;;  %37 = vrot.lane.b32.xlu1 %v58_v6, %s72_s25 }
   0xe   :  { %43 = vrot.lane.b32.xlu0 %v59_v7, %s73_s0 }
  0x74   :  { %v8_v8 = vpop.permute.xlu0 %7   ;;  %v20_v9 = vpop.permute.xlu1 %19  }
  0x75   :  { %10 = vst.msk [vmem:[#allocation0] sm:$0x1] %vm9_vm1, %v8_v8  }
  0x78   :  { %v14_v10 = vpop.permute.xlu0 %13   ;;  %v26_v11 = vpop.permute.xlu1 %25  }
  0x79   :  { %16 = vst.msk [vmem:[#allocation0] sm:$0x1] %vm15_vm2, %v14_v10  }
  0x7a   :  { %22 = vst.msk [vmem:[#allocation0] sm:$0x1] %vm21_vm3, %v20_v9  }
  0x7b   :  { %28 = vst.msk [vmem:[#allocation0] sm:$0x1] %vm27_vm4, %v26_v11  }
  0x7c   :  { %v32_v12 = vpop.permute.xlu0 %31   ;;  %v38_v13 = vpop.permute.xlu1 %37  }
  0x7d   :  { %34 = vst.msk [vmem:[#allocation0] sm:$0x1] %vm33_vm5, %v32_v12  }
  0x7e   :  { %40 = vst.msk [vmem:[#allocation0] sm:$0x1] %vm39_vm6, %v38_v13  }
  0x80   :  { %v44_v14 = vpop.permute.xlu0 %43  }
  0x81   :  { %46 = vst.msk [vmem:[#allocation0] sm:$0x1] %vm45_vm7, %v44_v14  }
  0x88   :  { %v50_v15 = vld [vmem:[#allocation0] sm:$0x1] }
  0x89   :  { %52 = vst [vmem:[%s112_s1] sm:$0x1] %v50_v15 }

// kernel: dtcwt_module_forward.4
= control target key start
LH: loop header
LB: loop body
LE: loop exit
PB: predicated region body
PF: predicated region fallthrough
CT: control target
= control target key end

     0   :  { %s1416_s18 = smov 0   ;;  %s1726_s0 = inlined_call_operand.vmem [shape: f32[768,64], index: 0, kind: input, shape index: {}]   ;;  %s1727_s1 = inlined_call_operand.vmem [shape: f32[64,64], index: 1, kind: input, shape index: {}]   ;;  %s1728_s2 = inlined_call_operand.vmem [shape: f32[1,64], index: 2, kind: input, shape index: {}]   ;;  %s1729_s3 = inlined_call_operand.vmem [shape: f32[64,64], index: 3, kind: input, shape index: {}]   ;;  %s1730_s4 = inlined_call_operand.vmem [shape: f32[1,64], index: 4, kind: input, shape index: {}]   ;;  %s1731_s5 = inlined_call_operand.vmem [shape: f32[768,64], index: 5, kind: output, shape index: {}]  }
   0x1 LB: > { %s1053_s19 = sadd.s32 4294967295, %s1384_s18   ;;  %p1057_p0 = scmp.ge.s32.totalorder %s1384_s18, 1  ;;  %s1384_s18 = sphi %s1416_s18, %s15_s18  }
   0x2   : > { %p188_p1 = scmp.lt.s32.totalorder %s1384_s18, 4 }
   0x4   : > { %p189_p2 = pnand %p1057_p0, %p188_p1 }
   0x5   : > { %v260_v0 = vld [vmem:[%s1727_s1] sm:$0xff] (!%p189_p2)  ;;  %v261_v1 = vld [vmem:[%s1727_s1 + $0x8] sm:$0xff] (!%p189_p2)  ;;  %v262_v2 = vld [vmem:[%s1727_s1 + $0x10] sm:$0xff] (!%p189_p2)  ;;  %s1058_s26 = sshll.u32 (!%p189_p2), %s1053_s19, 5  ;;  %vm275_vm0 = vcmask (!%p189_p2), 523264  }
   0x6   : > { %192 = sbr.rel (%p189_p2) target bundleno = 518 (0x206), region = 40  ;;  %v1338_v3 = vpack.c.bf16 (!%p189_p2), %v261_v1, %v260_v0  ;;  %v263_v4 = vld [vmem:[%s1727_s1 + $0x18] sm:$0xff] (!%p189_p2)  ;;  %p217_p3 = scmp.lt.s32.totalorder (!%p189_p2), %s1058_s26, 95  ;;  %v264_v6 = vld [vmem:[%s1727_s1 + $0x20] sm:$0xff] (!%p189_p2)  ;;  %v265_v7 = vld [vmem:[%s1727_s1 + $0x28] sm:$0xff] (!%p189_p2) }
   0x7   : > { %v1342_v5 = vpack.c.bf16 (!%p189_p2), %v263_v4, %v262_v2  ;;  %v629_v8 = vld [vmem:[%s1729_s3] sm:$0xff] (!%p189_p2)  ;;  %v630_v9 = vld [vmem:[%s1729_s3 + $0x8] sm:$0xff] (!%p189_p2)  ;;  %v631_v10 = vld [vmem:[%s1729_s3 + $0x10] sm:$0xff] (!%p189_p2)  ;;  %v1346_v13 = vpack.c.bf16 (!%p189_p2), %v265_v7, %v264_v6 }
   0x8   : > { %1339 = vmatprep.subr.bf16.mxu0 (!%p189_p2), %v1338_v3  ;;  %v632_v11 = vld [vmem:[%s1729_s3 + $0x18] sm:$0xff] (!%p189_p2)  ;;  %v1354_v12 = vpack.c.bf16 (!%p189_p2), %v630_v9, %v629_v8  ;;  %v633_v15 = vld [vmem:[%s1729_s3 + $0x20] sm:$0xff] (!%p189_p2)  ;;  %v634_v16 = vld [vmem:[%s1729_s3 + $0x28] sm:$0xff] (!%p189_p2) }
   0x9   : > { %1341 = vmatpush3.bf16.msra.mxu0 (!%p189_p2), %v1338_v3  ;;  %v1358_v14 = vpack.c.bf16 (!%p189_p2), %v632_v11, %v631_v10  ;;  %v266_v17 = vld [vmem:[%s1727_s1 + $0x30] sm:$0xff] (!%p189_p2)  ;;  %v267_v18 = vld [vmem:[%s1727_s1 + $0x38] sm:$0xff] (!%p189_p2)  ;;  %v1362_v20 = vpack.c.bf16 (!%p189_p2), %v634_v16, %v633_v15  ;;  %v1549_v56 = vld [vmem:[%s1728_s2] ss:$0 sm:$0xff] (!%p189_p2) }
   0xa   : > { %1343 = vmatprep.subr.bf16.mxu0 (!%p189_p2), %v1342_v5  ;;  %1355 = vmatprep.subr.bf16.mxu1 (!%p189_p2), %v1354_v12  ;;  %v1350_v21 = vpack.c.bf16 (!%p189_p2), %v267_v18, %v266_v17  ;;  %v635_v53 = vld [vmem:[%s1729_s3 + $0x30] sm:$0xff] (!%p189_p2)  ;;  %v636_v54 = vld [vmem:[%s1729_s3 + $0x38] sm:$0xff] (!%p189_p2) }
   0xb   : > { %1357 = vmatpush3.bf16.msra.mxu1 (!%p189_p2), %v1354_v12  ;;  %v1366_v55 = vpack.c.bf16 (!%p189_p2), %v636_v54, %v635_v53 }
   0xc   : > { %1359 = vmatprep.subr.bf16.mxu1 (!%p189_p2), %v1358_v14 }
   0xd   : > { %s1733_s26 = smov (!%p217_p3, %s1058_s26), 95  ;;  %1345 = vmatpush3.bf16.msra.mxu0 %v1342_v5 }
   0xe   : > { %s1059_s16 = sshll.u32 %s1733_s26, 3  ;;  %1347 = vmatprep.subr.bf16.mxu0 %v1346_v13 }
   0xf   : > { %s1474_s29 = scalar_lea.vmem %s1726_s0, %s1059_s16  ;;  %1361 = vmatpush3.bf16.msra.mxu1 %v1358_v14  ;;  %s1625_s15 = scalar_lea.vmem %s1731_s5, %s1059_s16 }
  0x10   : > { %v228_v19 = vld [vmem:[%s1474_s29] sm:$0xff]  ;;  %1363 = vmatprep.subr.bf16.mxu1 %v1362_v20  ;;  %v229_v22 = vld [vmem:[%s1474_s29 + $0x8] sm:$0xff]  ;;  %v230_v23 = vld [vmem:[%s1474_s29 + $0x10] sm:$0xff] }
  0x11   : > { %1226 = vmatprep.mubr.msk.f32.mxu0 %vm275_vm0, %v228_v19  ;;  %1349 = vmatpush3.bf16.msra.mxu0 %v1346_v13  ;;  %v231_v24 = vld [vmem:[%s1474_s29 + $0x18] sm:$0xff]  ;;  %v232_v25 = vld [vmem:[%s1474_s29 + $0x20] sm:$0xff]  ;;  %v233_v26 = vld [vmem:[%s1474_s29 + $0x28] sm:$0xff] }
  0x12   : > { %1351 = vmatprep.subr.bf16.mxu0 %v1350_v21  ;;  %v234_v27 = vld [vmem:[%s1474_s29 + $0x30] sm:$0xff]  ;;  %v235_v28 = vld [vmem:[%s1474_s29 + $0x38] sm:$0xff]  ;;  %v236_v29 = vld [vmem:[%s1474_s29 + $0x40] sm:$0xff] }
  0x13   : > { %1365 = vmatpush3.bf16.msra.mxu1 %v1362_v20  ;;  %v237_v30 = vld [vmem:[%s1474_s29 + $0x48] sm:$0xff]  ;;  %v238_v31 = vld [vmem:[%s1474_s29 + $0x50] sm:$0xff]  ;;  %v239_v32 = vld [vmem:[%s1474_s29 + $0x58] sm:$0xff] }
  0x14   : > { %v240_v33 = vld [vmem:[%s1474_s29 + $0x60] sm:$0xff]  ;;  %v241_v34 = vld [vmem:[%s1474_s29 + $0x68] sm:$0xff]  ;;  %v242_v35 = vld [vmem:[%s1474_s29 + $0x70] sm:$0xff]  ;;  %1367 = vmatprep.subr.bf16.mxu1 %v1366_v55 }
  0x15   : > { %1353 = vmatpush3.bf16.msra.mxu0 %v1350_v21  ;;  %v243_v36 = vld [vmem:[%s1474_s29 + $0x78] sm:$0xff]  ;;  %v244_v37 = vld [vmem:[%s1474_s29 + $0x80] sm:$0xff]  ;;  %v245_v38 = vld [vmem:[%s1474_s29 + $0x88] sm:$0xff] }
  0x16   : > { %v246_v39 = vld [vmem:[%s1474_s29 + $0x90] sm:$0xff]  ;;  %v247_v40 = vld [vmem:[%s1474_s29 + $0x98] sm:$0xff]  ;;  %v248_v41 = vld [vmem:[%s1474_s29 + $0xa0] sm:$0xff] }
  0x17   : > { %v249_v42 = vld [vmem:[%s1474_s29 + $0xa8] sm:$0xff]  ;;  %v250_v43 = vld [vmem:[%s1474_s29 + $0xb0] sm:$0xff]  ;;  %v251_v44 = vld [vmem:[%s1474_s29 + $0xb8] sm:$0xff]  ;;  %1369 = vmatpush3.bf16.msra.mxu1 %v1366_v55 }
  0x18   : > { %1227 = vmatmul.mubr.msk.f32.vlgmr.msra.gmra.mrb[0].mxu0 %vm275_vm0, %v229_v22  ;;  %v252_v45 = vld [vmem:[%s1474_s29 + $0xc0] sm:$0xff]  ;;  %v253_v46 = vld [vmem:[%s1474_s29 + $0xc8] sm:$0xff]  ;;  %v254_v47 = vld [vmem:[%s1474_s29 + $0xd0] sm:$0xff] }
  0x19   : > { %1229 = vmatprep.mubr.msk.f32.mxu0 %vm275_vm0, %v230_v23  ;;  %v255_v48 = vld [vmem:[%s1474_s29 + $0xd8] sm:$0xff]  ;;  %v256_v49 = vld [vmem:[%s1474_s29 + $0xe0] sm:$0xff]  ;;  %v257_v50 = vld [vmem:[%s1474_s29 + $0xe8] sm:$0xff] }
  0x1a   : > { %v258_v51 = vld [vmem:[%s1474_s29 + $0xf0] sm:$0xff]  ;;  %v259_v52 = vld [vmem:[%s1474_s29 + $0xf8] sm:$0xff] }
  0x1c   : > { %1230 = vmatmul.mubr.msk.f32.gmra.mrb[2].mxu0 %vm275_vm0, %v231_v24 }
  0x1d   : > { %1232 = vmatprep.mubr.msk.f32.mxu0 %vm275_vm0, %v232_v25 }
  0x20   : > { %1233 = vmatmul.mubr.msk.f32.gmra.mrb[4].mxu0 %vm275_vm0, %v233_v26 }
  0x21   : > { %1235 = vmatprep.mubr.msk.f32.mxu0 %vm275_vm0, %v234_v27 }
  0x24   : > { %1236 = vmatmul.mubr.msk.f32.gmra.mrb[6].mxu0 %vm275_vm0, %v235_v28 }
  0x25   : > { %1238 = vmatprep.mubr.msk.f32.mxu0 %vm275_vm0, %v236_v29 }
  0x28   : > { %1239 = vmatmul.mubr.msk.f32.gmra.mrb[8].mxu0 %vm275_vm0, %v237_v30 }
  0x29   : > { %1241 = vmatprep.mubr.msk.f32.mxu0 %vm275_vm0, %v238_v31 }
  0x2c   : > { %1242 = vmatmul.mubr.msk.f32.gmra.mrb[10].mxu0 %vm275_vm0, %v239_v32 }
  0x2d   : > { %1244 = vmatprep.mubr.msk.f32.mxu0 %vm275_vm0, %v240_v33 }
  0x30   : > { %1245 = vmatmul.mubr.msk.f32.gmra.mrb[12].mxu0 %vm275_vm0, %v241_v34 }
  0x31   : > { %1247 = vmatprep.mubr.msk.f32.mxu0 %vm275_vm0, %v242_v35 }
  0x34   : > { %1248 = vmatmul.mubr.msk.f32.gmra.mrb[14].mxu0 %vm275_vm0, %v243_v36 }
  0x35   : > { %1250 = vmatprep.mubr.msk.f32.mxu0 %vm275_vm0, %v244_v37 }
  0x38   : > { %1251 = vmatmul.mubr.msk.f32.gmra.mrb[16].mxu0 %vm275_vm0, %v245_v38 }
  0x39   : > { %1253 = vmatprep.mubr.msk.f32.mxu0 %vm275_vm0, %v246_v39 }
  0x3c   : > { %1254 = vmatmul.mubr.msk.f32.gmra.mrb[18].mxu0 %vm275_vm0, %v247_v40 }
  0x3d   : > { %1256 = vmatprep.mubr.msk.f32.mxu0 %vm275_vm0, %v248_v41 }
  0x40   : > { %1257 = vmatmul.mubr.msk.f32.gmra.mrb[20].mxu0 %vm275_vm0, %v249_v42 }
  0x41   : > { %1259 = vmatprep.mubr.msk.f32.mxu0 %vm275_vm0, %v250_v43 }
  0x44   : > { %1260 = vmatmul.mubr.msk.f32.gmra.mrb[22].mxu0 %vm275_vm0, %v251_v44 }
  0x45   : > { %1262 = vmatprep.mubr.msk.f32.mxu0 %vm275_vm0, %v252_v45 }
  0x48   : > { %1263 = vmatmul.mubr.msk.f32.gmra.mrb[24].mxu0 %vm275_vm0, %v253_v46 }
  0x49   : > { %1265 = vmatprep.mubr.msk.f32.mxu0 %vm275_vm0, %v254_v47 }
  0x4c   : > { %1266 = vmatmul.mubr.msk.f32.gmra.mrb[26].mxu0 %vm275_vm0, %v255_v48 }
  0x4d   : > { %1268 = vmatprep.mubr.msk.f32.mxu0 %vm275_vm0, %v256_v49 }
  0x50   : > { %1269 = vmatmul.mubr.msk.f32.gmra.mrb[28].mxu0 %vm275_vm0, %v257_v50 }
  0x51   : > { %1271 = vmatprep.mubr.msk.f32.mxu0 %vm275_vm0, %v258_v51 }
  0x54   : > { %1272 = vmatmul.mubr.msk.f32.gmra.mrb[30].mxu0 %vm275_vm0, %v259_v52 }
  0xeb   : > { %v1228_v57 = vpop.f32.mrb[0].mxu0 }
  0xec   : > { %v444_v58 = vadd.f32 %v1228_v57, %v1549_v56  ;;  %v438_v59 = vpop.f32.mrb[1].mxu0 }
  0xed   : > { %v439_v60 = vadd.f32 %v1549_v56, %v438_v59 }
  0xee   : > { %v598_v63 = vmax.f32 %v444_v58, 0.0 }
  0xef   : > { %v597_v61 = vmax.f32 %v439_v60, 0.0  ;;  %v1231_v62 = vpop.f32.mrb[2].mxu0 }
  0xf0   : > { %v454_v0 = vadd.f32 %v1231_v62, %v1549_v56  ;;  %v448_v1 = vpop.f32.mrb[3].mxu0 }
  0xf1   : > { %v449_v2 = vadd.f32 %v1549_v56, %v448_v1  ;;  %1290 = vmatprep.mubr.msk.f32.mxu1 %vm275_vm0, %v597_v61 }
  0xf2   : > { %1291 = vmatmul.mubr.msk.f32.vlgmr.msra.gmra.mrb[0].mxu1 %vm275_vm0, %v598_v63  ;;  %v600_v5 = vmax.f32 %v454_v0, 0.0 }
  0xf3   : > { %v599_v3 = vmax.f32 %v449_v2, 0.0  ;;  %v1234_v4 = vpop.f32.mrb[4].mxu0 }
  0xf4   : > { %v464_v6 = vadd.f32 %v1234_v4, %v1549_v56  ;;  %v458_v7 = vpop.f32.mrb[5].mxu0 }
  0xf5   : > { %v459_v8 = vadd.f32 %v1549_v56, %v458_v7  ;;  %1293 = vmatprep.mubr.msk.f32.mxu1 %vm275_vm0, %v599_v3 }
  0xf6   : > { %1294 = vmatmul.mubr.msk.f32.gmra.mrb[2].mxu1 %vm275_vm0, %v600_v5  ;;  %v602_v11 = vmax.f32 %v464_v6, 0.0 }
  0xf7   : > { %v601_v9 = vmax.f32 %v459_v8, 0.0  ;;  %v1237_v10 = vpop.f32.mrb[6].mxu0 }
  0xf8   : > { %v474_v12 = vadd.f32 %v1237_v10, %v1549_v56  ;;  %v468_v13 = vpop.f32.mrb[7].mxu0 }
  0xf9   : > { %v469_v14 = vadd.f32 %v1549_v56, %v468_v13  ;;  %1296 = vmatprep.mubr.msk.f32.mxu1 %vm275_vm0, %v601_v9 }
  0xfa   : > { %1297 = vmatmul.mubr.msk.f32.gmra.mrb[4].mxu1 %vm275_vm0, %v602_v11  ;;  %v604_v17 = vmax.f32 %v474_v12, 0.0 }
  0xfb   : > { %v603_v15 = vmax.f32 %v469_v14, 0.0  ;;  %v1240_v16 = vpop.f32.mrb[8].mxu0 }
  0xfc   : > { %v484_v18 = vadd.f32 %v1240_v16, %v1549_v56  ;;  %v478_v19 = vpop.f32.mrb[9].mxu0 }
  0xfd   : > { %v479_v20 = vadd.f32 %v1549_v56, %v478_v19  ;;  %1299 = vmatprep.mubr.msk.f32.mxu1 %vm275_vm0, %v603_v15 }
  0xfe   : > { %1300 = vmatmul.mubr.msk.f32.gmra.mrb[6].mxu1 %vm275_vm0, %v604_v17  ;;  %v606_v23 = vmax.f32 %v484_v18, 0.0 }
  0xff   : > { %v605_v21 = vmax.f32 %v479_v20, 0.0  ;;  %v1243_v22 = vpop.f32.mrb[10].mxu0 }
 0x100   : > { %v494_v24 = vadd.f32 %v1243_v22, %v1549_v56  ;;  %v488_v25 = vpop.f32.mrb[11].mxu0 }
 0x101   : > { %v489_v26 = vadd.f32 %v1549_v56, %v488_v25  ;;  %1302 = vmatprep.mubr.msk.f32.mxu1 %vm275_vm0, %v605_v21 }
 0x102   : > { %1303 = vmatmul.mubr.msk.f32.gmra.mrb[8].mxu1 %vm275_vm0, %v606_v23  ;;  %v608_v29 = vmax.f32 %v494_v24, 0.0 }
 0x103   : > { %v607_v27 = vmax.f32 %v489_v26, 0.0  ;;  %v1246_v28 = vpop.f32.mrb[12].mxu0  ;;  %v1618_v26 = vld [vmem:[%s1730_s4] ss:$0 sm:$0xff] }
 0x104   : > { %v504_v30 = vadd.f32 %v1246_v28, %v1549_v56  ;;  %v498_v31 = vpop.f32.mrb[13].mxu0 }
 0x105   : > { %v499_v32 = vadd.f32 %v1549_v56, %v498_v31  ;;  %1305 = vmatprep.mubr.msk.f32.mxu1 %vm275_vm0, %v607_v27 }
 0x106   : > { %1306 = vmatmul.mubr.msk.f32.gmra.mrb[10].mxu1 %vm275_vm0, %v608_v29  ;;  %v610_v35 = vmax.f32 %v504_v30, 0.0 }
 0x107   : > { %v609_v33 = vmax.f32 %v499_v32, 0.0  ;;  %v1249_v34 = vpop.f32.mrb[14].mxu0 }
 0x108   : > { %v514_v36 = vadd.f32 %v1249_v34, %v1549_v56  ;;  %v508_v37 = vpop.f32.mrb[15].mxu0 }
 0x109   : > { %v509_v38 = vadd.f32 %v1549_v56, %v508_v37  ;;  %1308 = vmatprep.mubr.msk.f32.mxu1 %vm275_vm0, %v609_v33 }
 0x10a   : > { %1309 = vmatmul.mubr.msk.f32.gmra.mrb[12].mxu1 %vm275_vm0, %v610_v35  ;;  %v612_v41 = vmax.f32 %v514_v36, 0.0 }
 0x10b   : > { %v611_v39 = vmax.f32 %v509_v38, 0.0  ;;  %v1252_v40 = vpop.f32.mrb[16].mxu0 }
 0x10c   : > { %v524_v42 = vadd.f32 %v1252_v40, %v1549_v56  ;;  %v518_v43 = vpop.f32.mrb[17].mxu0 }
 0x10d   : > { %v519_v44 = vadd.f32 %v1549_v56, %v518_v43  ;;  %1311 = vmatprep.mubr.msk.f32.mxu1 %vm275_vm0, %v611_v39 }
 0x10e   : > { %1312 = vmatmul.mubr.msk.f32.gmra.mrb[14].mxu1 %vm275_vm0, %v612_v41  ;;  %v614_v47 = vmax.f32 %v524_v42, 0.0 }
 0x10f   : > { %v613_v45 = vmax.f32 %v519_v44, 0.0  ;;  %v1255_v46 = vpop.f32.mrb[18].mxu0 }
 0x110   : > { %v534_v48 = vadd.f32 %v1255_v46, %v1549_v56  ;;  %v528_v49 = vpop.f32.mrb[19].mxu0 }
 0x111   : > { %v529_v50 = vadd.f32 %v1549_v56, %v528_v49  ;;  %1314 = vmatprep.mubr.msk.f32.mxu1 %vm275_vm0, %v613_v45 }
 0x112   : > { %1315 = vmatmul.mubr.msk.f32.gmra.mrb[16].mxu1 %vm275_vm0, %v614_v47  ;;  %v616_v53 = vmax.f32 %v534_v48, 0.0 }
 0x113   : > { %v615_v51 = vmax.f32 %v529_v50, 0.0  ;;  %v1258_v52 = vpop.f32.mrb[20].mxu0 }
 0x114   : > { %v544_v54 = vadd.f32 %v1258_v52, %v1549_v56  ;;  %v538_v55 = vpop.f32.mrb[21].mxu0 }
 0x115   : > { %v539_v57 = vadd.f32 %v1549_v56, %v538_v55  ;;  %1317 = vmatprep.mubr.msk.f32.mxu1 %vm275_vm0, %v615_v51 }
 0x116   : > { %1318 = vmatmul.mubr.msk.f32.gmra.mrb[18].mxu1 %vm275_vm0, %v616_v53  ;;  %v618_v60 = vmax.f32 %v544_v54, 0.0 }
 0x117   : > { %v617_v58 = vmax.f32 %v539_v57, 0.0  ;;  %v1261_v59 = vpop.f32.mrb[22].mxu0 }
 0x118   : > { %v554_v61 = vadd.f32 %v1261_v59, %v1549_v56  ;;  %v548_v62 = vpop.f32.mrb[23].mxu0 }
 0x119   : > { %v549_v63 = vadd.f32 %v1549_v56, %v548_v62  ;;  %1320 = vmatprep.mubr.msk.f32.mxu1 %vm275_vm0, %v617_v58 }
 0x11a   : > { %1321 = vmatmul.mubr.msk.f32.gmra.mrb[20].mxu1 %vm275_vm0, %v618_v60  ;;  %v620_v2 = vmax.f32 %v554_v61, 0.0 }
 0x11b   : > { %v619_v0 = vmax.f32 %v549_v63, 0.0  ;;  %v1264_v1 = vpop.f32.mrb[24].mxu0 }
 0x11c   : > { %v564_v3 = vadd.f32 %v1264_v1, %v1549_v56  ;;  %v558_v4 = vpop.f32.mrb[25].mxu0 }
 0x11d   : > { %v559_v5 = vadd.f32 %v1549_v56, %v558_v4  ;;  %1323 = vmatprep.mubr.msk.f32.mxu1 %vm275_vm0, %v619_v0 }
 0x11e   : > { %1324 = vmatmul.mubr.msk.f32.gmra.mrb[22].mxu1 %vm275_vm0, %v620_v2  ;;  %v622_v8 = vmax.f32 %v564_v3, 0.0 }
 0x11f   : > { %v621_v6 = vmax.f32 %v559_v5, 0.0  ;;  %v1267_v7 = vpop.f32.mrb[26].mxu0 }
 0x120   : > { %v574_v9 = vadd.f32 %v1267_v7, %v1549_v56  ;;  %v568_v10 = vpop.f32.mrb[27].mxu0 }
 0x121   : > { %v569_v11 = vadd.f32 %v1549_v56, %v568_v10  ;;  %1326 = vmatprep.mubr.msk.f32.mxu1 %vm275_vm0, %v621_v6 }
 0x122   : > { %1327 = vmatmul.mubr.msk.f32.gmra.mrb[24].mxu1 %vm275_vm0, %v622_v8  ;;  %v624_v14 = vmax.f32 %v574_v9, 0.0 }
 0x123   : > { %v623_v12 = vmax.f32 %v569_v11, 0.0  ;;  %v1270_v13 = vpop.f32.mrb[28].mxu0 }
 0x124   : > { %v584_v15 = vadd.f32 %v1270_v13, %v1549_v56  ;;  %v578_v16 = vpop.f32.mrb[29].mxu0 }
 0x125   : > { %v579_v17 = vadd.f32 %v1549_v56, %v578_v16  ;;  %1329 = vmatprep.mubr.msk.f32.mxu1 %vm275_vm0, %v623_v12 }
 0x126   : > { %1330 = vmatmul.mubr.msk.f32.gmra.mrb[26].mxu1 %vm275_vm0, %v624_v14  ;;  %v626_v20 = vmax.f32 %v584_v15, 0.0 }
 0x127   : > { %v625_v18 = vmax.f32 %v579_v17, 0.0  ;;  %v1273_v19 = vpop.f32.mrb[30].mxu0 }
 0x128   : > { %v594_v21 = vadd.f32 %v1273_v19, %v1549_v56  ;;  %v588_v22 = vpop.f32.mrb[31].mxu0 }
 0x129   : > { %v589_v23 = vadd.f32 %v1549_v56, %v588_v22  ;;  %1332 = vmatprep.mubr.msk.f32.mxu1 %vm275_vm0, %v625_v18 }
 0x12a   : > { %1333 = vmatmul.mubr.msk.f32.gmra.mrb[28].mxu1 %vm275_vm0, %v626_v20  ;;  %v628_v25 = vmax.f32 %v594_v21, 0.0 }
 0x12b   : > { %v627_v24 = vmax.f32 %v589_v23, 0.0 }
 0x12d   : > { %1335 = vmatprep.mubr.msk.f32.mxu1 %vm275_vm0, %v627_v24 }
 0x12e   : > { %1336 = vmatmul.mubr.msk.f32.gmra.mrb[30].mxu1 %vm275_vm0, %v628_v25 }
 0x1c5   : > { %v1292_v56 = vpop.f32.mrb[0].mxu1 }
 0x1c6   : > { %v812_v27 = vadd.f32 %v1292_v56, %v1618_v26  ;;  %v806_v28 = vpop.f32.mrb[1].mxu1 }
 0x1c7   : > { %v807_v29 = vadd.f32 %v1618_v26, %v806_v28 }
 0x1c8   : > { %966 = vst.msk [vmem:[%s1625_s15 + $0x8] sm:$0xff] %vm275_vm0, %v812_v27 }
 0x1c9   : > { %965 = vst.msk [vmem:[%s1625_s15] sm:$0xff] %vm275_vm0, %v807_v29  ;;  %v1295_v30 = vpop.f32.mrb[2].mxu1 }
 0x1ca   : > { %v822_v31 = vadd.f32 %v1295_v30, %v1618_v26  ;;  %v816_v32 = vpop.f32.mrb[3].mxu1 }
 0x1cb   : > { %v817_v33 = vadd.f32 %v1618_v26, %v816_v32 }
 0x1cc   : > { %968 = vst.msk [vmem:[%s1625_s15 + $0x18] sm:$0xff] %vm275_vm0, %v822_v31 }
 0x1cd   : > { %967 = vst.msk [vmem:[%s1625_s15 + $0x10] sm:$0xff] %vm275_vm0, %v817_v33  ;;  %v1298_v34 = vpop.f32.mrb[4].mxu1 }
 0x1ce   : > { %v832_v35 = vadd.f32 %v1298_v34, %v1618_v26  ;;  %v826_v36 = vpop.f32.mrb[5].mxu1 }
 0x1cf   : > { %v827_v37 = vadd.f32 %v1618_v26, %v826_v36 }
 0x1d0   : > { %970 = vst.msk [vmem:[%s1625_s15 + $0x28] sm:$0xff] %vm275_vm0, %v832_v35 }
 0x1d1   : > { %969 = vst.msk [vmem:[%s1625_s15 + $0x20] sm:$0xff] %vm275_vm0, %v827_v37  ;;  %v1301_v38 = vpop.f32.mrb[6].mxu1 }
 0x1d2   : > { %v842_v39 = vadd.f32 %v1301_v38, %v1618_v26  ;;  %v836_v40 = vpop.f32.mrb[7].mxu1 }
 0x1d3   : > { %v837_v41 = vadd.f32 %v1618_v26, %v836_v40 }
 0x1d4   : > { %972 = vst.msk [vmem:[%s1625_s15 + $0x38] sm:$0xff] %vm275_vm0, %v842_v39 }
 0x1d5   : > { %971 = vst.msk [vmem:[%s1625_s15 + $0x30] sm:$0xff] %vm275_vm0, %v837_v41  ;;  %v1304_v42 = vpop.f32.mrb[8].mxu1 }
 0x1d6   : > { %v852_v43 = vadd.f32 %v1304_v42, %v1618_v26  ;;  %v846_v44 = vpop.f32.mrb[9].mxu1 }
 0x1d7   : > { %v847_v45 = vadd.f32 %v1618_v26, %v846_v44 }
 0x1d8   : > { %974 = vst.msk [vmem:[%s1625_s15 + $0x48] sm:$0xff] %vm275_vm0, %v852_v43 }
 0x1d9   : > { %973 = vst.msk [vmem:[%s1625_s15 + $0x40] sm:$0xff] %vm275_vm0, %v847_v45  ;;  %v1307_v46 = vpop.f32.mrb[10].mxu1 }
 0x1da   : > { %v862_v47 = vadd.f32 %v1307_v46, %v1618_v26  ;;  %v856_v48 = vpop.f32.mrb[11].mxu1 }
 0x1db   : > { %v857_v49 = vadd.f32 %v1618_v26, %v856_v48 }
 0x1dc   : > { %976 = vst.msk [vmem:[%s1625_s15 + $0x58] sm:$0xff] %vm275_vm0, %v862_v47 }
 0x1dd   : > { %975 = vst.msk [vmem:[%s1625_s15 + $0x50] sm:$0xff] %vm275_vm0, %v857_v49  ;;  %v1310_v50 = vpop.f32.mrb[12].mxu1 }
 0x1de   : > { %v872_v51 = vadd.f32 %v1310_v50, %v1618_v26  ;;  %v866_v52 = vpop.f32.mrb[13].mxu1 }
 0x1df   : > { %v867_v53 = vadd.f32 %v1618_v26, %v866_v52 }
 0x1e0   : > { %978 = vst.msk [vmem:[%s1625_s15 + $0x68] sm:$0xff] %vm275_vm0, %v872_v51 }
 0x1e1   : > { %977 = vst.msk [vmem:[%s1625_s15 + $0x60] sm:$0xff] %vm275_vm0, %v867_v53  ;;  %v1313_v54 = vpop.f32.mrb[14].mxu1 }
 0x1e2   : > { %v882_v55 = vadd.f32 %v1313_v54, %v1618_v26  ;;  %v876_v57 = vpop.f32.mrb[15].mxu1 }
 0x1e3   : > { %v877_v58 = vadd.f32 %v1618_v26, %v876_v57 }
 0x1e4   : > { %980 = vst.msk [vmem:[%s1625_s15 + $0x78] sm:$0xff] %vm275_vm0, %v882_v55 }
 0x1e5   : > { %979 = vst.msk [vmem:[%s1625_s15 + $0x70] sm:$0xff] %vm275_vm0, %v877_v58  ;;  %v1316_v59 = vpop.f32.mrb[16].mxu1 }
 0x1e6   : > { %v892_v60 = vadd.f32 %v1316_v59, %v1618_v26  ;;  %v886_v61 = vpop.f32.mrb[17].mxu1 }
 0x1e7   : > { %v887_v62 = vadd.f32 %v1618_v26, %v886_v61 }
 0x1e8   : > { %982 = vst.msk [vmem:[%s1625_s15 + $0x88] sm:$0xff] %vm275_vm0, %v892_v60 }
 0x1e9   : > { %981 = vst.msk [vmem:[%s1625_s15 + $0x80] sm:$0xff] %vm275_vm0, %v887_v62  ;;  %v1319_v63 = vpop.f32.mrb[18].mxu1 }
 0x1ea   : > { %v902_v0 = vadd.f32 %v1319_v63, %v1618_v26  ;;  %v896_v1 = vpop.f32.mrb[19].mxu1 }
 0x1eb   : > { %v897_v2 = vadd.f32 %v1618_v26, %v896_v1 }
 0x1ec   : > { %984 = vst.msk [vmem:[%s1625_s15 + $0x98] sm:$0xff] %vm275_vm0, %v902_v0 }
 0x1ed   : > { %983 = vst.msk [vmem:[%s1625_s15 + $0x90] sm:$0xff] %vm275_vm0, %v897_v2  ;;  %v1322_v3 = vpop.f32.mrb[20].mxu1 }
 0x1ee   : > { %v912_v4 = vadd.f32 %v1322_v3, %v1618_v26  ;;  %v906_v5 = vpop.f32.mrb[21].mxu1 }
 0x1ef   : > { %v907_v6 = vadd.f32 %v1618_v26, %v906_v5 }
 0x1f0   : > { %986 = vst.msk [vmem:[%s1625_s15 + $0xa8] sm:$0xff] %vm275_vm0, %v912_v4 }
 0x1f1   : > { %985 = vst.msk [vmem:[%s1625_s15 + $0xa0] sm:$0xff] %vm275_vm0, %v907_v6  ;;  %v1325_v7 = vpop.f32.mrb[22].mxu1 }
 0x1f2   : > { %v922_v8 = vadd.f32 %v1325_v7, %v1618_v26  ;;  %v916_v9 = vpop.f32.mrb[23].mxu1 }
 0x1f3   : > { %v917_v10 = vadd.f32 %v1618_v26, %v916_v9 }
 0x1f4   : > { %988 = vst.msk [vmem:[%s1625_s15 + $0xb8] sm:$0xff] %vm275_vm0, %v922_v8 }
 0x1f5   : > { %987 = vst.msk [vmem:[%s1625_s15 + $0xb0] sm:$0xff] %vm275_vm0, %v917_v10  ;;  %v1328_v11 = vpop.f32.mrb[24].mxu1 }
 0x1f6   : > { %v932_v12 = vadd.f32 %v1328_v11, %v1618_v26  ;;  %v926_v13 = vpop.f32.mrb[25].mxu1 }
 0x1f7   : > { %v927_v14 = vadd.f32 %v1618_v26, %v926_v13 }
 0x1f8   : > { %990 = vst.msk [vmem:[%s1625_s15 + $0xc8] sm:$0xff] %vm275_vm0, %v932_v12 }
 0x1f9   : > { %989 = vst.msk [vmem:[%s1625_s15 + $0xc0] sm:$0xff] %vm275_vm0, %v927_v14  ;;  %v1331_v15 = vpop.f32.mrb[26].mxu1 }
 0x1fa   : > { %v942_v16 = vadd.f32 %v1331_v15, %v1618_v26  ;;  %v936_v17 = vpop.f32.mrb[27].mxu1 }
 0x1fb   : > { %v937_v18 = vadd.f32 %v1618_v26, %v936_v17 }
 0x1fc   : > { %992 = vst.msk [vmem:[%s1625_s15 + $0xd8] sm:$0xff] %vm275_vm0, %v942_v16 }
 0x1fd   : > { %991 = vst.msk [vmem:[%s1625_s15 + $0xd0] sm:$0xff] %vm275_vm0, %v937_v18  ;;  %v1334_v19 = vpop.f32.mrb[28].mxu1 }
 0x1fe   : > { %v952_v20 = vadd.f32 %v1334_v19, %v1618_v26  ;;  %v946_v21 = vpop.f32.mrb[29].mxu1 }
 0x1ff   : > { %v947_v22 = vadd.f32 %v1618_v26, %v946_v21 }
 0x200   : > { %994 = vst.msk [vmem:[%s1625_s15 + $0xe8] sm:$0xff] %vm275_vm0, %v952_v20 }
 0x201   : > { %993 = vst.msk [vmem:[%s1625_s15 + $0xe0] sm:$0xff] %vm275_vm0, %v947_v22  ;;  %v1337_v23 = vpop.f32.mrb[30].mxu1 }
 0x202   : > { %v962_v24 = vadd.f32 %v1337_v23, %v1618_v26  ;;  %v956_v25 = vpop.f32.mrb[31].mxu1 }
 0x203   : > { %v957_v56 = vadd.f32 %v1618_v26, %v956_v25 }
 0x204   : > { %996 = vst.msk [vmem:[%s1625_s15 + $0xf8] sm:$0xff] %vm275_vm0, %v962_v24 }
 0x205   : > { %995 = vst.msk [vmem:[%s1625_s15 + $0xf0] sm:$0xff] %vm275_vm0, %v957_v56 }
 0x206 PF: > { %s15_s18 = sadd.s32 1, %s1384_s18  }
 0x207   : > { %p12_p4 = scmp.ge.s32.totalorder %s15_s18, 5  }
 0x209   :  { %14 = sbr.rel (!%p12_p4) target bundleno = 1 (0x1), region = 70 }

// kernel: dtcwt_module_forward.3
= control target key start
LH: loop header
LB: loop body
LE: loop exit
PB: predicated region body
PF: predicated region fallthrough
CT: control target
= control target key end

     0   :  { %10 = vsyncpa [#allocation3], 0  ;;  %s7963_s15 = smov 0   ;;  %s7965_s16 = smov 0   ;;  %s11289_s0 = inlined_call_operand.vmem [shape: f32[2,32,16,16], index: 0, kind: input, shape index: {}]   ;;  %s11290_s1 = inlined_call_operand.hbm [shape: f32[16,32], index: 1, kind: input, shape index: {}]   ;;  %s11291_s2 = inlined_call_operand.vmem [shape: f32[32,16], index: 2, kind: input, shape index: {}]   ;;  %s11292_s3 = inlined_call_operand.vmem [shape: f32[2,32,16,16], index: 3, kind: output, shape index: {0}]   ;;  %s11293_s4 = inlined_call_operand.vmem [shape: f32[2,32,12,8,8], index: 4, kind: output, shape index: {1}]  }
   0x1   :  { %s7967_s17 = smov 0  }
   0x2 LB: > { %s6463_s18 = sadd.s32 4294967295, %s7929_s17   ;;  %s28_s19 = sadd.s32 1, %s7925_s16  ;;  %s7929_s17 = sphi %s7967_s17, %s16_s17   ;;  %s7925_s16 = sphi %s7965_s16, %s11826_s16   ;;  %s7921_s15 = sphi %s7963_s15, %s11825_s15  }
   0x3   : > { %p30_p0 = scmp.ge.s32.totalorder %s28_s19, 2  ;;  %p6465_p1 = scmp.ge.s32.totalorder %s7929_s17, 1 }
   0x4   : > { %p159_p2 = scmp.lt.s32.totalorder %s7929_s17, 3  ;;  %p7988_p4 = scmp.eq.s32.totalorder %s6463_s18, 0 }
   0x5   : > { %s11828_s19 = smov (%p30_p0, %s28_s19), 0  ;;  %s7931_s22 = smov [#allocation2]  }
   0x6   : > { %p7984_p3 = pnand %p6465_p1, %p159_p2  ;;  %s171_s23 = sshll.u32 %s7931_s22, 4  ;;  %s172_s23 = int_to_ptr.vmem [resolvable:$true] %s171_s23 }
   0x7   : > { %s11497_s21 = scalar_select %p7988_p4, 1, 0 }
   0x8   : > { %s11496_s20 = scalar_select %p7984_p3, 1, 0 }
   0x9   : > { %p7838_p5 = pneg %p7984_p3  ;;  %s7875_s27 = scalar_lea.hbm %s11290_s1, 256 }
   0xa   : > { %p7876_p7 = scmp.ne.s32.totalorder %s11290_s1, %s7875_s27  ;;  %p7882_p11 = scmp.lt.u32.totalorder %s7875_s27, %s11290_s1 }
   0xb   : > { %p7996_p6 = pnand %p7988_p4, %p7838_p5 }
   0xd   : > { %p7877_p8 = pneg %p7996_p6 }
   0xf   : > { %p7878_p9 = pnand %p7877_p8, %p7876_p7 }
  0x11   : > { %p7879_p10 = pneg %p7878_p9 }
  0x13   : > { %p7884_p12 = pnand %p7882_p11, %p7879_p10 }
  0x15   : > { %7887 = shalt.err (!%p7884_p12)
}
  0x16   : > { %s7888_s6 = scalar_lea.vmem %s172_s23, 256  ;;  %p7896_p2 = scmp.lt.s32.totalorder %s172_s23, %s172_s23 }
  0x17   : > { %p7889_p13 = scmp.ne.s32.totalorder %s172_s23, %s7888_s6  ;;  %p7897_p5 = scmp.lt.s32.totalorder %s7888_s6, %s7888_s6 }
  0x19   : > { %p7891_p0 = pnand %p7889_p13, %p7877_p8  ;;  %p7898_p4 = por %p7897_p5, %p7896_p2 }
  0x1b   : > { %p7892_p1 = pneg %p7891_p0 }
  0x1d   : > { %p7899_p3 = pnand %p7898_p4, %p7892_p1 }
  0x1f   : > { %7902 = shalt.err (!%p7899_p3)
}
  0x20   : > { %s7932_s7 = smov 128   ;;  %s7933_s8 = smov 8  }
  0x21   : > { %7841 = dma.hbm_to_vmem [thread:$0]  (!%p7996_p6), %s11290_s1, 256, %s172_s23, [#allocation3], %s7932_s7, %s7932_s7, %s7933_s8  }
  0x22   : > { %p11499_p7 = scmp.ne.s32.totalorder %s11496_s20, 0 }
  0x24   : > { %204 = sbr.rel (%p11499_p7) target bundleno = 1500 (0x5dc), region = 32 }
  0x2b   : > { %p11500_p9 = scmp.ne.s32.totalorder %s11497_s21, 0 }
  0x2d   : > { %7916 = dma.done.wait (%p11500_p9), [#allocation3], 256  }
  0x2e   : > { %7918 = vsyncadd (%p11500_p9), [#allocation3], 4294967040  ;;  %p251_p3 = scmp.lt.s32.totalorder %s7921_s15, 1  ;;  %vm349_vm0 = vcmask 130048   ;;  %v347_v0 = vld [vmem:[#allocation2] sm:$0xff]  ;;  %v348_v1 = vld [vmem:[#allocation2 + $0x8] sm:$0xff] }
  0x2f   : > { %v7701_v3 = vpack.c.bf16 %v348_v1, %v347_v0  ;;  %v8132_v51 = vld [vmem:[%s11291_s2] sm:$0xff]  ;;  %s7934_s30 = smov 120   ;;  %s7935_s5 = smov 8   ;;  %vm3919_vm1 = vcmask 64512  }
  0x30   : > { %s11830_s15 = smov (!%p251_p3, %s7921_s15), 1  ;;  %7385 = vmatprep.mubr.msk.f32.mxu1 %vm349_vm0, %v8132_v51  ;;  %s7936_s9 = smov 112  }
  0x31   : > { %s7021_s11 = sshll.u32 %s11830_s15, 9  ;;  %7702 = vmatprep.subr.bf16.mxu0 %v7701_v3  ;;  %s7833_s6 = smul.u32 3072, %s11830_s15 }
  0x32   : > { %s8032_s14 = scalar_lea.vmem %s11289_s0, %s7021_s11  ;;  %7704 = vmatpush3.bf16.msra.mxu0 %v7701_v3  ;;  %s8491_s29 = scalar_lea.vmem %s11292_s3, %s7021_s11 }
  0x33   : > { %v283_v2 = vld [vmem:[%s8032_s14] sm:$0xff]  ;;  %v284_v4 = vld [vmem:[%s8032_s14 + $0x8] sm:$0xff]  ;;  %v285_v5 = vld [vmem:[%s8032_s14 + $0x10] sm:$0xff]  ;;  %s8811_s8 = scalar_lea.vmem %s11293_s4, %s7833_s6  ;;  %s7937_s10 = smov 104  }
  0x34   : > { %7285 = vmatprep.mubr.msk.f32.mxu0 %vm349_vm0, %v283_v2  ;;  %v286_v6 = vld [vmem:[%s8032_s14 + $0x18] sm:$0xff]  ;;  %v287_v7 = vld [vmem:[%s8032_s14 + $0x20] sm:$0xff]  ;;  %v288_v8 = vld [vmem:[%s8032_s14 + $0x28] sm:$0xff] }
  0x35   : > { %7286 = vmatmul.mubr.msk.f32.vlgmr.msra.gmra.mrb[0].mxu0 %vm349_vm0, %v284_v4  ;;  %v289_v9 = vld [vmem:[%s8032_s14 + $0x30] sm:$0xff]  ;;  %v290_v10 = vld [vmem:[%s8032_s14 + $0x38] sm:$0xff]  ;;  %v291_v11 = vld [vmem:[%s8032_s14 + $0x40] sm:$0xff] }
  0x36   : > { %7288 = vmatprep.mubr.msk.f32.mxu0 %vm349_vm0, %v285_v5  ;;  %v292_v12 = vld [vmem:[%s8032_s14 + $0x48] sm:$0xff]  ;;  %v293_v13 = vld [vmem:[%s8032_s14 + $0x50] sm:$0xff]  ;;  %v294_v14 = vld [vmem:[%s8032_s14 + $0x58] sm:$0xff] }
  0x37   : > { %v295_v15 = vld [vmem:[%s8032_s14 + $0x60] sm:$0xff]  ;;  %v296_v16 = vld [vmem:[%s8032_s14 + $0x68] sm:$0xff]  ;;  %v297_v17 = vld [vmem:[%s8032_s14 + $0x70] sm:$0xff] }
  0x38   : > { %v298_v18 = vld [vmem:[%s8032_s14 + $0x78] sm:$0xff]  ;;  %v299_v19 = vld [vmem:[%s8032_s14 + $0x80] sm:$0xff]  ;;  %v300_v20 = vld [vmem:[%s8032_s14 + $0x88] sm:$0xff] }
  0x39   : > { %7289 = vmatmul.mubr.msk.f32.gmra.mrb[2].mxu0 %vm349_vm0, %v286_v6  ;;  %v301_v21 = vld [vmem:[%s8032_s14 + $0x90] sm:$0xff]  ;;  %v302_v22 = vld [vmem:[%s8032_s14 + $0x98] sm:$0xff]  ;;  %v303_v23 = vld [vmem:[%s8032_s14 + $0xa0] sm:$0xff] }
  0x3a   : > { %7291 = vmatprep.mubr.msk.f32.mxu0 %vm349_vm0, %v287_v7  ;;  %v304_v24 = vld [vmem:[%s8032_s14 + $0xa8] sm:$0xff]  ;;  %v305_v25 = vld [vmem:[%s8032_s14 + $0xb0] sm:$0xff]  ;;  %v306_v26 = vld [vmem:[%s8032_s14 + $0xb8] sm:$0xff] }
  0x3b   : > { %v307_v27 = vld [vmem:[%s8032_s14 + $0xc0] sm:$0xff]  ;;  %v308_v28 = vld [vmem:[%s8032_s14 + $0xc8] sm:$0xff]  ;;  %v309_v29 = vld [vmem:[%s8032_s14 + $0xd0] sm:$0xff] }
  0x3c   : > { %v310_v30 = vld [vmem:[%s8032_s14 + $0xd8] sm:$0xff]  ;;  %v311_v31 = vld [vmem:[%s8032_s14 + $0xe0] sm:$0xff]  ;;  %v312_v32 = vld [vmem:[%s8032_s14 + $0xe8] sm:$0xff] }
  0x3d   : > { %7292 = vmatmul.mubr.msk.f32.gmra.mrb[4].mxu0 %vm349_vm0, %v288_v8  ;;  %v313_v33 = vld [vmem:[%s8032_s14 + $0xf0] sm:$0xff]  ;;  %v314_v34 = vld [vmem:[%s8032_s14 + $0xf8] sm:$0xff]  ;;  %v315_v35 = vld [vmem:[%s8032_s14 + $0x100] sm:$0xff] }
  0x3e   : > { %7294 = vmatprep.mubr.msk.f32.mxu0 %vm349_vm0, %v289_v9  ;;  %v316_v36 = vld [vmem:[%s8032_s14 + $0x108] sm:$0xff]  ;;  %v317_v37 = vld [vmem:[%s8032_s14 + $0x110] sm:$0xff]  ;;  %v318_v38 = vld [vmem:[%s8032_s14 + $0x118] sm:$0xff] }
  0x3f   : > { %v319_v39 = vld [vmem:[%s8032_s14 + $0x120] sm:$0xff]  ;;  %v320_v40 = vld [vmem:[%s8032_s14 + $0x128] sm:$0xff]  ;;  %v321_v41 = vld [vmem:[%s8032_s14 + $0x130] sm:$0xff] }
  0x40   : > { %v322_v42 = vld [vmem:[%s8032_s14 + $0x138] sm:$0xff]  ;;  %v323_v43 = vld [vmem:[%s8032_s14 + $0x140] sm:$0xff]  ;;  %v324_v44 = vld [vmem:[%s8032_s14 + $0x148] sm:$0xff] }
  0x41   : > { %7295 = vmatmul.mubr.msk.f32.gmra.mrb[6].mxu0 %vm349_vm0, %v290_v10  ;;  %v325_v45 = vld [vmem:[%s8032_s14 + $0x150] sm:$0xff]  ;;  %v326_v46 = vld [vmem:[%s8032_s14 + $0x158] sm:$0xff]  ;;  %v327_v47 = vld [vmem:[%s8032_s14 + $0x160] sm:$0xff] }
  0x42   : > { %7297 = vmatprep.mubr.msk.f32.mxu0 %vm349_vm0, %v291_v11  ;;  %v328_v48 = vld [vmem:[%s8032_s14 + $0x168] sm:$0xff]  ;;  %v329_v49 = vld [vmem:[%s8032_s14 + $0x170] sm:$0xff]  ;;  %v330_v50 = vld [vmem:[%s8032_s14 + $0x178] sm:$0xff] }
  0x43   : > { %v331_v52 = vld [vmem:[%s8032_s14 + $0x180] sm:$0xff]  ;;  %v332_v53 = vld [vmem:[%s8032_s14 + $0x188] sm:$0xff]  ;;  %v333_v54 = vld [vmem:[%s8032_s14 + $0x190] sm:$0xff] }
  0x44   : > { %v334_v55 = vld [vmem:[%s8032_s14 + $0x198] sm:$0xff]  ;;  %v335_v56 = vld [vmem:[%s8032_s14 + $0x1a0] sm:$0xff]  ;;  %v336_v57 = vld [vmem:[%s8032_s14 + $0x1a8] sm:$0xff] }
  0x45   : > { %7298 = vmatmul.mubr.msk.f32.gmra.mrb[8].mxu0 %vm349_vm0, %v292_v12  ;;  %v337_v58 = vld [vmem:[%s8032_s14 + $0x1b0] sm:$0xff]  ;;  %v338_v59 = vld [vmem:[%s8032_s14 + $0x1b8] sm:$0xff]  ;;  %v339_v60 = vld [vmem:[%s8032_s14 + $0x1c0] sm:$0xff] }
  0x46   : > { %7300 = vmatprep.mubr.msk.f32.mxu0 %vm349_vm0, %v293_v13  ;;  %v340_v61 = vld [vmem:[%s8032_s14 + $0x1c8] sm:$0xff]  ;;  %v341_v62 = vld [vmem:[%s8032_s14 + $0x1d0] sm:$0xff]  ;;  %v342_v63 = vld [vmem:[%s8032_s14 + $0x1d8] sm:$0xff] }
  0x47   : > { %v343_v0 = vld [vmem:[%s8032_s14 + $0x1e0] sm:$0xff]  ;;  %v344_v1 = vld [vmem:[%s8032_s14 + $0x1e8] sm:$0xff]  ;;  %v345_v2 = vld [vmem:[%s8032_s14 + $0x1f0] sm:$0xff] }
  0x48   : > { %v346_v3 = vld [vmem:[%s8032_s14 + $0x1f8] sm:$0xff]  ;;  %v8174_v9 = vld [vmem:[%s11291_s2 + $0x8] sm:$0xff]  ;;  %v8179_v11 = vld [vmem:[%s11291_s2 + $0x10] sm:$0xff] }
  0x49   : > { %7301 = vmatmul.mubr.msk.f32.gmra.mrb[10].mxu0 %vm349_vm0, %v294_v14  ;;  %v8188_v14 = vld [vmem:[%s11291_s2 + $0x18] sm:$0xff] }
  0x4a   : > { %7303 = vmatprep.mubr.msk.f32.mxu0 %vm349_vm0, %v295_v15 }
  0x4d   : > { %7304 = vmatmul.mubr.msk.f32.gmra.mrb[12].mxu0 %vm349_vm0, %v296_v16 }
  0x4e   : > { %7306 = vmatprep.mubr.msk.f32.mxu0 %vm349_vm0, %v297_v17 }
  0x51   : > { %7307 = vmatmul.mubr.msk.f32.gmra.mrb[14].mxu0 %vm349_vm0, %v298_v18 }
  0x52   : > { %7309 = vmatprep.mubr.msk.f32.mxu0 %vm349_vm0, %v299_v19 }
  0x55   : > { %7310 = vmatmul.mubr.msk.f32.gmra.mrb[16].mxu0 %vm349_vm0, %v300_v20 }
  0x56   : > { %7312 = vmatprep.mubr.msk.f32.mxu0 %vm349_vm0, %v301_v21 }
  0x59   : > { %7313 = vmatmul.mubr.msk.f32.gmra.mrb[18].mxu0 %vm349_vm0, %v302_v22 }
  0x5a   : > { %7315 = vmatprep.mubr.msk.f32.mxu0 %vm349_vm0, %v303_v23 }
  0x5d   : > { %7316 = vmatmul.mubr.msk.f32.gmra.mrb[20].mxu0 %vm349_vm0, %v304_v24 }
  0x5e   : > { %7318 = vmatprep.mubr.msk.f32.mxu0 %vm349_vm0, %v305_v25 }
  0x61   : > { %7319 = vmatmul.mubr.msk.f32.gmra.mrb[22].mxu0 %vm349_vm0, %v306_v26 }
  0x62   : > { %7321 = vmatprep.mubr.msk.f32.mxu0 %vm349_vm0, %v307_v27 }
  0x65   : > { %7322 = vmatmul.mubr.msk.f32.gmra.mrb[24].mxu0 %vm349_vm0, %v308_v28 }
  0x66   : > { %7324 = vmatprep.mubr.msk.f32.mxu0 %vm349_vm0, %v309_v29 }
  0x69   : > { %7325 = vmatmul.mubr.msk.f32.gmra.mrb[26].mxu0 %vm349_vm0, %v310_v30 }
  0x6a   : > { %7327 = vmatprep.mubr.msk.f32.mxu0 %vm349_vm0, %v311_v31 }
  0x6d   : > { %7328 = vmatmul.mubr.msk.f32.gmra.mrb[28].mxu0 %vm349_vm0, %v312_v32 }
  0x6e   : > { %7330 = vmatprep.mubr.msk.f32.mxu0 %vm349_vm0, %v313_v33 }
  0x71   : > { %7331 = vmatmul.mubr.msk.f32.gmra.mrb[30].mxu0 %vm349_vm0, %v314_v34 }
  0x72   : > { %7333 = vmatprep.mubr.msk.f32.mxu0 %vm349_vm0, %v315_v35 }
  0x75   : > { %7334 = vmatmul.mubr.msk.f32.gmra.mrb[32].mxu0 %vm349_vm0, %v316_v36 }
  0x76   : > { %7336 = vmatprep.mubr.msk.f32.mxu0 %vm349_vm0, %v317_v37 }
  0x79   : > { %7337 = vmatmul.mubr.msk.f32.gmra.mrb[34].mxu0 %vm349_vm0, %v318_v38 }
  0x7a   : > { %7339 = vmatprep.mubr.msk.f32.mxu0 %vm349_vm0, %v319_v39 }
  0x7d   : > { %7340 = vmatmul.mubr.msk.f32.gmra.mrb[36].mxu0 %vm349_vm0, %v320_v40 }
  0x7e   : > { %7342 = vmatprep.mubr.msk.f32.mxu0 %vm349_vm0, %v321_v41 }
  0x81   : > { %7343 = vmatmul.mubr.msk.f32.gmra.mrb[38].mxu0 %vm349_vm0, %v322_v42 }
  0x82   : > { %7345 = vmatprep.mubr.msk.f32.mxu0 %vm349_vm0, %v323_v43 }
  0x85   : > { %7346 = vmatmul.mubr.msk.f32.gmra.mrb[40].mxu0 %vm349_vm0, %v324_v44 }
  0x86   : > { %7348 = vmatprep.mubr.msk.f32.mxu0 %vm349_vm0, %v325_v45 }
  0x89   : > { %7349 = vmatmul.mubr.msk.f32.gmra.mrb[42].mxu0 %vm349_vm0, %v326_v46 }
  0x8a   : > { %7351 = vmatprep.mubr.msk.f32.mxu0 %vm349_vm0, %v327_v47 }
  0x8d   : > { %7352 = vmatmul.mubr.msk.f32.gmra.mrb[44].mxu0 %vm349_vm0, %v328_v48 }
  0x8e   : > { %7354 = vmatprep.mubr.msk.f32.mxu0 %vm349_vm0, %v329_v49 }
  0x91   : > { %7355 = vmatmul.mubr.msk.f32.gmra.mrb[46].mxu0 %vm349_vm0, %v330_v50 }
  0x92   : > { %7357 = vmatprep.mubr.msk.f32.mxu0 %vm349_vm0, %v331_v52 }
  0x95   : > { %7358 = vmatmul.mubr.msk.f32.gmra.mrb[48].mxu0 %vm349_vm0, %v332_v53 }
  0x96   : > { %7360 = vmatprep.mubr.msk.f32.mxu0 %vm349_vm0, %v333_v54 }
  0x99   : > { %7361 = vmatmul.mubr.msk.f32.gmra.mrb[50].mxu0 %vm349_vm0, %v334_v55 }
  0x9a   : > { %7363 = vmatprep.mubr.msk.f32.mxu0 %vm349_vm0, %v335_v56 }
  0x9d   : > { %7364 = vmatmul.mubr.msk.f32.gmra.mrb[52].mxu0 %vm349_vm0, %v336_v57 }
  0x9e   : > { %7366 = vmatprep.mubr.msk.f32.mxu0 %vm349_vm0, %v337_v58 }
  0xa1   : > { %7367 = vmatmul.mubr.msk.f32.gmra.mrb[54].mxu0 %vm349_vm0, %v338_v59 }
  0xa2   : > { %7369 = vmatprep.mubr.msk.f32.mxu0 %vm349_vm0, %v339_v60 }
  0xa5   : > { %7370 = vmatmul.mubr.msk.f32.gmra.mrb[56].mxu0 %vm349_vm0, %v340_v61 }
  0xa6   : > { %7372 = vmatprep.mubr.msk.f32.mxu0 %vm349_vm0, %v341_v62 }
  0xa9   : > { %7373 = vmatmul.mubr.msk.f32.gmra.mrb[58].mxu0 %vm349_vm0, %v342_v63 }
  0xaa   : > { %7375 = vmatprep.mubr.msk.f32.mxu0 %vm349_vm0, %v343_v0 }
  0xad   : > { %7376 = vmatmul.mubr.msk.f32.gmra.mrb[60].mxu0 %vm349_vm0, %v344_v1 }
  0xae   : > { %7378 = vmatprep.mubr.msk.f32.mxu0 %vm349_vm0, %v345_v2 }
  0xb1   : > { %7379 = vmatmul.mubr.msk.f32.gmra.mrb[62].mxu0 %vm349_vm0, %v346_v3 }
  0xb2   : > { %7545 = vmatprep.mubr.msk.f32.mxu0 %vm349_vm0, %v8132_v51 }
 0x108   : > { %v7287_v4 = vpop.f32.mrb[0].mxu0 }
 0x109   : > { %v608_v5 = vpop.f32.mrb[1].mxu0 }
 0x10a   : > { %v7705_v6 = vpack.c.bf16 %v7287_v4, %v608_v5 }
 0x10c   : > { %v7290_v7 = vpop.f32.mrb[2].mxu0  ;;  %7706 = vmatprep.subr.bf16.mxu1 %v7705_v6 }
 0x10d   : > { %v618_v8 = vpop.f32.mrb[3].mxu0  ;;  %7708 = vmatpush3.bf16.msra.mxu1 %v7705_v6 }
 0x10e   : > { %v7709_v10 = vpack.c.bf16 %v7290_v7, %v618_v8 }
 0x110   : > { %v7293_v12 = vpop.f32.mrb[4].mxu0  ;;  %7386 = vmatmul.mubr.msk.f32.vlgmr.msra.gmra.mrb[0].mxu1 %vm349_vm0, %v8174_v9  ;;  %7710 = vmatprep.subr.bf16.mxu1 %v7709_v10 }
 0x111   : > { %v628_v13 = vpop.f32.mrb[5].mxu0  ;;  %7712 = vmatpush3.bf16.msra.mxu1 %v7709_v10  ;;  %7388 = vmatprep.mubr.msk.f32.mxu1 %vm349_vm0, %v8179_v11 }
 0x112   : > { %v7713_v15 = vpack.c.bf16 %v7293_v12, %v628_v13 }
 0x114   : > { %v7296_v16 = vpop.f32.mrb[6].mxu0  ;;  %7389 = vmatmul.mubr.msk.f32.gmra.mrb[2].mxu1 %vm349_vm0, %v8188_v14  ;;  %7714 = vmatprep.subr.bf16.mxu1 %v7713_v15 }
 0x115   : > { %v638_v17 = vpop.f32.mrb[7].mxu0  ;;  %7395 = vmatprep.mubr.msk.f32.mxu1 %vm349_vm0, %v8132_v51 }
 0x116   : > { %v7717_v18 = vpack.c.bf16 %v7296_v16, %v638_v17 }
 0x118   : > { %v7299_v19 = vpop.f32.mrb[8].mxu0  ;;  %7396 = vmatmul.mubr.msk.f32.vlgmr.msra.gmra.mrb[4].mxu1 %vm349_vm0, %v8174_v9 }
 0x119   : > { %7716 = vmatpush3.bf16.msra.mxu1 %v7713_v15  ;;  %v648_v20 = vpop.f32.mrb[9].mxu0  ;;  %7398 = vmatprep.mubr.msk.f32.mxu1 %vm349_vm0, %v8179_v11 }
 0x11a   : > { %v7721_v21 = vpack.c.bf16 %v7299_v19, %v648_v20  ;;  %7718 = vmatprep.subr.bf16.mxu1 %v7717_v18 }
 0x11c   : > { %v7302_v22 = vpop.f32.mrb[10].mxu0  ;;  %7399 = vmatmul.mubr.msk.f32.gmra.mrb[6].mxu1 %vm349_vm0, %v8188_v14 }
 0x11d   : > { %v658_v23 = vpop.f32.mrb[11].mxu0  ;;  %7405 = vmatprep.mubr.msk.f32.mxu1 %vm349_vm0, %v8132_v51 }
 0x11e   : > { %v7725_v24 = vpack.c.bf16 %v7302_v22, %v658_v23 }
 0x120   : > { %v7305_v25 = vpop.f32.mrb[12].mxu0  ;;  %7406 = vmatmul.mubr.msk.f32.vlgmr.msra.gmra.mrb[8].mxu1 %vm349_vm0, %v8174_v9 }
 0x121   : > { %7720 = vmatpush3.bf16.msra.mxu1 %v7717_v18  ;;  %v668_v26 = vpop.f32.mrb[13].mxu0  ;;  %7408 = vmatprep.mubr.msk.f32.mxu1 %vm349_vm0, %v8179_v11 }
 0x122   : > { %v7729_v27 = vpack.c.bf16 %v7305_v25, %v668_v26  ;;  %7722 = vmatprep.subr.bf16.mxu1 %v7721_v21 }
 0x124   : > { %v7308_v28 = vpop.f32.mrb[14].mxu0  ;;  %7409 = vmatmul.mubr.msk.f32.gmra.mrb[10].mxu1 %vm349_vm0, %v8188_v14 }
 0x125   : > { %v678_v29 = vpop.f32.mrb[15].mxu0  ;;  %7415 = vmatprep.mubr.msk.f32.mxu1 %vm349_vm0, %v8132_v51 }
 0x126   : > { %v7733_v30 = vpack.c.bf16 %v7308_v28, %v678_v29 }
 0x128   : > { %v7311_v31 = vpop.f32.mrb[16].mxu0  ;;  %7416 = vmatmul.mubr.msk.f32.vlgmr.msra.gmra.mrb[12].mxu1 %vm349_vm0, %v8174_v9 }
 0x129   : > { %7724 = vmatpush3.bf16.msra.mxu1 %v7721_v21  ;;  %v688_v32 = vpop.f32.mrb[17].mxu0  ;;  %7418 = vmatprep.mubr.msk.f32.mxu1 %vm349_vm0, %v8179_v11 }
 0x12a   : > { %v7737_v33 = vpack.c.bf16 %v7311_v31, %v688_v32  ;;  %7726 = vmatprep.subr.bf16.mxu1 %v7725_v24 }
 0x12c   : > { %v7314_v34 = vpop.f32.mrb[18].mxu0  ;;  %7419 = vmatmul.mubr.msk.f32.gmra.mrb[14].mxu1 %vm349_vm0, %v8188_v14 }
 0x12d   : > { %v698_v35 = vpop.f32.mrb[19].mxu0  ;;  %7425 = vmatprep.mubr.msk.f32.mxu1 %vm349_vm0, %v8132_v51 }
 0x12e   : > { %v7741_v36 = vpack.c.bf16 %v7314_v34, %v698_v35 }
 0x130   : > { %v7317_v37 = vpop.f32.mrb[20].mxu0  ;;  %7426 = vmatmul.mubr.msk.f32.vlgmr.msra.gmra.mrb[16].mxu1 %vm349_vm0, %v8174_v9 }
 0x131   : > { %7728 = vmatpush3.bf16.msra.mxu1 %v7725_v24  ;;  %v708_v38 = vpop.f32.mrb[21].mxu0  ;;  %7428 = vmatprep.mubr.msk.f32.mxu1 %vm349_vm0, %v8179_v11 }
 0x132   : > { %v8222_v39 = vpack.c.bf16 %v7317_v37, %v708_v38  ;;  %7730 = vmatprep.subr.bf16.mxu1 %v7729_v27 }
 0x134   : > { %v7320_v40 = vpop.f32.mrb[22].mxu0  ;;  %7429 = vmatmul.mubr.msk.f32.gmra.mrb[18].mxu1 %vm349_vm0, %v8188_v14 }
 0x135   : > { %v718_v41 = vpop.f32.mrb[23].mxu0  ;;  %7435 = vmatprep.mubr.msk.f32.mxu1 %vm349_vm0, %v8132_v51 }
 0x136   : > { %v8228_v42 = vpack.c.bf16 %v7320_v40, %v718_v41 }
 0x138   : > { %v7323_v43 = vpop.f32.mrb[24].mxu0  ;;  %7436 = vmatmul.mubr.msk.f32.vlgmr.msra.gmra.mrb[20].mxu1 %vm349_vm0, %v8174_v9 }
 0x139   : > { %7732 = vmatpush3.bf16.msra.mxu1 %v7729_v27  ;;  %v728_v44 = vpop.f32.mrb[25].mxu0  ;;  %7438 = vmatprep.mubr.msk.f32.mxu1 %vm349_vm0, %v8179_v11 }
 0x13a   : > { %v8234_v45 = vpack.c.bf16 %v7323_v43, %v728_v44  ;;  %7734 = vmatprep.subr.bf16.mxu1 %v7733_v30 }
 0x13c   : > { %v7326_v46 = vpop.f32.mrb[26].mxu0  ;;  %7439 = vmatmul.mubr.msk.f32.gmra.mrb[22].mxu1 %vm349_vm0, %v8188_v14 }
 0x13d   : > { %v738_v47 = vpop.f32.mrb[27].mxu0  ;;  %7445 = vmatprep.mubr.msk.f32.mxu1 %vm349_vm0, %v8132_v51 }
 0x13e   : > { %v8240_v48 = vpack.c.bf16 %v7326_v46, %v738_v47 }
 0x140   : > { %v7329_v49 = vpop.f32.mrb[28].mxu0  ;;  %7446 = vmatmul.mubr.msk.f32.vlgmr.msra.gmra.mrb[24].mxu1 %vm349_vm0, %v8174_v9 }
 0x141   : > { %7736 = vmatpush3.bf16.msra.mxu1 %v7733_v30  ;;  %v748_v50 = vpop.f32.mrb[29].mxu0  ;;  %7448 = vmatprep.mubr.msk.f32.mxu1 %vm349_vm0, %v8179_v11 }
 0x142   : > { %v8246_v52 = vpack.c.bf16 %v7329_v49, %v748_v50  ;;  %7738 = vmatprep.subr.bf16.mxu1 %v7737_v33 }
 0x144   : > { %v7332_v53 = vpop.f32.mrb[30].mxu0  ;;  %7449 = vmatmul.mubr.msk.f32.gmra.mrb[26].mxu1 %vm349_vm0, %v8188_v14 }
 0x145   : > { %v758_v54 = vpop.f32.mrb[31].mxu0  ;;  %7455 = vmatprep.mubr.msk.f32.mxu1 %vm349_vm0, %v8132_v51 }
 0x146   : > { %v8252_v55 = vpack.c.bf16 %v7332_v53, %v758_v54 }
 0x148   : > { %v7335_v56 = vpop.f32.mrb[32].mxu0  ;;  %7456 = vmatmul.mubr.msk.f32.vlgmr.msra.gmra.mrb[28].mxu1 %vm349_vm0, %v8174_v9 }
 0x149   : > { %7740 = vmatpush3.bf16.msra.mxu1 %v7737_v33  ;;  %v768_v57 = vpop.f32.mrb[33].mxu0  ;;  %7458 = vmatprep.mubr.msk.f32.mxu1 %vm349_vm0, %v8179_v11 }
 0x14a   : > { %v7769_v58 = vpack.c.bf16 %v7335_v56, %v768_v57  ;;  %7742 = vmatprep.subr.bf16.mxu1 %v7741_v36 }
 0x14c   : > { %7459 = vmatmul.mubr.msk.f32.gmra.mrb[30].mxu1 %vm349_vm0, %v8188_v14  ;;  %7770 = vmatprep.subr.bf16.mxu0 %v7769_v58  ;;  %v7338_v59 = vpop.f32.mrb[34].mxu0 }
 0x14d   : > { %7772 = vmatpush3.bf16.msra.mxu0 %v7769_v58  ;;  %7465 = vmatprep.mubr.msk.f32.mxu1 %vm349_vm0, %v8132_v51  ;;  %v778_v60 = vpop.f32.mrb[35].mxu0 }
 0x14e   : > { %v8262_v61 = vpack.c.bf16 %v7338_v59, %v778_v60 }
 0x150   : > { %7466 = vmatmul.mubr.msk.f32.vlgmr.msra.gmra.mrb[32].mxu1 %vm349_vm0, %v8174_v9  ;;  %7546 = vmatmul.mubr.msk.f32.vlgmr.msra.gmra.mrb[64].mxu0 %vm349_vm0, %v8174_v9  ;;  %v7341_v62 = vpop.f32.mrb[36].mxu0 }
 0x151   : > { %7744 = vmatpush3.bf16.msra.mxu1 %v7741_v36  ;;  %7468 = vmatprep.mubr.msk.f32.mxu1 %vm349_vm0, %v8179_v11  ;;  %v788_v63 = vpop.f32.mrb[37].mxu0 }
 0x152   : > { %7746 = vmatprep.subr.bf16.mxu1 %v8222_v39  ;;  %7548 = vmatprep.mubr.msk.f32.mxu0 %vm349_vm0, %v8179_v11  ;;  %v7777_v0 = vpack.c.bf16 %v7341_v62, %v788_v63 }
 0x154   : > { %7469 = vmatmul.mubr.msk.f32.gmra.mrb[34].mxu1 %vm349_vm0, %v8188_v14  ;;  %7549 = vmatmul.mubr.msk.f32.gmra.mrb[66].mxu0 %vm349_vm0, %v8188_v14  ;;  %v7344_v1 = vpop.f32.mrb[38].mxu0 }
 0x155   : > { %7475 = vmatprep.mubr.msk.f32.mxu1 %vm349_vm0, %v8132_v51  ;;  %7778 = vmatprep.subr.bf16.mxu0 %v7777_v0  ;;  %v798_v2 = vpop.f32.mrb[39].mxu0 }
 0x156   : > { %7780 = vmatpush3.bf16.msra.mxu0 %v7777_v0  ;;  %7565 = vmatprep.mubr.msk.f32.mxu0 %vm349_vm0, %v8132_v51  ;;  %v8281_v3 = vpack.c.bf16 %v7344_v1, %v798_v2 }
 0x158   : > { %7476 = vmatmul.mubr.msk.f32.vlgmr.msra.gmra.mrb[36].mxu1 %vm349_vm0, %v8174_v9  ;;  %v7347_v4 = vpop.f32.mrb[40].mxu0 }
 0x159   : > { %7748 = vmatpush3.bf16.msra.mxu1 %v8222_v39  ;;  %7478 = vmatprep.mubr.msk.f32.mxu1 %vm349_vm0, %v8179_v11  ;;  %v808_v5 = vpop.f32.mrb[41].mxu0 }
 0x15a   : > { %7750 = vmatprep.subr.bf16.mxu1 %v8228_v42  ;;  %7566 = vmatmul.mubr.msk.f32.vlgmr.msra.gmra.mrb[68].mxu0 %vm349_vm0, %v8174_v9  ;;  %v7785_v6 = vpack.c.bf16 %v7347_v4, %v808_v5 }
 0x15b   : > { %7568 = vmatprep.mubr.msk.f32.mxu0 %vm349_vm0, %v8179_v11 }
 0x15c   : > { %7479 = vmatmul.mubr.msk.f32.gmra.mrb[38].mxu1 %vm349_vm0, %v8188_v14  ;;  %7786 = vmatprep.subr.bf16.mxu0 %v7785_v6  ;;  %v7350_v7 = vpop.f32.mrb[42].mxu0 }
 0x15d   : > { %7485 = vmatprep.mubr.msk.f32.mxu1 %vm349_vm0, %v8132_v51  ;;  %7788 = vmatpush3.bf16.msra.mxu0 %v7785_v6  ;;  %v818_v8 = vpop.f32.mrb[43].mxu0 }
 0x15e   : > { %7569 = vmatmul.mubr.msk.f32.gmra.mrb[70].mxu0 %vm349_vm0, %v8188_v14  ;;  %v8299_v10 = vpack.c.bf16 %v7350_v7, %v818_v8 }
 0x15f   : > { %7585 = vmatprep.mubr.msk.f32.mxu0 %vm349_vm0, %v8132_v51 }
 0x160   : > { %7486 = vmatmul.mubr.msk.f32.vlgmr.msra.gmra.mrb[40].mxu1 %vm349_vm0, %v8174_v9  ;;  %v7353_v12 = vpop.f32.mrb[44].mxu0 }
 0x161   : > { %7752 = vmatpush3.bf16.msra.mxu1 %v8228_v42  ;;  %7488 = vmatprep.mubr.msk.f32.mxu1 %vm349_vm0, %v8179_v11  ;;  %v828_v13 = vpop.f32.mrb[45].mxu0 }
 0x162   : > { %7754 = vmatprep.subr.bf16.mxu1 %v8234_v45  ;;  %7586 = vmatmul.mubr.msk.f32.vlgmr.msra.gmra.mrb[72].mxu0 %vm349_vm0, %v8174_v9  ;;  %v7793_v15 = vpack.c.bf16 %v7353_v12, %v828_v13 }
 0x163   : > { %7588 = vmatprep.mubr.msk.f32.mxu0 %vm349_vm0, %v8179_v11 }
 0x164   : > { %7489 = vmatmul.mubr.msk.f32.gmra.mrb[42].mxu1 %vm349_vm0, %v8188_v14  ;;  %7794 = vmatprep.subr.bf16.mxu0 %v7793_v15  ;;  %v7356_v16 = vpop.f32.mrb[46].mxu0 }
 0x165   : > { %7495 = vmatprep.mubr.msk.f32.mxu1 %vm349_vm0, %v8132_v51  ;;  %7796 = vmatpush3.bf16.msra.mxu0 %v7793_v15  ;;  %v838_v17 = vpop.f32.mrb[47].mxu0 }
 0x166   : > { %7589 = vmatmul.mubr.msk.f32.gmra.mrb[74].mxu0 %vm349_vm0, %v8188_v14  ;;  %v8319_v18 = vpack.c.bf16 %v7356_v16, %v838_v17 }
 0x167   : > { %7605 = vmatprep.mubr.msk.f32.mxu0 %vm349_vm0, %v8132_v51 }
 0x168   : > { %7496 = vmatmul.mubr.msk.f32.vlgmr.msra.gmra.mrb[44].mxu1 %vm349_vm0, %v8174_v9  ;;  %v7359_v19 = vpop.f32.mrb[48].mxu0 }
 0x169   : > { %7756 = vmatpush3.bf16.msra.mxu1 %v8234_v45  ;;  %7498 = vmatprep.mubr.msk.f32.mxu1 %vm349_vm0, %v8179_v11  ;;  %v848_v20 = vpop.f32.mrb[49].mxu0 }
 0x16a   : > { %7758 = vmatprep.subr.bf16.mxu1 %v8240_v48  ;;  %7606 = vmatmul.mubr.msk.f32.vlgmr.msra.gmra.mrb[76].mxu0 %vm349_vm0, %v8174_v9  ;;  %v7801_v21 = vpack.c.bf16 %v7359_v19, %v848_v20 }
 0x16b   : > { %7608 = vmatprep.mubr.msk.f32.mxu0 %vm349_vm0, %v8179_v11 }
 0x16c   : > { %7499 = vmatmul.mubr.msk.f32.gmra.mrb[46].mxu1 %vm349_vm0, %v8188_v14  ;;  %7802 = vmatprep.subr.bf16.mxu0 %v7801_v21  ;;  %v7362_v22 = vpop.f32.mrb[50].mxu0 }
 0x16d   : > { %7505 = vmatprep.mubr.msk.f32.mxu1 %vm349_vm0, %v8132_v51  ;;  %7804 = vmatpush3.bf16.msra.mxu0 %v7801_v21  ;;  %v858_v23 = vpop.f32.mrb[51].mxu0 }
 0x16e   : > { %7609 = vmatmul.mubr.msk.f32.gmra.mrb[78].mxu0 %vm349_vm0, %v8188_v14  ;;  %v8339_v24 = vpack.c.bf16 %v7362_v22, %v858_v23 }
 0x16f   : > { %7625 = vmatprep.mubr.msk.f32.mxu0 %vm349_vm0, %v8132_v51 }
 0x170   : > { %7506 = vmatmul.mubr.msk.f32.vlgmr.msra.gmra.mrb[48].mxu1 %vm349_vm0, %v8174_v9  ;;  %v7365_v25 = vpop.f32.mrb[52].mxu0 }
 0x171   : > { %7760 = vmatpush3.bf16.msra.mxu1 %v8240_v48  ;;  %7508 = vmatprep.mubr.msk.f32.mxu1 %vm349_vm0, %v8179_v11  ;;  %v868_v26 = vpop.f32.mrb[53].mxu0 }
 0x172   : > { %7762 = vmatprep.subr.bf16.mxu1 %v8246_v52  ;;  %7626 = vmatmul.mubr.msk.f32.vlgmr.msra.gmra.mrb[80].mxu0 %vm349_vm0, %v8174_v9  ;;  %v7809_v27 = vpack.c.bf16 %v7365_v25, %v868_v26 }
 0x173   : > { %7628 = vmatprep.mubr.msk.f32.mxu0 %vm349_vm0, %v8179_v11 }
 0x174   : > { %7509 = vmatmul.mubr.msk.f32.gmra.mrb[50].mxu1 %vm349_vm0, %v8188_v14  ;;  %7810 = vmatprep.subr.bf16.mxu0 %v7809_v27  ;;  %v7368_v28 = vpop.f32.mrb[54].mxu0 }
 0x175   : > { %7515 = vmatprep.mubr.msk.f32.mxu1 %vm349_vm0, %v8132_v51  ;;  %7812 = vmatpush3.bf16.msra.mxu0 %v7809_v27  ;;  %v878_v29 = vpop.f32.mrb[55].mxu0 }
 0x176   : > { %7629 = vmatmul.mubr.msk.f32.gmra.mrb[82].mxu0 %vm349_vm0, %v8188_v14  ;;  %v8359_v30 = vpack.c.bf16 %v7368_v28, %v878_v29 }
 0x177   : > { %7645 = vmatprep.mubr.msk.f32.mxu0 %vm349_vm0, %v8132_v51 }
 0x178   : > { %7516 = vmatmul.mubr.msk.f32.vlgmr.msra.gmra.mrb[52].mxu1 %vm349_vm0, %v8174_v9  ;;  %v7371_v31 = vpop.f32.mrb[56].mxu0 }
 0x179   : > { %7764 = vmatpush3.bf16.msra.mxu1 %v8246_v52  ;;  %7518 = vmatprep.mubr.msk.f32.mxu1 %vm349_vm0, %v8179_v11  ;;  %v888_v32 = vpop.f32.mrb[57].mxu0 }
 0x17a   : > { %7766 = vmatprep.subr.bf16.mxu1 %v8252_v55  ;;  %7646 = vmatmul.mubr.msk.f32.vlgmr.msra.gmra.mrb[84].mxu0 %vm349_vm0, %v8174_v9  ;;  %v7817_v33 = vpack.c.bf16 %v7371_v31, %v888_v32 }
 0x17b   : > { %7648 = vmatprep.mubr.msk.f32.mxu0 %vm349_vm0, %v8179_v11 }
 0x17c   : > { %7519 = vmatmul.mubr.msk.f32.gmra.mrb[54].mxu1 %vm349_vm0, %v8188_v14  ;;  %7818 = vmatprep.subr.bf16.mxu0 %v7817_v33  ;;  %v7374_v34 = vpop.f32.mrb[58].mxu0 }
 0x17d   : > { %7525 = vmatprep.mubr.msk.f32.mxu1 %vm349_vm0, %v8132_v51  ;;  %7820 = vmatpush3.bf16.msra.mxu0 %v7817_v33  ;;  %v898_v35 = vpop.f32.mrb[59].mxu0 }
 0x17e   : > { %7649 = vmatmul.mubr.msk.f32.gmra.mrb[86].mxu0 %vm349_vm0, %v8188_v14  ;;  %v7821_v36 = vpack.c.bf16 %v7374_v34, %v898_v35 }
 0x17f   : > { %7665 = vmatprep.mubr.msk.f32.mxu0 %vm349_vm0, %v8132_v51 }
 0x180   : > { %7526 = vmatmul.mubr.msk.f32.vlgmr.msra.gmra.mrb[56].mxu1 %vm349_vm0, %v8174_v9  ;;  %v7377_v37 = vpop.f32.mrb[60].mxu0 }
 0x181   : > { %7768 = vmatpush3.bf16.msra.mxu1 %v8252_v55  ;;  %7528 = vmatprep.mubr.msk.f32.mxu1 %vm349_vm0, %v8179_v11  ;;  %v908_v38 = vpop.f32.mrb[61].mxu0 }
 0x182   : > { %7774 = vmatprep.subr.bf16.mxu1 %v8262_v61  ;;  %7666 = vmatmul.mubr.msk.f32.vlgmr.msra.gmra.mrb[88].mxu0 %vm349_vm0, %v8174_v9  ;;  %v7825_v39 = vpack.c.bf16 %v7377_v37, %v908_v38 }
 0x183   : > { %7668 = vmatprep.mubr.msk.f32.mxu0 %vm349_vm0, %v8179_v11 }
 0x184   : > { %7529 = vmatmul.mubr.msk.f32.gmra.mrb[58].mxu1 %vm349_vm0, %v8188_v14  ;;  %7826 = vmatprep.subr.bf16.mxu0 %v7825_v39  ;;  %v7380_v40 = vpop.f32.mrb[62].mxu0 }
 0x185   : > { %7535 = vmatprep.mubr.msk.f32.mxu1 %vm349_vm0, %v8132_v51  ;;  %7828 = vmatpush3.bf16.msra.mxu0 %v7825_v39  ;;  %v918_v41 = vpop.f32.mrb[63].mxu0 }
 0x186   : > { %7669 = vmatmul.mubr.msk.f32.gmra.mrb[90].mxu0 %vm349_vm0, %v8188_v14  ;;  %v7829_v42 = vpack.c.bf16 %v7380_v40, %v918_v41 }
 0x187   : > { %7685 = vmatprep.mubr.msk.f32.mxu0 %vm349_vm0, %v8132_v51 }
 0x188   : > { %7536 = vmatmul.mubr.msk.f32.vlgmr.msra.gmra.mrb[60].mxu1 %vm349_vm0, %v8174_v9 }
 0x189   : > { %7538 = vmatprep.mubr.msk.f32.mxu1 %vm349_vm0, %v8179_v11  ;;  %7776 = vmatpush3.bf16.msra.mxu1 %v8262_v61 }
 0x18a   : > { %7782 = vmatprep.subr.bf16.mxu1 %v8281_v3  ;;  %7686 = vmatmul.mubr.msk.f32.vlgmr.msra.gmra.mrb[92].mxu0 %vm349_vm0, %v8174_v9 }
 0x18b   : > { %7688 = vmatprep.mubr.msk.f32.mxu0 %vm349_vm0, %v8179_v11 }
 0x18c   : > { %7539 = vmatmul.mubr.msk.f32.gmra.mrb[62].mxu1 %vm349_vm0, %v8188_v14 }
 0x18d   : > { %7555 = vmatprep.mubr.msk.f32.mxu1 %vm349_vm0, %v8132_v51 }
 0x18e   : > { %7689 = vmatmul.mubr.msk.f32.gmra.mrb[94].mxu0 %vm349_vm0, %v8188_v14 }
 0x190   : > { %7556 = vmatmul.mubr.msk.f32.vlgmr.msra.gmra.mrb[64].mxu1 %vm349_vm0, %v8174_v9 }
 0x191   : > { %7558 = vmatprep.mubr.msk.f32.mxu1 %vm349_vm0, %v8179_v11  ;;  %7784 = vmatpush3.bf16.msra.mxu1 %v8281_v3 }
 0x192   : > { %7790 = vmatprep.subr.bf16.mxu1 %v8299_v10 }
 0x194   : > { %7559 = vmatmul.mubr.msk.f32.gmra.mrb[66].mxu1 %vm349_vm0, %v8188_v14 }
 0x195   : > { %7575 = vmatprep.mubr.msk.f32.mxu1 %vm349_vm0, %v8132_v51 }
 0x198   : > { %7576 = vmatmul.mubr.msk.f32.vlgmr.msra.gmra.mrb[68].mxu1 %vm349_vm0, %v8174_v9 }
 0x199   : > { %7578 = vmatprep.mubr.msk.f32.mxu1 %vm349_vm0, %v8179_v11  ;;  %7792 = vmatpush3.bf16.msra.mxu1 %v8299_v10 }
 0x19a   : > { %7798 = vmatprep.subr.bf16.mxu1 %v8319_v18 }
 0x19c   : > { %7579 = vmatmul.mubr.msk.f32.gmra.mrb[70].mxu1 %vm349_vm0, %v8188_v14 }
 0x19d   : > { %7595 = vmatprep.mubr.msk.f32.mxu1 %vm349_vm0, %v8132_v51 }
 0x1a0   : > { %7596 = vmatmul.mubr.msk.f32.vlgmr.msra.gmra.mrb[72].mxu1 %vm349_vm0, %v8174_v9 }
 0x1a1   : > { %7598 = vmatprep.mubr.msk.f32.mxu1 %vm349_vm0, %v8179_v11  ;;  %7800 = vmatpush3.bf16.msra.mxu1 %v8319_v18 }
 0x1a2   : > { %7806 = vmatprep.subr.bf16.mxu1 %v8339_v24 }
 0x1a4   : > { %7599 = vmatmul.mubr.msk.f32.gmra.mrb[74].mxu1 %vm349_vm0, %v8188_v14 }
 0x1a5   : > { %7615 = vmatprep.mubr.msk.f32.mxu1 %vm349_vm0, %v8132_v51 }
 0x1a8   : > { %7616 = vmatmul.mubr.msk.f32.vlgmr.msra.gmra.mrb[76].mxu1 %vm349_vm0, %v8174_v9 }
 0x1a9   : > { %7618 = vmatprep.mubr.msk.f32.mxu1 %vm349_vm0, %v8179_v11  ;;  %7808 = vmatpush3.bf16.msra.mxu1 %v8339_v24 }
 0x1aa   : > { %7814 = vmatprep.subr.bf16.mxu1 %v8359_v30 }
 0x1ac   : > { %7619 = vmatmul.mubr.msk.f32.gmra.mrb[78].mxu1 %vm349_vm0, %v8188_v14 }
 0x1ad   : > { %7635 = vmatprep.mubr.msk.f32.mxu1 %vm349_vm0, %v8132_v51 }
 0x1b0   : > { %7636 = vmatmul.mubr.msk.f32.vlgmr.msra.gmra.mrb[80].mxu1 %vm349_vm0, %v8174_v9 }
 0x1b1   : > { %7638 = vmatprep.mubr.msk.f32.mxu1 %vm349_vm0, %v8179_v11  ;;  %7816 = vmatpush3.bf16.msra.mxu1 %v8359_v30 }
 0x1b2   : > { %7822 = vmatprep.subr.bf16.mxu1 %v7821_v36 }
 0x1b4   : > { %7639 = vmatmul.mubr.msk.f32.gmra.mrb[82].mxu1 %vm349_vm0, %v8188_v14 }
 0x1b5   : > { %7655 = vmatprep.mubr.msk.f32.mxu1 %vm349_vm0, %v8132_v51 }
 0x1b8   : > { %7656 = vmatmul.mubr.msk.f32.vlgmr.msra.gmra.mrb[84].mxu1 %vm349_vm0, %v8174_v9 }
 0x1b9   : > { %7658 = vmatprep.mubr.msk.f32.mxu1 %vm349_vm0, %v8179_v11  ;;  %7824 = vmatpush3.bf16.msra.mxu1 %v7821_v36 }
 0x1ba   : > { %7830 = vmatprep.subr.bf16.mxu1 %v7829_v42 }
 0x1bc   : > { %7659 = vmatmul.mubr.msk.f32.gmra.mrb[86].mxu1 %vm349_vm0, %v8188_v14 }
 0x1bd   : > { %7675 = vmatprep.mubr.msk.f32.mxu1 %vm349_vm0, %v8132_v51 }
 0x1c0   : > { %7676 = vmatmul.mubr.msk.f32.vlgmr.msra.gmra.mrb[88].mxu1 %vm349_vm0, %v8174_v9 }
 0x1c1   : > { %7678 = vmatprep.mubr.msk.f32.mxu1 %vm349_vm0, %v8179_v11  ;;  %7832 = vmatpush3.bf16.msra.mxu1 %v7829_v42 }
 0x1c4   : > { %7679 = vmatmul.mubr.msk.f32.gmra.mrb[90].mxu1 %vm349_vm0, %v8188_v14 }
 0x1c5   : > { %7695 = vmatprep.mubr.msk.f32.mxu1 %vm349_vm0, %v8132_v51 }
 0x1c8   : > { %7696 = vmatmul.mubr.msk.f32.vlgmr.msra.gmra.mrb[92].mxu1 %vm349_vm0, %v8174_v9 }
 0x1c9   : > { %7698 = vmatprep.mubr.msk.f32.mxu1 %vm349_vm0, %v8179_v11 }
 0x1cc   : > { %7699 = vmatmul.mubr.msk.f32.gmra.mrb[94].mxu1 %vm349_vm0, %v8188_v14 }
 0x1e3   : > { %v7387_v51 = vpop.f32.mrb[0].mxu1 }
 0x1e4   : > { %3664 = vst.msk [vmem:[%s8491_s29 + $0x8] sm:$0xff] %vm349_vm0, %v7387_v51  ;;  %4627 = vrot.lane.b32.xlu0 %v7387_v51, %s7934_s30  ;;  %v8496_v9 = vpop.f32.mrb[1].mxu1 }
 0x1e5   : > { %3663 = vst.msk [vmem:[%s8491_s29] sm:$0xff] %vm349_vm0, %v8496_v9 }
 0x1e7   : > { %v7390_v11 = vpop.f32.mrb[2].mxu1 }
 0x1e8   : > { %4948 = vrot.lane.b32.xlu0 %v7387_v51, %s7935_s5  ;;  %v8502_v14 = vpop.f32.mrb[3].mxu1 }
 0x1eb   : > { %v7397_v43 = vpop.f32.mrb[4].mxu1 }
 0x1ec   : > { %3666 = vst.msk [vmem:[%s8491_s29 + $0x18] sm:$0xff] %vm349_vm0, %v7397_v43  ;;  %3759 = vrot.lane.b32.xlu0 %v7390_v11, %s7934_s30  ;;  %4629 = vrot.lane.b32.xlu1 %v7397_v43, %s7934_s30  ;;  %v8508_v44 = vpop.f32.mrb[5].mxu1 }
 0x1ed   : > { %3665 = vst.msk [vmem:[%s8491_s29 + $0x10] sm:$0xff] %vm349_vm0, %v8508_v44 }
 0x1ef   : > { %v7400_v45 = vpop.f32.mrb[6].mxu1 }
 0x1f0   : > { %3952 = vrot.lane.b32.xlu0 %v7390_v11, %s7935_s5  ;;  %4950 = vrot.lane.b32.xlu1 %v7397_v43, %s7935_s5  ;;  %v8515_v46 = vpop.f32.mrb[7].mxu1 }
 0x1f3   : > { %v7407_v47 = vpop.f32.mrb[8].mxu1 }
 0x1f4   : > { %3954 = vrot.lane.b32.xlu1 %v7400_v45, %s7935_s5  ;;  %3761 = vrot.lane.b32.xlu0 %v7400_v45, %s7934_s30  ;;  %3668 = vst.msk [vmem:[%s8491_s29 + $0x28] sm:$0xff] %vm349_vm0, %v7407_v47  ;;  %v8521_v48 = vpop.f32.mrb[9].mxu1 }
 0x1f5   : > { %3667 = vst.msk [vmem:[%s8491_s29 + $0x20] sm:$0xff] %vm349_vm0, %v8521_v48 }
 0x1f7   : > { %v7410_v49 = vpop.f32.mrb[10].mxu1 }
 0x1f8   : > { %4631 = vrot.lane.b32.xlu0 %v7407_v47, %s7934_s30  ;;  %3763 = vrot.lane.b32.xlu1 %v7410_v49, %s7934_s30  ;;  %v8528_v50 = vpop.f32.mrb[11].mxu1 }
 0x1f9   : > { %11501 = vst [vmem:[#allocation5_spill] sm:$0xff] %v8528_v50 }
 0x1fb   : > { %v7417_v52 = vpop.f32.mrb[12].mxu1 }
 0x1fc   : > { %3670 = vst.msk [vmem:[%s8491_s29 + $0x38] sm:$0xff] %vm349_vm0, %v7417_v52  ;;  %4952 = vrot.lane.b32.xlu0 %v7407_v47, %s7935_s5  ;;  %4633 = vrot.lane.b32.xlu1 %v7417_v52, %s7934_s30  ;;  %v8534_v53 = vpop.f32.mrb[13].mxu1 }
 0x1fd   : > { %3669 = vst.msk [vmem:[%s8491_s29 + $0x30] sm:$0xff] %vm349_vm0, %v8534_v53 }
 0x1ff   : > { %v7420_v54 = vpop.f32.mrb[14].mxu1 }
 0x200   : > { %3956 = vrot.lane.b32.xlu0 %v7410_v49, %s7935_s5  ;;  %4954 = vrot.lane.b32.xlu1 %v7417_v52, %s7935_s5  ;;  %v8541_v55 = vpop.f32.mrb[15].mxu1 }
 0x203   : > { %v7427_v56 = vpop.f32.mrb[16].mxu1 }
 0x204   : > { %3672 = vst.msk [vmem:[%s8491_s29 + $0x48] sm:$0xff] %vm349_vm0, %v7427_v56  ;;  %3765 = vrot.lane.b32.xlu1 %v7420_v54, %s7934_s30  ;;  %4635 = vrot.lane.b32.xlu0 %v7427_v56, %s7934_s30  ;;  %v8547_v57 = vpop.f32.mrb[17].mxu1 }
 0x205   : > { %11502 = vst [vmem:[#allocation6_spill] sm:$0xff] %v8547_v57  ;;  %3671 = vst.msk [vmem:[%s8491_s29 + $0x40] sm:$0xff] %vm349_vm0, %v8547_v57 }
 0x207   : > { %v7430_v58 = vpop.f32.mrb[18].mxu1 }
 0x208   : > { %3958 = vrot.lane.b32.xlu1 %v7420_v54, %s7935_s5  ;;  %4956 = vrot.lane.b32.xlu0 %v7427_v56, %s7935_s5  ;;  %v8554_v59 = vpop.f32.mrb[19].mxu1 }
 0x209   : > { %11503 = vst [vmem:[#allocation7_spill] sm:$0xff] %v8554_v59 }
 0x20b   : > { %v7437_v60 = vpop.f32.mrb[20].mxu1 }
 0x20c   : > { %3674 = vst.msk [vmem:[%s8491_s29 + $0x58] sm:$0xff] %vm349_vm0, %v7437_v60  ;;  %3767 = vrot.lane.b32.xlu0 %v7430_v58, %s7934_s30  ;;  %4637 = vrot.lane.b32.xlu1 %v7437_v60, %s7934_s30  ;;  %v8560_v61 = vpop.f32.mrb[21].mxu1 }
 0x20d   : > { %3673 = vst.msk [vmem:[%s8491_s29 + $0x50] sm:$0xff] %vm349_vm0, %v8560_v61 }
 0x20f   : > { %v7440_v62 = vpop.f32.mrb[22].mxu1 }
 0x210   : > { %3960 = vrot.lane.b32.xlu0 %v7430_v58, %s7935_s5  ;;  %4958 = vrot.lane.b32.xlu1 %v7437_v60, %s7935_s5  ;;  %v8567_v63 = vpop.f32.mrb[23].mxu1 }
 0x213   : > { %v7447_v0 = vpop.f32.mrb[24].mxu1 }
 0x214   : > { %3676 = vst.msk [vmem:[%s8491_s29 + $0x68] sm:$0xff] %vm349_vm0, %v7447_v0  ;;  %3769 = vrot.lane.b32.xlu1 %v7440_v62, %s7934_s30  ;;  %4639 = vrot.lane.b32.xlu0 %v7447_v0, %s7934_s30  ;;  %v8573_v1 = vpop.f32.mrb[25].mxu1 }
 0x215   : > { %11504 = vst [vmem:[#allocation8_spill] sm:$0xff] %v8573_v1  ;;  %3675 = vst.msk [vmem:[%s8491_s29 + $0x60] sm:$0xff] %vm349_vm0, %v8573_v1 }
 0x217   : > { %v7450_v2 = vpop.f32.mrb[26].mxu1 }
 0x218   : > { %3962 = vrot.lane.b32.xlu1 %v7440_v62, %s7935_s5  ;;  %4960 = vrot.lane.b32.xlu0 %v7447_v0, %s7935_s5  ;;  %v8580_v3 = vpop.f32.mrb[27].mxu1 }
 0x219   : > { %11505 = vst [vmem:[#allocation9_spill] sm:$0xff] %v8580_v3 }
 0x21b   : > { %v7457_v4 = vpop.f32.mrb[28].mxu1 }
 0x21c   : > { %3678 = vst.msk [vmem:[%s8491_s29 + $0x78] sm:$0xff] %vm349_vm0, %v7457_v4  ;;  %3771 = vrot.lane.b32.xlu0 %v7450_v2, %s7934_s30  ;;  %4641 = vrot.lane.b32.xlu1 %v7457_v4, %s7934_s30  ;;  %v8586_v5 = vpop.f32.mrb[29].mxu1 }
 0x21d   : > { %11506 = vst [vmem:[#allocation10_spill] sm:$0xff] %v8586_v5  ;;  %3677 = vst.msk [vmem:[%s8491_s29 + $0x70] sm:$0xff] %vm349_vm0, %v8586_v5 }
 0x21f   : > { %v7460_v6 = vpop.f32.mrb[30].mxu1 }
 0x220   : > { %3964 = vrot.lane.b32.xlu0 %v7450_v2, %s7935_s5  ;;  %4962 = vrot.lane.b32.xlu1 %v7457_v4, %s7935_s5  ;;  %v8593_v7 = vpop.f32.mrb[31].mxu1 }
 0x223   : > { %v7467_v8 = vpop.f32.mrb[32].mxu1  ;;  %v7547_v10 = vpop.f32.mrb[64].mxu0 }
 0x224   : > { %3680 = vst.msk [vmem:[%s8491_s29 + $0x88] sm:$0xff] %vm349_vm0, %v7467_v8  ;;  %3773 = vrot.lane.b32.xlu1 %v7460_v6, %s7934_s30  ;;  %4643 = vrot.lane.b32.xlu0 %v7467_v8, %s7934_s30  ;;  %3696 = vst.msk [vmem:[%s8491_s29 + $0x108] sm:$0xff] %vm349_vm0, %v7547_v10  ;;  %v8601_v12 = vpop.f32.mrb[33].mxu1  ;;  %v8603_v13 = vpop.f32.mrb[65].mxu0 }
 0x225   : > { %11507 = vst [vmem:[#allocation11_spill] sm:$0xff] %v8601_v12  ;;  %11508 = vst [vmem:[#allocation12_spill] sm:$0xff] %v8603_v13 }
 0x226   : > { %3679 = vst.msk [vmem:[%s8491_s29 + $0x80] sm:$0xff] %vm349_vm0, %v8601_v12  ;;  %3695 = vst.msk [vmem:[%s8491_s29 + $0x100] sm:$0xff] %vm349_vm0, %v8603_v13 }
 0x227   : > { %v7470_v15 = vpop.f32.mrb[34].mxu1  ;;  %v7550_v16 = vpop.f32.mrb[66].mxu0 }
 0x228   : > { %3966 = vrot.lane.b32.xlu1 %v7460_v6, %s7935_s5  ;;  %4659 = vrot.lane.b32.xlu0 %v7547_v10, %s7934_s30  ;;  %v8613_v17 = vpop.f32.mrb[35].mxu1  ;;  %v8615_v18 = vpop.f32.mrb[67].mxu0 }
 0x229   : > { %11509 = vst [vmem:[#allocation13_spill] sm:$0xff] %v8613_v17 }
 0x22b   : > { %v7477_v19 = vpop.f32.mrb[36].mxu1 }
 0x22c   : > { %3682 = vst.msk [vmem:[%s8491_s29 + $0x98] sm:$0xff] %vm349_vm0, %v7477_v19  ;;  %4645 = vrot.lane.b32.xlu1 %v7477_v19, %s7934_s30  ;;  %4964 = vrot.lane.b32.xlu0 %v7467_v8, %s7935_s5  ;;  %v8621_v20 = vpop.f32.mrb[37].mxu1 }
 0x22d   : > { %11510 = vst [vmem:[#allocation14_spill] sm:$0xff] %v8621_v20  ;;  %3681 = vst.msk [vmem:[%s8491_s29 + $0x90] sm:$0xff] %vm349_vm0, %v8621_v20  ;;  %v7567_v21 = vpop.f32.mrb[68].mxu0 }
 0x22e   : > { %3700 = vst.msk [vmem:[%s8491_s29 + $0x128] sm:$0xff] %vm349_vm0, %v7567_v21  ;;  %v8628_v22 = vpop.f32.mrb[69].mxu0 }
 0x22f   : > { %11511 = vst [vmem:[#allocation15_spill] sm:$0xff] %v8628_v22  ;;  %v7480_v23 = vpop.f32.mrb[38].mxu1  ;;  %3699 = vst.msk [vmem:[%s8491_s29 + $0x120] sm:$0xff] %vm349_vm0, %v8628_v22 }
 0x230   : > { %4966 = vrot.lane.b32.xlu1 %v7477_v19, %s7935_s5  ;;  %4980 = vrot.lane.b32.xlu0 %v7547_v10, %s7935_s5  ;;  %v8635_v24 = vpop.f32.mrb[39].mxu1 }
 0x231   : > { %11512 = vst [vmem:[#allocation16_spill] sm:$0xff] %v8635_v24  ;;  %v7570_v25 = vpop.f32.mrb[70].mxu0 }
 0x232   : > { %v8637_v26 = vpop.f32.mrb[71].mxu0 }
 0x233   : > { %v8639_v27 = vpop.f32.mrb[40].mxu1 }
 0x234   : > { %3777 = vrot.lane.b32.xlu1 %v7480_v23, %s7934_s30  ;;  %3775 = vrot.lane.b32.xlu0 %v7470_v15, %s7934_s30  ;;  %3684 = vst.msk [vmem:[%s8491_s29 + $0xa8] sm:$0xff] %vm349_vm0, %v8639_v27  ;;  %v8646_v28 = vpop.f32.mrb[41].mxu1 }
 0x235   : > { %11513 = vst [vmem:[#allocation17_spill] sm:$0xff] %v8646_v28  ;;  %3683 = vst.msk [vmem:[%s8491_s29 + $0xa0] sm:$0xff] %vm349_vm0, %v8646_v28  ;;  %v8651_v29 = vpop.f32.mrb[72].mxu0 }
 0x236   : > { %3704 = vst.msk [vmem:[%s8491_s29 + $0x148] sm:$0xff] %vm349_vm0, %v8651_v29  ;;  %v8656_v30 = vpop.f32.mrb[73].mxu0 }
 0x237   : > { %11514 = vst [vmem:[#allocation18_spill] sm:$0xff] %v8656_v30  ;;  %v8658_v31 = vpop.f32.mrb[42].mxu1  ;;  %3703 = vst.msk [vmem:[%s8491_s29 + $0x140] sm:$0xff] %vm349_vm0, %v8656_v30 }
 0x238   : > { %3970 = vrot.lane.b32.xlu1 %v7480_v23, %s7935_s5  ;;  %3791 = vrot.lane.b32.xlu0 %v7550_v16, %s7934_s30  ;;  %v8665_v32 = vpop.f32.mrb[43].mxu1 }
 0x239   : > { %v8667_v33 = vpop.f32.mrb[74].mxu0 }
 0x23a   : > { %v8669_v34 = vpop.f32.mrb[75].mxu0 }
 0x23b   : > { %v7497_v35 = vpop.f32.mrb[44].mxu1 }
 0x23c   : > { %3686 = vst.msk [vmem:[%s8491_s29 + $0xb8] sm:$0xff] %vm349_vm0, %v7497_v35  ;;  %4649 = vrot.lane.b32.xlu1 %v7497_v35, %s7934_s30  ;;  %3968 = vrot.lane.b32.xlu0 %v7470_v15, %s7935_s5  ;;  %v8675_v36 = vpop.f32.mrb[45].mxu1 }
 0x23d   : > { %11515 = vst [vmem:[#allocation19_spill] sm:$0xff] %v8675_v36  ;;  %3685 = vst.msk [vmem:[%s8491_s29 + $0xb0] sm:$0xff] %vm349_vm0, %v8675_v36  ;;  %v8680_v37 = vpop.f32.mrb[76].mxu0 }
 0x23e   : > { %3708 = vst.msk [vmem:[%s8491_s29 + $0x168] sm:$0xff] %vm349_vm0, %v8680_v37  ;;  %v8685_v38 = vpop.f32.mrb[77].mxu0 }
 0x23f   : > { %11516 = vst [vmem:[#allocation20_spill] sm:$0xff] %v8685_v38  ;;  %v7500_v39 = vpop.f32.mrb[46].mxu1  ;;  %3707 = vst.msk [vmem:[%s8491_s29 + $0x160] sm:$0xff] %vm349_vm0, %v8685_v38 }
 0x240   : > { %4970 = vrot.lane.b32.xlu1 %v7497_v35, %s7935_s5  ;;  %3984 = vrot.lane.b32.xlu0 %v7550_v16, %s7935_s5  ;;  %v8692_v40 = vpop.f32.mrb[47].mxu1 }
 0x241   : > { %v8694_v41 = vpop.f32.mrb[78].mxu0 }
 0x242   : > { %v8696_v42 = vpop.f32.mrb[79].mxu0 }
 0x243   : > { %v8698_v51 = vpop.f32.mrb[48].mxu1 }
 0x244   : > { %3781 = vrot.lane.b32.xlu1 %v7500_v39, %s7934_s30  ;;  %4663 = vrot.lane.b32.xlu0 %v7567_v21, %s7934_s30  ;;  %3688 = vst.msk [vmem:[%s8491_s29 + $0xc8] sm:$0xff] %vm349_vm0, %v8698_v51  ;;  %v8705_v11 = vpop.f32.mrb[49].mxu1 }
 0x245   : > { %11517 = vst [vmem:[#allocation21_spill] sm:$0xff] %v8705_v11  ;;  %3687 = vst.msk [vmem:[%s8491_s29 + $0xc0] sm:$0xff] %vm349_vm0, %v8705_v11  ;;  %v8710_v43 = vpop.f32.mrb[80].mxu0 }
 0x246   : > { %3712 = vst.msk [vmem:[%s8491_s29 + $0x188] sm:$0xff] %vm349_vm0, %v8710_v43  ;;  %v8715_v45 = vpop.f32.mrb[81].mxu0 }
 0x247   : > { %11518 = vst [vmem:[#allocation22_spill] sm:$0xff] %v8715_v45  ;;  %v8717_v47 = vpop.f32.mrb[50].mxu1  ;;  %3711 = vst.msk [vmem:[%s8491_s29 + $0x180] sm:$0xff] %vm349_vm0, %v8715_v45 }
 0x248   : > { %3974 = vrot.lane.b32.xlu1 %v7500_v39, %s7935_s5  ;;  %4984 = vrot.lane.b32.xlu0 %v7567_v21, %s7935_s5  ;;  %v8724_v49 = vpop.f32.mrb[51].mxu1 }
 0x249   : > { %11519 = vst [vmem:[#allocation23_spill] sm:$0xff] %v8724_v49  ;;  %v8726_v52 = vpop.f32.mrb[82].mxu0 }
 0x24a   : > { %v8728_v54 = vpop.f32.mrb[83].mxu0 }
 0x24b   : > { %11520 = vst [vmem:[#allocation24_spill] sm:$0xff] %v8728_v54  ;;  %v7517_v56 = vpop.f32.mrb[52].mxu1 }
 0x24c   : > { %3690 = vst.msk [vmem:[%s8491_s29 + $0xd8] sm:$0xff] %vm349_vm0, %v7517_v56  ;;  %4653 = vrot.lane.b32.xlu1 %v7517_v56, %s7934_s30  ;;  %3795 = vrot.lane.b32.xlu0 %v7570_v25, %s7934_s30  ;;  %v8734_v58 = vpop.f32.mrb[53].mxu1 }
 0x24d   : > { %11521 = vst [vmem:[#allocation25_spill] sm:$0xff] %v8734_v58  ;;  %3689 = vst.msk [vmem:[%s8491_s29 + $0xd0] sm:$0xff] %vm349_vm0, %v8734_v58  ;;  %v8739_v60 = vpop.f32.mrb[84].mxu0 }
 0x24e   : > { %3716 = vst.msk [vmem:[%s8491_s29 + $0x1a8] sm:$0xff] %vm349_vm0, %v8739_v60  ;;  %v8744_v62 = vpop.f32.mrb[85].mxu0 }
 0x24f   : > { %11522 = vst [vmem:[#allocation26_spill] sm:$0xff] %v8744_v62  ;;  %v7520_v0 = vpop.f32.mrb[54].mxu1  ;;  %3715 = vst.msk [vmem:[%s8491_s29 + $0x1a0] sm:$0xff] %vm349_vm0, %v8744_v62 }
 0x250   : > { %4974 = vrot.lane.b32.xlu1 %v7517_v56, %s7935_s5  ;;  %3988 = vrot.lane.b32.xlu0 %v7570_v25, %s7935_s5  ;;  %v8751_v2 = vpop.f32.mrb[55].mxu1 }
 0x251   : > { %11523 = vst [vmem:[#allocation27_spill] sm:$0xff] %v8751_v2  ;;  %v8753_v4 = vpop.f32.mrb[86].mxu0 }
 0x252   : > { %v8755_v6 = vpop.f32.mrb[87].mxu0 }
 0x253   : > { %11524 = vst [vmem:[#allocation28_spill] sm:$0xff] %v8755_v6  ;;  %v8757_v8 = vpop.f32.mrb[56].mxu1 }
 0x254   : > { %3785 = vrot.lane.b32.xlu1 %v7520_v0, %s7934_s30  ;;  %4647 = vrot.lane.b32.xlu0 %v8639_v27, %s7934_s30  ;;  %3692 = vst.msk [vmem:[%s8491_s29 + $0xe8] sm:$0xff] %vm349_vm0, %v8757_v8  ;;  %v8765_v10 = vpop.f32.mrb[57].mxu1 }
 0x255   : > { %11525 = vst [vmem:[#allocation29_spill] sm:$0xff] %v8765_v10  ;;  %3691 = vst.msk [vmem:[%s8491_s29 + $0xe0] sm:$0xff] %vm349_vm0, %v8765_v10  ;;  %v8770_v15 = vpop.f32.mrb[88].mxu0 }
 0x256   : > { %v8772_v16 = vpop.permute.xlu0 %4627  ;;  %3720 = vst.msk [vmem:[%s8491_s29 + $0x1c8] sm:$0xff] %vm349_vm0, %v8770_v15  ;;  %v8777_v19 = vpop.f32.mrb[89].mxu0 }
 0x257   : > { %11526 = vst [vmem:[#allocation30_spill] sm:$0xff] %v8777_v19  ;;  %v8779_v21 = vpop.f32.mrb[58].mxu1  ;;  %3719 = vst.msk [vmem:[%s8491_s29 + $0x1c0] sm:$0xff] %vm349_vm0, %v8777_v19 }
 0x258   : > { %3978 = vrot.lane.b32.xlu1 %v7520_v0, %s7935_s5  ;;  %4667 = vrot.lane.b32.xlu0 %v8651_v29, %s7934_s30  ;;  %v8787_v23 = vpop.f32.mrb[59].mxu1 }
 0x259   : > { %11527 = vst [vmem:[#allocation31_spill] sm:$0xff] %v8787_v23  ;;  %v8789_v25 = vpop.f32.mrb[90].mxu0 }
 0x25a   : > { %v8791_v35 = vpop.permute.xlu0 %4948  ;;  %v8793_v39 = vpop.f32.mrb[91].mxu0 }
 0x25b   : > { %11528 = vst [vmem:[#allocation32_spill] sm:$0xff] %v8793_v39  ;;  %v7537_v56 = vpop.f32.mrb[60].mxu1 }
 0x25c   : > { %3694 = vst.msk [vmem:[%s8491_s29 + $0xf8] sm:$0xff] %vm349_vm0, %v7537_v56  ;;  %4657 = vrot.lane.b32.xlu1 %v7537_v56, %s7934_s30  ;;  %4968 = vrot.lane.b32.xlu0 %v8639_v27, %s7935_s5  ;;  %v8801_v0 = vpop.f32.mrb[61].mxu1 }
 0x25d   : > { %11529 = vst [vmem:[#allocation33_spill] sm:$0xff] %v8801_v0  ;;  %3693 = vst.msk [vmem:[%s8491_s29 + $0xf0] sm:$0xff] %vm349_vm0, %v8801_v0  ;;  %v8852_v36 = vpop.f32.mrb[92].mxu0 }
 0x25e   : > { %v3760_v19 = vpop.permute.xlu0 %3759  ;;  %v4630_v10 = vpop.permute.xlu1 %4629  ;;  %3724 = vst.msk [vmem:[%s8491_s29 + $0x1e8] sm:$0xff] %vm349_vm0, %v8852_v36 }
 0x25f   : > { %v3855_v62 = vsub.f32 %v8502_v14, %v3760_v19  ;;  %v4273_v45 = vadd.f32 %v3760_v19, %v8502_v14  ;;  %v7540_v11 = vpop.f32.mrb[62].mxu1 }
 0x260   : > { %4978 = vrot.lane.b32.xlu1 %v7537_v56, %s7935_s5  ;;  %4988 = vrot.lane.b32.xlu0 %v8651_v29, %s7935_s5  ;;  %v8816_v27 = vpop.f32.mrb[63].mxu1 }
 0x261   : > { %11530 = vst [vmem:[#allocation34_spill] sm:$0xff] %v8816_v27  ;;  %v8818_v38 = vmul.f32 0.70710677, %v3855_v62  ;;  %v8820_v19 = vmul.f32 0.70710677, %v4273_v45  ;;  %v4724_v45 = vsub.f32 %v8508_v44, %v4630_v10 }
 0x262   : > { %v8822_v0 = vpop.permute.xlu0 %3952  ;;  %v8824_v30 = vpop.permute.xlu1 %4950 }
 0x263   : > { %11531 = vst [vmem:[#allocation35_spill] sm:$0xff] %v8820_v19  ;;  %3920 = vst.msk [vmem:[%s8811_s8] sm:$0xff] %vm3919_vm1, %v8818_v38  ;;  %v8832_v56 = vpop.f32.mrb[64].mxu1 }
 0x264   : > { %6699 = vst.msk [vmem:[%s8811_s8 + $0x28] sm:$0xff] %vm3919_vm1, %v8820_v19  ;;  %3789 = vrot.lane.b32.xlu1 %v7540_v11, %s7934_s30  ;;  %3779 = vrot.lane.b32.xlu0 %v8658_v31, %s7934_s30  ;;  %v8840_v29 = vpop.f32.mrb[65].mxu1 }
 0x265   : > { %3698 = vst.msk [vmem:[%s8491_s29 + $0x118] sm:$0xff] %vm349_vm0, %v8832_v56  ;;  %11532 = vst [vmem:[#allocation36_spill] sm:$0xff] %v8840_v29 }
 0x266   : > { %3697 = vst.msk [vmem:[%s8491_s29 + $0x110] sm:$0xff] %vm349_vm0, %v8840_v29  ;;  %v8846_v62 = vpop.permute.xlu1 %3954  ;;  %v3762_v19 = vpop.permute.xlu0 %3761 }
 0x267   : > { %v3856_v28 = vsub.f32 %v8515_v46, %v3762_v19  ;;  %v4274_v58 = vadd.f32 %v3762_v19, %v8515_v46  ;;  %v8850_v22 = vpop.f32.mrb[66].mxu1  ;;  %v5045_v19 = vadd.f32 %v8824_v30, %v8508_v44 }
 0x268   : > { %3982 = vrot.lane.b32.xlu1 %v7540_v11, %s7935_s5  ;;  %3799 = vrot.lane.b32.xlu0 %v8667_v33, %s7934_s30  ;;  %v8857_v29 = vpop.f32.mrb[67].mxu1  ;;  %v4756_v11 = vmul.f32 0.70710677, %v4724_v45  ;;  %v8888_v45 = vpop.f32.mrb[93].mxu0 }
 0x269   : > { %11533 = vst [vmem:[#allocation37_spill] sm:$0xff] %v8857_v29  ;;  %v8862_v20 = vmul.f32 0.70710677, %v4274_v58  ;;  %v8868_v39 = vmul.f32 0.70710677, %v3856_v28  ;;  %11536 = vst [vmem:[#allocation40_spill] sm:$0xff] %v8888_v45 }
 0x26a   : > { %v8866_v13 = vpop.permute.xlu0 %4631  ;;  %v3764_v12 = vpop.permute.xlu1 %3763  ;;  %3723 = vst.msk [vmem:[%s8491_s29 + $0x1e0] sm:$0xff] %vm349_vm0, %v8888_v45  ;;  %v5077_v5 = vmul.f32 0.70710677, %v5045_v19 }
 0x26b   : > { %11534 = vst [vmem:[#allocation38_spill] sm:$0xff] %v8862_v20  ;;  %6700 = vst.msk [vmem:[%s8811_s8 + $0x88] sm:$0xff] %vm3919_vm1, %v8862_v20  ;;  %v3857_v23 = vsub.f32 %v8528_v50, %v3764_v12  ;;  %v4275_v1 = vadd.f32 %v3764_v12, %v8528_v50  ;;  %v8875_v58 = vpop.f32.mrb[68].mxu1 }
 0x26c   : > { %4821 = vrot.lane.b32.xlu1 %v4756_v11, %s7936_s9  ;;  %3972 = vrot.lane.b32.xlu0 %v8658_v31, %s7935_s5  ;;  %3921 = vst.msk [vmem:[%s8811_s8 + $0x60] sm:$0xff] %vm3919_vm1, %v8868_v39  ;;  %v8886_v28 = vpop.f32.mrb[69].mxu1  ;;  %v5270_v31 = vadd.f32 %v4630_v10, %v8508_v44  ;;  %v5495_v10 = vsub.f32 %v8508_v44, %v8824_v30 }
 0x26d   : > { %3702 = vst.msk [vmem:[%s8491_s29 + $0x138] sm:$0xff] %vm349_vm0, %v8875_v58  ;;  %11535 = vst [vmem:[#allocation39_spill] sm:$0xff] %v8886_v28  ;;  %v8890_v12 = vmul.f32 0.70710677, %v3857_v23  ;;  %v8899_v11 = vmul.f32 0.70710677, %v4275_v1 }
 0x26e   : > { %3701 = vst.msk [vmem:[%s8491_s29 + $0x130] sm:$0xff] %vm349_vm0, %v8886_v28  ;;  %v8901_v20 = vpop.permute.xlu0 %4952  ;;  %v8903_v6 = vpop.permute.xlu1 %4633  ;;  %v5302_v28 = vmul.f32 0.70710677, %v5270_v31 }
 0x26f   : > { %11537 = vst [vmem:[#allocation41_spill] sm:$0xff] %v8890_v12  ;;  %11538 = vst [vmem:[#allocation42_spill] sm:$0xff] %v8899_v11  ;;  %v8908_v23 = vpop.f32.mrb[70].mxu1 }
 0x270   : > { %3922 = vst.msk [vmem:[%s8811_s8 + $0xc0] sm:$0xff] %vm3919_vm1, %v8890_v12  ;;  %6701 = vst.msk [vmem:[%s8811_s8 + $0xe8] sm:$0xff] %vm3919_vm1, %v8899_v11  ;;  %5142 = vrot.lane.b32.xlu1 %v5077_v5, %s7937_s10  ;;  %3992 = vrot.lane.b32.xlu0 %v8667_v33, %s7935_s5  ;;  %v8916_v1 = vpop.f32.mrb[71].mxu1  ;;  %v5527_v33 = vmul.f32 0.70710677, %v5495_v10 }
 0x271   : > { %11539 = vst [vmem:[#allocation43_spill] sm:$0xff] %v8916_v1 }
 0x272   : > { %v8920_v19 = vpop.permute.xlu0 %3956  ;;  %v8922_v45 = vpop.permute.xlu1 %4954 }
 0x273   : > { %11540 = vst [vmem:[#allocation44_spill] sm:$0xff] %v8920_v19  ;;  %v8924_v12 = vpop.f32.mrb[72].mxu1 }
 0x274   : > { %5367 = vrot.lane.b32.xlu1 %v5302_v28, %s7936_s9  ;;  %4671 = vrot.lane.b32.xlu0 %v8680_v37, %s7934_s30  ;;  %3706 = vst.msk [vmem:[%s8491_s29 + $0x158] sm:$0xff] %vm349_vm0, %v8924_v12  ;;  %v8932_v5 = vpop.f32.mrb[73].mxu1 }
 0x275   : > { %11541 = vst [vmem:[#allocation45_spill] sm:$0xff] %v8932_v5  ;;  %3705 = vst.msk [vmem:[%s8491_s29 + $0x150] sm:$0xff] %vm349_vm0, %v8932_v5  ;;  %v8948_v5 = vpop.f32.mrb[94].mxu0 }
 0x276   : > { %v3766_v44 = vpop.permute.xlu1 %3765  ;;  %v8937_v30 = vpop.permute.xlu0 %4635 }
 0x277   : > { %11542 = vst [vmem:[#allocation46_spill] sm:$0xff] %v8937_v30  ;;  %v3858_v31 = vsub.f32 %v8541_v55, %v3766_v44  ;;  %v4276_v28 = vadd.f32 %v3766_v44, %v8541_v55  ;;  %v8941_v11 = vpop.f32.mrb[74].mxu1  ;;  %v8992_v19 = vpop.f32.mrb[95].mxu0 }
 0x278   : > { %5592 = vrot.lane.b32.xlu1 %v5527_v33, %s7937_s10  ;;  %4992 = vrot.lane.b32.xlu0 %v8680_v37, %s7935_s5  ;;  %v8946_v57 = vpop.f32.mrb[75].mxu1  ;;  %v4049_v33 = vadd.f32 %v8846_v62, %v8515_v46  ;;  %11548 = vst [vmem:[#allocation52_spill] sm:$0xff] %v8992_v19 }
 0x279   : > { %11543 = vst [vmem:[#allocation47_spill] sm:$0xff] %v8946_v57  ;;  %v8950_v1 = vmul.f32 0.70710677, %v3858_v31  ;;  %v8952_v10 = vmul.f32 0.70710677, %v4276_v28 }
 0x27a   : > { %v8954_v30 = vpop.permute.xlu1 %3958  ;;  %v8956_v54 = vpop.permute.xlu0 %4956 }
 0x27b   : > { %11544 = vst [vmem:[#allocation48_spill] sm:$0xff] %v8952_v10  ;;  %11545 = vst [vmem:[#allocation49_spill] sm:$0xff] %v8956_v54  ;;  %v8964_v44 = vpop.f32.mrb[76].mxu1 }
 0x27c   : > { %3923 = vst.msk [vmem:[%s8811_s8 + $0x120] sm:$0xff] %vm3919_vm1, %v8950_v1  ;;  %6702 = vst.msk [vmem:[%s8811_s8 + $0x148] sm:$0xff] %vm3919_vm1, %v8952_v10  ;;  %4661 = vrot.lane.b32.xlu1 %v8832_v56, %s7934_s30  ;;  %3803 = vrot.lane.b32.xlu0 %v8694_v41, %s7934_s30  ;;  %v8973_v37 = vpop.f32.mrb[77].mxu1 }
 0x27d   : > { %3710 = vst.msk [vmem:[%s8491_s29 + $0x178] sm:$0xff] %vm349_vm0, %v8964_v44  ;;  %11546 = vst [vmem:[#allocation50_spill] sm:$0xff] %v8973_v37 }
 0x27e   : > { %3709 = vst.msk [vmem:[%s8491_s29 + $0x170] sm:$0xff] %vm349_vm0, %v8973_v37  ;;  %v3768_v31 = vpop.permute.xlu0 %3767  ;;  %v8980_v28 = vpop.permute.xlu1 %4637 }
 0x27f   : > { %v3859_v10 = vsub.f32 %v8554_v59, %v3768_v31  ;;  %v4277_v57 = vadd.f32 %v3768_v31, %v8554_v59  ;;  %v8984_v54 = vpop.f32.mrb[78].mxu1  ;;  %v4371_v31 = vsub.f32 %v8515_v46, %v8846_v62 }
 0x280   : > { %4982 = vrot.lane.b32.xlu1 %v8832_v56, %s7935_s5  ;;  %3996 = vrot.lane.b32.xlu0 %v8694_v41, %s7935_s5  ;;  %v8990_v37 = vpop.f32.mrb[79].mxu1  ;;  %v9004_v56 = vmul.f32 0.70710677, %v4049_v33 }
 0x281   : > { %11547 = vst [vmem:[#allocation51_spill] sm:$0xff] %v8990_v37  ;;  %v8994_v50 = vmul.f32 0.70710677, %v3859_v10  ;;  %v8996_v49 = vmul.f32 0.70710677, %v4277_v57 }
 0x282   : > { %v9000_v59 = vpop.permute.xlu0 %3960  ;;  %v9002_v29 = vpop.permute.xlu1 %4958  ;;  %11551 = vst [vmem:[#allocation55_spill] sm:$0xff] %v9004_v56  ;;  %v9028_v10 = vmul.f32 0.70710677, %v4371_v31 }
 0x283   : > { %11549 = vst [vmem:[#allocation53_spill] sm:$0xff] %v8994_v50  ;;  %11550 = vst [vmem:[#allocation54_spill] sm:$0xff] %v8996_v49  ;;  %v9012_v41 = vpop.f32.mrb[80].mxu1 }
 0x284   : > { %3924 = vst.msk [vmem:[%s8811_s8 + $0x180] sm:$0xff] %vm3919_vm1, %v8994_v50  ;;  %6703 = vst.msk [vmem:[%s8811_s8 + $0x1a8] sm:$0xff] %vm3919_vm1, %v8996_v49  ;;  %4146 = vrot.lane.b32.xlu1 %v9004_v56, %s7934_s30  ;;  %4651 = vrot.lane.b32.xlu0 %v8698_v51, %s7934_s30  ;;  %v9021_v46 = vpop.f32.mrb[81].mxu1 }
 0x285   : > { %3714 = vst.msk [vmem:[%s8491_s29 + $0x198] sm:$0xff] %vm349_vm0, %v9012_v41  ;;  %11552 = vst [vmem:[#allocation56_spill] sm:$0xff] %v9021_v46 }
 0x286   : > { %3713 = vst.msk [vmem:[%s8491_s29 + $0x190] sm:$0xff] %vm349_vm0, %v9021_v46  ;;  %v3770_v57 = vpop.permute.xlu1 %3769  ;;  %v9026_v62 = vpop.permute.xlu0 %4639  ;;  %11553 = vst [vmem:[#allocation57_spill] sm:$0xff] %v9028_v10 }
 0x287   : > { %v3860_v33 = vsub.f32 %v8567_v63, %v3770_v57  ;;  %v4278_v49 = vadd.f32 %v3770_v57, %v8567_v63  ;;  %v9032_v56 = vpop.f32.mrb[82].mxu1 }
 0x288   : > { %4468 = vrot.lane.b32.xlu1 %v9028_v10, %s7934_s30  ;;  %4675 = vrot.lane.b32.xlu0 %v8710_v43, %s7934_s30  ;;  %v9038_v19 = vpop.f32.mrb[83].mxu1 }
 0x289   : > { %11554 = vst [vmem:[#allocation58_spill] sm:$0xff] %v9038_v19  ;;  %v9040_v46 = vmul.f32 0.70710677, %v3860_v33  ;;  %v9042_v37 = vmul.f32 0.70710677, %v4278_v49 }
 0x28a   : > { %v9044_v31 = vpop.permute.xlu1 %3962  ;;  %v9046_v50 = vpop.permute.xlu0 %4960 }
 0x28b   : > { %11555 = vst [vmem:[#allocation59_spill] sm:$0xff] %v9042_v37  ;;  %11556 = vst [vmem:[#allocation60_spill] sm:$0xff] %v9046_v50  ;;  %v9062_v19 = vpop.f32.mrb[84].mxu1 }
 0x28c   : > { %3925 = vst.msk [vmem:[%s8811_s8 + $0x1e0] sm:$0xff] %vm3919_vm1, %v9040_v46  ;;  %6704 = vst.msk [vmem:[%s8811_s8 + $0x208] sm:$0xff] %vm3919_vm1, %v9042_v37  ;;  %5753 = vrot.lane.b32.xlu1 %v8868_v39, %s7936_s9  ;;  %4972 = vrot.lane.b32.xlu0 %v8698_v51, %s7935_s5  ;;  %v9071_v51 = vpop.f32.mrb[85].mxu1 }
 0x28d   : > { %3718 = vst.msk [vmem:[%s8491_s29 + $0x1b8] sm:$0xff] %vm349_vm0, %v9062_v19  ;;  %11557 = vst [vmem:[#allocation61_spill] sm:$0xff] %v9071_v51 }
 0x28e   : > { %v3772_v49 = vpop.permute.xlu0 %3771  ;;  %v9058_v57 = vpop.permute.xlu1 %4641  ;;  %3717 = vst.msk [vmem:[%s8491_s29 + $0x1b0] sm:$0xff] %vm349_vm0, %v9071_v51 }
 0x28f   : > { %v3861_v33 = vsub.f32 %v8580_v3, %v3772_v49  ;;  %v4279_v10 = vadd.f32 %v3772_v49, %v8580_v3 }
 0x290   : > { %3793 = vrot.lane.b32.xlu1 %v8850_v22, %s7934_s30  ;;  %4996 = vrot.lane.b32.xlu0 %v8710_v43, %s7935_s5 }
 0x291   : > { %v9073_v39 = vmul.f32 0.70710677, %v3861_v33  ;;  %v9075_v37 = vmul.f32 0.70710677, %v4279_v10 }
 0x292   : > { %v9080_v49 = vpop.permute.xlu0 %3964  ;;  %v9082_v3 = vpop.permute.xlu1 %4962 }
 0x293   : > { %11558 = vst [vmem:[#allocation62_spill] sm:$0xff] %v9073_v39  ;;  %11559 = vst [vmem:[#allocation63_spill] sm:$0xff] %v9075_v37 }
 0x294   : > { %11560 = vst [vmem:[#allocation64_spill] sm:$0xff] %v9080_v49  ;;  %3926 = vst.msk [vmem:[%s8811_s8 + $0x240] sm:$0xff] %vm3919_vm1, %v9073_v39  ;;  %3986 = vrot.lane.b32.xlu1 %v8850_v22, %s7935_s5  ;;  %3783 = vrot.lane.b32.xlu0 %v8717_v47, %s7934_s30  ;;  %v9098_v49 = vpop.f32.mrb[86].mxu1 }
 0x295   : > { %6705 = vst.msk [vmem:[%s8811_s8 + $0x268] sm:$0xff] %vm3919_vm1, %v9075_v37  ;;  %v9104_v37 = vpop.f32.mrb[87].mxu1 }
 0x296   : > { %v3774_v43 = vpop.permute.xlu1 %3773  ;;  %v9094_v10 = vpop.permute.xlu0 %4643  ;;  %11562 = vst [vmem:[#allocation66_spill] sm:$0xff] %v9104_v37 }
 0x297   : > { %11561 = vst [vmem:[#allocation65_spill] sm:$0xff] %v9094_v10  ;;  %v3862_v33 = vsub.f32 %v8593_v7, %v3774_v43  ;;  %v4280_v51 = vadd.f32 %v3774_v43, %v8593_v7 }
 0x298   : > { %4665 = vrot.lane.b32.xlu1 %v8875_v58, %s7934_s30  ;;  %3807 = vrot.lane.b32.xlu0 %v8726_v52, %s7934_s30 }
 0x299   : > { %v9106_v22 = vmul.f32 0.70710677, %v3862_v33  ;;  %v9108_v39 = vmul.f32 0.70710677, %v4280_v51  ;;  %v4726_v33 = vsub.f32 %v8534_v53, %v8903_v6 }
 0x29a   : > { %v9110_v50 = vpop.permute.xlu1 %3966  ;;  %v9112_v10 = vpop.permute.xlu0 %4659 }
 0x29b   : > { %11563 = vst [vmem:[#allocation67_spill] sm:$0xff] %v9106_v22  ;;  %11564 = vst [vmem:[#allocation68_spill] sm:$0xff] %v9108_v39 }
 0x29c   : > { %11565 = vst [vmem:[#allocation69_spill] sm:$0xff] %v9110_v50  ;;  %11566 = vst [vmem:[#allocation70_spill] sm:$0xff] %v9112_v10  ;;  %4986 = vrot.lane.b32.xlu1 %v8875_v58, %s7935_s5  ;;  %3976 = vrot.lane.b32.xlu0 %v8717_v47, %s7935_s5  ;;  %v5047_v47 = vadd.f32 %v8922_v45, %v8534_v53  ;;  %v5272_v50 = vadd.f32 %v8903_v6, %v8534_v53 }
 0x29d   : > { %3927 = vst.msk [vmem:[%s8811_s8 + $0x2a0] sm:$0xff] %vm3919_vm1, %v9106_v22  ;;  %6706 = vst.msk [vmem:[%s8811_s8 + $0x2c8] sm:$0xff] %vm3919_vm1, %v9108_v39 }
 0x29e   : > { %v9124_v43 = vpop.permute.xlu1 %4645  ;;  %v9126_v51 = vpop.permute.xlu0 %4964 }
 0x29f   : > { %11567 = vst [vmem:[#allocation71_spill] sm:$0xff] %v9124_v43  ;;  %11568 = vst [vmem:[#allocation72_spill] sm:$0xff] %v9126_v51 }
 0x2a0   : > { %3797 = vrot.lane.b32.xlu1 %v8908_v23, %s7934_s30  ;;  %4000 = vrot.lane.b32.xlu0 %v8726_v52, %s7935_s5  ;;  %v4758_v52 = vmul.f32 0.70710677, %v4726_v33 }
 0x2a2   : > { %v9134_v39 = vpop.permute.xlu1 %4966  ;;  %v9136_v37 = vpop.permute.xlu0 %4980 }
 0x2a3   : > { %11569 = vst [vmem:[#allocation73_spill] sm:$0xff] %v9134_v39  ;;  %11570 = vst [vmem:[#allocation74_spill] sm:$0xff] %v9136_v37 }
 0x2a4   : > { %3990 = vrot.lane.b32.xlu1 %v8908_v23, %s7935_s5  ;;  %4679 = vrot.lane.b32.xlu0 %v8739_v60, %s7934_s30 }
 0x2a6   : > { %v3778_v58 = vpop.permute.xlu1 %3777  ;;  %v3776_v51 = vpop.permute.xlu0 %3775 }
 0x2a7   : > { %v3864_v43 = vsub.f32 %v8635_v24, %v3778_v58  ;;  %v4282_v39 = vadd.f32 %v3778_v58, %v8635_v24  ;;  %v3863_v37 = vsub.f32 %v8613_v17, %v3776_v51  ;;  %v4281_v23 = vadd.f32 %v3776_v51, %v8613_v17 }
 0x2a8   : > { %4825 = vrot.lane.b32.xlu1 %v4758_v52, %s7936_s9  ;;  %5000 = vrot.lane.b32.xlu0 %v8739_v60, %s7935_s5  ;;  %v5079_v17 = vmul.f32 0.70710677, %v5047_v47 }
 0x2a9   : > { %v9151_v10 = vmul.f32 0.70710677, %v3864_v43  ;;  %v9153_v22 = vmul.f32 0.70710677, %v4282_v39  ;;  %v9155_v33 = vmul.f32 0.70710677, %v3863_v37  ;;  %v5497_v43 = vsub.f32 %v8534_v53, %v8922_v45 }
 0x2aa   : > { %v9159_v58 = vmul.f32 0.70710677, %v4281_v23  ;;  %v9161_v24 = vpop.permute.xlu1 %3970  ;;  %v3792_v51 = vpop.permute.xlu0 %3791  ;;  %v5304_v39 = vmul.f32 0.70710677, %v5272_v50 }
 0x2ab   : > { %11571 = vst [vmem:[#allocation75_spill] sm:$0xff] %v9153_v22  ;;  %3929 = vst.msk [vmem:[%s8811_s8 + $0x360] sm:$0xff] %vm3919_vm1, %v9151_v10  ;;  %v3871_v60 = vsub.f32 %v8615_v18, %v3792_v51  ;;  %v4289_v6 = vadd.f32 %v3792_v51, %v8615_v18  ;;  %v9193_v51 = vpop.f32.mrb[88].mxu1  ;;  %v5529_v53 = vmul.f32 0.70710677, %v5497_v43 }
 0x2ac   : > { %11572 = vst [vmem:[#allocation76_spill] sm:$0xff] %v9159_v58  ;;  %6708 = vst.msk [vmem:[%s8811_s8 + $0x388] sm:$0xff] %vm3919_vm1, %v9153_v22  ;;  %5146 = vrot.lane.b32.xlu1 %v5079_v17, %s7937_s10  ;;  %3811 = vrot.lane.b32.xlu0 %v8753_v4, %s7934_s30  ;;  %v9204_v50 = vpop.f32.mrb[89].mxu1 }
 0x2ad   : > { %3928 = vst.msk [vmem:[%s8811_s8 + $0x300] sm:$0xff] %vm3919_vm1, %v9155_v33  ;;  %6707 = vst.msk [vmem:[%s8811_s8 + $0x328] sm:$0xff] %vm3919_vm1, %v9159_v58  ;;  %v9180_v37 = vmul.f32 0.70710677, %v3871_v60  ;;  %v9184_v47 = vmul.f32 0.70710677, %v4289_v6 }
 0x2ae   : > { %v9186_v52 = vpop.permute.xlu1 %4649  ;;  %v9188_v23 = vpop.permute.xlu0 %3968  ;;  %3722 = vst.msk [vmem:[%s8491_s29 + $0x1d8] sm:$0xff] %vm349_vm0, %v9193_v51  ;;  %11574 = vst [vmem:[#allocation78_spill] sm:$0xff] %v9204_v50 }
 0x2af   : > { %11573 = vst [vmem:[#allocation77_spill] sm:$0xff] %v9184_v47  ;;  %3936 = vst.msk [vmem:[%s8811_s8 + $0x600] sm:$0xff] %vm3919_vm1, %v9180_v37 }
 0x2b0   : > { %6715 = vst.msk [vmem:[%s8811_s8 + $0x628] sm:$0xff] %vm3919_vm1, %v9184_v47  ;;  %5371 = vrot.lane.b32.xlu1 %v5304_v39, %s7936_s9  ;;  %4004 = vrot.lane.b32.xlu0 %v8753_v4, %s7935_s5 }
 0x2b1   : > { %3721 = vst.msk [vmem:[%s8491_s29 + $0x1d0] sm:$0xff] %vm349_vm0, %v9204_v50 }
 0x2b2   : > { %v9209_v17 = vpop.permute.xlu1 %4970  ;;  %v9211_v45 = vpop.permute.xlu0 %3984 }
 0x2b4   : > { %5596 = vrot.lane.b32.xlu1 %v5529_v53, %s7937_s10  ;;  %4655 = vrot.lane.b32.xlu0 %v8757_v8, %s7934_s30  ;;  %v4051_v53 = vadd.f32 %v8954_v30, %v8541_v55 }
 0x2b6   : > { %v3782_v4 = vpop.permute.xlu1 %3781  ;;  %v9216_v60 = vpop.permute.xlu0 %4663 }
 0x2b7   : > { %v3866_v6 = vsub.f32 %v8692_v40, %v3782_v4  ;;  %v4284_v39 = vadd.f32 %v3782_v4, %v8692_v40  ;;  %v9244_v4 = vmul.f32 0.70710677, %v4051_v53 }
 0x2b8   : > { %4669 = vrot.lane.b32.xlu1 %v8924_v12, %s7934_s30  ;;  %4683 = vrot.lane.b32.xlu0 %v8770_v15, %s7934_s30 }
 0x2b9   : > { %v9224_v43 = vmul.f32 0.70710677, %v3866_v6  ;;  %v9226_v47 = vmul.f32 0.70710677, %v4284_v39  ;;  %11577 = vst [vmem:[#allocation81_spill] sm:$0xff] %v9244_v4  ;;  %v4373_v6 = vsub.f32 %v8541_v55, %v8954_v30 }
 0x2ba   : > { %v9230_v22 = vpop.permute.xlu1 %3974  ;;  %v9232_v58 = vpop.permute.xlu0 %4984 }
 0x2bb   : > { %11575 = vst [vmem:[#allocation79_spill] sm:$0xff] %v9224_v43  ;;  %11576 = vst [vmem:[#allocation80_spill] sm:$0xff] %v9226_v47 }
 0x2bc   : > { %3931 = vst.msk [vmem:[%s8811_s8 + $0x420] sm:$0xff] %vm3919_vm1, %v9224_v43  ;;  %6710 = vst.msk [vmem:[%s8811_s8 + $0x448] sm:$0xff] %vm3919_vm1, %v9226_v47  ;;  %4990 = vrot.lane.b32.xlu1 %v8924_v12, %s7935_s5  ;;  %4976 = vrot.lane.b32.xlu0 %v8757_v8, %s7935_s5  ;;  %v9258_v12 = vmul.f32 0.70710677, %v4373_v6 }
 0x2be   : > { %v9248_v39 = vpop.permute.xlu1 %4653  ;;  %v3796_v50 = vpop.permute.xlu0 %3795  ;;  %11579 = vst [vmem:[#allocation83_spill] sm:$0xff] %v9258_v12 }
 0x2bf   : > { %v3873_v43 = vsub.f32 %v8637_v26, %v3796_v50  ;;  %v4291_v47 = vadd.f32 %v3796_v50, %v8637_v26  ;;  %v9269_v50 = vpop.f32.mrb[90].mxu1 }
 0x2c0   : > { %4150 = vrot.lane.b32.xlu1 %v9244_v4, %s7934_s30  ;;  %5004 = vrot.lane.b32.xlu0 %v8770_v15, %s7935_s5  ;;  %v9278_v15 = vpop.f32.mrb[91].mxu1 }
 0x2c1   : > { %v9256_v8 = vmul.f32 0.70710677, %v3873_v43  ;;  %v9260_v53 = vmul.f32 0.70710677, %v4291_v47  ;;  %11582 = vst [vmem:[#allocation86_spill] sm:$0xff] %v9278_v15 }
 0x2c2   : > { %v9262_v55 = vpop.permute.xlu1 %4974  ;;  %v9264_v30 = vpop.permute.xlu0 %3988 }
 0x2c3   : > { %11578 = vst [vmem:[#allocation82_spill] sm:$0xff] %v9256_v8  ;;  %11580 = vst [vmem:[#allocation84_spill] sm:$0xff] %v9260_v53 }
 0x2c4   : > { %11581 = vst [vmem:[#allocation85_spill] sm:$0xff] %v9264_v30  ;;  %3938 = vst.msk [vmem:[%s8811_s8 + $0x6c0] sm:$0xff] %vm3919_vm1, %v9256_v8  ;;  %4472 = vrot.lane.b32.xlu1 %v9258_v12, %s7934_s30  ;;  %3787 = vrot.lane.b32.xlu0 %v8779_v21, %s7934_s30 }
 0x2c5   : > { %6717 = vst.msk [vmem:[%s8811_s8 + $0x6e8] sm:$0xff] %vm3919_vm1, %v9260_v53 }
 0x2c6   : > { %v3786_v47 = vpop.permute.xlu1 %3785  ;;  %v9280_v43 = vpop.permute.xlu0 %4647 }
 0x2c7   : > { %11583 = vst [vmem:[#allocation87_spill] sm:$0xff] %v9280_v43  ;;  %v3868_v6 = vsub.f32 %v8751_v2, %v3786_v47  ;;  %v4286_v4 = vadd.f32 %v3786_v47, %v8751_v2  ;;  %v9302_v47 = vpop.f32.mrb[92].mxu1 }
 0x2c8   : > { %5757 = vrot.lane.b32.xlu1 %v8950_v1, %s7936_s9  ;;  %3815 = vrot.lane.b32.xlu0 %v8789_v25, %s7934_s30  ;;  %3726 = vst.msk [vmem:[%s8491_s29 + $0x1f8] sm:$0xff] %vm349_vm0, %v9302_v47  ;;  %v9311_v1 = vpop.f32.mrb[93].mxu1 }
 0x2c9   : > { %v9288_v12 = vmul.f32 0.70710677, %v3868_v6  ;;  %v9290_v53 = vmul.f32 0.70710677, %v4286_v4  ;;  %11588 = vst [vmem:[#allocation92_spill] sm:$0xff] %v9311_v1  ;;  %3725 = vst.msk [vmem:[%s8491_s29 + $0x1f0] sm:$0xff] %vm349_vm0, %v9311_v1  ;;  %v4723_v4 = vsub.f32 %v8496_v9, %v8772_v16 }
 0x2ca   : > { %v9292_v15 = vpop.permute.xlu1 %3978  ;;  %v9294_v8 = vpop.permute.xlu0 %4667 }
 0x2cb   : > { %11584 = vst [vmem:[#allocation88_spill] sm:$0xff] %v9288_v12  ;;  %11585 = vst [vmem:[#allocation89_spill] sm:$0xff] %v9290_v53  ;;  %v9332_v43 = vpop.f32.mrb[94].mxu1 }
 0x2cc   : > { %11586 = vst [vmem:[#allocation90_spill] sm:$0xff] %v9292_v15  ;;  %11587 = vst [vmem:[#allocation91_spill] sm:$0xff] %v9294_v8  ;;  %3801 = vrot.lane.b32.xlu1 %v8941_v11, %s7934_s30  ;;  %3980 = vrot.lane.b32.xlu0 %v8779_v21, %s7935_s5  ;;  %v4755_v21 = vmul.f32 0.70710677, %v4723_v4 }
 0x2cd   : > { %3933 = vst.msk [vmem:[%s8811_s8 + $0x4e0] sm:$0xff] %vm3919_vm1, %v9288_v12  ;;  %6712 = vst.msk [vmem:[%s8811_s8 + $0x508] sm:$0xff] %vm3919_vm1, %v9290_v53  ;;  %v5044_v12 = vadd.f32 %v8791_v35, %v8496_v9 }
 0x2ce   : > { %v9318_v6 = vpop.permute.xlu1 %4657  ;;  %v9320_v53 = vpop.permute.xlu0 %4968 }
 0x2cf   : > { %11589 = vst [vmem:[#allocation93_spill] sm:$0xff] %v9318_v6  ;;  %11590 = vst [vmem:[#allocation94_spill] sm:$0xff] %v9320_v53  ;;  %v9337_v53 = vpop.f32.mrb[95].mxu1 }
 0x2d0   : > { %3994 = vrot.lane.b32.xlu1 %v8941_v11, %s7935_s5  ;;  %4008 = vrot.lane.b32.xlu0 %v8789_v25, %s7935_s5  ;;  %11593 = vst [vmem:[#allocation97_spill] sm:$0xff] %v9337_v53  ;;  %v5269_v25 = vadd.f32 %v8772_v16, %v8496_v9  ;;  %v5076_v11 = vmul.f32 0.70710677, %v5044_v12 }
 0x2d2   : > { %v9328_v8 = vpop.permute.xlu1 %4978  ;;  %v9330_v1 = vpop.permute.xlu0 %4988  ;;  %v5301_v53 = vmul.f32 0.70710677, %v5269_v25 }
 0x2d3   : > { %11591 = vst [vmem:[#allocation95_spill] sm:$0xff] %v9328_v8  ;;  %11592 = vst [vmem:[#allocation96_spill] sm:$0xff] %v9330_v1 }
 0x2d4   : > { %4673 = vrot.lane.b32.xlu1 %v8964_v44, %s7934_s30  ;;  %4819 = vrot.lane.b32.xlu0 %v4755_v21, %s7936_s9 }
 0x2d6   : > { %v3790_v4 = vpop.permute.xlu1 %3789  ;;  %v3780_v6 = vpop.permute.xlu0 %3779 }
 0x2d7   : > { %v3870_v8 = vsub.f32 %v8816_v27, %v3790_v4  ;;  %v4288_v1 = vadd.f32 %v3790_v4, %v8816_v27  ;;  %v3865_v15 = vsub.f32 %v8665_v32, %v3780_v6  ;;  %v4283_v2 = vadd.f32 %v3780_v6, %v8665_v32 }
 0x2d8   : > { %4994 = vrot.lane.b32.xlu1 %v8964_v44, %s7935_s5  ;;  %5140 = vrot.lane.b32.xlu0 %v5076_v11, %s7937_s10  ;;  %v5494_v4 = vsub.f32 %v8496_v9, %v8791_v35  ;;  %v5049_v11 = vadd.f32 %v9002_v29, %v8560_v61 }
 0x2d9   : > { %v9348_v16 = vmul.f32 0.70710677, %v3870_v8  ;;  %v9350_v12 = vmul.f32 0.70710677, %v4288_v1  ;;  %v9352_v21 = vmul.f32 0.70710677, %v3865_v15  ;;  %v4728_v8 = vsub.f32 %v8560_v61, %v8980_v28 }
 0x2da   : > { %v9356_v27 = vmul.f32 0.70710677, %v4283_v2  ;;  %v9358_v30 = vpop.permute.xlu1 %3982  ;;  %v3800_v6 = vpop.permute.xlu0 %3799  ;;  %v5526_v35 = vmul.f32 0.70710677, %v5494_v4 }
 0x2db   : > { %11594 = vst [vmem:[#allocation98_spill] sm:$0xff] %v9350_v12  ;;  %3935 = vst.msk [vmem:[%s8811_s8 + $0x5a0] sm:$0xff] %vm3919_vm1, %v9348_v16  ;;  %v3875_v44 = vsub.f32 %v8669_v34, %v3800_v6  ;;  %v4293_v9 = vadd.f32 %v3800_v6, %v8669_v34 }
 0x2dc   : > { %11595 = vst [vmem:[#allocation99_spill] sm:$0xff] %v9356_v27  ;;  %6714 = vst.msk [vmem:[%s8811_s8 + $0x5c8] sm:$0xff] %vm3919_vm1, %v9350_v12  ;;  %3805 = vrot.lane.b32.xlu1 %v8984_v54, %s7934_s30  ;;  %5365 = vrot.lane.b32.xlu0 %v5301_v53, %s7936_s9  ;;  %v4760_v53 = vmul.f32 0.70710677, %v4728_v8 }
 0x2dd   : > { %3930 = vst.msk [vmem:[%s8811_s8 + $0x3c0] sm:$0xff] %vm3919_vm1, %v9352_v21  ;;  %6709 = vst.msk [vmem:[%s8811_s8 + $0x3e8] sm:$0xff] %vm3919_vm1, %v9356_v27  ;;  %v9377_v2 = vmul.f32 0.70710677, %v3875_v44  ;;  %v9381_v15 = vmul.f32 0.70710677, %v4293_v9  ;;  %v5274_v44 = vadd.f32 %v8980_v28, %v8560_v61  ;;  %v5499_v28 = vsub.f32 %v8560_v61, %v9002_v29 }
 0x2de   : > { %v4822_v1 = vpop.permute.xlu1 %4821  ;;  %v9383_v25 = vpop.permute.xlu0 %3972  ;;  %v5081_v9 = vmul.f32 0.70710677, %v5049_v11 }
 0x2df   : > { %11596 = vst [vmem:[#allocation100_spill] sm:$0xff] %v9381_v15  ;;  %3940 = vst.msk [vmem:[%s8811_s8 + $0x780] sm:$0xff] %vm3919_vm1, %v9377_v2 }
 0x2e0   : > { %6764 = vst.msk [vmem:[%s8811_s8 + $0x70] sm:$0xff] %vm3919_vm1, %v4822_v1  ;;  %6719 = vst.msk [vmem:[%s8811_s8 + $0x7a8] sm:$0xff] %vm3919_vm1, %v9381_v15  ;;  %3998 = vrot.lane.b32.xlu1 %v8984_v54, %s7935_s5  ;;  %5590 = vrot.lane.b32.xlu0 %v5526_v35, %s7937_s10  ;;  %v4048_v54 = vadd.f32 %v8822_v0, %v8502_v14 }
 0x2e2   : > { %v5143_v4 = vpop.permute.xlu1 %5142  ;;  %v9398_v6 = vpop.permute.xlu0 %3992  ;;  %v9416_v1 = vmul.f32 0.70710677, %v4048_v54  ;;  %v5531_v54 = vmul.f32 0.70710677, %v5499_v28 }
 0x2e3   : > { %6796 = vst.msk [vmem:[%s8811_s8 + $0xa0] sm:$0xff] %vm3919_vm1, %v5143_v4  ;;  %v5306_v4 = vmul.f32 0.70710677, %v5274_v44 }
 0x2e4   : > { %4829 = vrot.lane.b32.xlu1 %v4760_v53, %s7936_s9  ;;  %4687 = vrot.lane.b32.xlu0 %v8852_v36, %s7934_s30  ;;  %11597 = vst [vmem:[#allocation101_spill] sm:$0xff] %v9416_v1  ;;  %v4370_v53 = vsub.f32 %v8502_v14, %v8822_v0 }
 0x2e6   : > { %v5368_v35 = vpop.permute.xlu1 %5367  ;;  %v9409_v8 = vpop.permute.xlu0 %4671 }
 0x2e7   : > { %6828 = vst.msk [vmem:[%s8811_s8 + $0x78] sm:$0xff] %vm3919_vm1, %v5368_v35 }
 0x2e8   : > { %5150 = vrot.lane.b32.xlu1 %v5081_v9, %s7937_s10  ;;  %5008 = vrot.lane.b32.xlu0 %v8852_v36, %s7935_s5  ;;  %v9429_v36 = vmul.f32 0.70710677, %v4370_v53 }
 0x2ea   : > { %v5593_v11 = vpop.permute.xlu1 %5592  ;;  %v9422_v15 = vpop.permute.xlu0 %4992  ;;  %11598 = vst [vmem:[#allocation102_spill] sm:$0xff] %v9429_v36 }
 0x2eb   : > { %6860 = vst.msk [vmem:[%s8811_s8 + $0xa8] sm:$0xff] %vm3919_vm1, %v5593_v11 }
 0x2ec   : > { %5375 = vrot.lane.b32.xlu1 %v5306_v4, %s7936_s9  ;;  %4144 = vrot.lane.b32.xlu0 %v9416_v1, %s7934_s30  ;;  %v4053_v4 = vadd.f32 %v9044_v31, %v8567_v63 }
 0x2ee   : > { %v9431_v14 = vpop.permute.xlu1 %4661  ;;  %v3804_v0 = vpop.permute.xlu0 %3803 }
 0x2ef   : > { %v3877_v61 = vsub.f32 %v8696_v42, %v3804_v0  ;;  %v4295_v29 = vadd.f32 %v3804_v0, %v8696_v42  ;;  %v9468_v0 = vmul.f32 0.70710677, %v4053_v4 }
 0x2f0   : > { %5600 = vrot.lane.b32.xlu1 %v5531_v54, %s7937_s10  ;;  %4466 = vrot.lane.b32.xlu0 %v9429_v36, %s7934_s30  ;;  %v4725_v54 = vsub.f32 %v8521_v48, %v8866_v13 }
 0x2f1   : > { %v9438_v44 = vmul.f32 0.70710677, %v3877_v61  ;;  %v9440_v9 = vmul.f32 0.70710677, %v4295_v29 }
 0x2f2   : > { %v9442_v35 = vpop.permute.xlu1 %4982  ;;  %v9444_v53 = vpop.permute.xlu0 %3996 }
 0x2f3   : > { %11599 = vst [vmem:[#allocation103_spill] sm:$0xff] %v9440_v9  ;;  %3942 = vst.msk [vmem:[%s8811_s8 + $0x840] sm:$0xff] %vm3919_vm1, %v9438_v44 }
 0x2f4   : > { %6721 = vst.msk [vmem:[%s8811_s8 + $0x868] sm:$0xff] %vm3919_vm1, %v9440_v9  ;;  %4677 = vrot.lane.b32.xlu1 %v9012_v41, %s7934_s30  ;;  %5751 = vrot.lane.b32.xlu0 %v8818_v38, %s7936_s9  ;;  %v4375_v38 = vsub.f32 %v8567_v63, %v9044_v31  ;;  %v5271_v63 = vadd.f32 %v8866_v13, %v8521_v48 }
 0x2f5   : > { %v5496_v13 = vsub.f32 %v8521_v48, %v8901_v20 }
 0x2f6   : > { %v4147_v28 = vpop.permute.xlu1 %4146  ;;  %v9458_v11 = vpop.permute.xlu0 %4651  ;;  %v9482_v4 = vmul.f32 0.70710677, %v4375_v38  ;;  %v11603_v38 = vld [vmem:[#allocation37_spill] sm:$0xff] }
 0x2f7   : > { %6668 = vst.msk [vmem:[%s8811_s8 + $0x90] sm:$0xff] %vm3919_vm1, %v4147_v28  ;;  %v5046_v28 = vadd.f32 %v8901_v20, %v8521_v48  ;;  %v5528_v20 = vmul.f32 0.70710677, %v5496_v13 }
 0x2f8   : > { %4998 = vrot.lane.b32.xlu1 %v9012_v41, %s7935_s5  ;;  %3819 = vrot.lane.b32.xlu0 %v8948_v5, %s7934_s30  ;;  %v4757_v41 = vmul.f32 0.70710677, %v4725_v54  ;;  %11600 = vst [vmem:[#allocation104_spill] sm:$0xff] %v9482_v4 }
 0x2fa   : > { %v4469_v61 = vpop.permute.xlu1 %4468  ;;  %v9472_v29 = vpop.permute.xlu0 %4675 }
 0x2fb   : > { %6732 = vst.msk [vmem:[%s8811_s8 + $0xb8] sm:$0xff] %vm3919_vm1, %v4469_v61 }
 0x2fc   : > { %4154 = vrot.lane.b32.xlu1 %v9468_v0, %s7934_s30  ;;  %4012 = vrot.lane.b32.xlu0 %v8948_v5, %s7935_s5  ;;  %v5078_v5 = vmul.f32 0.70710677, %v5046_v28 }
 0x2fe   : > { %v5754_v36 = vpop.permute.xlu1 %5753  ;;  %v9484_v9 = vpop.permute.xlu0 %4972 }
 0x2ff   : > { %11601 = vst [vmem:[#allocation105_spill] sm:$0xff] %v9484_v9  ;;  %6892 = vst.msk [vmem:[%s8811_s8 + $0x68] sm:$0xff] %vm3919_vm1, %v5754_v36 }
 0x300   : > { %4476 = vrot.lane.b32.xlu1 %v9482_v4, %s7934_s30  ;;  %4823 = vrot.lane.b32.xlu0 %v4757_v41, %s7936_s9  ;;  %v5303_v4 = vmul.f32 0.70710677, %v5271_v63  ;;  %v11608_v63 = vld [vmem:[#allocation5_spill] sm:$0xff] }
 0x302   : > { %v3794_v31 = vpop.permute.xlu1 %3793  ;;  %v9493_v54 = vpop.permute.xlu0 %4996 }
 0x303   : > { %11602 = vst [vmem:[#allocation106_spill] sm:$0xff] %v9493_v54  ;;  %v3872_v61 = vsub.f32 %v11603_v38, %v3794_v31  ;;  %v4290_v12 = vadd.f32 %v3794_v31, %v11603_v38  ;;  %v11609_v31 = vld [vmem:[#allocation44_spill] sm:$0xff] }
 0x304   : > { %5761 = vrot.lane.b32.xlu1 %v9040_v46, %s7936_s9  ;;  %5144 = vrot.lane.b32.xlu0 %v5078_v5, %s7937_s10  ;;  %v11606_v46 = vld [vmem:[#allocation23_spill] sm:$0xff] }
 0x305   : > { %v9500_v36 = vmul.f32 0.70710677, %v3872_v61  ;;  %v9502_v41 = vmul.f32 0.70710677, %v4290_v12  ;;  %v4050_v61 = vadd.f32 %v11609_v31, %v11608_v63 }
 0x306   : > { %v9506_v28 = vpop.permute.xlu1 %3986  ;;  %v3784_v27 = vpop.permute.xlu0 %3783 }
 0x307   : > { %11604 = vst [vmem:[#allocation37_spill] sm:$0xff] %v9500_v36  ;;  %11605 = vst [vmem:[#allocation107_spill] sm:$0xff] %v9502_v41  ;;  %v3867_v5 = vsub.f32 %v11606_v46, %v3784_v27  ;;  %v4285_v12 = vadd.f32 %v3784_v27, %v11606_v46  ;;  %v11612_v27 = vld [vmem:[#allocation24_spill] sm:$0xff] }
 0x308   : > { %3937 = vst.msk [vmem:[%s8811_s8 + $0x660] sm:$0xff] %vm3919_vm1, %v9500_v36  ;;  %6716 = vst.msk [vmem:[%s8811_s8 + $0x688] sm:$0xff] %vm3919_vm1, %v9502_v41  ;;  %3809 = vrot.lane.b32.xlu1 %v9032_v56, %s7934_s30  ;;  %5369 = vrot.lane.b32.xlu0 %v5303_v4, %s7936_s9 }
 0x309   : > { %v9519_v48 = vmul.f32 0.70710677, %v3867_v5  ;;  %v9523_v1 = vmul.f32 0.70710677, %v4285_v12  ;;  %v9540_v5 = vmul.f32 0.70710677, %v4050_v61  ;;  %v4372_v12 = vsub.f32 %v11608_v63, %v11609_v31 }
 0x30a   : > { %v9525_v41 = vpop.permute.xlu1 %4665  ;;  %v3808_v36 = vpop.permute.xlu0 %3807  ;;  %v11620_v63 = vld [vmem:[#allocation43_spill] sm:$0xff] }
 0x30b   : > { %11607 = vst [vmem:[#allocation108_spill] sm:$0xff] %v9519_v48  ;;  %11610 = vst [vmem:[#allocation5_spill] sm:$0xff] %v9523_v1  ;;  %v3879_v46 = vsub.f32 %v11612_v27, %v3808_v36  ;;  %v4297_v4 = vadd.f32 %v3808_v36, %v11612_v27 }
 0x30c   : > { %11611 = vst [vmem:[#allocation44_spill] sm:$0xff] %v9525_v41  ;;  %3932 = vst.msk [vmem:[%s8811_s8 + $0x480] sm:$0xff] %vm3919_vm1, %v9519_v48  ;;  %4002 = vrot.lane.b32.xlu1 %v9032_v56, %s7935_s5  ;;  %5594 = vrot.lane.b32.xlu0 %v5528_v20, %s7937_s10  ;;  %v9560_v56 = vmul.f32 0.70710677, %v4372_v12  ;;  %v11623_v12 = vld [vmem:[#allocation46_spill] sm:$0xff] }
 0x30d   : > { %6711 = vst.msk [vmem:[%s8811_s8 + $0x4a8] sm:$0xff] %vm3919_vm1, %v9523_v1  ;;  %v9538_v13 = vmul.f32 0.70710677, %v3879_v46  ;;  %11614 = vst [vmem:[#allocation110_spill] sm:$0xff] %v9540_v5  ;;  %v9544_v48 = vmul.f32 0.70710677, %v4297_v4 }
 0x30e   : > { %v9546_v41 = vpop.permute.xlu1 %4986  ;;  %v9548_v36 = vpop.permute.xlu0 %3976  ;;  %11618 = vst [vmem:[#allocation114_spill] sm:$0xff] %v9560_v56  ;;  %v11624_v1 = vld [vmem:[#allocation6_spill] sm:$0xff] }
 0x30f   : > { %11613 = vst [vmem:[#allocation109_spill] sm:$0xff] %v9538_v13  ;;  %11615 = vst [vmem:[#allocation111_spill] sm:$0xff] %v9544_v48 }
 0x310   : > { %11616 = vst [vmem:[#allocation112_spill] sm:$0xff] %v9546_v41  ;;  %11617 = vst [vmem:[#allocation113_spill] sm:$0xff] %v9548_v36  ;;  %4681 = vrot.lane.b32.xlu1 %v9062_v19, %s7934_s30  ;;  %4148 = vrot.lane.b32.xlu0 %v9540_v5, %s7934_s30  ;;  %v4727_v5 = vsub.f32 %v11624_v1, %v11623_v12 }
 0x311   : > { %3944 = vst.msk [vmem:[%s8811_s8 + $0x900] sm:$0xff] %vm3919_vm1, %v9538_v13  ;;  %6723 = vst.msk [vmem:[%s8811_s8 + $0x928] sm:$0xff] %vm3919_vm1, %v9544_v48 }
 0x312   : > { %v3798_v46 = vpop.permute.xlu1 %3797  ;;  %v9562_v20 = vpop.permute.xlu0 %4000 }
 0x313   : > { %11619 = vst [vmem:[#allocation115_spill] sm:$0xff] %v9562_v20  ;;  %v3874_v31 = vsub.f32 %v11620_v63, %v3798_v46  ;;  %v4292_v61 = vadd.f32 %v3798_v46, %v11620_v63  ;;  %v4759_v46 = vmul.f32 0.70710677, %v4727_v5 }
 0x314   : > { %5002 = vrot.lane.b32.xlu1 %v9062_v19, %s7935_s5  ;;  %4470 = vrot.lane.b32.xlu0 %v9560_v56, %s7934_s30  ;;  %v11627_v19 = vld [vmem:[#allocation41_spill] sm:$0xff]  ;;  %v11629_v56 = vld [vmem:[#allocation10_spill] sm:$0xff] }
 0x315   : > { %v9570_v4 = vmul.f32 0.70710677, %v3874_v31  ;;  %v9572_v48 = vmul.f32 0.70710677, %v4292_v61  ;;  %v11628_v31 = vld [vmem:[#allocation49_spill] sm:$0xff] }
 0x316   : > { %v9576_v13 = vpop.permute.xlu1 %3990  ;;  %v9578_v20 = vpop.permute.xlu0 %4679  ;;  %v5048_v61 = vadd.f32 %v11628_v31, %v11624_v1 }
 0x317   : > { %11621 = vst [vmem:[#allocation116_spill] sm:$0xff] %v9570_v4  ;;  %11622 = vst [vmem:[#allocation117_spill] sm:$0xff] %v9572_v48 }
 0x318   : > { %11625 = vst [vmem:[#allocation46_spill] sm:$0xff] %v9576_v13  ;;  %11626 = vst [vmem:[#allocation6_spill] sm:$0xff] %v9578_v20  ;;  %3813 = vrot.lane.b32.xlu1 %v9098_v49, %s7934_s30  ;;  %5755 = vrot.lane.b32.xlu0 %v11627_v19, %s7936_s9  ;;  %v4730_v20 = vsub.f32 %v11629_v56, %v9058_v57  ;;  %v5273_v19 = vadd.f32 %v11623_v12, %v11624_v1  ;;  %v5080_v5 = vmul.f32 0.70710677, %v5048_v61 }
 0x319   : > { %3939 = vst.msk [vmem:[%s8811_s8 + $0x720] sm:$0xff] %vm3919_vm1, %v9570_v4  ;;  %6718 = vst.msk [vmem:[%s8811_s8 + $0x748] sm:$0xff] %vm3919_vm1, %v9572_v48  ;;  %v5051_v4 = vadd.f32 %v9082_v3, %v11629_v56  ;;  %v5498_v61 = vsub.f32 %v11624_v1, %v11628_v31 }
 0x31a   : > { %v4826_v27 = vpop.permute.xlu1 %4825  ;;  %v9594_v13 = vpop.permute.xlu0 %5000  ;;  %v4762_v48 = vmul.f32 0.70710677, %v4730_v20 }
 0x31b   : > { %11630 = vst [vmem:[#allocation41_spill] sm:$0xff] %v9594_v13  ;;  %6766 = vst.msk [vmem:[%s8811_s8 + $0x130] sm:$0xff] %vm3919_vm1, %v4826_v27  ;;  %v11631_v27 = vld [vmem:[#allocation28_spill] sm:$0xff]  ;;  %v5083_v41 = vmul.f32 0.70710677, %v5051_v4 }
 0x31c   : > { %4006 = vrot.lane.b32.xlu1 %v9098_v49, %s7935_s5  ;;  %4827 = vrot.lane.b32.xlu0 %v4759_v46, %s7936_s9  ;;  %v5305_v46 = vmul.f32 0.70710677, %v5273_v19  ;;  %v5530_v1 = vmul.f32 0.70710677, %v5498_v61 }
 0x31e   : > { %v5147_v63 = vpop.permute.xlu1 %5146  ;;  %v3812_v36 = vpop.permute.xlu0 %3811 }
 0x31f   : > { %6798 = vst.msk [vmem:[%s8811_s8 + $0x160] sm:$0xff] %vm3919_vm1, %v5147_v63  ;;  %v3881_v13 = vsub.f32 %v11631_v27, %v3812_v36  ;;  %v4299_v49 = vadd.f32 %v3812_v36, %v11631_v27  ;;  %v5276_v63 = vadd.f32 %v9058_v57, %v11629_v56  ;;  %v5501_v36 = vsub.f32 %v11629_v56, %v9082_v3 }
 0x320   : > { %4833 = vrot.lane.b32.xlu1 %v4762_v48, %s7936_s9  ;;  %5148 = vrot.lane.b32.xlu0 %v5080_v5, %s7937_s10  ;;  %v11634_v48 = vld [vmem:[#allocation7_spill] sm:$0xff] }
 0x321   : > { %v9611_v12 = vmul.f32 0.70710677, %v3881_v13  ;;  %v9613_v20 = vmul.f32 0.70710677, %v4299_v49  ;;  %v4052_v57 = vadd.f32 %v9000_v59, %v11634_v48  ;;  %v5308_v13 = vmul.f32 0.70710677, %v5276_v63 }
 0x322   : > { %v5372_v54 = vpop.permute.xlu1 %5371  ;;  %v9619_v9 = vpop.permute.xlu0 %4004  ;;  %v5533_v19 = vmul.f32 0.70710677, %v5501_v36  ;;  %v11641_v63 = vld [vmem:[#allocation69_spill] sm:$0xff] }
 0x323   : > { %11632 = vst [vmem:[#allocation49_spill] sm:$0xff] %v9611_v12  ;;  %11633 = vst [vmem:[#allocation10_spill] sm:$0xff] %v9613_v20 }
 0x324   : > { %3946 = vst.msk [vmem:[%s8811_s8 + $0x9c0] sm:$0xff] %vm3919_vm1, %v9611_v12  ;;  %6725 = vst.msk [vmem:[%s8811_s8 + $0x9e8] sm:$0xff] %vm3919_vm1, %v9613_v20  ;;  %5154 = vrot.lane.b32.xlu1 %v5083_v41, %s7937_s10  ;;  %5373 = vrot.lane.b32.xlu0 %v5305_v46, %s7936_s9  ;;  %v4374_v41 = vsub.f32 %v11634_v48, %v9000_v59  ;;  %v11640_v59 = vld [vmem:[#allocation8_spill] sm:$0xff] }
 0x325   : > { %6830 = vst.msk [vmem:[%s8811_s8 + $0x138] sm:$0xff] %vm3919_vm1, %v5372_v54  ;;  %v9641_v54 = vmul.f32 0.70710677, %v4052_v57  ;;  %v4729_v61 = vsub.f32 %v11640_v59, %v9026_v62 }
 0x326   : > { %v5597_v4 = vpop.permute.xlu1 %5596  ;;  %v9635_v31 = vpop.permute.xlu0 %4655  ;;  %v9652_v3 = vmul.f32 0.70710677, %v4374_v41 }
 0x327   : > { %11635 = vst [vmem:[#allocation28_spill] sm:$0xff] %v9635_v31  ;;  %6862 = vst.msk [vmem:[%s8811_s8 + $0x168] sm:$0xff] %vm3919_vm1, %v5597_v4  ;;  %v4761_v36 = vmul.f32 0.70710677, %v4729_v61  ;;  %v11644_v4 = vld [vmem:[#allocation60_spill] sm:$0xff] }
 0x328   : > { %5379 = vrot.lane.b32.xlu1 %v5308_v13, %s7936_s9  ;;  %5598 = vrot.lane.b32.xlu0 %v5530_v1, %s7937_s10  ;;  %11636 = vst [vmem:[#allocation7_spill] sm:$0xff] %v9641_v54  ;;  %11638 = vst [vmem:[#allocation119_spill] sm:$0xff] %v9652_v3  ;;  %v4055_v1 = vadd.f32 %v11641_v63, %v8593_v7  ;;  %v11643_v13 = vld [vmem:[#allocation53_spill] sm:$0xff]  ;;  %v5050_v41 = vadd.f32 %v11644_v4, %v11640_v59 }
 0x32a   : > { %v9645_v5 = vpop.permute.xlu1 %4669  ;;  %v9647_v49 = vpop.permute.xlu0 %4683 }
 0x32b   : > { %11637 = vst [vmem:[#allocation118_spill] sm:$0xff] %v9647_v49 }
 0x32c   : > { %5604 = vrot.lane.b32.xlu1 %v5533_v19, %s7937_s10  ;;  %4152 = vrot.lane.b32.xlu0 %v9641_v54, %s7934_s30  ;;  %v9676_v19 = vmul.f32 0.70710677, %v4055_v1 }
 0x32e   : > { %v9654_v56 = vpop.permute.xlu1 %4990  ;;  %v9656_v46 = vpop.permute.xlu0 %4976 }
 0x32f   : > { %11639 = vst [vmem:[#allocation120_spill] sm:$0xff] %v9656_v46  ;;  %v11671_v46 = vld [vmem:[#allocation12_spill] sm:$0xff] }
 0x330   : > { %4685 = vrot.lane.b32.xlu1 %v9193_v51, %s7934_s30  ;;  %4474 = vrot.lane.b32.xlu0 %v9652_v3, %s7934_s30  ;;  %v4377_v3 = vsub.f32 %v8593_v7, %v11641_v63  ;;  %v5275_v7 = vadd.f32 %v9026_v62, %v11640_v59  ;;  %v5082_v63 = vmul.f32 0.70710677, %v5050_v41 }
 0x332   : > { %v4151_v48 = vpop.permute.xlu1 %4150  ;;  %v9666_v57 = vpop.permute.xlu0 %5004  ;;  %v9693_v12 = vmul.f32 0.70710677, %v4377_v3  ;;  %v5307_v41 = vmul.f32 0.70710677, %v5275_v7  ;;  %v11654_v7 = vld [vmem:[#allocation67_spill] sm:$0xff] }
 0x333   : > { %11642 = vst [vmem:[#allocation8_spill] sm:$0xff] %v9666_v57  ;;  %6670 = vst.msk [vmem:[%s8811_s8 + $0x150] sm:$0xff] %vm3919_vm1, %v4151_v48 }
 0x334   : > { %5006 = vrot.lane.b32.xlu1 %v9193_v51, %s7935_s5  ;;  %5759 = vrot.lane.b32.xlu0 %v11643_v13, %s7936_s9  ;;  %v11645_v51 = vld [vmem:[#allocation31_spill] sm:$0xff]  ;;  %11648 = vst [vmem:[#allocation60_spill] sm:$0xff] %v9693_v12 }
 0x336   : > { %v4473_v20 = vpop.permute.xlu1 %4472  ;;  %v3788_v48 = vpop.permute.xlu0 %3787 }
 0x337   : > { %6734 = vst.msk [vmem:[%s8811_s8 + $0x178] sm:$0xff] %vm3919_vm1, %v4473_v20  ;;  %v3869_v54 = vsub.f32 %v11645_v51, %v3788_v48  ;;  %v4287_v13 = vadd.f32 %v3788_v48, %v11645_v51  ;;  %v11670_v51 = vld [vmem:[#allocation70_spill] sm:$0xff] }
 0x338   : > { %4158 = vrot.lane.b32.xlu1 %v9676_v19, %s7934_s30  ;;  %4831 = vrot.lane.b32.xlu0 %v4761_v36, %s7936_s9 }
 0x339   : > { %v9687_v61 = vmul.f32 0.70710677, %v3869_v54  ;;  %v9689_v1 = vmul.f32 0.70710677, %v4287_v13  ;;  %v11649_v54 = vld [vmem:[#allocation32_spill] sm:$0xff]  ;;  %v5500_v13 = vsub.f32 %v11640_v59, %v11644_v4 }
 0x33a   : > { %v5758_v20 = vpop.permute.xlu1 %5757  ;;  %v3816_v57 = vpop.permute.xlu0 %3815 }
 0x33b   : > { %11646 = vst [vmem:[#allocation69_spill] sm:$0xff] %v9687_v61  ;;  %11647 = vst [vmem:[#allocation53_spill] sm:$0xff] %v9689_v1  ;;  %v3883_v36 = vsub.f32 %v11649_v54, %v3816_v57  ;;  %v4301_v48 = vadd.f32 %v3816_v57, %v11649_v54  ;;  %v11653_v57 = vld [vmem:[#allocation47_spill] sm:$0xff] }
 0x33c   : > { %3934 = vst.msk [vmem:[%s8811_s8 + $0x540] sm:$0xff] %vm3919_vm1, %v9687_v61  ;;  %6713 = vst.msk [vmem:[%s8811_s8 + $0x568] sm:$0xff] %vm3919_vm1, %v9689_v1  ;;  %4480 = vrot.lane.b32.xlu1 %v9693_v12, %s7934_s30  ;;  %5152 = vrot.lane.b32.xlu0 %v5082_v63, %s7937_s10  ;;  %v11657_v12 = vld [vmem:[#allocation9_spill] sm:$0xff] }
 0x33d   : > { %6894 = vst.msk [vmem:[%s8811_s8 + $0x128] sm:$0xff] %vm3919_vm1, %v5758_v20  ;;  %v9708_v62 = vmul.f32 0.70710677, %v3883_v36  ;;  %v9710_v3 = vmul.f32 0.70710677, %v4301_v48 }
 0x33e   : > { %v3802_v20 = vpop.permute.xlu1 %3801  ;;  %v9714_v1 = vpop.permute.xlu0 %3980  ;;  %v5532_v48 = vmul.f32 0.70710677, %v5500_v13 }
 0x33f   : > { %11650 = vst [vmem:[#allocation121_spill] sm:$0xff] %v9708_v62  ;;  %11651 = vst [vmem:[#allocation122_spill] sm:$0xff] %v9710_v3  ;;  %v3876_v63 = vsub.f32 %v11653_v57, %v3802_v20  ;;  %v4294_v36 = vadd.f32 %v3802_v20, %v11653_v57 }
 0x340   : > { %11652 = vst [vmem:[#allocation123_spill] sm:$0xff] %v9714_v1  ;;  %3948 = vst.msk [vmem:[%s8811_s8 + $0xa80] sm:$0xff] %vm3919_vm1, %v9708_v62  ;;  %5765 = vrot.lane.b32.xlu1 %v11654_v7, %s7936_s9  ;;  %5377 = vrot.lane.b32.xlu0 %v5307_v41, %s7936_s9  ;;  %v11658_v62 = vld [vmem:[#allocation64_spill] sm:$0xff] }
 0x341   : > { %6727 = vst.msk [vmem:[%s8811_s8 + $0xaa8] sm:$0xff] %vm3919_vm1, %v9710_v3  ;;  %v9727_v59 = vmul.f32 0.70710677, %v3876_v63  ;;  %v9729_v4 = vmul.f32 0.70710677, %v4294_v36  ;;  %v4054_v61 = vadd.f32 %v11658_v62, %v11657_v12  ;;  %v4376_v13 = vsub.f32 %v11657_v12, %v11658_v62  ;;  %v11664_v12 = vld [vmem:[#allocation65_spill] sm:$0xff] }
 0x342   : > { %v9733_v54 = vpop.permute.xlu1 %3994  ;;  %v9735_v3 = vpop.permute.xlu0 %4008  ;;  %v11665_v62 = vld [vmem:[#allocation11_spill] sm:$0xff] }
 0x343   : > { %11655 = vst [vmem:[#allocation47_spill] sm:$0xff] %v9727_v59  ;;  %11656 = vst [vmem:[#allocation67_spill] sm:$0xff] %v9729_v4  ;;  %v9746_v41 = vmul.f32 0.70710677, %v4054_v61  ;;  %v9758_v36 = vmul.f32 0.70710677, %v4376_v13 }
 0x344   : > { %11659 = vst [vmem:[#allocation9_spill] sm:$0xff] %v9735_v3  ;;  %3941 = vst.msk [vmem:[%s8811_s8 + $0x7e0] sm:$0xff] %vm3919_vm1, %v9727_v59  ;;  %3817 = vrot.lane.b32.xlu1 %v9269_v50, %s7934_s30  ;;  %5602 = vrot.lane.b32.xlu0 %v5532_v48, %s7937_s10 }
 0x345   : > { %6720 = vst.msk [vmem:[%s8811_s8 + $0x808] sm:$0xff] %vm3919_vm1, %v9729_v4  ;;  %11660 = vst [vmem:[#allocation64_spill] sm:$0xff] %v9746_v41 }
 0x346   : > { %v9750_v20 = vpop.permute.xlu1 %4673  ;;  %v4820_v63 = vpop.permute.xlu0 %4819  ;;  %11662 = vst [vmem:[#allocation125_spill] sm:$0xff] %v9758_v36 }
 0x347   : > { %11661 = vst [vmem:[#allocation124_spill] sm:$0xff] %v9750_v20  ;;  %6763 = vst.msk [vmem:[%s8811_s8 + $0x10] sm:$0xff] %vm3919_vm1, %v4820_v63  ;;  %v11666_v63 = vld [vmem:[#allocation51_spill] sm:$0xff] }
 0x348   : > { %4010 = vrot.lane.b32.xlu1 %v9269_v50, %s7935_s5  ;;  %4156 = vrot.lane.b32.xlu0 %v9746_v41, %s7934_s30  ;;  %v4731_v50 = vsub.f32 %v11665_v62, %v11664_v12 }
 0x34a   : > { %v9760_v7 = vpop.permute.xlu1 %4994  ;;  %v5141_v61 = vpop.permute.xlu0 %5140  ;;  %v4763_v1 = vmul.f32 0.70710677, %v4731_v50 }
 0x34b   : > { %11663 = vst [vmem:[#allocation126_spill] sm:$0xff] %v9760_v7  ;;  %6795 = vst.msk [vmem:[%s8811_s8 + $0x40] sm:$0xff] %vm3919_vm1, %v5141_v61  ;;  %v11667_v61 = vld [vmem:[#allocation62_spill] sm:$0xff]  ;;  %v4739_v7 = vsub.f32 %v11671_v46, %v11670_v51 }
 0x34c   : > { %4689 = vrot.lane.b32.xlu1 %v9302_v47, %s7934_s30  ;;  %4478 = vrot.lane.b32.xlu0 %v9758_v36, %s7934_s30 }
 0x34e   : > { %v3806_v48 = vpop.permute.xlu1 %3805  ;;  %v5366_v13 = vpop.permute.xlu0 %5365 }
 0x34f   : > { %v3878_v4 = vsub.f32 %v11666_v63, %v3806_v48  ;;  %v4296_v41 = vadd.f32 %v3806_v48, %v11666_v63  ;;  %6827 = vst.msk [vmem:[%s8811_s8 + $0x18] sm:$0xff] %vm3919_vm1, %v5366_v13  ;;  %v11675_v13 = vld [vmem:[#allocation72_spill] sm:$0xff]  ;;  %v11678_v63 = vld [vmem:[#allocation74_spill] sm:$0xff] }
 0x350   : > { %5010 = vrot.lane.b32.xlu1 %v9302_v47, %s7935_s5  ;;  %5763 = vrot.lane.b32.xlu0 %v11667_v61, %s7936_s9  ;;  %v4771_v47 = vmul.f32 0.70710677, %v4739_v7  ;;  %v5052_v61 = vadd.f32 %v11675_v13, %v11665_v62  ;;  %v11677_v7 = vld [vmem:[#allocation73_spill] sm:$0xff]  ;;  %v5060_v20 = vadd.f32 %v11678_v63, %v11671_v46 }
 0x351   : > { %v9778_v36 = vmul.f32 0.70710677, %v3878_v4  ;;  %v9780_v3 = vmul.f32 0.70710677, %v4296_v41  ;;  %v11673_v4 = vld [vmem:[#allocation71_spill] sm:$0xff]  ;;  %v11674_v41 = vld [vmem:[#allocation14_spill] sm:$0xff] }
 0x352   : > { %v9784_v49 = vpop.permute.xlu1 %3998  ;;  %v5591_v48 = vpop.permute.xlu0 %5590  ;;  %v4732_v50 = vsub.f32 %v11674_v41, %v11673_v4 }
 0x353   : > { %11668 = vst [vmem:[#allocation65_spill] sm:$0xff] %v9778_v36  ;;  %11669 = vst [vmem:[#allocation11_spill] sm:$0xff] %v9780_v3 }
 0x354   : > { %11672 = vst [vmem:[#allocation62_spill] sm:$0xff] %v9784_v49  ;;  %3943 = vst.msk [vmem:[%s8811_s8 + $0x8a0] sm:$0xff] %vm3919_vm1, %v9778_v36  ;;  %3821 = vrot.lane.b32.xlu1 %v9332_v43, %s7934_s30  ;;  %4835 = vrot.lane.b32.xlu0 %v4763_v1, %s7936_s9  ;;  %v5084_v1 = vmul.f32 0.70710677, %v5052_v61 }
 0x355   : > { %6722 = vst.msk [vmem:[%s8811_s8 + $0x8c8] sm:$0xff] %vm3919_vm1, %v9780_v3  ;;  %6859 = vst.msk [vmem:[%s8811_s8 + $0x48] sm:$0xff] %vm3919_vm1, %v5591_v48  ;;  %v4764_v48 = vmul.f32 0.70710677, %v4732_v50  ;;  %v5053_v3 = vadd.f32 %v11677_v7, %v11674_v41  ;;  %v5092_v50 = vmul.f32 0.70710677, %v5060_v20 }
 0x356   : > { %v4830_v49 = vpop.permute.xlu1 %4829  ;;  %v9801_v36 = vpop.permute.xlu0 %4687 }
 0x357   : > { %11676 = vst [vmem:[#allocation70_spill] sm:$0xff] %v9801_v36  ;;  %6768 = vst.msk [vmem:[%s8811_s8 + $0x1f0] sm:$0xff] %vm3919_vm1, %v4830_v49  ;;  %v5278_v49 = vadd.f32 %v11673_v4, %v11674_v41 }
 0x358   : > { %4014 = vrot.lane.b32.xlu1 %v9332_v43, %s7935_s5  ;;  %4851 = vrot.lane.b32.xlu0 %v4771_v47, %s7936_s9  ;;  %v5277_v43 = vadd.f32 %v11664_v12, %v11665_v62  ;;  %v5085_v47 = vmul.f32 0.70710677, %v5053_v3  ;;  %v5285_v12 = vadd.f32 %v11670_v51, %v11671_v46  ;;  %v5503_v3 = vsub.f32 %v11674_v41, %v11677_v7  ;;  %v11679_v51 = vld [vmem:[#allocation16_spill] sm:$0xff] }
 0x35a   : > { %v5151_v31 = vpop.permute.xlu1 %5150  ;;  %v9812_v59 = vpop.permute.xlu0 %5008 }
 0x35b   : > { %6800 = vst.msk [vmem:[%s8811_s8 + $0x220] sm:$0xff] %vm3919_vm1, %v5151_v31  ;;  %v5309_v31 = vmul.f32 0.70710677, %v5277_v43  ;;  %v5535_v43 = vmul.f32 0.70710677, %v5503_v3 }
 0x35c   : > { %4837 = vrot.lane.b32.xlu1 %v4764_v48, %s7936_s9  ;;  %5156 = vrot.lane.b32.xlu0 %v5084_v1, %s7937_s10  ;;  %v5310_v48 = vmul.f32 0.70710677, %v5278_v49  ;;  %v5502_v1 = vsub.f32 %v11665_v62, %v11675_v13  ;;  %v4057_v49 = vadd.f32 %v9161_v24, %v11679_v51  ;;  %v4379_v62 = vsub.f32 %v11679_v51, %v9161_v24  ;;  %v11682_v24 = vld [vmem:[#allocation13_spill] sm:$0xff]  ;;  %v11684_v51 = vld [vmem:[#allocation19_spill] sm:$0xff] }
 0x35e   : > { %v5376_v61 = vpop.permute.xlu1 %5375  ;;  %v4145_v36 = vpop.permute.xlu0 %4144  ;;  %v5534_v7 = vmul.f32 0.70710677, %v5502_v1 }
 0x35f   : > { %6832 = vst.msk [vmem:[%s8811_s8 + $0x1f8] sm:$0xff] %vm3919_vm1, %v5376_v61  ;;  %6667 = vst.msk [vmem:[%s8811_s8 + $0x30] sm:$0xff] %vm3919_vm1, %v4145_v36  ;;  %v5317_v36 = vmul.f32 0.70710677, %v5285_v12  ;;  %v9850_v61 = vmul.f32 0.70710677, %v4057_v49  ;;  %v4734_v49 = vsub.f32 %v11684_v51, %v9186_v52 }
 0x360   : > { %5158 = vrot.lane.b32.xlu1 %v5085_v47, %s7937_s10  ;;  %5172 = vrot.lane.b32.xlu0 %v5092_v50, %s7937_s10  ;;  %v5510_v50 = vsub.f32 %v11671_v46, %v11678_v63  ;;  %v11680_v12 = vld [vmem:[#allocation52_spill] sm:$0xff] }
 0x362   : > { %v5601_v20 = vpop.permute.xlu1 %5600  ;;  %v4467_v4 = vpop.permute.xlu0 %4466  ;;  %v5542_v63 = vmul.f32 0.70710677, %v5510_v50 }
 0x363   : > { %6864 = vst.msk [vmem:[%s8811_s8 + $0x228] sm:$0xff] %vm3919_vm1, %v5601_v20  ;;  %6731 = vst.msk [vmem:[%s8811_s8 + $0x58] sm:$0xff] %vm3919_vm1, %v4467_v4  ;;  %v9863_v20 = vmul.f32 0.70710677, %v4379_v62  ;;  %v4056_v4 = vadd.f32 %v9188_v23, %v11682_v24 }
 0x364   : > { %5383 = vrot.lane.b32.xlu1 %v5310_v48, %s7936_s9  ;;  %5381 = vrot.lane.b32.xlu0 %v5309_v31, %s7936_s9 }
 0x365   : > { %11681 = vst [vmem:[#allocation12_spill] sm:$0xff] %v9863_v20 }
 0x366   : > { %v9842_v47 = vpop.permute.xlu1 %4677  ;;  %v5752_v41 = vpop.permute.xlu0 %5751 }
 0x367   : > { %6891 = vst.msk [vmem:[%s8811_s8 + $0x8] sm:$0xff] %vm3919_vm1, %v5752_v41  ;;  %v9884_v41 = vmul.f32 0.70710677, %v4056_v4 }
 0x368   : > { %5608 = vrot.lane.b32.xlu1 %v5535_v43, %s7937_s10  ;;  %5397 = vrot.lane.b32.xlu0 %v5317_v36, %s7936_s9 }
 0x369   : > { %11685 = vst [vmem:[#allocation14_spill] sm:$0xff] %v9884_v41 }
 0x36a   : > { %v9854_v13 = vpop.permute.xlu1 %4998  ;;  %v3820_v31 = vpop.permute.xlu0 %3819 }
 0x36b   : > { %v3885_v48 = vsub.f32 %v11680_v12, %v3820_v31  ;;  %v4303_v3 = vadd.f32 %v3820_v31, %v11680_v12  ;;  %v4766_v31 = vmul.f32 0.70710677, %v4734_v49  ;;  %v4386_v49 = vsub.f32 %v8615_v18, %v9211_v45 }
 0x36c   : > { %4162 = vrot.lane.b32.xlu1 %v9850_v61, %s7934_s30  ;;  %5606 = vrot.lane.b32.xlu0 %v5534_v7, %s7937_s10  ;;  %v4064_v7 = vadd.f32 %v9211_v45, %v8615_v18  ;;  %v5505_v45 = vsub.f32 %v11684_v51, %v9209_v17 }
 0x36d   : > { %v9861_v46 = vmul.f32 0.70710677, %v3885_v48  ;;  %v9869_v43 = vmul.f32 0.70710677, %v4303_v3  ;;  %v4378_v48 = vsub.f32 %v11682_v24, %v9188_v23  ;;  %v5055_v3 = vadd.f32 %v9209_v17, %v11684_v51 }
 0x36e   : > { %v4155_v36 = vpop.permute.xlu1 %4154  ;;  %v9867_v1 = vpop.permute.xlu0 %4012  ;;  %v5537_v17 = vmul.f32 0.70710677, %v5505_v45 }
 0x36f   : > { %11683 = vst [vmem:[#allocation71_spill] sm:$0xff] %v9869_v43  ;;  %6672 = vst.msk [vmem:[%s8811_s8 + $0x210] sm:$0xff] %vm3919_vm1, %v4155_v36  ;;  %v9911_v23 = vmul.f32 0.70710677, %v4378_v48  ;;  %v5087_v24 = vmul.f32 0.70710677, %v5055_v3 }
 0x370   : > { %3950 = vst.msk [vmem:[%s8811_s8 + $0xb40] sm:$0xff] %vm3919_vm1, %v9861_v46  ;;  %4484 = vrot.lane.b32.xlu1 %v9863_v20, %s7934_s30  ;;  %5622 = vrot.lane.b32.xlu0 %v5542_v63, %s7937_s10  ;;  %6729 = vst.msk [vmem:[%s8811_s8 + $0xb68] sm:$0xff] %vm3919_vm1, %v9869_v43  ;;  %v9900_v63 = vmul.f32 0.70710677, %v4064_v7  ;;  %v9928_v3 = vmul.f32 0.70710677, %v4386_v49 }
 0x371   : > { %11687 = vst [vmem:[#allocation73_spill] sm:$0xff] %v9911_v23  ;;  %v11691_v49 = vld [vmem:[#allocation15_spill] sm:$0xff]  ;;  %v11696_v20 = vld [vmem:[#allocation25_spill] sm:$0xff] }
 0x372   : > { %v4477_v50 = vpop.permute.xlu1 %4476  ;;  %v4824_v62 = vpop.permute.xlu0 %4823  ;;  %11686 = vst [vmem:[#allocation72_spill] sm:$0xff] %v9900_v63  ;;  %11690 = vst [vmem:[#allocation16_spill] sm:$0xff] %v9928_v3 }
 0x373   : > { %6736 = vst.msk [vmem:[%s8811_s8 + $0x238] sm:$0xff] %vm3919_vm1, %v4477_v50  ;;  %6765 = vst.msk [vmem:[%s8811_s8 + $0xd0] sm:$0xff] %vm3919_vm1, %v4824_v62  ;;  %v11688_v62 = vld [vmem:[#allocation58_spill] sm:$0xff] }
 0x374   : > { %5769 = vrot.lane.b32.xlu1 %v9151_v10, %s7936_s9  ;;  %4160 = vrot.lane.b32.xlu0 %v9884_v41, %s7934_s30  ;;  %v5280_v10 = vadd.f32 %v9186_v52, %v11684_v51  ;;  %v4059_v51 = vadd.f32 %v9230_v22, %v8692_v40  ;;  %v11716_v41 = vld [vmem:[#allocation96_spill] sm:$0xff] }
 0x376   : > { %v5762_v4 = vpop.permute.xlu1 %5761  ;;  %v5145_v36 = vpop.permute.xlu0 %5144  ;;  %v5312_v18 = vmul.f32 0.70710677, %v5280_v10 }
 0x377   : > { %6896 = vst.msk [vmem:[%s8811_s8 + $0x1e8] sm:$0xff] %vm3919_vm1, %v5762_v4  ;;  %6797 = vst.msk [vmem:[%s8811_s8 + $0x100] sm:$0xff] %vm3919_vm1, %v5145_v36 }
 0x378   : > { %4841 = vrot.lane.b32.xlu1 %v4766_v31, %s7936_s9  ;;  %4176 = vrot.lane.b32.xlu0 %v9900_v63, %s7934_s30 }
 0x37a   : > { %v3810_v7 = vpop.permute.xlu1 %3809  ;;  %v5370_v50 = vpop.permute.xlu0 %5369 }
 0x37b   : > { %v3880_v4 = vsub.f32 %v11688_v62, %v3810_v7  ;;  %v4298_v31 = vadd.f32 %v3810_v7, %v11688_v62  ;;  %6829 = vst.msk [vmem:[%s8811_s8 + $0xd8] sm:$0xff] %vm3919_vm1, %v5370_v50  ;;  %v4741_v50 = vsub.f32 %v11691_v49, %v9216_v60 }
 0x37c   : > { %5162 = vrot.lane.b32.xlu1 %v5087_v24, %s7937_s10  ;;  %4482 = vrot.lane.b32.xlu0 %v9911_v23, %s7934_s30 }
 0x37d   : > { %v9922_v52 = vmul.f32 0.70710677, %v3880_v4  ;;  %v9924_v48 = vmul.f32 0.70710677, %v4298_v31  ;;  %v9954_v4 = vmul.f32 0.70710677, %v4059_v51  ;;  %v4381_v31 = vsub.f32 %v8692_v40, %v9230_v22 }
 0x37e   : > { %v9930_v36 = vpop.permute.xlu1 %4002  ;;  %v5595_v7 = vpop.permute.xlu0 %5594  ;;  %v11693_v51 = vld [vmem:[#allocation66_spill] sm:$0xff] }
 0x37f   : > { %11689 = vst [vmem:[#allocation74_spill] sm:$0xff] %v9924_v48  ;;  %3945 = vst.msk [vmem:[%s8811_s8 + $0x960] sm:$0xff] %vm3919_vm1, %v9922_v52 }
 0x380   : > { %6724 = vst.msk [vmem:[%s8811_s8 + $0x988] sm:$0xff] %vm3919_vm1, %v9924_v48  ;;  %6861 = vst.msk [vmem:[%s8811_s8 + $0x108] sm:$0xff] %vm3919_vm1, %v5595_v7  ;;  %5387 = vrot.lane.b32.xlu1 %v5312_v18, %s7936_s9  ;;  %4498 = vrot.lane.b32.xlu0 %v9928_v3, %s7934_s30  ;;  %v9966_v7 = vmul.f32 0.70710677, %v4381_v31  ;;  %v5287_v31 = vadd.f32 %v9216_v60, %v11691_v49 }
 0x382   : > { %v9945_v10 = vpop.permute.xlu1 %4681  ;;  %v4149_v24 = vpop.permute.xlu0 %4148  ;;  %11692 = vst [vmem:[#allocation52_spill] sm:$0xff] %v9966_v7  ;;  %v5319_v60 = vmul.f32 0.70710677, %v5287_v31  ;;  %v11698_v31 = vld [vmem:[#allocation85_spill] sm:$0xff] }
 0x383   : > { %6669 = vst.msk [vmem:[%s8811_s8 + $0xf0] sm:$0xff] %vm3919_vm1, %v4149_v24 }
 0x384   : > { %5612 = vrot.lane.b32.xlu1 %v5537_v17, %s7937_s10  ;;  %5767 = vrot.lane.b32.xlu0 %v9155_v33, %s7936_s9  ;;  %v4773_v33 = vmul.f32 0.70710677, %v4741_v50  ;;  %v5062_v17 = vadd.f32 %v9232_v58, %v11691_v49 }
 0x386   : > { %v9958_v18 = vpop.permute.xlu1 %5002  ;;  %v4471_v45 = vpop.permute.xlu0 %4470  ;;  %v5094_v3 = vmul.f32 0.70710677, %v5062_v17  ;;  %v5512_v17 = vsub.f32 %v11691_v49, %v9232_v58  ;;  %v5282_v58 = vadd.f32 %v9248_v39, %v11696_v20 }
 0x387   : > { %6733 = vst.msk [vmem:[%s8811_s8 + $0x118] sm:$0xff] %vm3919_vm1, %v4471_v45 }
 0x388   : > { %4166 = vrot.lane.b32.xlu1 %v9954_v4, %s7934_s30  ;;  %5783 = vrot.lane.b32.xlu0 %v9180_v37, %s7936_s9 }
 0x38a   : > { %v3814_v40 = vpop.permute.xlu1 %3813  ;;  %v5756_v22 = vpop.permute.xlu0 %5755 }
 0x38b   : > { %v3882_v24 = vsub.f32 %v11693_v51, %v3814_v40  ;;  %v4300_v45 = vadd.f32 %v3814_v40, %v11693_v51  ;;  %6893 = vst.msk [vmem:[%s8811_s8 + $0xc8] sm:$0xff] %vm3919_vm1, %v5756_v22  ;;  %v4736_v40 = vsub.f32 %v11696_v20, %v9248_v39  ;;  %v5507_v39 = vsub.f32 %v11696_v20, %v9262_v55 }
 0x38c   : > { %4488 = vrot.lane.b32.xlu1 %v9966_v7, %s7934_s30  ;;  %4855 = vrot.lane.b32.xlu0 %v4773_v33, %s7936_s9  ;;  %v11697_v33 = vld [vmem:[#allocation79_spill] sm:$0xff] }
 0x38d   : > { %v9977_v37 = vmul.f32 0.70710677, %v3882_v24  ;;  %v9979_v50 = vmul.f32 0.70710677, %v4300_v45  ;;  %v4768_v24 = vmul.f32 0.70710677, %v4736_v40  ;;  %v5057_v45 = vadd.f32 %v9262_v55, %v11696_v20 }
 0x38e   : > { %v9985_v23 = vpop.permute.xlu1 %4006  ;;  %v4828_v22 = vpop.permute.xlu0 %4827  ;;  %v4066_v40 = vadd.f32 %v11698_v31, %v8637_v26  ;;  %v11701_v55 = vld [vmem:[#allocation27_spill] sm:$0xff]  ;;  %v11702_v20 = vld [vmem:[#allocation90_spill] sm:$0xff] }
 0x38f   : > { %11694 = vst [vmem:[#allocation13_spill] sm:$0xff] %v9977_v37  ;;  %11695 = vst [vmem:[#allocation19_spill] sm:$0xff] %v9979_v50  ;;  %v5089_v49 = vmul.f32 0.70710677, %v5057_v45  ;;  %v5539_v45 = vmul.f32 0.70710677, %v5507_v39 }
 0x390   : > { %3947 = vst.msk [vmem:[%s8811_s8 + $0xa20] sm:$0xff] %vm3919_vm1, %v9977_v37  ;;  %6726 = vst.msk [vmem:[%s8811_s8 + $0xa48] sm:$0xff] %vm3919_vm1, %v9979_v50  ;;  %5773 = vrot.lane.b32.xlu1 %v11697_v33, %s7936_s9  ;;  %5176 = vrot.lane.b32.xlu0 %v5094_v3, %s7937_s10  ;;  %v5544_v3 = vmul.f32 0.70710677, %v5512_v17 }
 0x391   : > { %6767 = vst.msk [vmem:[%s8811_s8 + $0x190] sm:$0xff] %vm3919_vm1, %v4828_v22 }
 0x392   : > { %v4834_v7 = vpop.permute.xlu1 %4833  ;;  %v5149_v43 = vpop.permute.xlu0 %5148 }
 0x393   : > { %6770 = vst.msk [vmem:[%s8811_s8 + $0x2b0] sm:$0xff] %vm3919_vm1, %v4834_v7  ;;  %6799 = vst.msk [vmem:[%s8811_s8 + $0x1c0] sm:$0xff] %vm3919_vm1, %v5149_v43  ;;  %v5314_v43 = vmul.f32 0.70710677, %v5282_v58  ;;  %v10020_v7 = vmul.f32 0.70710677, %v4066_v40  ;;  %v4061_v58 = vadd.f32 %v11702_v20, %v11701_v55 }
 0x394   : > { %4845 = vrot.lane.b32.xlu1 %v4768_v24, %s7936_s9  ;;  %5401 = vrot.lane.b32.xlu0 %v5319_v60, %s7936_s9  ;;  %v4388_v60 = vsub.f32 %v8637_v26, %v11698_v31  ;;  %v11703_v31 = vld [vmem:[#allocation87_spill] sm:$0xff]  ;;  %v11704_v40 = vld [vmem:[#allocation17_spill] sm:$0xff] }
 0x395   : > { %11699 = vst [vmem:[#allocation58_spill] sm:$0xff] %v10020_v7 }
 0x396   : > { %v5155_v22 = vpop.permute.xlu1 %5154  ;;  %v5374_v33 = vpop.permute.xlu0 %5373 }
 0x397   : > { %6802 = vst.msk [vmem:[%s8811_s8 + $0x2e0] sm:$0xff] %vm3919_vm1, %v5155_v22  ;;  %6831 = vst.msk [vmem:[%s8811_s8 + $0x198] sm:$0xff] %vm3919_vm1, %v5374_v33  ;;  %v4733_v22 = vsub.f32 %v11704_v40, %v11703_v31  ;;  %v10044_v33 = vmul.f32 0.70710677, %v4061_v58  ;;  %v11708_v58 = vld [vmem:[#allocation91_spill] sm:$0xff] }
 0x398   : > { %5166 = vrot.lane.b32.xlu1 %v5089_v49, %s7937_s10  ;;  %5626 = vrot.lane.b32.xlu0 %v5544_v3, %s7937_s10  ;;  %v10031_v3 = vmul.f32 0.70710677, %v4388_v60 }
 0x39a   : > { %v5380_v17 = vpop.permute.xlu1 %5379  ;;  %v5599_v24 = vpop.permute.xlu0 %5598  ;;  %11700 = vst [vmem:[#allocation15_spill] sm:$0xff] %v10031_v3 }
 0x39b   : > { %6834 = vst.msk [vmem:[%s8811_s8 + $0x2b8] sm:$0xff] %vm3919_vm1, %v5380_v17  ;;  %6863 = vst.msk [vmem:[%s8811_s8 + $0x1c8] sm:$0xff] %vm3919_vm1, %v5599_v24  ;;  %v11706_v17 = vld [vmem:[#allocation82_spill] sm:$0xff]  ;;  %v4765_v24 = vmul.f32 0.70710677, %v4733_v22 }
 0x39c   : > { %5391 = vrot.lane.b32.xlu1 %v5314_v43, %s7936_s9  ;;  %4180 = vrot.lane.b32.xlu0 %v10020_v7, %s7934_s30  ;;  %v4383_v43 = vsub.f32 %v11701_v55, %v11702_v20 }
 0x39e   : > { %v5605_v49 = vpop.permute.xlu1 %5604  ;;  %v4153_v26 = vpop.permute.xlu0 %4152 }
 0x39f   : > { %6866 = vst.msk [vmem:[%s8811_s8 + $0x2e8] sm:$0xff] %vm3919_vm1, %v5605_v49  ;;  %6671 = vst.msk [vmem:[%s8811_s8 + $0x1b0] sm:$0xff] %vm3919_vm1, %v4153_v26  ;;  %v11709_v49 = vld [vmem:[#allocation18_spill] sm:$0xff] }
 0x3a0   : > { %5616 = vrot.lane.b32.xlu1 %v5539_v45, %s7937_s10  ;;  %4502 = vrot.lane.b32.xlu0 %v10031_v3, %s7934_s30  ;;  %v10056_v45 = vmul.f32 0.70710677, %v4383_v43  ;;  %v4743_v26 = vsub.f32 %v11709_v49, %v11708_v58  ;;  %v11711_v3 = vld [vmem:[#allocation93_spill] sm:$0xff]  ;;  %v11713_v43 = vld [vmem:[#allocation94_spill] sm:$0xff] }
 0x3a1   : > { %v5054_v50 = vadd.f32 %v11713_v43, %v11704_v40 }
 0x3a2   : > { %v10048_v39 = vpop.permute.xlu1 %4685  ;;  %v4475_v60 = vpop.permute.xlu0 %4474  ;;  %11707 = vst [vmem:[#allocation25_spill] sm:$0xff] %v10056_v45 }
 0x3a3   : > { %11705 = vst [vmem:[#allocation66_spill] sm:$0xff] %v10048_v39  ;;  %6735 = vst.msk [vmem:[%s8811_s8 + $0x1d8] sm:$0xff] %vm3919_vm1, %v4475_v60  ;;  %v4775_v60 = vmul.f32 0.70710677, %v4743_v26  ;;  %v5086_v26 = vmul.f32 0.70710677, %v5054_v50 }
 0x3a4   : > { %4170 = vrot.lane.b32.xlu1 %v10044_v33, %s7934_s30  ;;  %5787 = vrot.lane.b32.xlu0 %v11706_v17, %s7936_s9  ;;  %v11712_v17 = vld [vmem:[#allocation33_spill] sm:$0xff] }
 0x3a5   : > { %v4738_v22 = vsub.f32 %v11712_v17, %v11711_v3  ;;  %v5284_v50 = vadd.f32 %v11711_v3, %v11712_v17 }
 0x3a6   : > { %v10060_v55 = vpop.permute.xlu1 %5006  ;;  %v5760_v20 = vpop.permute.xlu0 %5759 }
 0x3a7   : > { %11710 = vst [vmem:[#allocation79_spill] sm:$0xff] %v10060_v55  ;;  %6895 = vst.msk [vmem:[%s8811_s8 + $0x188] sm:$0xff] %vm3919_vm1, %v5760_v20  ;;  %v11714_v20 = vld [vmem:[#allocation88_spill] sm:$0xff]  ;;  %v5064_v55 = vadd.f32 %v11716_v41, %v11709_v49 }
 0x3a8   : > { %4492 = vrot.lane.b32.xlu1 %v10056_v45, %s7934_s30  ;;  %4839 = vrot.lane.b32.xlu0 %v4765_v24, %s7936_s9  ;;  %v4770_v24 = vmul.f32 0.70710677, %v4738_v22  ;;  %v11715_v45 = vld [vmem:[#allocation95_spill] sm:$0xff] }
 0x3a9   : > { %v5059_v63 = vadd.f32 %v11715_v45, %v11712_v17 }
 0x3aa   : > { %v4159_v48 = vpop.permute.xlu1 %4158  ;;  %v4832_v7 = vpop.permute.xlu0 %4831 }
 0x3ab   : > { %6674 = vst.msk [vmem:[%s8811_s8 + $0x2d0] sm:$0xff] %vm3919_vm1, %v4159_v48  ;;  %6769 = vst.msk [vmem:[%s8811_s8 + $0x250] sm:$0xff] %vm3919_vm1, %v4832_v7  ;;  %v5279_v48 = vadd.f32 %v11703_v31, %v11704_v40  ;;  %v5091_v7 = vmul.f32 0.70710677, %v5059_v63  ;;  %v5289_v31 = vadd.f32 %v11708_v58, %v11709_v49  ;;  %v5509_v63 = vsub.f32 %v11712_v17, %v11715_v45 }
 0x3ac   : > { %5777 = vrot.lane.b32.xlu1 %v11714_v20, %s7936_s9  ;;  %4859 = vrot.lane.b32.xlu0 %v4775_v60, %s7936_s9  ;;  %v5096_v60 = vmul.f32 0.70710677, %v5064_v55  ;;  %v5504_v17 = vsub.f32 %v11704_v40, %v11713_v43  ;;  %v5514_v43 = vsub.f32 %v11709_v49, %v11716_v41  ;;  %v4058_v41 = vadd.f32 %v9383_v25, %v8665_v32 }
 0x3ad   : > { %v5321_v45 = vmul.f32 0.70710677, %v5289_v31 }
 0x3ae   : > { %v4481_v37 = vpop.permute.xlu1 %4480  ;;  %v5153_v39 = vpop.permute.xlu0 %5152  ;;  %v5536_v40 = vmul.f32 0.70710677, %v5504_v17 }
 0x3af   : > { %6738 = vst.msk [vmem:[%s8811_s8 + $0x2f8] sm:$0xff] %vm3919_vm1, %v4481_v37  ;;  %6801 = vst.msk [vmem:[%s8811_s8 + $0x280] sm:$0xff] %vm3919_vm1, %v5153_v39  ;;  %v5311_v37 = vmul.f32 0.70710677, %v5279_v48  ;;  %v5316_v39 = vmul.f32 0.70710677, %v5284_v50 }
 0x3b0   : > { %4849 = vrot.lane.b32.xlu1 %v4770_v24, %s7936_s9  ;;  %5160 = vrot.lane.b32.xlu0 %v5086_v26, %s7937_s10  ;;  %v11717_v24 = vld [vmem:[#allocation86_spill] sm:$0xff]  ;;  %v5541_v50 = vmul.f32 0.70710677, %v5509_v63 }
 0x3b2   : > { %v5766_v22 = vpop.permute.xlu1 %5765  ;;  %v5378_v20 = vpop.permute.xlu0 %5377 }
 0x3b3   : > { %6898 = vst.msk [vmem:[%s8811_s8 + $0x2a8] sm:$0xff] %vm3919_vm1, %v5766_v22  ;;  %6833 = vst.msk [vmem:[%s8811_s8 + $0x258] sm:$0xff] %vm3919_vm1, %v5378_v20 }
 0x3b4   : > { %5170 = vrot.lane.b32.xlu1 %v5091_v7, %s7937_s10  ;;  %5180 = vrot.lane.b32.xlu0 %v5096_v60, %s7937_s10  ;;  %v11718_v7 = vld [vmem:[#allocation34_spill] sm:$0xff] }
 0x3b5   : > { %v4063_v60 = vadd.f32 %v9358_v30, %v11718_v7  ;;  %v4385_v31 = vsub.f32 %v11718_v7, %v9358_v30  ;;  %v11719_v7 = vld [vmem:[#allocation97_spill] sm:$0xff] }
 0x3b6   : > { %v3818_v3 = vpop.permute.xlu1 %3817  ;;  %v5603_v55 = vpop.permute.xlu0 %5602 }
 0x3b7   : > { %v3884_v26 = vsub.f32 %v11717_v24, %v3818_v3  ;;  %v4302_v22 = vadd.f32 %v3818_v3, %v11717_v24  ;;  %6865 = vst.msk [vmem:[%s8811_s8 + $0x288] sm:$0xff] %vm3919_vm1, %v5603_v55  ;;  %v5546_v55 = vmul.f32 0.70710677, %v5514_v43 }
 0x3b8   : > { %5395 = vrot.lane.b32.xlu1 %v5316_v39, %s7936_s9  ;;  %5385 = vrot.lane.b32.xlu0 %v5311_v37, %s7936_s9  ;;  %v10130_v37 = vmul.f32 0.70710677, %v4063_v60 }
 0x3b9   : > { %v10108_v58 = vmul.f32 0.70710677, %v3884_v26  ;;  %v10110_v48 = vmul.f32 0.70710677, %v4302_v22  ;;  %v10141_v26 = vmul.f32 0.70710677, %v4385_v31  ;;  %v4380_v31 = vsub.f32 %v8665_v32, %v9383_v25 }
 0x3ba   : > { %v10116_v20 = vpop.permute.xlu1 %4010  ;;  %v4157_v3 = vpop.permute.xlu0 %4156  ;;  %v10152_v22 = vmul.f32 0.70710677, %v4058_v41  ;;  %v4390_v25 = vsub.f32 %v8669_v34, %v9398_v6 }
 0x3bb   : > { %3949 = vst.msk [vmem:[%s8811_s8 + $0xae0] sm:$0xff] %vm3919_vm1, %v10108_v58  ;;  %6728 = vst.msk [vmem:[%s8811_s8 + $0xb08] sm:$0xff] %vm3919_vm1, %v10110_v48  ;;  %v10186_v32 = vmul.f32 0.70710677, %v4380_v31  ;;  %v11722_v31 = vld [vmem:[#allocation20_spill] sm:$0xff] }
 0x3bc   : > { %6673 = vst.msk [vmem:[%s8811_s8 + $0x270] sm:$0xff] %vm3919_vm1, %v4157_v3  ;;  %5620 = vrot.lane.b32.xlu1 %v5541_v50, %s7937_s10  ;;  %5405 = vrot.lane.b32.xlu0 %v5321_v45, %s7936_s9  ;;  %v4068_v45 = vadd.f32 %v9398_v6, %v8669_v34 }
 0x3be   : > { %v10134_v39 = vpop.permute.xlu1 %4689  ;;  %v4479_v63 = vpop.permute.xlu0 %4478 }
 0x3bf   : > { %6737 = vst.msk [vmem:[%s8811_s8 + $0x298] sm:$0xff] %vm3919_vm1, %v4479_v63  ;;  %v10170_v63 = vmul.f32 0.70710677, %v4068_v45 }
 0x3c0   : > { %4174 = vrot.lane.b32.xlu1 %v10130_v37, %s7934_s30  ;;  %5610 = vrot.lane.b32.xlu0 %v5536_v40, %s7937_s10 }
 0x3c2   : > { %v10145_v49 = vpop.permute.xlu1 %5010  ;;  %v5764_v30 = vpop.permute.xlu0 %5763 }
 0x3c3   : > { %6897 = vst.msk [vmem:[%s8811_s8 + $0x248] sm:$0xff] %vm3919_vm1, %v5764_v30 }
 0x3c4   : > { %4496 = vrot.lane.b32.xlu1 %v10141_v26, %s7934_s30  ;;  %5630 = vrot.lane.b32.xlu0 %v5546_v55, %s7937_s10 }
 0x3c6   : > { %v3822_v17 = vpop.permute.xlu1 %3821  ;;  %v4836_v50 = vpop.permute.xlu0 %4835 }
 0x3c7   : > { %v3886_v60 = vsub.f32 %v11719_v7, %v3822_v17  ;;  %v4304_v3 = vadd.f32 %v3822_v17, %v11719_v7  ;;  %6771 = vst.msk [vmem:[%s8811_s8 + $0x310] sm:$0xff] %vm3919_vm1, %v4836_v50  ;;  %v11721_v17 = vld [vmem:[#allocation81_spill] sm:$0xff]  ;;  %v10198_v50 = vmul.f32 0.70710677, %v4390_v25 }
 0x3c8   : > { %5781 = vrot.lane.b32.xlu1 %v9348_v16, %s7936_s9  ;;  %4164 = vrot.lane.b32.xlu0 %v10152_v22, %s7934_s30  ;;  %v11720_v16 = vld [vmem:[#allocation55_spill] sm:$0xff] }
 0x3c9   : > { %v10164_v40 = vmul.f32 0.70710677, %v3886_v60  ;;  %v10166_v43 = vmul.f32 0.70710677, %v4304_v3 }
 0x3ca   : > { %v10172_v55 = vpop.permute.xlu1 %4014  ;;  %v4852_v41 = vpop.permute.xlu0 %4851 }
 0x3cb   : > { %3951 = vst.msk [vmem:[%s8811_s8 + $0xba0] sm:$0xff] %vm3919_vm1, %v10164_v40  ;;  %6730 = vst.msk [vmem:[%s8811_s8 + $0xbc8] sm:$0xff] %vm3919_vm1, %v10166_v43 }
 0x3cc   : > { %6779 = vst.msk [vmem:[%s8811_s8 + $0x610] sm:$0xff] %vm3919_vm1, %v4852_v41  ;;  %5882 = vrot.lane.b32.xlu1 %v11720_v16, %s7937_s10  ;;  %4184 = vrot.lane.b32.xlu0 %v10170_v63, %s7934_s30 }
 0x3ce   : > { %v4838_v30 = vpop.permute.xlu1 %4837  ;;  %v5157_v45 = vpop.permute.xlu0 %5156 }
 0x3cf   : > { %6772 = vst.msk [vmem:[%s8811_s8 + $0x370] sm:$0xff] %vm3919_vm1, %v4838_v30  ;;  %6803 = vst.msk [vmem:[%s8811_s8 + $0x340] sm:$0xff] %vm3919_vm1, %v5157_v45 }
 0x3d0   : > { %5886 = vrot.lane.b32.xlu1 %v11721_v17, %s7937_s10  ;;  %4486 = vrot.lane.b32.xlu0 %v10186_v32, %s7934_s30 }
 0x3d2   : > { %v5159_v60 = vpop.permute.xlu1 %5158  ;;  %v5173_v34 = vpop.permute.xlu0 %5172 }
 0x3d3   : > { %6804 = vst.msk [vmem:[%s8811_s8 + $0x3a0] sm:$0xff] %vm3919_vm1, %v5159_v60  ;;  %6811 = vst.msk [vmem:[%s8811_s8 + $0x640] sm:$0xff] %vm3919_vm1, %v5173_v34  ;;  %v5516_v60 = vsub.f32 %v11722_v31, %v9422_v15 }
 0x3d4   : > { %5890 = vrot.lane.b32.xlu1 %v9468_v0, %s7937_s10  ;;  %4506 = vrot.lane.b32.xlu0 %v10198_v50, %s7934_s30  ;;  %v4745_v0 = vsub.f32 %v11722_v31, %v9409_v8 }
 0x3d6   : > { %v5384_v6 = vpop.permute.xlu1 %5383  ;;  %v5382_v3 = vpop.permute.xlu0 %5381 }
 0x3d7   : > { %6836 = vst.msk [vmem:[%s8811_s8 + $0x378] sm:$0xff] %vm3919_vm1, %v5384_v6  ;;  %6835 = vst.msk [vmem:[%s8811_s8 + $0x318] sm:$0xff] %vm3919_vm1, %v5382_v3 }
 0x3d8   : > { %5894 = vrot.lane.b32.xlu1 %v9676_v19, %s7937_s10  ;;  %5771 = vrot.lane.b32.xlu0 %v9352_v21, %s7936_s9  ;;  %v4777_v19 = vmul.f32 0.70710677, %v4745_v0  ;;  %v5066_v21 = vadd.f32 %v9422_v15, %v11722_v31 }
 0x3da   : > { %v5609_v41 = vpop.permute.xlu1 %5608  ;;  %v5398_v16 = vpop.permute.xlu0 %5397 }
 0x3db   : > { %6868 = vst.msk [vmem:[%s8811_s8 + $0x3a8] sm:$0xff] %vm3919_vm1, %v5609_v41  ;;  %6843 = vst.msk [vmem:[%s8811_s8 + $0x618] sm:$0xff] %vm3919_vm1, %v5398_v16 }
 0x3dc   : > { %5898 = vrot.lane.b32.xlu1 %v9850_v61, %s7937_s10  ;;  %5791 = vrot.lane.b32.xlu0 %v9377_v2, %s7936_s9  ;;  %v5291_v2 = vadd.f32 %v9409_v8, %v11722_v31  ;;  %v5098_v61 = vmul.f32 0.70710677, %v5066_v21  ;;  %v11723_v8 = vld [vmem:[#allocation36_spill] sm:$0xff]  ;;  %v4070_v31 = vadd.f32 %v9444_v53, %v8696_v42 }
 0x3dd   : > { %v4740_v34 = vsub.f32 %v11723_v8, %v9431_v14  ;;  %v5061_v15 = vadd.f32 %v9442_v35, %v11723_v8 }
 0x3de   : > { %v4163_v25 = vpop.permute.xlu1 %4162  ;;  %v5607_v30 = vpop.permute.xlu0 %5606  ;;  %v10267_v21 = vmul.f32 0.70710677, %v4070_v31 }
 0x3df   : > { %6676 = vst.msk [vmem:[%s8811_s8 + $0x390] sm:$0xff] %vm3919_vm1, %v4163_v25  ;;  %6867 = vst.msk [vmem:[%s8811_s8 + $0x348] sm:$0xff] %vm3919_vm1, %v5607_v30  ;;  %v4772_v0 = vmul.f32 0.70710677, %v4740_v34  ;;  %v4392_v25 = vsub.f32 %v8696_v42, %v9444_v53 }
 0x3e0   : > { %5902 = vrot.lane.b32.xlu1 %v9954_v4, %s7937_s10  ;;  %4863 = vrot.lane.b32.xlu0 %v4777_v19, %s7936_s9  ;;  %v5323_v4 = vmul.f32 0.70710677, %v5291_v2  ;;  %v5093_v19 = vmul.f32 0.70710677, %v5061_v15  ;;  %v4387_v15 = vsub.f32 %v11603_v38, %v9506_v28 }
 0x3e2   : > { %v4485_v45 = vpop.permute.xlu1 %4484  ;;  %v5623_v17 = vpop.permute.xlu0 %5622 }
 0x3e3   : > { %6740 = vst.msk [vmem:[%s8811_s8 + $0x3b8] sm:$0xff] %vm3919_vm1, %v4485_v45  ;;  %6875 = vst.msk [vmem:[%s8811_s8 + $0x648] sm:$0xff] %vm3919_vm1, %v5623_v17  ;;  %v10280_v45 = vmul.f32 0.70710677, %v4392_v25 }
 0x3e4   : > { %5906 = vrot.lane.b32.xlu1 %v10044_v33, %s7937_s10  ;;  %5184 = vrot.lane.b32.xlu0 %v5098_v61, %s7937_s10  ;;  %v5548_v33 = vmul.f32 0.70710677, %v5516_v60  ;;  %v5511_v61 = vsub.f32 %v11723_v8, %v9442_v35  ;;  %v4065_v35 = vadd.f32 %v9506_v28, %v11603_v38 }
 0x3e6   : > { %v5770_v6 = vpop.permute.xlu1 %5769  ;;  %v4161_v3 = vpop.permute.xlu0 %4160  ;;  %v5543_v17 = vmul.f32 0.70710677, %v5511_v61 }
 0x3e7   : > { %6900 = vst.msk [vmem:[%s8811_s8 + $0x368] sm:$0xff] %vm3919_vm1, %v5770_v6  ;;  %6675 = vst.msk [vmem:[%s8811_s8 + $0x330] sm:$0xff] %vm3919_vm1, %v4161_v3  ;;  %v11725_v3 = vld [vmem:[#allocation22_spill] sm:$0xff] }
 0x3e8   : > { %5910 = vrot.lane.b32.xlu1 %v10130_v37, %s7937_s10  ;;  %5409 = vrot.lane.b32.xlu0 %v5323_v4, %s7936_s9  ;;  %v5286_v37 = vadd.f32 %v9431_v14, %v11723_v8  ;;  %v11724_v4 = vld [vmem:[#allocation21_spill] sm:$0xff] }
 0x3e9   : > { %v4735_v60 = vsub.f32 %v11724_v4, %v9458_v11 }
 0x3ea   : > { %v4842_v41 = vpop.permute.xlu1 %4841  ;;  %v4177_v16 = vpop.permute.xlu0 %4176  ;;  %v5318_v14 = vmul.f32 0.70710677, %v5286_v37 }
 0x3eb   : > { %6774 = vst.msk [vmem:[%s8811_s8 + $0x430] sm:$0xff] %vm3919_vm1, %v4842_v41  ;;  %6683 = vst.msk [vmem:[%s8811_s8 + $0x630] sm:$0xff] %vm3919_vm1, %v4177_v16  ;;  %v4767_v6 = vmul.f32 0.70710677, %v4735_v60  ;;  %v11726_v16 = vld [vmem:[#allocation105_spill] sm:$0xff]  ;;  %v11729_v60 = vld [vmem:[#allocation44_spill] sm:$0xff] }
 0x3ec   : > { %4853 = vrot.lane.b32.xlu1 %v4772_v0, %s7936_s9  ;;  %5634 = vrot.lane.b32.xlu0 %v5548_v33, %s7937_s10  ;;  %v4747_v33 = vsub.f32 %v11725_v3, %v9472_v29  ;;  %v4097_v0 = vmul.f32 0.70710677, %v4065_v35  ;;  %v5056_v37 = vadd.f32 %v11726_v16, %v11724_v4  ;;  %v11730_v35 = vld [vmem:[#allocation39_spill] sm:$0xff] }
 0x3ee   : > { %v5163_v30 = vpop.permute.xlu1 %5162  ;;  %v4483_v2 = vpop.permute.xlu0 %4482  ;;  %v5088_v28 = vmul.f32 0.70710677, %v5056_v37 }
 0x3ef   : > { %6806 = vst.msk [vmem:[%s8811_s8 + $0x460] sm:$0xff] %vm3919_vm1, %v5163_v30  ;;  %6739 = vst.msk [vmem:[%s8811_s8 + $0x358] sm:$0xff] %vm3919_vm1, %v4483_v2  ;;  %v11727_v30 = vld [vmem:[#allocation106_spill] sm:$0xff] }
 0x3f0   : > { %5174 = vrot.lane.b32.xlu1 %v5093_v19, %s7937_s10  ;;  %4188 = vrot.lane.b32.xlu0 %v10267_v21, %s7934_s30  ;;  %v10312_v19 = vmul.f32 0.70710677, %v4387_v15  ;;  %v5068_v2 = vadd.f32 %v11727_v30, %v11725_v3 }
 0x3f2   : > { %v5388_v42 = vpop.permute.xlu1 %5387  ;;  %v4499_v53 = vpop.permute.xlu0 %4498 }
 0x3f3   : > { %6838 = vst.msk [vmem:[%s8811_s8 + $0x438] sm:$0xff] %vm3919_vm1, %v5388_v42  ;;  %6747 = vst.msk [vmem:[%s8811_s8 + $0x658] sm:$0xff] %vm3919_vm1, %v4499_v53  ;;  %v11728_v42 = vld [vmem:[#allocation37_spill] sm:$0xff]  ;;  %v5281_v53 = vadd.f32 %v9458_v11, %v11724_v4  ;;  %v5293_v11 = vadd.f32 %v9472_v29, %v11725_v3  ;;  %v5506_v29 = vsub.f32 %v11724_v4, %v11726_v16 }
 0x3f4   : > { %5399 = vrot.lane.b32.xlu1 %v5318_v14, %s7936_s9  ;;  %4510 = vrot.lane.b32.xlu0 %v10280_v45, %s7934_s30  ;;  %v5518_v4 = vsub.f32 %v11725_v3, %v11727_v30  ;;  %v11733_v3 = vld [vmem:[#allocation113_spill] sm:$0xff] }
 0x3f6   : > { %v5613_v8 = vpop.permute.xlu1 %5612  ;;  %v5768_v34 = vpop.permute.xlu0 %5767 }
 0x3f7   : > { %6870 = vst.msk [vmem:[%s8811_s8 + $0x468] sm:$0xff] %vm3919_vm1, %v5613_v8  ;;  %6899 = vst.msk [vmem:[%s8811_s8 + $0x308] sm:$0xff] %vm3919_vm1, %v5768_v34  ;;  %v4742_v8 = vsub.f32 %v11730_v35, %v11729_v60 }
 0x3f8   : > { %5624 = vrot.lane.b32.xlu1 %v5543_v17, %s7937_s10  ;;  %5795 = vrot.lane.b32.xlu0 %v9438_v44, %s7936_s9  ;;  %v4779_v44 = vmul.f32 0.70710677, %v4747_v33  ;;  %v5100_v17 = vmul.f32 0.70710677, %v5068_v2  ;;  %v5313_v33 = vmul.f32 0.70710677, %v5281_v53 }
 0x3f9   : > { %v4774_v15 = vmul.f32 0.70710677, %v4742_v8  ;;  %v11732_v8 = vld [vmem:[#allocation23_spill] sm:$0xff] }
 0x3fa   : > { %v4167_v31 = vpop.permute.xlu1 %4166  ;;  %v5784_v41 = vpop.permute.xlu0 %5783  ;;  %v4060_v30 = vadd.f32 %v11733_v3, %v11732_v8 }
 0x3fb   : > { %6678 = vst.msk [vmem:[%s8811_s8 + $0x450] sm:$0xff] %vm3919_vm1, %v4167_v31  ;;  %6907 = vst.msk [vmem:[%s8811_s8 + $0x608] sm:$0xff] %vm3919_vm1, %v5784_v41  ;;  %v11731_v31 = vld [vmem:[#allocation112_spill] sm:$0xff] }
 0x3fc   : > { %4178 = vrot.lane.b32.xlu1 %v4097_v0, %s7934_s30  ;;  %4843 = vrot.lane.b32.xlu0 %v4767_v6, %s7936_s9  ;;  %v5063_v41 = vadd.f32 %v11731_v31, %v11730_v35 }
 0x3fe   : > { %v4489_v25 = vpop.permute.xlu1 %4488  ;;  %v4856_v38 = vpop.permute.xlu0 %4855 }
 0x3ff   : > { %6742 = vst.msk [vmem:[%s8811_s8 + $0x478] sm:$0xff] %vm3919_vm1, %v4489_v25  ;;  %6781 = vst.msk [vmem:[%s8811_s8 + $0x6d0] sm:$0xff] %vm3919_vm1, %v4856_v38  ;;  %v5288_v25 = vadd.f32 %v11729_v60, %v11730_v35  ;;  %v5095_v38 = vmul.f32 0.70710677, %v5063_v41  ;;  %v11737_v41 = vld [vmem:[#allocation115_spill] sm:$0xff] }
 0x400   : > { %4500 = vrot.lane.b32.xlu1 %v10312_v19, %s7934_s30  ;;  %4867 = vrot.lane.b32.xlu0 %v4779_v44, %s7936_s9 }
 0x401   : > { %v5320_v16 = vmul.f32 0.70710677, %v5288_v25 }
 0x402   : > { %v5774_v14 = vpop.permute.xlu1 %5773  ;;  %v5177_v61 = vpop.permute.xlu0 %5176 }
 0x403   : > { %6902 = vst.msk [vmem:[%s8811_s8 + $0x428] sm:$0xff] %vm3919_vm1, %v5774_v14  ;;  %6813 = vst.msk [vmem:[%s8811_s8 + $0x700] sm:$0xff] %vm3919_vm1, %v5177_v61  ;;  %v5538_v14 = vmul.f32 0.70710677, %v5506_v29  ;;  %v5513_v61 = vsub.f32 %v11730_v35, %v11731_v31  ;;  %v11736_v31 = vld [vmem:[#allocation24_spill] sm:$0xff] }
 0x404   : > { %5785 = vrot.lane.b32.xlu1 %v11728_v42, %s7936_s9  ;;  %5164 = vrot.lane.b32.xlu0 %v5088_v28, %s7937_s10 }
 0x405   : > { %v5545_v60 = vmul.f32 0.70710677, %v5513_v61  ;;  %v4394_v61 = vsub.f32 %v11736_v31, %v11737_v41 }
 0x406   : > { %v4846_v34 = vpop.permute.xlu1 %4845  ;;  %v5402_v6 = vpop.permute.xlu0 %5401 }
 0x407   : > { %6776 = vst.msk [vmem:[%s8811_s8 + $0x4f0] sm:$0xff] %vm3919_vm1, %v4846_v34  ;;  %6845 = vst.msk [vmem:[%s8811_s8 + $0x6d8] sm:$0xff] %vm3919_vm1, %v5402_v6  ;;  %v11734_v34 = vld [vmem:[#allocation43_spill] sm:$0xff]  ;;  %v11735_v6 = vld [vmem:[#allocation46_spill] sm:$0xff] }
 0x408   : > { %5914 = vrot.lane.b32.xlu1 %v4097_v0, %s7937_s10  ;;  %5188 = vrot.lane.b32.xlu0 %v5100_v17, %s7937_s10  ;;  %v5325_v0 = vmul.f32 0.70710677, %v5293_v11  ;;  %v5550_v17 = vmul.f32 0.70710677, %v5518_v4  ;;  %v4067_v35 = vadd.f32 %v11735_v6, %v11734_v34 }
 0x40a   : > { %v5167_v44 = vpop.permute.xlu1 %5166  ;;  %v5627_v37 = vpop.permute.xlu0 %5626 }
 0x40b   : > { %6808 = vst.msk [vmem:[%s8811_s8 + $0x520] sm:$0xff] %vm3919_vm1, %v5167_v44  ;;  %6877 = vst.msk [vmem:[%s8811_s8 + $0x708] sm:$0xff] %vm3919_vm1, %v5627_v37  ;;  %v4072_v44 = vadd.f32 %v11737_v41, %v11736_v31  ;;  %v4099_v37 = vmul.f32 0.70710677, %v4067_v35  ;;  %v11740_v31 = vld [vmem:[#allocation108_spill] sm:$0xff]  ;;  %v11741_v41 = vld [vmem:[#allocation6_spill] sm:$0xff] }
 0x40c   : > { %4857 = vrot.lane.b32.xlu1 %v4774_v15, %s7936_s9  ;;  %5389 = vrot.lane.b32.xlu0 %v5313_v33, %s7936_s9  ;;  %v10380_v15 = vmul.f32 0.70710677, %v4060_v30 }
 0x40e   : > { %v5392_v28 = vpop.permute.xlu1 %5391  ;;  %v4181_v2 = vpop.permute.xlu0 %4180 }
 0x40f   : > { %6840 = vst.msk [vmem:[%s8811_s8 + $0x4f8] sm:$0xff] %vm3919_vm1, %v5392_v28  ;;  %6685 = vst.msk [vmem:[%s8811_s8 + $0x6f0] sm:$0xff] %vm3919_vm1, %v4181_v2  ;;  %v10395_v28 = vmul.f32 0.70710677, %v4072_v44  ;;  %v11742_v44 = vld [vmem:[#allocation26_spill] sm:$0xff] }
 0x410   : > { %5178 = vrot.lane.b32.xlu1 %v5095_v38, %s7937_s10  ;;  %5413 = vrot.lane.b32.xlu0 %v5325_v0, %s7936_s9  ;;  %v4389_v0 = vsub.f32 %v11734_v34, %v11735_v6  ;;  %v4382_v38 = vsub.f32 %v11732_v8, %v11733_v3  ;;  %v11739_v8 = vld [vmem:[#allocation45_spill] sm:$0xff] }
 0x411   : > { %v4744_v3 = vsub.f32 %v11739_v8, %v9645_v5  ;;  %v5065_v35 = vadd.f32 %v9654_v56, %v11739_v8 }
 0x412   : > { %v5617_v42 = vpop.permute.xlu1 %5616  ;;  %v4503_v53 = vpop.permute.xlu0 %4502  ;;  %v10397_v2 = vmul.f32 0.70710677, %v4389_v0  ;;  %v5290_v0 = vadd.f32 %v9645_v5, %v11739_v8  ;;  %v5515_v5 = vsub.f32 %v11739_v8, %v9654_v56  ;;  %v4069_v56 = vadd.f32 %v9733_v54, %v11653_v57 }
 0x413   : > { %6872 = vst.msk [vmem:[%s8811_s8 + $0x528] sm:$0xff] %vm3919_vm1, %v5617_v42  ;;  %6749 = vst.msk [vmem:[%s8811_s8 + $0x718] sm:$0xff] %vm3919_vm1, %v4503_v53  ;;  %v4776_v6 = vmul.f32 0.70710677, %v4744_v3 }
 0x414   : > { %5403 = vrot.lane.b32.xlu1 %v5320_v16, %s7936_s9  ;;  %5614 = vrot.lane.b32.xlu0 %v5538_v14, %s7937_s10  ;;  %v10407_v16 = vmul.f32 0.70710677, %v4382_v38 }
 0x416   : > { %v4171_v33 = vpop.permute.xlu1 %4170  ;;  %v5788_v11 = vpop.permute.xlu0 %5787 }
 0x417   : > { %6680 = vst.msk [vmem:[%s8811_s8 + $0x510] sm:$0xff] %vm3919_vm1, %v4171_v33  ;;  %6909 = vst.msk [vmem:[%s8811_s8 + $0x6c8] sm:$0xff] %vm3919_vm1, %v5788_v11 }
 0x418   : > { %5628 = vrot.lane.b32.xlu1 %v5545_v60, %s7937_s10  ;;  %5638 = vrot.lane.b32.xlu0 %v5550_v17, %s7937_s10  ;;  %v11738_v17 = vld [vmem:[#allocation116_spill] sm:$0xff]  ;;  %v10419_v60 = vmul.f32 0.70710677, %v4394_v61  ;;  %v11744_v61 = vld [vmem:[#allocation41_spill] sm:$0xff] }
 0x41a   : > { %v4493_v29 = vpop.permute.xlu1 %4492  ;;  %v4840_v25 = vpop.permute.xlu0 %4839 }
 0x41b   : > { %6744 = vst.msk [vmem:[%s8811_s8 + $0x538] sm:$0xff] %vm3919_vm1, %v4493_v29  ;;  %6773 = vst.msk [vmem:[%s8811_s8 + $0x3d0] sm:$0xff] %vm3919_vm1, %v4840_v25  ;;  %v5097_v29 = vmul.f32 0.70710677, %v5065_v35 }
 0x41c   : > { %4182 = vrot.lane.b32.xlu1 %v4099_v37, %s7934_s30  ;;  %4168 = vrot.lane.b32.xlu0 %v10380_v15, %s7934_s30 }
 0x41e   : > { %v5778_v14 = vpop.permute.xlu1 %5777  ;;  %v4860_v4 = vpop.permute.xlu0 %4859 }
 0x41f   : > { %6904 = vst.msk [vmem:[%s8811_s8 + $0x4e8] sm:$0xff] %vm3919_vm1, %v5778_v14  ;;  %6783 = vst.msk [vmem:[%s8811_s8 + $0x790] sm:$0xff] %vm3919_vm1, %v4860_v4  ;;  %v11743_v14 = vld [vmem:[#allocation109_spill] sm:$0xff] }
 0x420   : > { %4504 = vrot.lane.b32.xlu1 %v10397_v2, %s7934_s30  ;;  %4192 = vrot.lane.b32.xlu0 %v10395_v28, %s7934_s30 }
 0x422   : > { %v4850_v42 = vpop.permute.xlu1 %4849  ;;  %v5161_v53 = vpop.permute.xlu0 %5160 }
 0x423   : > { %6778 = vst.msk [vmem:[%s8811_s8 + $0x5b0] sm:$0xff] %vm3919_vm1, %v4850_v42  ;;  %6805 = vst.msk [vmem:[%s8811_s8 + $0x400] sm:$0xff] %vm3919_vm1, %v5161_v53  ;;  %v5070_v42 = vadd.f32 %v11744_v61, %v11742_v44  ;;  %v5322_v53 = vmul.f32 0.70710677, %v5290_v0 }
 0x424   : > { %5789 = vrot.lane.b32.xlu1 %v11738_v17, %s7936_s9  ;;  %4490 = vrot.lane.b32.xlu0 %v10407_v16, %s7934_s30 }
 0x426   : > { %v5171_v30 = vpop.permute.xlu1 %5170  ;;  %v5181_v34 = vpop.permute.xlu0 %5180 }
 0x427   : > { %6810 = vst.msk [vmem:[%s8811_s8 + $0x5e0] sm:$0xff] %vm3919_vm1, %v5171_v30  ;;  %6815 = vst.msk [vmem:[%s8811_s8 + $0x7c0] sm:$0xff] %vm3919_vm1, %v5181_v34  ;;  %v5295_v30 = vadd.f32 %v11741_v41, %v11742_v44  ;;  %v5102_v34 = vmul.f32 0.70710677, %v5070_v42  ;;  %v11745_v42 = vld [vmem:[#allocation47_spill] sm:$0xff] }
 0x428   : > { %5918 = vrot.lane.b32.xlu1 %v4099_v37, %s7937_s10  ;;  %4514 = vrot.lane.b32.xlu0 %v10419_v60, %s7934_s30  ;;  %v4749_v37 = vsub.f32 %v11742_v44, %v11741_v41  ;;  %v4391_v41 = vsub.f32 %v11653_v57, %v9733_v54 }
 0x42a   : > { %v5396_v33 = vpop.permute.xlu1 %5395  ;;  %v5386_v11 = vpop.permute.xlu0 %5385  ;;  %v4781_v4 = vmul.f32 0.70710677, %v4749_v37 }
 0x42b   : > { %6842 = vst.msk [vmem:[%s8811_s8 + $0x5b8] sm:$0xff] %vm3919_vm1, %v5396_v33  ;;  %6837 = vst.msk [vmem:[%s8811_s8 + $0x3d8] sm:$0xff] %vm3919_vm1, %v5386_v11  ;;  %v5327_v33 = vmul.f32 0.70710677, %v5295_v30  ;;  %v5520_v11 = vsub.f32 %v11742_v44, %v11744_v61  ;;  %v4074_v44 = vadd.f32 %v9619_v9, %v11631_v27 }
 0x42c   : > { %4861 = vrot.lane.b32.xlu1 %v4776_v6, %s7936_s9  ;;  %5775 = vrot.lane.b32.xlu0 %v11740_v31, %s7936_s9  ;;  %v5547_v6 = vmul.f32 0.70710677, %v5515_v5  ;;  %v4101_v31 = vmul.f32 0.70710677, %v4069_v56  ;;  %v11746_v5 = vld [vmem:[#allocation28_spill] sm:$0xff] }
 0x42d   : > { %v10491_v57 = vmul.f32 0.70710677, %v4074_v44  ;;  %v11753_v44 = vld [vmem:[#allocation120_spill] sm:$0xff] }
 0x42e   : > { %v5621_v25 = vpop.permute.xlu1 %5620  ;;  %v5406_v38 = vpop.permute.xlu0 %5405 }
 0x42f   : > { %6874 = vst.msk [vmem:[%s8811_s8 + $0x5e8] sm:$0xff] %vm3919_vm1, %v5621_v25  ;;  %6847 = vst.msk [vmem:[%s8811_s8 + $0x798] sm:$0xff] %vm3919_vm1, %v5406_v38  ;;  %v10482_v25 = vmul.f32 0.70710677, %v4391_v41  ;;  %v11752_v41 = vld [vmem:[#allocation126_spill] sm:$0xff] }
 0x430   : > { %5182 = vrot.lane.b32.xlu1 %v5097_v29, %s7937_s10  ;;  %5799 = vrot.lane.b32.xlu0 %v11743_v14, %s7936_s9  ;;  %v5552_v29 = vmul.f32 0.70710677, %v5520_v11  ;;  %v4396_v14 = vsub.f32 %v11631_v27, %v9619_v9  ;;  %v11748_v9 = vld [vmem:[#allocation124_spill] sm:$0xff]  ;;  %v11749_v27 = vld [vmem:[#allocation50_spill] sm:$0xff] }
 0x431   : > { %v4746_v30 = vsub.f32 %v11749_v27, %v11748_v9 }
 0x432   : > { %v4175_v17 = vpop.permute.xlu1 %4174  ;;  %v5611_v3 = vpop.permute.xlu0 %5610 }
 0x433   : > { %6682 = vst.msk [vmem:[%s8811_s8 + $0x5d0] sm:$0xff] %vm3919_vm1, %v4175_v17  ;;  %6869 = vst.msk [vmem:[%s8811_s8 + $0x408] sm:$0xff] %vm3919_vm1, %v5611_v3  ;;  %v11747_v17 = vld [vmem:[#allocation29_spill] sm:$0xff]  ;;  %v4778_v11 = vmul.f32 0.70710677, %v4746_v30 }
 0x434   : > { %5407 = vrot.lane.b32.xlu1 %v5322_v53, %s7936_s9  ;;  %4871 = vrot.lane.b32.xlu0 %v4781_v4, %s7936_s9  ;;  %v10503_v53 = vmul.f32 0.70710677, %v4396_v14  ;;  %v4737_v3 = vsub.f32 %v11747_v17, %v11746_v5 }
 0x436   : > { %v4497_v8 = vpop.permute.xlu1 %4496  ;;  %v5631_v35 = vpop.permute.xlu0 %5630  ;;  %v4769_v56 = vmul.f32 0.70710677, %v4737_v3  ;;  %v11754_v3 = vld [vmem:[#allocation8_spill] sm:$0xff] }
 0x437   : > { %6746 = vst.msk [vmem:[%s8811_s8 + $0x5f8] sm:$0xff] %vm3919_vm1, %v4497_v8  ;;  %6879 = vst.msk [vmem:[%s8811_s8 + $0x7c8] sm:$0xff] %vm3919_vm1, %v5631_v35  ;;  %v11750_v8 = vld [vmem:[#allocation118_spill] sm:$0xff] }
 0x438   : > { %5632 = vrot.lane.b32.xlu1 %v5547_v6, %s7937_s10  ;;  %5192 = vrot.lane.b32.xlu0 %v5102_v34, %s7937_s10  ;;  %v11751_v35 = vld [vmem:[#allocation30_spill] sm:$0xff] }
 0x439   : > { %v5072_v30 = vadd.f32 %v11754_v3, %v11751_v35 }
 0x43a   : > { %v5782_v37 = vpop.permute.xlu1 %5781  ;;  %v4165_v0 = vpop.permute.xlu0 %4164 }
 0x43b   : > { %6906 = vst.msk [vmem:[%s8811_s8 + $0x5a8] sm:$0xff] %vm3919_vm1, %v5782_v37  ;;  %6677 = vst.msk [vmem:[%s8811_s8 + $0x3f0] sm:$0xff] %vm3919_vm1, %v4165_v0  ;;  %v5067_v37 = vadd.f32 %v11752_v41, %v11749_v27 }
 0x43c   : > { %4186 = vrot.lane.b32.xlu1 %v4101_v31, %s7934_s30  ;;  %5417 = vrot.lane.b32.xlu0 %v5327_v33, %s7936_s9  ;;  %v4751_v33 = vsub.f32 %v11751_v35, %v11750_v8 }
 0x43d   : > { %v5099_v14 = vmul.f32 0.70710677, %v5067_v37 }
 0x43e   : > { %v5883_v38 = vpop.permute.xlu1 %5882  ;;  %v4185_v54 = vpop.permute.xlu0 %4184 }
 0x43f   : > { %6924 = vst.msk [vmem:[%s8811_s8 + $0x98] sm:$0xff] %vm3919_vm1, %v5883_v38  ;;  %6687 = vst.msk [vmem:[%s8811_s8 + $0x7b0] sm:$0xff] %vm3919_vm1, %v4185_v54  ;;  %v5058_v38 = vadd.f32 %v11753_v44, %v11747_v17  ;;  %v5292_v54 = vadd.f32 %v11748_v9, %v11749_v27  ;;  %v5517_v9 = vsub.f32 %v11749_v27, %v11752_v41 }
 0x440   : > { %4508 = vrot.lane.b32.xlu1 %v10482_v25, %s7934_s30  ;;  %5642 = vrot.lane.b32.xlu0 %v5552_v29, %s7937_s10 }
 0x441   : > { %v5549_v37 = vmul.f32 0.70710677, %v5517_v9 }
 0x442   : > { %v5887_v4 = vpop.permute.xlu1 %5886  ;;  %v4487_v61 = vpop.permute.xlu0 %4486 }
 0x443   : > { %6926 = vst.msk [vmem:[%s8811_s8 + $0x158] sm:$0xff] %vm3919_vm1, %v5887_v4  ;;  %6741 = vst.msk [vmem:[%s8811_s8 + $0x418] sm:$0xff] %vm3919_vm1, %v4487_v61 }
 0x444   : > { %5793 = vrot.lane.b32.xlu1 %v11745_v42, %s7936_s9  ;;  %4196 = vrot.lane.b32.xlu0 %v10491_v57, %s7934_s30  ;;  %v5090_v42 = vmul.f32 0.70710677, %v5058_v38 }
 0x446   : > { %v5891_v34 = vpop.permute.xlu1 %5890  ;;  %v4507_v6 = vpop.permute.xlu0 %4506 }
 0x447   : > { %6928 = vst.msk [vmem:[%s8811_s8 + $0x218] sm:$0xff] %vm3919_vm1, %v5891_v34  ;;  %6751 = vst.msk [vmem:[%s8811_s8 + $0x7d8] sm:$0xff] %vm3919_vm1, %v4507_v6  ;;  %v5324_v34 = vmul.f32 0.70710677, %v5292_v54 }
 0x448   : > { %5922 = vrot.lane.b32.xlu1 %v4101_v31, %s7937_s10  ;;  %4518 = vrot.lane.b32.xlu0 %v10503_v53, %s7934_s30  ;;  %v4783_v31 = vmul.f32 0.70710677, %v4751_v33  ;;  %v5283_v33 = vadd.f32 %v11746_v5, %v11747_v17  ;;  %v5297_v5 = vadd.f32 %v11750_v8, %v11751_v35  ;;  %v5508_v8 = vsub.f32 %v11747_v17, %v11753_v44 }
 0x44a   : > { %v5895_v0 = vpop.permute.xlu1 %5894  ;;  %v5772_v29 = vpop.permute.xlu0 %5771  ;;  %v5315_v38 = vmul.f32 0.70710677, %v5283_v33  ;;  %v11757_v33 = vld [vmem:[#allocation65_spill] sm:$0xff] }
 0x44b   : > { %6930 = vst.msk [vmem:[%s8811_s8 + $0x2d8] sm:$0xff] %vm3919_vm1, %v5895_v0  ;;  %6901 = vst.msk [vmem:[%s8811_s8 + $0x3c8] sm:$0xff] %vm3919_vm1, %v5772_v29  ;;  %v11755_v0 = vld [vmem:[#allocation51_spill] sm:$0xff]  ;;  %v11756_v29 = vld [vmem:[#allocation62_spill] sm:$0xff] }
 0x44c   : > { %4865 = vrot.lane.b32.xlu1 %v4778_v11, %s7936_s9  ;;  %4847 = vrot.lane.b32.xlu0 %v4769_v56, %s7936_s9  ;;  %v5104_v11 = vmul.f32 0.70710677, %v5072_v30  ;;  %v4071_v27 = vadd.f32 %v11756_v29, %v11755_v0 }
 0x44e   : > { %v5899_v4 = vpop.permute.xlu1 %5898  ;;  %v5792_v61 = vpop.permute.xlu0 %5791  ;;  %v4103_v54 = vmul.f32 0.70710677, %v4071_v27  ;;  %v11760_v27 = vld [vmem:[#allocation56_spill] sm:$0xff] }
 0x44f   : > { %6932 = vst.msk [vmem:[%s8811_s8 + $0x398] sm:$0xff] %vm3919_vm1, %v5899_v4  ;;  %6911 = vst.msk [vmem:[%s8811_s8 + $0x788] sm:$0xff] %vm3919_vm1, %v5792_v61 }
 0x450   : > { %5186 = vrot.lane.b32.xlu1 %v5099_v14, %s7937_s10  ;;  %4875 = vrot.lane.b32.xlu0 %v4783_v31, %s7936_s9  ;;  %v4393_v14 = vsub.f32 %v11755_v0, %v11756_v29  ;;  %v11759_v0 = vld [vmem:[#allocation123_spill] sm:$0xff] }
 0x452   : > { %v5903_v6 = vpop.permute.xlu1 %5902  ;;  %v4864_v56 = vpop.permute.xlu0 %4863  ;;  %v10568_v30 = vmul.f32 0.70710677, %v4393_v14 }
 0x453   : > { %6934 = vst.msk [vmem:[%s8811_s8 + $0x458] sm:$0xff] %vm3919_vm1, %v5903_v6  ;;  %6785 = vst.msk [vmem:[%s8811_s8 + $0x850] sm:$0xff] %vm3919_vm1, %v4864_v56  ;;  %v5540_v6 = vmul.f32 0.70710677, %v5508_v8  ;;  %v5522_v56 = vsub.f32 %v11751_v35, %v11754_v3  ;;  %v4748_v35 = vsub.f32 %v11760_v27, %v9842_v47 }
 0x454   : > { %5411 = vrot.lane.b32.xlu1 %v5324_v34, %s7936_s9  ;;  %5168 = vrot.lane.b32.xlu0 %v5090_v42, %s7937_s10  ;;  %v5329_v42 = vmul.f32 0.70710677, %v5297_v5  ;;  %v11762_v5 = vld [vmem:[#allocation9_spill] sm:$0xff] }
 0x456   : > { %v5907_v41 = vpop.permute.xlu1 %5906  ;;  %v5185_v31 = vpop.permute.xlu0 %5184 }
 0x457   : > { %6936 = vst.msk [vmem:[%s8811_s8 + $0x518] sm:$0xff] %vm3919_vm1, %v5907_v41  ;;  %6817 = vst.msk [vmem:[%s8811_s8 + $0x880] sm:$0xff] %vm3919_vm1, %v5185_v31 }
 0x458   : > { %5636 = vrot.lane.b32.xlu1 %v5549_v37, %s7937_s10  ;;  %5196 = vrot.lane.b32.xlu0 %v5104_v11, %s7937_s10  ;;  %v5554_v11 = vmul.f32 0.70710677, %v5522_v56  ;;  %v11758_v37 = vld [vmem:[#allocation31_spill] sm:$0xff] }
 0x459   : > { %v4062_v29 = vadd.f32 %v11759_v0, %v11758_v37 }
 0x45a   : > { %v5911_v4 = vpop.permute.xlu1 %5910  ;;  %v5410_v61 = vpop.permute.xlu0 %5409 }
 0x45b   : > { %6938 = vst.msk [vmem:[%s8811_s8 + $0x5d8] sm:$0xff] %vm3919_vm1, %v5911_v4  ;;  %6849 = vst.msk [vmem:[%s8811_s8 + $0x858] sm:$0xff] %vm3919_vm1, %v5410_v61  ;;  %v10596_v31 = vmul.f32 0.70710677, %v4062_v29  ;;  %v4780_v4 = vmul.f32 0.70710677, %v4748_v35  ;;  %v5069_v61 = vadd.f32 %v9854_v13, %v11760_v27 }
 0x45c   : > { %4190 = vrot.lane.b32.xlu1 %v4103_v54, %s7934_s30  ;;  %5393 = vrot.lane.b32.xlu0 %v5315_v38, %s7936_s9  ;;  %v11761_v38 = vld [vmem:[#allocation32_spill] sm:$0xff] }
 0x45d   : > { %v4076_v14 = vadd.f32 %v11762_v5, %v11761_v38 }
 0x45e   : > { %v4854_v34 = vpop.permute.xlu1 %4853  ;;  %v5635_v9 = vpop.permute.xlu0 %5634 }
 0x45f   : > { %6780 = vst.msk [vmem:[%s8811_s8 + $0x670] sm:$0xff] %vm3919_vm1, %v4854_v34  ;;  %6881 = vst.msk [vmem:[%s8811_s8 + $0x888] sm:$0xff] %vm3919_vm1, %v5635_v9  ;;  %v10611_v34 = vmul.f32 0.70710677, %v4076_v14  ;;  %v5294_v9 = vadd.f32 %v9842_v47, %v11760_v27 }
 0x460   : > { %4512 = vrot.lane.b32.xlu1 %v10568_v30, %s7934_s30  ;;  %5421 = vrot.lane.b32.xlu0 %v5329_v42, %s7936_s9 }
 0x461   : > { %v5326_v47 = vmul.f32 0.70710677, %v5294_v9 }
 0x462   : > { %v5175_v17 = vpop.permute.xlu1 %5174  ;;  %v4189_v44 = vpop.permute.xlu0 %4188 }
 0x463   : > { %6812 = vst.msk [vmem:[%s8811_s8 + $0x6a0] sm:$0xff] %vm3919_vm1, %v5175_v17  ;;  %6689 = vst.msk [vmem:[%s8811_s8 + $0x870] sm:$0xff] %vm3919_vm1, %v4189_v44 }
 0x464   : > { %5797 = vrot.lane.b32.xlu1 %v11757_v33, %s7936_s9  ;;  %5618 = vrot.lane.b32.xlu0 %v5540_v6, %s7937_s10  ;;  %v5101_v6 = vmul.f32 0.70710677, %v5069_v61  ;;  %v4398_v33 = vsub.f32 %v11761_v38, %v11762_v5  ;;  %v11764_v38 = vld [vmem:[#allocation40_spill] sm:$0xff] }
 0x465   : > { %v5074_v9 = vadd.f32 %v9812_v59, %v11764_v38 }
 0x466   : > { %v5400_v3 = vpop.permute.xlu1 %5399  ;;  %v4511_v41 = vpop.permute.xlu0 %4510  ;;  %v10635_v29 = vmul.f32 0.70710677, %v4398_v33 }
 0x467   : > { %6844 = vst.msk [vmem:[%s8811_s8 + $0x678] sm:$0xff] %vm3919_vm1, %v5400_v3  ;;  %6753 = vst.msk [vmem:[%s8811_s8 + $0x898] sm:$0xff] %vm3919_vm1, %v4511_v41  ;;  %v4073_v3 = vadd.f32 %v9930_v36, %v11688_v62  ;;  %v11763_v41 = vld [vmem:[#allocation70_spill] sm:$0xff] }
 0x468   : > { %5926 = vrot.lane.b32.xlu1 %v4103_v54, %s7937_s10  ;;  %5646 = vrot.lane.b32.xlu0 %v5554_v11, %s7937_s10  ;;  %v4384_v54 = vsub.f32 %v11758_v37, %v11759_v0  ;;  %v5519_v11 = vsub.f32 %v11760_v27, %v9854_v13  ;;  %v4753_v5 = vsub.f32 %v11764_v38, %v11763_v41 }
 0x469   : > { %v4105_v14 = vmul.f32 0.70710677, %v4073_v3 }
 0x46a   : > { %v5625_v42 = vpop.permute.xlu1 %5624  ;;  %v5796_v8 = vpop.permute.xlu0 %5795  ;;  %v10622_v44 = vmul.f32 0.70710677, %v4384_v54  ;;  %v5551_v35 = vmul.f32 0.70710677, %v5519_v11  ;;  %v4785_v54 = vmul.f32 0.70710677, %v4753_v5 }
 0x46b   : > { %6876 = vst.msk [vmem:[%s8811_s8 + $0x6a8] sm:$0xff] %vm3919_vm1, %v5625_v42  ;;  %6913 = vst.msk [vmem:[%s8811_s8 + $0x848] sm:$0xff] %vm3919_vm1, %v5796_v8  ;;  %v11765_v8 = vld [vmem:[#allocation69_spill] sm:$0xff] }
 0x46c   : > { %4869 = vrot.lane.b32.xlu1 %v4780_v4, %s7936_s9  ;;  %4172 = vrot.lane.b32.xlu0 %v10596_v31, %s7934_s30  ;;  %v4395_v4 = vsub.f32 %v11688_v62, %v9930_v36 }
 0x46e   : > { %v4179_v56 = vpop.permute.xlu1 %4178  ;;  %v4844_v17 = vpop.permute.xlu0 %4843 }
 0x46f   : > { %6684 = vst.msk [vmem:[%s8811_s8 + $0x690] sm:$0xff] %vm3919_vm1, %v4179_v56  ;;  %6775 = vst.msk [vmem:[%s8811_s8 + $0x490] sm:$0xff] %vm3919_vm1, %v4844_v17  ;;  %v5299_v56 = vadd.f32 %v11763_v41, %v11764_v38  ;;  %v5106_v17 = vmul.f32 0.70710677, %v5074_v9 }
 0x470   : > { %5190 = vrot.lane.b32.xlu1 %v5101_v6, %s7937_s10  ;;  %4200 = vrot.lane.b32.xlu0 %v10611_v34, %s7934_s30  ;;  %v10659_v6 = vmul.f32 0.70710677, %v4395_v4  ;;  %v4400_v4 = vsub.f32 %v11680_v12, %v9867_v1 }
 0x471   : > { %v5331_v11 = vmul.f32 0.70710677, %v5299_v56  ;;  %v4075_v56 = vadd.f32 %v9985_v23, %v11693_v51 }
 0x472   : > { %v4501_v37 = vpop.permute.xlu1 %4500  ;;  %v4868_v0 = vpop.permute.xlu0 %4867  ;;  %v10710_v9 = vmul.f32 0.70710677, %v4400_v4 }
 0x473   : > { %6748 = vst.msk [vmem:[%s8811_s8 + $0x6b8] sm:$0xff] %vm3919_vm1, %v4501_v37  ;;  %6787 = vst.msk [vmem:[%s8811_s8 + $0x910] sm:$0xff] %vm3919_vm1, %v4868_v0  ;;  %v5524_v37 = vsub.f32 %v11764_v38, %v9812_v59  ;;  %v11766_v0 = vld [vmem:[#allocation61_spill] sm:$0xff] }
 0x474   : > { %5415 = vrot.lane.b32.xlu1 %v5326_v47, %s7936_s9  ;;  %4494 = vrot.lane.b32.xlu0 %v10622_v44, %s7934_s30  ;;  %v5071_v41 = vadd.f32 %v9958_v18, %v11766_v0 }
 0x476   : > { %v5786_v13 = vpop.permute.xlu1 %5785  ;;  %v5165_v27 = vpop.permute.xlu0 %5164 }
 0x477   : > { %6908 = vst.msk [vmem:[%s8811_s8 + $0x668] sm:$0xff] %vm3919_vm1, %v5786_v13  ;;  %6807 = vst.msk [vmem:[%s8811_s8 + $0x4c0] sm:$0xff] %vm3919_vm1, %v5165_v27  ;;  %v4078_v27 = vadd.f32 %v9867_v1, %v11680_v12  ;;  %v5521_v1 = vsub.f32 %v11766_v0, %v9958_v18  ;;  %v11767_v18 = vld [vmem:[#allocation49_spill] sm:$0xff] }
 0x478   : > { %5640 = vrot.lane.b32.xlu1 %v5551_v35, %s7937_s10  ;;  %4522 = vrot.lane.b32.xlu0 %v10635_v29, %s7934_s30  ;;  %v4750_v35 = vsub.f32 %v11766_v0, %v9945_v10 }
 0x47a   : > { %v5915_v61 = vpop.permute.xlu1 %5914  ;;  %v5189_v42 = vpop.permute.xlu0 %5188  ;;  %v4782_v59 = vmul.f32 0.70710677, %v4750_v35  ;;  %v11768_v35 = vld [vmem:[#allocation121_spill] sm:$0xff] }
 0x47b   : > { %6940 = vst.msk [vmem:[%s8811_s8 + $0x698] sm:$0xff] %vm3919_vm1, %v5915_v61  ;;  %6819 = vst.msk [vmem:[%s8811_s8 + $0x940] sm:$0xff] %vm3919_vm1, %v5189_v42  ;;  %v5296_v61 = vadd.f32 %v9945_v10, %v11766_v0  ;;  %v5103_v42 = vmul.f32 0.70710677, %v5071_v41 }
 0x47c   : > { %4194 = vrot.lane.b32.xlu1 %v4105_v14, %s7934_s30  ;;  %5779 = vrot.lane.b32.xlu0 %v11765_v8, %s7936_s9 }
 0x47d   : > { %v5328_v12 = vmul.f32 0.70710677, %v5296_v61 }
 0x47e   : > { %v4858_v62 = vpop.permute.xlu1 %4857  ;;  %v5390_v36 = vpop.permute.xlu0 %5389 }
 0x47f   : > { %6782 = vst.msk [vmem:[%s8811_s8 + $0x730] sm:$0xff] %vm3919_vm1, %v4858_v62  ;;  %6839 = vst.msk [vmem:[%s8811_s8 + $0x498] sm:$0xff] %vm3919_vm1, %v5390_v36  ;;  %v5553_v36 = vmul.f32 0.70710677, %v5521_v1 }
 0x480   : > { %4516 = vrot.lane.b32.xlu1 %v10659_v6, %s7934_s30  ;;  %4879 = vrot.lane.b32.xlu0 %v4785_v54, %s7936_s9 }
 0x482   : > { %v5179_v33 = vpop.permute.xlu1 %5178  ;;  %v5414_v47 = vpop.permute.xlu0 %5413 }
 0x483   : > { %6814 = vst.msk [vmem:[%s8811_s8 + $0x760] sm:$0xff] %vm3919_vm1, %v5179_v33  ;;  %6851 = vst.msk [vmem:[%s8811_s8 + $0x918] sm:$0xff] %vm3919_vm1, %v5414_v47  ;;  %v10730_v47 = vmul.f32 0.70710677, %v4075_v56 }
 0x484   : > { %5801 = vrot.lane.b32.xlu1 %v9922_v52, %s7936_s9  ;;  %5200 = vrot.lane.b32.xlu0 %v5106_v17, %s7937_s10  ;;  %v5556_v52 = vmul.f32 0.70710677, %v5524_v37 }
 0x486   : > { %v5404_v3 = vpop.permute.xlu1 %5403  ;;  %v5615_v13 = vpop.permute.xlu0 %5614 }
 0x487   : > { %6846 = vst.msk [vmem:[%s8811_s8 + $0x738] sm:$0xff] %vm3919_vm1, %v5404_v3  ;;  %6871 = vst.msk [vmem:[%s8811_s8 + $0x4c8] sm:$0xff] %vm3919_vm1, %v5615_v13 }
 0x488   : > { %5930 = vrot.lane.b32.xlu1 %v4105_v14, %s7937_s10  ;;  %5425 = vrot.lane.b32.xlu0 %v5331_v11, %s7936_s9  ;;  %v10697_v14 = vmul.f32 0.70710677, %v4078_v27  ;;  %v4397_v11 = vsub.f32 %v11693_v51, %v9985_v23  ;;  %v11769_v23 = vld [vmem:[#allocation66_spill] sm:$0xff] }
 0x489   : > { %v11770_v51 = vld [vmem:[#allocation78_spill] sm:$0xff] }
 0x48a   : > { %v5629_v38 = vpop.permute.xlu1 %5628  ;;  %v5639_v5 = vpop.permute.xlu0 %5638  ;;  %v10742_v3 = vmul.f32 0.70710677, %v4397_v11  ;;  %v4752_v27 = vsub.f32 %v11770_v51, %v11769_v23  ;;  %v11776_v11 = vld [vmem:[#allocation64_spill] sm:$0xff] }
 0x48b   : > { %6878 = vst.msk [vmem:[%s8811_s8 + $0x768] sm:$0xff] %vm3919_vm1, %v5629_v38  ;;  %6883 = vst.msk [vmem:[%s8811_s8 + $0x948] sm:$0xff] %vm3919_vm1, %v5639_v5  ;;  %v11771_v38 = vld [vmem:[#allocation13_spill] sm:$0xff] }
 0x48c   : > { %4873 = vrot.lane.b32.xlu1 %v4782_v59, %s7936_s9  ;;  %5650 = vrot.lane.b32.xlu0 %v5556_v52, %s7937_s10  ;;  %v11772_v5 = vld [vmem:[#allocation101_spill] sm:$0xff]  ;;  %v4784_v4 = vmul.f32 0.70710677, %v4752_v27 }
 0x48e   : > { %v4183_v8 = vpop.permute.xlu1 %4182  ;;  %v4169_v54 = vpop.permute.xlu0 %4168 }
 0x48f   : > { %6686 = vst.msk [vmem:[%s8811_s8 + $0x750] sm:$0xff] %vm3919_vm1, %v4183_v8  ;;  %6679 = vst.msk [vmem:[%s8811_s8 + $0x4b0] sm:$0xff] %vm3919_vm1, %v4169_v54  ;;  %v11774_v54 = vld [vmem:[#allocation110_spill] sm:$0xff] }
 0x490   : > { %5194 = vrot.lane.b32.xlu1 %v5103_v42, %s7937_s10  ;;  %4204 = vrot.lane.b32.xlu0 %v10697_v14, %s7934_s30 }
 0x492   : > { %v4505_v10 = vpop.permute.xlu1 %4504  ;;  %v4193_v62 = vpop.permute.xlu0 %4192 }
 0x493   : > { %6750 = vst.msk [vmem:[%s8811_s8 + $0x778] sm:$0xff] %vm3919_vm1, %v4505_v10  ;;  %6691 = vst.msk [vmem:[%s8811_s8 + $0x930] sm:$0xff] %vm3919_vm1, %v4193_v62 }
 0x494   : > { %5419 = vrot.lane.b32.xlu1 %v5328_v12, %s7936_s9  ;;  %4526 = vrot.lane.b32.xlu0 %v10710_v9, %s7934_s30  ;;  %v5298_v12 = vadd.f32 %v11769_v23, %v11770_v51 }
 0x496   : > { %v5790_v17 = vpop.permute.xlu1 %5789  ;;  %v4491_v33 = vpop.permute.xlu0 %4490  ;;  %v5330_v56 = vmul.f32 0.70710677, %v5298_v12 }
 0x497   : > { %6910 = vst.msk [vmem:[%s8811_s8 + $0x728] sm:$0xff] %vm3919_vm1, %v5790_v17  ;;  %6743 = vst.msk [vmem:[%s8811_s8 + $0x4d8] sm:$0xff] %vm3919_vm1, %v4491_v33 }
 0x498   : > { %5644 = vrot.lane.b32.xlu1 %v5553_v36, %s7937_s10  ;;  %5803 = vrot.lane.b32.xlu0 %v11767_v18, %s7936_s9  ;;  %v11775_v36 = vld [vmem:[#allocation7_spill] sm:$0xff] }
 0x49a   : > { %v5919_v37 = vpop.permute.xlu1 %5918  ;;  %v4515_v0 = vpop.permute.xlu0 %4514 }
 0x49b   : > { %6942 = vst.msk [vmem:[%s8811_s8 + $0x758] sm:$0xff] %vm3919_vm1, %v5919_v37  ;;  %6755 = vst.msk [vmem:[%s8811_s8 + $0x958] sm:$0xff] %vm3919_vm1, %v4515_v0  ;;  %v4077_v0 = vadd.f32 %v10116_v20, %v11717_v24 }
 0x49c   : > { %4198 = vrot.lane.b32.xlu1 %v10730_v47, %s7934_s30  ;;  %5807 = vrot.lane.b32.xlu0 %v11768_v35, %s7936_s9 }
 0x49d   : > { %v10798_v23 = vmul.f32 0.70710677, %v4077_v0 }
 0x49e   : > { %v4862_v13 = vpop.permute.xlu1 %4861  ;;  %v5776_v52 = vpop.permute.xlu0 %5775 }
 0x49f   : > { %6784 = vst.msk [vmem:[%s8811_s8 + $0x7f0] sm:$0xff] %vm3919_vm1, %v4862_v13  ;;  %6903 = vst.msk [vmem:[%s8811_s8 + $0x488] sm:$0xff] %vm3919_vm1, %v5776_v52  ;;  %v11777_v52 = vld [vmem:[#allocation14_spill] sm:$0xff] }
 0x4a0   : > { %4520 = vrot.lane.b32.xlu1 %v10742_v3, %s7934_s30  ;;  %5811 = vrot.lane.b32.xlu0 %v9861_v46, %s7936_s9  ;;  %v11773_v46 = vld [vmem:[#allocation79_spill] sm:$0xff] }
 0x4a1   : > { %v5073_v61 = vadd.f32 %v11773_v46, %v11770_v51  ;;  %v5523_v17 = vsub.f32 %v11770_v51, %v11773_v46  ;;  %v4399_v51 = vsub.f32 %v11717_v24, %v10116_v20  ;;  %v11778_v24 = vld [vmem:[#allocation92_spill] sm:$0xff] }
 0x4a2   : > { %v5183_v59 = vpop.permute.xlu1 %5182  ;;  %v5800_v41 = vpop.permute.xlu0 %5799  ;;  %v4754_v20 = vsub.f32 %v11778_v24, %v10134_v39 }
 0x4a3   : > { %6816 = vst.msk [vmem:[%s8811_s8 + $0x820] sm:$0xff] %vm3919_vm1, %v5183_v59  ;;  %6915 = vst.msk [vmem:[%s8811_s8 + $0x908] sm:$0xff] %vm3919_vm1, %v5800_v41  ;;  %v5105_v1 = vmul.f32 0.70710677, %v5073_v61  ;;  %v5555_v37 = vmul.f32 0.70710677, %v5523_v17  ;;  %v4079_v17 = vadd.f32 %v10172_v55, %v11719_v7 }
 0x4a4   : > { %5805 = vrot.lane.b32.xlu1 %v11771_v38, %s7936_s9  ;;  %5880 = vrot.lane.b32.xlu0 %v11772_v5, %s7937_s10  ;;  %v10810_v41 = vmul.f32 0.70710677, %v4399_v51  ;;  %v4786_v46 = vmul.f32 0.70710677, %v4754_v20  ;;  %v11786_v20 = vld [vmem:[#allocation63_spill] sm:$0xff] }
 0x4a6   : > { %v5408_v42 = vpop.permute.xlu1 %5407  ;;  %v4872_v8 = vpop.permute.xlu0 %4871 }
 0x4a7   : > { %6848 = vst.msk [vmem:[%s8811_s8 + $0x7f8] sm:$0xff] %vm3919_vm1, %v5408_v42  ;;  %6789 = vst.msk [vmem:[%s8811_s8 + $0x9d0] sm:$0xff] %vm3919_vm1, %v4872_v8  ;;  %v11779_v8 = vld [vmem:[#allocation72_spill] sm:$0xff] }
 0x4a8   : > { %4877 = vrot.lane.b32.xlu1 %v4784_v4, %s7936_s9  ;;  %5884 = vrot.lane.b32.xlu0 %v11774_v54, %s7937_s10 }
 0x4aa   : > { %v5633_v10 = vpop.permute.xlu1 %5632  ;;  %v5193_v62 = vpop.permute.xlu0 %5192 }
 0x4ab   : > { %6880 = vst.msk [vmem:[%s8811_s8 + $0x828] sm:$0xff] %vm3919_vm1, %v5633_v10  ;;  %6821 = vst.msk [vmem:[%s8811_s8 + $0xa00] sm:$0xff] %vm3919_vm1, %v5193_v62  ;;  %v5525_v62 = vsub.f32 %v11778_v24, %v10145_v49 }
 0x4ac   : > { %5198 = vrot.lane.b32.xlu1 %v5105_v1, %s7937_s10  ;;  %5888 = vrot.lane.b32.xlu0 %v11775_v36, %s7937_s10  ;;  %v11780_v1 = vld [vmem:[#allocation58_spill] sm:$0xff] }
 0x4ae   : > { %v4187_v33 = vpop.permute.xlu1 %4186  ;;  %v5418_v18 = vpop.permute.xlu0 %5417 }
 0x4af   : > { %6688 = vst.msk [vmem:[%s8811_s8 + $0x810] sm:$0xff] %vm3919_vm1, %v4187_v33  ;;  %6853 = vst.msk [vmem:[%s8811_s8 + $0x9d8] sm:$0xff] %vm3919_vm1, %v5418_v18 }
 0x4b0   : > { %5423 = vrot.lane.b32.xlu1 %v5330_v56, %s7936_s9  ;;  %5892 = vrot.lane.b32.xlu0 %v11776_v11, %s7937_s10  ;;  %v5557_v56 = vmul.f32 0.70710677, %v5525_v62 }
 0x4b2   : > { %v4509_v35 = vpop.permute.xlu1 %4508  ;;  %v5643_v13 = vpop.permute.xlu0 %5642 }
 0x4b3   : > { %6752 = vst.msk [vmem:[%s8811_s8 + $0x838] sm:$0xff] %vm3919_vm1, %v4509_v35  ;;  %6885 = vst.msk [vmem:[%s8811_s8 + $0xa08] sm:$0xff] %vm3919_vm1, %v5643_v13 }
 0x4b4   : > { %5648 = vrot.lane.b32.xlu1 %v5555_v37, %s7937_s10  ;;  %5896 = vrot.lane.b32.xlu0 %v11777_v52, %s7937_s10 }
 0x4b6   : > { %v5794_v27 = vpop.permute.xlu1 %5793  ;;  %v4197_v59 = vpop.permute.xlu0 %4196 }
 0x4b7   : > { %6912 = vst.msk [vmem:[%s8811_s8 + $0x7e8] sm:$0xff] %vm3919_vm1, %v5794_v27  ;;  %6693 = vst.msk [vmem:[%s8811_s8 + $0x9f0] sm:$0xff] %vm3919_vm1, %v4197_v59  ;;  %v11783_v27 = vld [vmem:[#allocation38_spill] sm:$0xff] }
 0x4b8   : > { %4202 = vrot.lane.b32.xlu1 %v10798_v23, %s7934_s30  ;;  %5900 = vrot.lane.b32.xlu0 %v10152_v22, %s7937_s10  ;;  %v11784_v59 = vld [vmem:[#allocation54_spill] sm:$0xff] }
 0x4ba   : > { %v5923_v38 = vpop.permute.xlu1 %5922  ;;  %v4519_v5 = vpop.permute.xlu0 %4518 }
 0x4bb   : > { %6944 = vst.msk [vmem:[%s8811_s8 + $0x818] sm:$0xff] %vm3919_vm1, %v5923_v38  ;;  %6757 = vst.msk [vmem:[%s8811_s8 + $0xa18] sm:$0xff] %vm3919_vm1, %v4519_v5 }
 0x4bc   : > { %4524 = vrot.lane.b32.xlu1 %v10810_v41, %s7934_s30  ;;  %5904 = vrot.lane.b32.xlu0 %v10380_v15, %s7937_s10  ;;  %v5075_v15 = vadd.f32 %v10145_v49, %v11778_v24  ;;  %v4111_v49 = vmul.f32 0.70710677, %v4079_v17 }
 0x4be   : > { %v4866_v22 = vpop.permute.xlu1 %4865  ;;  %v4848_v4 = vpop.permute.xlu0 %4847 }
 0x4bf   : > { %6786 = vst.msk [vmem:[%s8811_s8 + $0x8b0] sm:$0xff] %vm3919_vm1, %v4866_v22  ;;  %6777 = vst.msk [vmem:[%s8811_s8 + $0x550] sm:$0xff] %vm3919_vm1, %v4848_v4 }
 0x4c0   : > { %5809 = vrot.lane.b32.xlu1 %v10108_v58, %s7936_s9  ;;  %5908 = vrot.lane.b32.xlu0 %v10596_v31, %s7937_s10  ;;  %v5300_v58 = vadd.f32 %v10134_v39, %v11778_v24  ;;  %v5107_v31 = vmul.f32 0.70710677, %v5075_v15  ;;  %v11785_v24 = vld [vmem:[#allocation48_spill] sm:$0xff] }
 0x4c1   : > { %v11788_v15 = vld [vmem:[#allocation76_spill] sm:$0xff] }
 0x4c2   : > { %v5187_v61 = vpop.permute.xlu1 %5186  ;;  %v4876_v42 = vpop.permute.xlu0 %4875  ;;  %v5332_v10 = vmul.f32 0.70710677, %v5300_v58  ;;  %v11790_v58 = vld [vmem:[#allocation99_spill] sm:$0xff] }
 0x4c3   : > { %6818 = vst.msk [vmem:[%s8811_s8 + $0x8e0] sm:$0xff] %vm3919_vm1, %v5187_v61  ;;  %6791 = vst.msk [vmem:[%s8811_s8 + $0xa90] sm:$0xff] %vm3919_vm1, %v4876_v42 }
 0x4c4   : > { %4881 = vrot.lane.b32.xlu1 %v4786_v46, %s7936_s9  ;;  %5912 = vrot.lane.b32.xlu0 %v11779_v8, %s7937_s10  ;;  %v11787_v46 = vld [vmem:[#allocation59_spill] sm:$0xff]  ;;  %v11789_v8 = vld [vmem:[#allocation68_spill] sm:$0xff] }
 0x4c6   : > { %v5412_v54 = vpop.permute.xlu1 %5411  ;;  %v5169_v12 = vpop.permute.xlu0 %5168 }
 0x4c7   : > { %6850 = vst.msk [vmem:[%s8811_s8 + $0x8b8] sm:$0xff] %vm3919_vm1, %v5412_v54  ;;  %6809 = vst.msk [vmem:[%s8811_s8 + $0x580] sm:$0xff] %vm3919_vm1, %v5169_v12  ;;  %v11791_v12 = vld [vmem:[#allocation75_spill] sm:$0xff] }
 0x4c8   : > { %5202 = vrot.lane.b32.xlu1 %v5107_v31, %s7937_s10  ;;  %5916 = vrot.lane.b32.xlu0 %v11780_v1, %s7937_s10  ;;  %v11792_v1 = vld [vmem:[#allocation5_spill] sm:$0xff] }
 0x4ca   : > { %v5637_v36 = vpop.permute.xlu1 %5636  ;;  %v5197_v39 = vpop.permute.xlu0 %5196 }
 0x4cb   : > { %6882 = vst.msk [vmem:[%s8811_s8 + $0x8e8] sm:$0xff] %vm3919_vm1, %v5637_v36  ;;  %6823 = vst.msk [vmem:[%s8811_s8 + $0xac0] sm:$0xff] %vm3919_vm1, %v5197_v39  ;;  %v11793_v36 = vld [vmem:[#allocation80_spill] sm:$0xff]  ;;  %v11794_v39 = vld [vmem:[#allocation53_spill] sm:$0xff] }
 0x4cc   : > { %5427 = vrot.lane.b32.xlu1 %v5332_v10, %s7936_s9  ;;  %5920 = vrot.lane.b32.xlu0 %v10170_v63, %s7937_s10  ;;  %v4401_v63 = vsub.f32 %v11719_v7, %v10172_v55 }
 0x4ce   : > { %v4191_v33 = vpop.permute.xlu1 %4190  ;;  %v5394_v18 = vpop.permute.xlu0 %5393  ;;  %v10875_v0 = vmul.f32 0.70710677, %v4401_v63 }
 0x4cf   : > { %6690 = vst.msk [vmem:[%s8811_s8 + $0x8d0] sm:$0xff] %vm3919_vm1, %v4191_v33  ;;  %6841 = vst.msk [vmem:[%s8811_s8 + $0x558] sm:$0xff] %vm3919_vm1, %v5394_v18  ;;  %v11795_v33 = vld [vmem:[#allocation89_spill] sm:$0xff] }
 0x4d0   : > { %5652 = vrot.lane.b32.xlu1 %v5557_v56, %s7937_s10  ;;  %5924 = vrot.lane.b32.xlu0 %v10267_v21, %s7937_s10  ;;  %v11796_v18 = vld [vmem:[#allocation77_spill] sm:$0xff] }
 0x4d2   : > { %v4513_v11 = vpop.permute.xlu1 %4512  ;;  %v5422_v37 = vpop.permute.xlu0 %5421 }
 0x4d3   : > { %6754 = vst.msk [vmem:[%s8811_s8 + $0x8f8] sm:$0xff] %vm3919_vm1, %v4513_v11  ;;  %6855 = vst.msk [vmem:[%s8811_s8 + $0xa98] sm:$0xff] %vm3919_vm1, %v5422_v37  ;;  %v11797_v11 = vld [vmem:[#allocation98_spill] sm:$0xff]  ;;  %v11798_v37 = vld [vmem:[#allocation84_spill] sm:$0xff] }
 0x4d4   : > { %4206 = vrot.lane.b32.xlu1 %v4111_v49, %s7934_s30  ;;  %5928 = vrot.lane.b32.xlu0 %v10395_v28, %s7937_s10 }
 0x4d6   : > { %v5798_v21 = vpop.permute.xlu1 %5797  ;;  %v5619_v35 = vpop.permute.xlu0 %5618 }
 0x4d7   : > { %6914 = vst.msk [vmem:[%s8811_s8 + $0x8a8] sm:$0xff] %vm3919_vm1, %v5798_v21  ;;  %6873 = vst.msk [vmem:[%s8811_s8 + $0x588] sm:$0xff] %vm3919_vm1, %v5619_v35 }
 0x4d8   : > { %4528 = vrot.lane.b32.xlu1 %v10875_v0, %s7934_s30  ;;  %5932 = vrot.lane.b32.xlu0 %v10491_v57, %s7937_s10 }
 0x4da   : > { %v5927_v7 = vpop.permute.xlu1 %5926  ;;  %v5647_v55 = vpop.permute.xlu0 %5646 }
 0x4db   : > { %6946 = vst.msk [vmem:[%s8811_s8 + $0x8d8] sm:$0xff] %vm3919_vm1, %v5927_v7  ;;  %6887 = vst.msk [vmem:[%s8811_s8 + $0xac8] sm:$0xff] %vm3919_vm1, %v5647_v55  ;;  %v11799_v7 = vld [vmem:[#allocation107_spill] sm:$0xff]  ;;  %v11800_v55 = vld [vmem:[#allocation100_spill] sm:$0xff] }
 0x4dc   : > { %5813 = vrot.lane.b32.xlu1 %v10164_v40, %s7936_s9  ;;  %5936 = vrot.lane.b32.xlu0 %v10611_v34, %s7937_s10  ;;  %v11781_v34 = vld [vmem:[#allocation35_spill] sm:$0xff] }
 0x4de   : > { %v4870_v28 = vpop.permute.xlu1 %4869  ;;  %v4173_v13 = vpop.permute.xlu0 %4172 }
 0x4df   : > { %6788 = vst.msk [vmem:[%s8811_s8 + $0x970] sm:$0xff] %vm3919_vm1, %v4870_v28  ;;  %6681 = vst.msk [vmem:[%s8811_s8 + $0x570] sm:$0xff] %vm3919_vm1, %v4173_v13 }
 0x4e0   : > { %5934 = vrot.lane.b32.xlu1 %v10730_v47, %s7937_s10  ;;  %5940 = vrot.lane.b32.xlu0 %v10697_v14, %s7937_s10  ;;  %v11782_v14 = vld [vmem:[#allocation42_spill] sm:$0xff] }
 0x4e2   : > { %v5191_v40 = vpop.permute.xlu1 %5190  ;;  %v4201_v57 = vpop.permute.xlu0 %4200 }
 0x4e3   : > { %6820 = vst.msk [vmem:[%s8811_s8 + $0x9a0] sm:$0xff] %vm3919_vm1, %v5191_v40  ;;  %6695 = vst.msk [vmem:[%s8811_s8 + $0xab0] sm:$0xff] %vm3919_vm1, %v4201_v57  ;;  %v11801_v40 = vld [vmem:[#allocation117_spill] sm:$0xff]  ;;  %v11802_v57 = vld [vmem:[#allocation103_spill] sm:$0xff] }
 0x4e4   : > { %5938 = vrot.lane.b32.xlu1 %v10798_v23, %s7937_s10  ;;  %6041 = vrot.lane.b32.xlu0 %v11781_v34, %s7936_s9 }
 0x4e6   : > { %v5416_v47 = vpop.permute.xlu1 %5415  ;;  %v4495_v52 = vpop.permute.xlu0 %4494 }
 0x4e7   : > { %6852 = vst.msk [vmem:[%s8811_s8 + $0x978] sm:$0xff] %vm3919_vm1, %v5416_v47  ;;  %6745 = vst.msk [vmem:[%s8811_s8 + $0x598] sm:$0xff] %vm3919_vm1, %v4495_v52  ;;  %v11803_v52 = vld [vmem:[#allocation67_spill] sm:$0xff] }
 0x4e8   : > { %5942 = vrot.lane.b32.xlu1 %v4111_v49, %s7937_s10  ;;  %6045 = vrot.lane.b32.xlu0 %v11782_v14, %s7936_s9  ;;  %v11804_v14 = vld [vmem:[#allocation111_spill] sm:$0xff] }
 0x4ea   : > { %v5641_v51 = vpop.permute.xlu1 %5640  ;;  %v4523_v23 = vpop.permute.xlu0 %4522 }
 0x4eb   : > { %6884 = vst.msk [vmem:[%s8811_s8 + $0x9a8] sm:$0xff] %vm3919_vm1, %v5641_v51  ;;  %6759 = vst.msk [vmem:[%s8811_s8 + $0xad8] sm:$0xff] %vm3919_vm1, %v4523_v23 }
 0x4ec   : > { %6043 = vrot.lane.b32.xlu1 %v11783_v27, %s7936_s9  ;;  %6049 = vrot.lane.b32.xlu0 %v11784_v59, %s7936_s9  ;;  %v11805_v27 = vld [vmem:[#allocation11_spill] sm:$0xff]  ;;  %v11806_v59 = vld [vmem:[#allocation10_spill] sm:$0xff] }
 0x4ee   : > { %v4195_v38 = vpop.permute.xlu1 %4194  ;;  %v5780_v5 = vpop.permute.xlu0 %5779 }
 0x4ef   : > { %6692 = vst.msk [vmem:[%s8811_s8 + $0x990] sm:$0xff] %vm3919_vm1, %v4195_v38  ;;  %6905 = vst.msk [vmem:[%s8811_s8 + $0x548] sm:$0xff] %vm3919_vm1, %v5780_v5 }
 0x4f0   : > { %6047 = vrot.lane.b32.xlu1 %v11785_v24, %s7936_s9  ;;  %6053 = vrot.lane.b32.xlu0 %v11786_v20, %s7936_s9  ;;  %v11807_v24 = vld [vmem:[#allocation74_spill] sm:$0xff] }
 0x4f1   : > { %v11808_v20 = vld [vmem:[#allocation122_spill] sm:$0xff] }
 0x4f2   : > { %v4517_v22 = vpop.permute.xlu1 %4516  ;;  %v4880_v4 = vpop.permute.xlu0 %4879 }
 0x4f3   : > { %6756 = vst.msk [vmem:[%s8811_s8 + $0x9b8] sm:$0xff] %vm3919_vm1, %v4517_v22  ;;  %6793 = vst.msk [vmem:[%s8811_s8 + $0xb50] sm:$0xff] %vm3919_vm1, %v4880_v4 }
 0x4f4   : > { %6051 = vrot.lane.b32.xlu1 %v11787_v46, %s7936_s9  ;;  %6057 = vrot.lane.b32.xlu0 %v11788_v15, %s7936_s9  ;;  %v11809_v46 = vld [vmem:[#allocation19_spill] sm:$0xff] }
 0x4f5   : > { %v11810_v15 = vld [vmem:[#allocation71_spill] sm:$0xff] }
 0x4f6   : > { %v5802_v61 = vpop.permute.xlu1 %5801  ;;  %v5201_v42 = vpop.permute.xlu0 %5200 }
 0x4f7   : > { %6916 = vst.msk [vmem:[%s8811_s8 + $0x968] sm:$0xff] %vm3919_vm1, %v5802_v61  ;;  %6825 = vst.msk [vmem:[%s8811_s8 + $0xb80] sm:$0xff] %vm3919_vm1, %v5201_v42 }
 0x4f8   : > { %6055 = vrot.lane.b32.xlu1 %v11789_v8, %s7936_s9  ;;  %6061 = vrot.lane.b32.xlu0 %v11790_v58, %s7936_s9  ;;  %v11811_v8 = vld [vmem:[#allocation102_spill] sm:$0xff] }
 0x4fa   : > { %v5931_v31 = vpop.permute.xlu1 %5930  ;;  %v5426_v54 = vpop.permute.xlu0 %5425 }
 0x4fb   : > { %6948 = vst.msk [vmem:[%s8811_s8 + $0x998] sm:$0xff] %vm3919_vm1, %v5931_v31  ;;  %6857 = vst.msk [vmem:[%s8811_s8 + $0xb58] sm:$0xff] %vm3919_vm1, %v5426_v54  ;;  %v11812_v54 = vld [vmem:[#allocation114_spill] sm:$0xff] }
 0x4fc   : > { %6059 = vrot.lane.b32.xlu1 %v11791_v12, %s7936_s9  ;;  %6065 = vrot.lane.b32.xlu0 %v11792_v1, %s7936_s9  ;;  %v11813_v1 = vld [vmem:[#allocation57_spill] sm:$0xff] }
 0x4fe   : > { %v4874_v10 = vpop.permute.xlu1 %4873  ;;  %v5651_v62 = vpop.permute.xlu0 %5650 }
 0x4ff   : > { %6790 = vst.msk [vmem:[%s8811_s8 + $0xa30] sm:$0xff] %vm3919_vm1, %v4874_v10  ;;  %6889 = vst.msk [vmem:[%s8811_s8 + $0xb88] sm:$0xff] %vm3919_vm1, %v5651_v62  ;;  %v11814_v10 = vld [vmem:[#allocation119_spill] sm:$0xff] }
 0x500   : > { %6063 = vrot.lane.b32.xlu1 %v11793_v36, %s7936_s9  ;;  %6069 = vrot.lane.b32.xlu0 %v11794_v39, %s7936_s9  ;;  %v11815_v36 = vld [vmem:[#allocation83_spill] sm:$0xff]  ;;  %v11816_v39 = vld [vmem:[#allocation125_spill] sm:$0xff] }
 0x502   : > { %v5195_v56 = vpop.permute.xlu1 %5194  ;;  %v4205_v17 = vpop.permute.xlu0 %4204 }
 0x503   : > { %6822 = vst.msk [vmem:[%s8811_s8 + $0xa60] sm:$0xff] %vm3919_vm1, %v5195_v56  ;;  %6697 = vst.msk [vmem:[%s8811_s8 + $0xb70] sm:$0xff] %vm3919_vm1, %v4205_v17 }
 0x504   : > { %6067 = vrot.lane.b32.xlu1 %v11795_v33, %s7936_s9  ;;  %6073 = vrot.lane.b32.xlu0 %v11796_v18, %s7936_s9  ;;  %v11817_v33 = vld [vmem:[#allocation104_spill] sm:$0xff]  ;;  %v11818_v18 = vld [vmem:[#allocation73_spill] sm:$0xff] }
 0x506   : > { %v5420_v49 = vpop.permute.xlu1 %5419  ;;  %v4527_v63 = vpop.permute.xlu0 %4526 }
 0x507   : > { %6854 = vst.msk [vmem:[%s8811_s8 + $0xa38] sm:$0xff] %vm3919_vm1, %v5420_v49  ;;  %6761 = vst.msk [vmem:[%s8811_s8 + $0xb98] sm:$0xff] %vm3919_vm1, %v4527_v63 }
 0x508   : > { %6071 = vrot.lane.b32.xlu1 %v11797_v11, %s7936_s9  ;;  %6077 = vrot.lane.b32.xlu0 %v11798_v37, %s7936_s9  ;;  %v11819_v11 = vld [vmem:[#allocation60_spill] sm:$0xff] }
 0x50a   : > { %v5645_v21 = vpop.permute.xlu1 %5644  ;;  %v5804_v35 = vpop.permute.xlu0 %5803 }
 0x50b   : > { %6886 = vst.msk [vmem:[%s8811_s8 + $0xa68] sm:$0xff] %vm3919_vm1, %v5645_v21  ;;  %6917 = vst.msk [vmem:[%s8811_s8 + $0x9c8] sm:$0xff] %vm3919_vm1, %v5804_v35  ;;  %v11820_v35 = vld [vmem:[#allocation12_spill] sm:$0xff] }
 0x50c   : > { %6075 = vrot.lane.b32.xlu1 %v11799_v7, %s7936_s9  ;;  %6081 = vrot.lane.b32.xlu0 %v11800_v55, %s7936_s9 }
 0x50e   : > { %v4199_v28 = vpop.permute.xlu1 %4198  ;;  %v5808_v13 = vpop.permute.xlu0 %5807 }
 0x50f   : > { %6694 = vst.msk [vmem:[%s8811_s8 + $0xa50] sm:$0xff] %vm3919_vm1, %v4199_v28  ;;  %6919 = vst.msk [vmem:[%s8811_s8 + $0xa88] sm:$0xff] %vm3919_vm1, %v5808_v13 }
 0x510   : > { %6079 = vrot.lane.b32.xlu1 %v11801_v40, %s7936_s9  ;;  %6085 = vrot.lane.b32.xlu0 %v11802_v57, %s7936_s9  ;;  %v11823_v40 = vld [vmem:[#allocation16_spill] sm:$0xff] }
 0x512   : > { %v4521_v34 = vpop.permute.xlu1 %4520  ;;  %v5812_v47 = vpop.permute.xlu0 %5811 }
 0x513   : > { %6758 = vst.msk [vmem:[%s8811_s8 + $0xa78] sm:$0xff] %vm3919_vm1, %v4521_v34  ;;  %6921 = vst.msk [vmem:[%s8811_s8 + $0xb48] sm:$0xff] %vm3919_vm1, %v5812_v47 }
 0x514   : > { %6083 = vrot.lane.b32.xlu1 %v11803_v52, %s7936_s9  ;;  %6089 = vrot.lane.b32.xlu0 %v11804_v14, %s7936_s9 }
 0x516   : > { %v5806_v51 = vpop.permute.xlu1 %5805  ;;  %v5881_v23 = vpop.permute.xlu0 %5880 }
 0x517   : > { %6918 = vst.msk [vmem:[%s8811_s8 + $0xa28] sm:$0xff] %vm3919_vm1, %v5806_v51  ;;  %6923 = vst.msk [vmem:[%s8811_s8 + $0x38] sm:$0xff] %vm3919_vm1, %v5881_v23 }
 0x518   : > { %6087 = vrot.lane.b32.xlu1 %v11805_v27, %s7936_s9  ;;  %6093 = vrot.lane.b32.xlu0 %v11806_v59, %s7936_s9 }
 0x51a   : > { %v4878_v38 = vpop.permute.xlu1 %4877  ;;  %v5885_v5 = vpop.permute.xlu0 %5884 }
 0x51b   : > { %6792 = vst.msk [vmem:[%s8811_s8 + $0xaf0] sm:$0xff] %vm3919_vm1, %v4878_v38  ;;  %6925 = vst.msk [vmem:[%s8811_s8 + $0xf8] sm:$0xff] %vm3919_vm1, %v5885_v5 }
 0x51c   : > { %6091 = vrot.lane.b32.xlu1 %v11807_v24, %s7936_s9  ;;  %6097 = vrot.lane.b32.xlu0 %v11808_v20, %s7936_s9 }
 0x51e   : > { %v5199_v22 = vpop.permute.xlu1 %5198  ;;  %v5889_v4 = vpop.permute.xlu0 %5888 }
 0x51f   : > { %6824 = vst.msk [vmem:[%s8811_s8 + $0xb20] sm:$0xff] %vm3919_vm1, %v5199_v22  ;;  %6927 = vst.msk [vmem:[%s8811_s8 + $0x1b8] sm:$0xff] %vm3919_vm1, %v5889_v4 }
 0x520   : > { %6095 = vrot.lane.b32.xlu1 %v11809_v46, %s7936_s9  ;;  %6101 = vrot.lane.b32.xlu0 %v11810_v15, %s7936_s9 }
 0x522   : > { %v5424_v61 = vpop.permute.xlu1 %5423  ;;  %v5893_v42 = vpop.permute.xlu0 %5892 }
 0x523   : > { %6856 = vst.msk [vmem:[%s8811_s8 + $0xaf8] sm:$0xff] %vm3919_vm1, %v5424_v61  ;;  %6929 = vst.msk [vmem:[%s8811_s8 + $0x278] sm:$0xff] %vm3919_vm1, %v5893_v42 }
 0x524   : > { %6099 = vrot.lane.b32.xlu1 %v10110_v48, %s7936_s9  ;;  %6170 = vrot.lane.b32.xlu0 %v11811_v8, %s7937_s10 }
 0x526   : > { %v5649_v58 = vpop.permute.xlu1 %5648  ;;  %v5897_v31 = vpop.permute.xlu0 %5896 }
 0x527   : > { %6888 = vst.msk [vmem:[%s8811_s8 + $0xb28] sm:$0xff] %vm3919_vm1, %v5649_v58  ;;  %6931 = vst.msk [vmem:[%s8811_s8 + $0x338] sm:$0xff] %vm3919_vm1, %v5897_v31 }
 0x528   : > { %6103 = vrot.lane.b32.xlu1 %v10166_v43, %s7936_s9  ;;  %6174 = vrot.lane.b32.xlu0 %v11812_v54, %s7937_s10 }
 0x52a   : > { %v4203_v48 = vpop.permute.xlu1 %4202  ;;  %v5901_v12 = vpop.permute.xlu0 %5900 }
 0x52b   : > { %6696 = vst.msk [vmem:[%s8811_s8 + $0xb10] sm:$0xff] %vm3919_vm1, %v4203_v48  ;;  %6933 = vst.msk [vmem:[%s8811_s8 + $0x3f8] sm:$0xff] %vm3919_vm1, %v5901_v12 }
 0x52c   : > { %6172 = vrot.lane.b32.xlu1 %v11813_v1, %s7937_s10  ;;  %6178 = vrot.lane.b32.xlu0 %v11814_v10, %s7937_s10 }
 0x52e   : > { %v4525_v43 = vpop.permute.xlu1 %4524  ;;  %v5905_v62 = vpop.permute.xlu0 %5904 }
 0x52f   : > { %6760 = vst.msk [vmem:[%s8811_s8 + $0xb38] sm:$0xff] %vm3919_vm1, %v4525_v43  ;;  %6935 = vst.msk [vmem:[%s8811_s8 + $0x4b8] sm:$0xff] %vm3919_vm1, %v5905_v62 }
 0x530   : > { %6176 = vrot.lane.b32.xlu1 %v11815_v36, %s7937_s10  ;;  %6182 = vrot.lane.b32.xlu0 %v11816_v39, %s7937_s10 }
 0x532   : > { %v5810_v56 = vpop.permute.xlu1 %5809  ;;  %v5909_v17 = vpop.permute.xlu0 %5908 }
 0x533   : > { %6920 = vst.msk [vmem:[%s8811_s8 + $0xae8] sm:$0xff] %vm3919_vm1, %v5810_v56  ;;  %6937 = vst.msk [vmem:[%s8811_s8 + $0x578] sm:$0xff] %vm3919_vm1, %v5909_v17 }
 0x534   : > { %6180 = vrot.lane.b32.xlu1 %v11817_v33, %s7937_s10  ;;  %6186 = vrot.lane.b32.xlu0 %v11818_v18, %s7937_s10 }
 0x536   : > { %v4882_v49 = vpop.permute.xlu1 %4881  ;;  %v5913_v63 = vpop.permute.xlu0 %5912 }
 0x537   : > { %6794 = vst.msk [vmem:[%s8811_s8 + $0xbb0] sm:$0xff] %vm3919_vm1, %v4882_v49  ;;  %6939 = vst.msk [vmem:[%s8811_s8 + $0x638] sm:$0xff] %vm3919_vm1, %v5913_v63 }
 0x538   : > { %6184 = vrot.lane.b32.xlu1 %v11819_v11, %s7937_s10  ;;  %6190 = vrot.lane.b32.xlu0 %v10186_v32, %s7937_s10  ;;  %v11821_v32 = vld [vmem:[#allocation52_spill] sm:$0xff] }
 0x53a   : > { %v5203_v37 = vpop.permute.xlu1 %5202  ;;  %v5917_v21 = vpop.permute.xlu0 %5916 }
 0x53b   : > { %6826 = vst.msk [vmem:[%s8811_s8 + $0xbe0] sm:$0xff] %vm3919_vm1, %v5203_v37  ;;  %6941 = vst.msk [vmem:[%s8811_s8 + $0x6f8] sm:$0xff] %vm3919_vm1, %v5917_v21 }
 0x53c   : > { %6188 = vrot.lane.b32.xlu1 %v11820_v35, %s7937_s10  ;;  %6194 = vrot.lane.b32.xlu0 %v10407_v16, %s7937_s10  ;;  %v11822_v16 = vld [vmem:[#allocation25_spill] sm:$0xff] }
 0x53e   : > { %v5428_v7 = vpop.permute.xlu1 %5427  ;;  %v5921_v55 = vpop.permute.xlu0 %5920 }
 0x53f   : > { %6858 = vst.msk [vmem:[%s8811_s8 + $0xbb8] sm:$0xff] %vm3919_vm1, %v5428_v7  ;;  %6943 = vst.msk [vmem:[%s8811_s8 + $0x7b8] sm:$0xff] %vm3919_vm1, %v5921_v55 }
 0x540   : > { %6192 = vrot.lane.b32.xlu1 %v11821_v32, %s7937_s10  ;;  %6198 = vrot.lane.b32.xlu0 %v10622_v44, %s7937_s10  ;;  %v11824_v44 = vld [vmem:[#allocation15_spill] sm:$0xff] }
 0x542   : > { %v5653_v28 = vpop.permute.xlu1 %5652  ;;  %v5925_v13 = vpop.permute.xlu0 %5924 }
 0x543   : > { %6890 = vst.msk [vmem:[%s8811_s8 + $0xbe8] sm:$0xff] %vm3919_vm1, %v5653_v28  ;;  %6945 = vst.msk [vmem:[%s8811_s8 + $0x878] sm:$0xff] %vm3919_vm1, %v5925_v13 }
 0x544   : > { %6196 = vrot.lane.b32.xlu1 %v11822_v16, %s7937_s10  ;;  %6202 = vrot.lane.b32.xlu0 %v11823_v40, %s7937_s10 }
 0x546   : > { %v4207_v57 = vpop.permute.xlu1 %4206  ;;  %v5929_v34 = vpop.permute.xlu0 %5928 }
 0x547   : > { %6698 = vst.msk [vmem:[%s8811_s8 + $0xbd0] sm:$0xff] %vm3919_vm1, %v4207_v57  ;;  %6947 = vst.msk [vmem:[%s8811_s8 + $0x938] sm:$0xff] %vm3919_vm1, %v5929_v34 }
 0x548   : > { %6200 = vrot.lane.b32.xlu1 %v10141_v26, %s7937_s10  ;;  %6206 = vrot.lane.b32.xlu0 %v11824_v44, %s7937_s10 }
 0x54a   : > { %v4529_v47 = vpop.permute.xlu1 %4528  ;;  %v5933_v52 = vpop.permute.xlu0 %5932 }
 0x54b   : > { %6762 = vst.msk [vmem:[%s8811_s8 + $0xbf8] sm:$0xff] %vm3919_vm1, %v4529_v47  ;;  %6949 = vst.msk [vmem:[%s8811_s8 + $0x9f8] sm:$0xff] %vm3919_vm1, %v5933_v52 }
 0x54c   : > { %6204 = vrot.lane.b32.xlu1 %v10312_v19, %s7937_s10  ;;  %6210 = vrot.lane.b32.xlu0 %v10198_v50, %s7937_s10 }
 0x54e   : > { %v5814_v26 = vpop.permute.xlu1 %5813  ;;  %v5937_v14 = vpop.permute.xlu0 %5936 }
 0x54f   : > { %6922 = vst.msk [vmem:[%s8811_s8 + $0xba8] sm:$0xff] %vm3919_vm1, %v5814_v26  ;;  %6951 = vst.msk [vmem:[%s8811_s8 + $0xab8] sm:$0xff] %vm3919_vm1, %v5937_v14 }
 0x550   : > { %6208 = vrot.lane.b32.xlu1 %v10397_v2, %s7937_s10  ;;  %6214 = vrot.lane.b32.xlu0 %v10280_v45, %s7937_s10 }
 0x552   : > { %v5935_v19 = vpop.permute.xlu1 %5934  ;;  %v5941_v51 = vpop.permute.xlu0 %5940 }
 0x553   : > { %6950 = vst.msk [vmem:[%s8811_s8 + $0xa58] sm:$0xff] %vm3919_vm1, %v5935_v19  ;;  %6953 = vst.msk [vmem:[%s8811_s8 + $0xb78] sm:$0xff] %vm3919_vm1, %v5941_v51 }
 0x554   : > { %6212 = vrot.lane.b32.xlu1 %v10482_v25, %s7937_s10  ;;  %6218 = vrot.lane.b32.xlu0 %v10419_v60, %s7937_s10 }
 0x556   : > { %v5939_v50 = vpop.permute.xlu1 %5938  ;;  %v6042_v2 = vpop.permute.xlu0 %6041 }
 0x557   : > { %6952 = vst.msk [vmem:[%s8811_s8 + $0xb18] sm:$0xff] %vm3919_vm1, %v5939_v50  ;;  %6955 = vst.msk [vmem:[%s8811_s8 + $0x20] sm:$0xff] %vm3919_vm1, %v6042_v2 }
 0x558   : > { %6216 = vrot.lane.b32.xlu1 %v10568_v30, %s7937_s10  ;;  %6222 = vrot.lane.b32.xlu0 %v10503_v53, %s7937_s10 }
 0x55a   : > { %v5943_v45 = vpop.permute.xlu1 %5942  ;;  %v6046_v25 = vpop.permute.xlu0 %6045 }
 0x55b   : > { %6954 = vst.msk [vmem:[%s8811_s8 + $0xbd8] sm:$0xff] %vm3919_vm1, %v5943_v45  ;;  %6957 = vst.msk [vmem:[%s8811_s8 + $0xe0] sm:$0xff] %vm3919_vm1, %v6046_v25 }
 0x55c   : > { %6220 = vrot.lane.b32.xlu1 %v10659_v6, %s7937_s10  ;;  %6226 = vrot.lane.b32.xlu0 %v10635_v29, %s7937_s10 }
 0x55e   : > { %v6044_v60 = vpop.permute.xlu1 %6043  ;;  %v6050_v30 = vpop.permute.xlu0 %6049 }
 0x55f   : > { %6956 = vst.msk [vmem:[%s8811_s8 + $0x80] sm:$0xff] %vm3919_vm1, %v6044_v60  ;;  %6959 = vst.msk [vmem:[%s8811_s8 + $0x1a0] sm:$0xff] %vm3919_vm1, %v6050_v30 }
 0x560   : > { %6224 = vrot.lane.b32.xlu1 %v10742_v3, %s7937_s10  ;;  %6230 = vrot.lane.b32.xlu0 %v10710_v9, %s7937_s10 }
 0x562   : > { %v6048_v53 = vpop.permute.xlu1 %6047  ;;  %v6054_v6 = vpop.permute.xlu0 %6053 }
 0x563   : > { %6958 = vst.msk [vmem:[%s8811_s8 + $0x140] sm:$0xff] %vm3919_vm1, %v6048_v53  ;;  %6961 = vst.msk [vmem:[%s8811_s8 + $0x260] sm:$0xff] %vm3919_vm1, %v6054_v6 }
 0x564   : > { %6228 = vrot.lane.b32.xlu1 %v10810_v41, %s7937_s10 }
 0x566   : > { %v6052_v29 = vpop.permute.xlu1 %6051  ;;  %v6058_v23 = vpop.permute.xlu0 %6057 }
 0x567   : > { %6960 = vst.msk [vmem:[%s8811_s8 + $0x200] sm:$0xff] %vm3919_vm1, %v6052_v29  ;;  %6963 = vst.msk [vmem:[%s8811_s8 + $0x320] sm:$0xff] %vm3919_vm1, %v6058_v23 }
 0x568   : > { %6232 = vrot.lane.b32.xlu1 %v10875_v0, %s7937_s10 }
 0x56a   : > { %v6056_v9 = vpop.permute.xlu1 %6055  ;;  %v6062_v3 = vpop.permute.xlu0 %6061 }
 0x56b   : > { %6962 = vst.msk [vmem:[%s8811_s8 + $0x2c0] sm:$0xff] %vm3919_vm1, %v6056_v9  ;;  %6965 = vst.msk [vmem:[%s8811_s8 + $0x3e0] sm:$0xff] %vm3919_vm1, %v6062_v3 }
 0x56e   : > { %v6060_v41 = vpop.permute.xlu1 %6059  ;;  %v6066_v27 = vpop.permute.xlu0 %6065 }
 0x56f   : > { %6964 = vst.msk [vmem:[%s8811_s8 + $0x380] sm:$0xff] %vm3919_vm1, %v6060_v41  ;;  %6967 = vst.msk [vmem:[%s8811_s8 + $0x4a0] sm:$0xff] %vm3919_vm1, %v6066_v27 }
 0x572   : > { %v6064_v59 = vpop.permute.xlu1 %6063  ;;  %v6070_v38 = vpop.permute.xlu0 %6069 }
 0x573   : > { %6966 = vst.msk [vmem:[%s8811_s8 + $0x440] sm:$0xff] %vm3919_vm1, %v6064_v59  ;;  %6969 = vst.msk [vmem:[%s8811_s8 + $0x560] sm:$0xff] %vm3919_vm1, %v6070_v38 }
 0x576   : > { %v6068_v0 = vpop.permute.xlu1 %6067  ;;  %v6074_v5 = vpop.permute.xlu0 %6073 }
 0x577   : > { %6968 = vst.msk [vmem:[%s8811_s8 + $0x500] sm:$0xff] %vm3919_vm1, %v6068_v0  ;;  %6971 = vst.msk [vmem:[%s8811_s8 + $0x620] sm:$0xff] %vm3919_vm1, %v6074_v5 }
 0x57a   : > { %v6072_v24 = vpop.permute.xlu1 %6071  ;;  %v6078_v20 = vpop.permute.xlu0 %6077 }
 0x57b   : > { %6970 = vst.msk [vmem:[%s8811_s8 + $0x5c0] sm:$0xff] %vm3919_vm1, %v6072_v24  ;;  %6973 = vst.msk [vmem:[%s8811_s8 + $0x6e0] sm:$0xff] %vm3919_vm1, %v6078_v20 }
 0x57e   : > { %v6076_v22 = vpop.permute.xlu1 %6075  ;;  %v6082_v4 = vpop.permute.xlu0 %6081 }
 0x57f   : > { %6972 = vst.msk [vmem:[%s8811_s8 + $0x680] sm:$0xff] %vm3919_vm1, %v6076_v22  ;;  %6975 = vst.msk [vmem:[%s8811_s8 + $0x7a0] sm:$0xff] %vm3919_vm1, %v6082_v4 }
 0x582   : > { %v6080_v46 = vpop.permute.xlu1 %6079  ;;  %v6086_v15 = vpop.permute.xlu0 %6085 }
 0x583   : > { %6974 = vst.msk [vmem:[%s8811_s8 + $0x740] sm:$0xff] %vm3919_vm1, %v6080_v46  ;;  %6977 = vst.msk [vmem:[%s8811_s8 + $0x860] sm:$0xff] %vm3919_vm1, %v6086_v15 }
 0x586   : > { %v6084_v61 = vpop.permute.xlu1 %6083  ;;  %v6090_v42 = vpop.permute.xlu0 %6089 }
 0x587   : > { %6976 = vst.msk [vmem:[%s8811_s8 + $0x800] sm:$0xff] %vm3919_vm1, %v6084_v61  ;;  %6979 = vst.msk [vmem:[%s8811_s8 + $0x920] sm:$0xff] %vm3919_vm1, %v6090_v42 }
 0x58a   : > { %v6088_v8 = vpop.permute.xlu1 %6087  ;;  %v6094_v58 = vpop.permute.xlu0 %6093 }
 0x58b   : > { %6978 = vst.msk [vmem:[%s8811_s8 + $0x8c0] sm:$0xff] %vm3919_vm1, %v6088_v8  ;;  %6981 = vst.msk [vmem:[%s8811_s8 + $0x9e0] sm:$0xff] %vm3919_vm1, %v6094_v58 }
 0x58e   : > { %v6092_v31 = vpop.permute.xlu1 %6091  ;;  %v6098_v54 = vpop.permute.xlu0 %6097 }
 0x58f   : > { %6980 = vst.msk [vmem:[%s8811_s8 + $0x980] sm:$0xff] %vm3919_vm1, %v6092_v31  ;;  %6983 = vst.msk [vmem:[%s8811_s8 + $0xaa0] sm:$0xff] %vm3919_vm1, %v6098_v54 }
 0x592   : > { %v6096_v48 = vpop.permute.xlu1 %6095  ;;  %v6102_v12 = vpop.permute.xlu0 %6101 }
 0x593   : > { %6982 = vst.msk [vmem:[%s8811_s8 + $0xa40] sm:$0xff] %vm3919_vm1, %v6096_v48  ;;  %6985 = vst.msk [vmem:[%s8811_s8 + $0xb60] sm:$0xff] %vm3919_vm1, %v6102_v12 }
 0x596   : > { %v6100_v1 = vpop.permute.xlu1 %6099  ;;  %v6171_v10 = vpop.permute.xlu0 %6170 }
 0x597   : > { %6984 = vst.msk [vmem:[%s8811_s8 + $0xb00] sm:$0xff] %vm3919_vm1, %v6100_v1  ;;  %6987 = vst.msk [vmem:[%s8811_s8 + $0x50] sm:$0xff] %vm3919_vm1, %v6171_v10 }
 0x59a   : > { %v6104_v43 = vpop.permute.xlu1 %6103  ;;  %v6175_v62 = vpop.permute.xlu0 %6174 }
 0x59b   : > { %6986 = vst.msk [vmem:[%s8811_s8 + $0xbc0] sm:$0xff] %vm3919_vm1, %v6104_v43  ;;  %6989 = vst.msk [vmem:[%s8811_s8 + $0x110] sm:$0xff] %vm3919_vm1, %v6175_v62 }
 0x59e   : > { %v6173_v36 = vpop.permute.xlu1 %6172  ;;  %v6179_v39 = vpop.permute.xlu0 %6178 }
 0x59f   : > { %6988 = vst.msk [vmem:[%s8811_s8 + $0xb0] sm:$0xff] %vm3919_vm1, %v6173_v36  ;;  %6991 = vst.msk [vmem:[%s8811_s8 + $0x1d0] sm:$0xff] %vm3919_vm1, %v6179_v39 }
 0x5a2   : > { %v6177_v56 = vpop.permute.xlu1 %6176  ;;  %v6183_v17 = vpop.permute.xlu0 %6182 }
 0x5a3   : > { %6990 = vst.msk [vmem:[%s8811_s8 + $0x170] sm:$0xff] %vm3919_vm1, %v6177_v56  ;;  %6993 = vst.msk [vmem:[%s8811_s8 + $0x290] sm:$0xff] %vm3919_vm1, %v6183_v17 }
 0x5a6   : > { %v6181_v33 = vpop.permute.xlu1 %6180  ;;  %v6187_v18 = vpop.permute.xlu0 %6186 }
 0x5a7   : > { %6992 = vst.msk [vmem:[%s8811_s8 + $0x230] sm:$0xff] %vm3919_vm1, %v6181_v33  ;;  %6995 = vst.msk [vmem:[%s8811_s8 + $0x350] sm:$0xff] %vm3919_vm1, %v6187_v18 }
 0x5aa   : > { %v6185_v49 = vpop.permute.xlu1 %6184  ;;  %v6191_v63 = vpop.permute.xlu0 %6190 }
 0x5ab   : > { %6994 = vst.msk [vmem:[%s8811_s8 + $0x2f0] sm:$0xff] %vm3919_vm1, %v6185_v49  ;;  %6997 = vst.msk [vmem:[%s8811_s8 + $0x410] sm:$0xff] %vm3919_vm1, %v6191_v63 }
 0x5ae   : > { %v6189_v11 = vpop.permute.xlu1 %6188  ;;  %v6195_v37 = vpop.permute.xlu0 %6194 }
 0x5af   : > { %6996 = vst.msk [vmem:[%s8811_s8 + $0x3b0] sm:$0xff] %vm3919_vm1, %v6189_v11  ;;  %6999 = vst.msk [vmem:[%s8811_s8 + $0x4d0] sm:$0xff] %vm3919_vm1, %v6195_v37 }
 0x5b2   : > { %v6193_v21 = vpop.permute.xlu1 %6192  ;;  %v6199_v35 = vpop.permute.xlu0 %6198 }
 0x5b3   : > { %6998 = vst.msk [vmem:[%s8811_s8 + $0x470] sm:$0xff] %vm3919_vm1, %v6193_v21  ;;  %7001 = vst.msk [vmem:[%s8811_s8 + $0x590] sm:$0xff] %vm3919_vm1, %v6199_v35 }
 0x5b6   : > { %v6197_v7 = vpop.permute.xlu1 %6196  ;;  %v6203_v55 = vpop.permute.xlu0 %6202 }
 0x5b7   : > { %7000 = vst.msk [vmem:[%s8811_s8 + $0x530] sm:$0xff] %vm3919_vm1, %v6197_v7  ;;  %7003 = vst.msk [vmem:[%s8811_s8 + $0x650] sm:$0xff] %vm3919_vm1, %v6203_v55 }
 0x5ba   : > { %v6201_v32 = vpop.permute.xlu1 %6200  ;;  %v6207_v28 = vpop.permute.xlu0 %6206 }
 0x5bb   : > { %7002 = vst.msk [vmem:[%s8811_s8 + $0x5f0] sm:$0xff] %vm3919_vm1, %v6201_v32  ;;  %7005 = vst.msk [vmem:[%s8811_s8 + $0x710] sm:$0xff] %vm3919_vm1, %v6207_v28 }
 0x5be   : > { %v6205_v13 = vpop.permute.xlu1 %6204  ;;  %v6211_v16 = vpop.permute.xlu0 %6210 }
 0x5bf   : > { %7004 = vst.msk [vmem:[%s8811_s8 + $0x6b0] sm:$0xff] %vm3919_vm1, %v6205_v13  ;;  %7007 = vst.msk [vmem:[%s8811_s8 + $0x7d0] sm:$0xff] %vm3919_vm1, %v6211_v16 }
 0x5c2   : > { %v6209_v40 = vpop.permute.xlu1 %6208  ;;  %v6215_v57 = vpop.permute.xlu0 %6214 }
 0x5c3   : > { %7006 = vst.msk [vmem:[%s8811_s8 + $0x770] sm:$0xff] %vm3919_vm1, %v6209_v40  ;;  %7009 = vst.msk [vmem:[%s8811_s8 + $0x890] sm:$0xff] %vm3919_vm1, %v6215_v57 }
 0x5c6   : > { %v6213_v34 = vpop.permute.xlu1 %6212  ;;  %v6219_v44 = vpop.permute.xlu0 %6218 }
 0x5c7   : > { %7008 = vst.msk [vmem:[%s8811_s8 + $0x830] sm:$0xff] %vm3919_vm1, %v6213_v34  ;;  %7011 = vst.msk [vmem:[%s8811_s8 + $0x950] sm:$0xff] %vm3919_vm1, %v6219_v44 }
 0x5ca   : > { %v6217_v47 = vpop.permute.xlu1 %6216  ;;  %v6223_v52 = vpop.permute.xlu0 %6222 }
 0x5cb   : > { %7010 = vst.msk [vmem:[%s8811_s8 + $0x8f0] sm:$0xff] %vm3919_vm1, %v6217_v47  ;;  %7013 = vst.msk [vmem:[%s8811_s8 + $0xa10] sm:$0xff] %vm3919_vm1, %v6223_v52 }
 0x5ce   : > { %v6221_v26 = vpop.permute.xlu1 %6220  ;;  %v6227_v14 = vpop.permute.xlu0 %6226 }
 0x5cf   : > { %7012 = vst.msk [vmem:[%s8811_s8 + $0x9b0] sm:$0xff] %vm3919_vm1, %v6221_v26  ;;  %7015 = vst.msk [vmem:[%s8811_s8 + $0xad0] sm:$0xff] %vm3919_vm1, %v6227_v14 }
 0x5d2   : > { %v6225_v19 = vpop.permute.xlu1 %6224  ;;  %v6231_v51 = vpop.permute.xlu0 %6230 }
 0x5d3   : > { %7014 = vst.msk [vmem:[%s8811_s8 + $0xa70] sm:$0xff] %vm3919_vm1, %v6225_v19  ;;  %7017 = vst.msk [vmem:[%s8811_s8 + $0xb90] sm:$0xff] %vm3919_vm1, %v6231_v51 }
 0x5d6   : > { %v6229_v50 = vpop.permute.xlu1 %6228 }
 0x5d7   : > { %7016 = vst.msk [vmem:[%s8811_s8 + $0xb30] sm:$0xff] %vm3919_vm1, %v6229_v50 }
 0x5da   : > { %v6233_v2 = vpop.permute.xlu1 %6232 }
 0x5db   : > { %7018 = vst.msk [vmem:[%s8811_s8 + $0xbf0] sm:$0xff] %vm3919_vm1, %v6233_v2 }
 0x5dc PF: > { %s16_s17 = sadd.s32 1, %s7929_s17   ;;  %s11825_s15 = smov %s7925_s16 }
 0x5dd   : > { %p13_p4 = scmp.ge.s32.totalorder %s16_s17, 4   ;;  %s11826_s16 = smov %s11828_s19 }
 0x5df   :  { %15 = sbr.rel (!%p13_p4) target bundleno = 2 (0x2), region = 90 }
 0x5e6   :  { %6358 = vsyncpa [#allocation3], 1 }
 0x5e7   :  { %6360 = vsyncpa [#allocation3 + $0x1], 1 }

// kernel: dtcwt_module_forward.5
= control target key start
LH: loop header
LB: loop body
LE: loop exit
PB: predicated region body
PF: predicated region fallthrough
CT: control target
= control target key end

     0   :  { %s23931_s13 = smov 0   ;;  %s23933_s14 = smov 0   ;;  %s27183_s0 = inlined_call_operand.vmem [shape: f32[2,32,16,16], index: 0, kind: input, shape index: {}]   ;;  %s27184_s1 = inlined_call_operand.vmem [shape: f32[32,16,16], index: 1, kind: input, shape index: {}]   ;;  %s27185_s2 = inlined_call_operand.vmem [shape: f32[2,32,6,8,16], index: 2, kind: input, shape index: {}]   ;;  %s27186_s3 = inlined_call_operand.vmem [shape: f32[16,16], index: 3, kind: input, shape index: {}]   ;;  %s27187_s4 = inlined_call_operand.vmem [shape: f32[16,8], index: 4, kind: input, shape index: {}]   ;;  %s27188_s5 = inlined_call_operand.vmem [shape: f32[16,8], index: 5, kind: input, shape index: {}]   ;;  %s27189_s6 = inlined_call_operand.vmem [shape: f32[16,8], index: 6, kind: input, shape index: {}]   ;;  %s27190_s7 = inlined_call_operand.vmem [shape: f32[16,8], index: 7, kind: input, shape index: {}]   ;;  %s27191_s8 = inlined_call_operand.vmem [shape: f32[16,16], index: 8, kind: input, shape index: {}]   ;;  %s27192_s9 = inlined_call_operand.vmem [shape: f32[16,16], index: 9, kind: input, shape index: {}]   ;;  %s27193_s10 = inlined_call_operand.vmem [shape: f32[2,32,16,16], index: 10, kind: output, shape index: {}]  }
   0x1   :  { %s23935_s15 = smov 0  }
   0x2 LB: > { %s32_s16 = sadd.s32 1, %s23868_s14  ;;  %p20413_p0 = scmp.ge.s32.totalorder %s23872_s15, 1  ;;  %s23872_s15 = sphi %s23935_s15, %s20_s15   ;;  %s23868_s14 = sphi %s23933_s14, %s27373_s14   ;;  %s23864_s13 = sphi %s23931_s13, %s27372_s13  }
   0x3   : > { %p34_p1 = scmp.ge.s32.totalorder %s32_s16, 2  ;;  %p364_p2 = scmp.lt.s32.totalorder %s23872_s15, 3 }
   0x5   : > { %s27375_s16 = smov (%p34_p1, %s32_s16), 0  ;;  %p365_p3 = pnand %p20413_p0, %p364_p2 }
   0x7   : > { %368 = sbr.rel (%p365_p3) target bundleno = 1126 (0x466), region = 60 }
   0xe   : > { %p429_p4 = scmp.lt.s32.totalorder %s23864_s13, 1  ;;  %vm1204_vm0 = vcmask 64512   ;;  %v23952_v0 = vld [vmem:[%s27189_s6] sm:$0xff]  ;;  %s23874_s23 = smov 120   ;;  %v23982_v13 = vld [vmem:[%s27189_s6 + $0x8] sm:$0xff]  ;;  %vm4415_vm1 = vcmask 130048  }
   0xf   : > { %21837 = vmatprep.mubr.msk.f32.mxu0 %vm1204_vm0, %v23952_v0  ;;  %21842 = vmatprep.mubr.msk.f32.mxu1 %vm1204_vm0, %v23952_v0  ;;  %s23875_s26 = smov 8  }
  0x10   : > { %s27377_s13 = smov (!%p429_p4, %s23864_s13), 1 }
  0x11   : > { %s23739_s19 = smul.u32 1536, %s27377_s13  ;;  %s20997_s27 = sshll.u32 %s27377_s13, 9 }
  0x12   : > { %s24395_s30 = scalar_lea.vmem %s27183_s0, %s20997_s27  ;;  %s26980_s17 = scalar_lea.vmem %s27193_s10, %s20997_s27 }
  0x13   : > { %s23964_s22 = scalar_lea.vmem %s27185_s2, %s23739_s19 }
  0x14   : > { %v666_v1 = vld [vmem:[%s23964_s22 + $0x30] sm:$0xff]  ;;  %v671_v2 = vld [vmem:[%s23964_s22 + $0x58] sm:$0xff]  ;;  %v660_v3 = vld [vmem:[%s23964_s22] sm:$0xff] }
  0x15   : > { %v885_v4 = vsub.f32 %v666_v1, %v671_v2  ;;  %v853_v5 = vadd.f32 %v671_v2, %v666_v1  ;;  %v665_v6 = vld [vmem:[%s23964_s22 + $0x28] sm:$0xff]  ;;  %v672_v7 = vld [vmem:[%s23964_s22 + $0x60] sm:$0xff]  ;;  %v23973_v11 = vld [vmem:[%s23964_s22 + $0x90] sm:$0xff]  ;;  %v917_v24 = vsub.f32 %v671_v2, %v666_v1 }
  0x16   : > { %v677_v8 = vld [vmem:[%s23964_s22 + $0x88] sm:$0xff]  ;;  %v884_v9 = vsub.f32 %v660_v3, %v665_v6  ;;  %v852_v10 = vadd.f32 %v665_v6, %v660_v3  ;;  %v23976_v12 = vld [vmem:[%s23964_s22 + $0xb8] sm:$0xff]  ;;  %v916_v16 = vsub.f32 %v665_v6, %v660_v3  ;;  %v23988_v18 = vld [vmem:[%s23964_s22 + $0xf0] sm:$0xff] }
  0x17   : > { %982 = vrot.lane.b32.xlu1 %v885_v4, %s23874_s23  ;;  %21840 = vmatprep.subr.mxu1 %v853_v5  ;;  %v886_v14 = vsub.f32 %v672_v7, %v677_v8  ;;  %v855_v15 = vadd.f32 %v23976_v12, %v23973_v11  ;;  %v854_v17 = vadd.f32 %v677_v8, %v672_v7  ;;  %v23991_v19 = vld [vmem:[%s23964_s22 + $0x118] sm:$0xff]  ;;  %v684_v20 = vld [vmem:[%s23964_s22 + $0xc0] sm:$0xff]  ;;  %v689_v21 = vld [vmem:[%s23964_s22 + $0xe8] sm:$0xff] }
  0x18   : > { %980 = vrot.lane.b32.xlu0 %v884_v9, %s23874_s23  ;;  %21835 = vmatprep.subr.mxu0 %v852_v10  ;;  %v918_v22 = vsub.f32 %v677_v8, %v672_v7  ;;  %v857_v23 = vadd.f32 %v23991_v19, %v23988_v18  ;;  %v856_v25 = vadd.f32 %v689_v21, %v684_v20  ;;  %v24008_v26 = vld [vmem:[%s23964_s22 + $0x150] sm:$0xff]  ;;  %v24011_v27 = vld [vmem:[%s23964_s22 + $0x178] sm:$0xff]  ;;  %v24018_v28 = vld [vmem:[%s23964_s22 + $0x120] sm:$0xff] }
  0x19   : > { %21836 = vmatpush3.msra.mxu0 %v852_v10  ;;  %21841 = vmatpush3.msra.mxu1 %v853_v5  ;;  %v24021_v29 = vld [vmem:[%s23964_s22 + $0x148] sm:$0xff]  ;;  %v888_v30 = vsub.f32 %v684_v20, %v689_v21  ;;  %v859_v31 = vadd.f32 %v24011_v27, %v24008_v26  ;;  %v887_v32 = vsub.f32 %v23973_v11, %v23976_v12  ;;  %v24036_v34 = vld [vmem:[%s23964_s22 + $0x1b0] sm:$0xff]  ;;  %v24039_v35 = vld [vmem:[%s23964_s22 + $0x1d8] sm:$0xff] }
  0x1a   : > { %21838 = vmatmul.mubr.msk.f32.vlgmr.msra.gmra.mrb[0].mxu0 %vm1204_vm0, %v23982_v13  ;;  %21843 = vmatmul.mubr.msk.f32.vlgmr.msra.gmra.mrb[0].mxu1 %vm1204_vm0, %v23982_v13  ;;  %v858_v33 = vadd.f32 %v24021_v29, %v24018_v28  ;;  %v24046_v36 = vld [vmem:[%s23964_s22 + $0x180] sm:$0xff]  ;;  %v24049_v37 = vld [vmem:[%s23964_s22 + $0x1a8] sm:$0xff]  ;;  %v920_v38 = vsub.f32 %v689_v21, %v684_v20  ;;  %v861_v39 = vadd.f32 %v24039_v35, %v24036_v34  ;;  %v24064_v42 = vld [vmem:[%s23964_s22 + $0x210] sm:$0xff] }
  0x1b   : > { %984 = vrot.lane.b32.xlu1 %v886_v14, %s23874_s23  ;;  %21850 = vmatprep.subr.mxu1 %v855_v15  ;;  %v919_v40 = vsub.f32 %v23976_v12, %v23973_v11  ;;  %v860_v41 = vadd.f32 %v24049_v37, %v24046_v36  ;;  %v24067_v43 = vld [vmem:[%s23964_s22 + $0x238] sm:$0xff]  ;;  %v24074_v44 = vld [vmem:[%s23964_s22 + $0x1e0] sm:$0xff]  ;;  %v24077_v45 = vld [vmem:[%s23964_s22 + $0x208] sm:$0xff]  ;;  %v890_v46 = vsub.f32 %v24018_v28, %v24021_v29 }
  0x1c   : > { %1108 = vrot.lane.b32.xlu0 %v916_v16, %s23875_s26  ;;  %21845 = vmatprep.subr.mxu0 %v854_v17  ;;  %v863_v47 = vadd.f32 %v24067_v43, %v24064_v42  ;;  %v889_v48 = vsub.f32 %v23988_v18, %v23991_v19  ;;  %v862_v49 = vadd.f32 %v24077_v45, %v24074_v44  ;;  %v24094_v50 = vld [vmem:[%s23964_s22 + $0x270] sm:$0xff]  ;;  %v24097_v51 = vld [vmem:[%s23964_s22 + $0x298] sm:$0xff]  ;;  %v24104_v52 = vld [vmem:[%s23964_s22 + $0x240] sm:$0xff] }
  0x1d   : > { %21846 = vmatpush3.msra.mxu0 %v854_v17  ;;  %21847 = vmatprep.mubr.msk.f32.mxu0 %vm1204_vm0, %v23952_v0  ;;  %v24107_v53 = vld [vmem:[%s23964_s22 + $0x268] sm:$0xff]  ;;  %v922_v54 = vsub.f32 %v24021_v29, %v24018_v28  ;;  %v865_v55 = vadd.f32 %v24097_v51, %v24094_v50  ;;  %v921_v56 = vsub.f32 %v23991_v19, %v23988_v18  ;;  %v24124_v58 = vld [vmem:[%s23964_s22 + $0x2d0] sm:$0xff]  ;;  %v24127_v59 = vld [vmem:[%s23964_s22 + $0x2f8] sm:$0xff] }
  0x1e   : > { %21851 = vmatpush3.msra.mxu1 %v855_v15  ;;  %21852 = vmatprep.mubr.msk.f32.mxu1 %vm1204_vm0, %v23952_v0  ;;  %v864_v57 = vadd.f32 %v24107_v53, %v24104_v52  ;;  %v24134_v60 = vld [vmem:[%s23964_s22 + $0x2a0] sm:$0xff]  ;;  %v24137_v61 = vld [vmem:[%s23964_s22 + $0x2c8] sm:$0xff]  ;;  %v892_v62 = vsub.f32 %v24046_v36, %v24049_v37  ;;  %v867_v63 = vadd.f32 %v24127_v59, %v24124_v58  ;;  %v24154_v3 = vld [vmem:[%s23964_s22 + $0x330] sm:$0xff] }
  0x1f   : > { %21848 = vmatmul.mubr.msk.f32.vlgmr.msra.gmra.mrb[2].mxu0 %vm1204_vm0, %v23982_v13  ;;  %21853 = vmatmul.mubr.msk.f32.vlgmr.msra.gmra.mrb[2].mxu1 %vm1204_vm0, %v23982_v13  ;;  %v891_v1 = vsub.f32 %v24008_v26, %v24011_v27  ;;  %v866_v2 = vadd.f32 %v24137_v61, %v24134_v60  ;;  %v24157_v4 = vld [vmem:[%s23964_s22 + $0x358] sm:$0xff]  ;;  %v24164_v5 = vld [vmem:[%s23964_s22 + $0x300] sm:$0xff]  ;;  %v24167_v6 = vld [vmem:[%s23964_s22 + $0x328] sm:$0xff]  ;;  %v924_v7 = vsub.f32 %v24049_v37, %v24046_v36 }
  0x20   : > { %1112 = vrot.lane.b32.xlu1 %v918_v22, %s23875_s26  ;;  %21860 = vmatprep.subr.mxu1 %v857_v23  ;;  %v869_v8 = vadd.f32 %v24157_v4, %v24154_v3  ;;  %v923_v9 = vsub.f32 %v24011_v27, %v24008_v26  ;;  %v868_v10 = vadd.f32 %v24167_v6, %v24164_v5  ;;  %v24184_v11 = vld [vmem:[%s23964_s22 + $0x390] sm:$0xff]  ;;  %v24187_v12 = vld [vmem:[%s23964_s22 + $0x3b8] sm:$0xff]  ;;  %v24194_v14 = vld [vmem:[%s23964_s22 + $0x360] sm:$0xff] }
  0x21   : > { %1110 = vrot.lane.b32.xlu0 %v917_v24, %s23875_s26  ;;  %21855 = vmatprep.subr.mxu0 %v856_v25  ;;  %v24197_v15 = vld [vmem:[%s23964_s22 + $0x388] sm:$0xff]  ;;  %v894_v16 = vsub.f32 %v24074_v44, %v24077_v45  ;;  %v871_v17 = vadd.f32 %v24187_v12, %v24184_v11  ;;  %v24206_v18 = vld [vmem:[%s23964_s22 + $0x450] sm:$0xff]  ;;  %v24209_v19 = vld [vmem:[%s23964_s22 + $0x478] sm:$0xff]  ;;  %v893_v20 = vsub.f32 %v24036_v34, %v24039_v35 }
  0x22   : > { %21856 = vmatpush3.msra.mxu0 %v856_v25  ;;  %21857 = vmatprep.mubr.msk.f32.mxu0 %vm1204_vm0, %v23952_v0  ;;  %v870_v21 = vadd.f32 %v24197_v15, %v24194_v14  ;;  %v24218_v22 = vld [vmem:[%s23964_s22 + $0x3f0] sm:$0xff]  ;;  %v24225_v24 = vld [vmem:[%s23964_s22 + $0x418] sm:$0xff]  ;;  %v24238_v27 = vld [vmem:[%s23964_s22 + $0x3c0] sm:$0xff] }
  0x23   : > { %21861 = vmatpush3.msra.mxu1 %v857_v23  ;;  %21862 = vmatprep.mubr.msk.f32.mxu1 %vm1204_vm0, %v23952_v0  ;;  %v939_v23 = vsub.f32 %v24209_v19, %v24206_v18  ;;  %v24228_v25 = vld [vmem:[%s23964_s22 + $0x4b0] sm:$0xff]  ;;  %v24231_v26 = vld [vmem:[%s23964_s22 + $0x4d8] sm:$0xff]  ;;  %v24241_v28 = vld [vmem:[%s23964_s22 + $0x3e8] sm:$0xff] }
  0x24   : > { %21858 = vmatmul.mubr.msk.f32.vlgmr.msra.gmra.mrb[4].mxu0 %vm1204_vm0, %v23982_v13  ;;  %21863 = vmatmul.mubr.msk.f32.vlgmr.msra.gmra.mrb[4].mxu1 %vm1204_vm0, %v23982_v13  ;;  %v909_v29 = vsub.f32 %v24228_v25, %v24231_v26  ;;  %v24257_v36 = vld [vmem:[%s23964_s22 + $0x508] sm:$0xff]  ;;  %v872_v37 = vadd.f32 %v24241_v28, %v24238_v27 }
  0x25   : > { %988 = vrot.lane.b32.xlu1 %v888_v30, %s23874_s23  ;;  %21870 = vmatprep.subr.mxu1 %v859_v31  ;;  %v926_v30 = vsub.f32 %v24077_v45, %v24074_v44  ;;  %v24286_v44 = vld [vmem:[%s23964_s22 + $0x510] sm:$0xff]  ;;  %v24289_v45 = vld [vmem:[%s23964_s22 + $0x538] sm:$0xff] }
  0x26   : > { %986 = vrot.lane.b32.xlu0 %v887_v32, %s23874_s23  ;;  %21865 = vmatprep.subr.mxu0 %v858_v33  ;;  %v925_v32 = vsub.f32 %v24039_v35, %v24036_v34  ;;  %v24270_v34 = vld [vmem:[%s23964_s22 + $0x420] sm:$0xff] }
  0x27   : > { %21866 = vmatpush3.msra.mxu0 %v858_v33  ;;  %21867 = vmatprep.mubr.msk.f32.mxu0 %vm1204_vm0, %v23952_v0  ;;  %v24254_v33 = vld [vmem:[%s23964_s22 + $0x4e0] sm:$0xff] }
  0x28   : > { %21871 = vmatpush3.msra.mxu1 %v859_v31  ;;  %21872 = vmatprep.mubr.msk.f32.mxu1 %vm1204_vm0, %v23952_v0  ;;  %v873_v31 = vadd.f32 %v24225_v24, %v24218_v22  ;;  %v24273_v35 = vld [vmem:[%s23964_s22 + $0x540] sm:$0xff] }
  0x29   : > { %21868 = vmatmul.mubr.msk.f32.vlgmr.msra.gmra.mrb[6].mxu0 %vm1204_vm0, %v23982_v13  ;;  %21873 = vmatmul.mubr.msk.f32.vlgmr.msra.gmra.mrb[6].mxu1 %vm1204_vm0, %v23982_v13 }
  0x2a   : > { %1116 = vrot.lane.b32.xlu1 %v920_v38, %s23875_s26  ;;  %21880 = vmatprep.subr.mxu1 %v861_v39  ;;  %v942_v38 = vsub.f32 %v24257_v36, %v24254_v33 }
  0x2b   : > { %1114 = vrot.lane.b32.xlu0 %v919_v40, %s23875_s26  ;;  %21875 = vmatprep.subr.mxu0 %v860_v41  ;;  %v24276_v40 = vld [vmem:[%s23964_s22 + $0x568] sm:$0xff] }
  0x2c   : > { %21876 = vmatpush3.msra.mxu0 %v860_v41  ;;  %21877 = vmatprep.mubr.msk.f32.mxu0 %vm1204_vm0, %v23952_v0  ;;  %v24283_v41 = vld [vmem:[%s23964_s22 + $0x448] sm:$0xff] }
  0x2d   : > { %21881 = vmatpush3.msra.mxu1 %v861_v39  ;;  %21882 = vmatprep.mubr.msk.f32.mxu1 %vm1204_vm0, %v23952_v0  ;;  %v941_v39 = vsub.f32 %v24231_v26, %v24228_v25 }
  0x2e   : > { %21878 = vmatmul.mubr.msk.f32.vlgmr.msra.gmra.mrb[8].mxu0 %vm1204_vm0, %v23982_v13  ;;  %21883 = vmatmul.mubr.msk.f32.vlgmr.msra.gmra.mrb[8].mxu1 %vm1204_vm0, %v23982_v13 }
  0x2f   : > { %992 = vrot.lane.b32.xlu1 %v890_v46, %s23874_s23  ;;  %21890 = vmatprep.subr.mxu1 %v863_v47  ;;  %v541_v46 = vld [vmem:[%s27184_s1 + $0x48] sm:$0xff] }
  0x30   : > { %990 = vrot.lane.b32.xlu0 %v889_v48, %s23874_s23  ;;  %21885 = vmatprep.subr.mxu0 %v862_v49  ;;  %v896_v48 = vsub.f32 %v24104_v52, %v24107_v53 }
  0x31   : > { %21886 = vmatpush3.msra.mxu0 %v862_v49  ;;  %21887 = vmatprep.mubr.msk.f32.mxu0 %vm1204_vm0, %v23952_v0  ;;  %v875_v49 = vadd.f32 %v24209_v19, %v24206_v18 }
  0x32   : > { %21891 = vmatpush3.msra.mxu1 %v863_v47  ;;  %21892 = vmatprep.mubr.msk.f32.mxu1 %vm1204_vm0, %v23952_v0  ;;  %v540_v47 = vld [vmem:[%s27184_s1 + $0x40] sm:$0xff] }
  0x33   : > { %21888 = vmatmul.mubr.msk.f32.vlgmr.msra.gmra.mrb[10].mxu0 %vm1204_vm0, %v23982_v13  ;;  %21893 = vmatmul.mubr.msk.f32.vlgmr.msra.gmra.mrb[10].mxu1 %vm1204_vm0, %v23982_v13 }
  0x34   : > { %1120 = vrot.lane.b32.xlu1 %v922_v54, %s23875_s26  ;;  %21900 = vmatprep.subr.mxu1 %v865_v55  ;;  %v895_v54 = vsub.f32 %v24064_v42, %v24067_v43 }
  0x35   : > { %1118 = vrot.lane.b32.xlu0 %v921_v56, %s23875_s26  ;;  %21895 = vmatprep.subr.mxu0 %v864_v57 }
  0x36   : > { %21896 = vmatpush3.msra.mxu0 %v864_v57  ;;  %21897 = vmatprep.mubr.msk.f32.mxu0 %vm1204_vm0, %v23952_v0 }
  0x37   : > { %21901 = vmatpush3.msra.mxu1 %v865_v55  ;;  %21902 = vmatprep.mubr.msk.f32.mxu1 %vm1204_vm0, %v23952_v0  ;;  %v874_v55 = vadd.f32 %v24283_v41, %v24270_v34 }
  0x38   : > { %21898 = vmatmul.mubr.msk.f32.vlgmr.msra.gmra.mrb[12].mxu0 %vm1204_vm0, %v23982_v13  ;;  %21903 = vmatmul.mubr.msk.f32.vlgmr.msra.gmra.mrb[12].mxu1 %vm1204_vm0, %v23982_v13 }
  0x39   : > { %996 = vrot.lane.b32.xlu1 %v892_v62, %s23874_s23  ;;  %21910 = vmatprep.subr.mxu1 %v867_v63  ;;  %v24314_v62 = vld [vmem:[%s23964_s22 + $0x480] sm:$0xff] }
  0x3a   : > { %994 = vrot.lane.b32.xlu0 %v891_v1, %s23874_s23  ;;  %21905 = vmatprep.subr.mxu0 %v866_v2  ;;  %v24320_v1 = vld [vmem:[%s23964_s22 + $0x570] sm:$0xff] }
  0x3b   : > { %21906 = vmatpush3.msra.mxu0 %v866_v2  ;;  %21907 = vmatprep.mubr.msk.f32.mxu0 %vm1204_vm0, %v23952_v0  ;;  %v24327_v2 = vld [vmem:[%s23964_s22 + $0x598] sm:$0xff] }
  0x3c   : > { %21911 = vmatpush3.msra.mxu1 %v867_v63  ;;  %21912 = vmatprep.mubr.msk.f32.mxu1 %vm1204_vm0, %v23952_v0  ;;  %v24317_v63 = vld [vmem:[%s23964_s22 + $0x4a8] sm:$0xff] }
  0x3d   : > { %21908 = vmatmul.mubr.msk.f32.vlgmr.msra.gmra.mrb[14].mxu0 %vm1204_vm0, %v23982_v13  ;;  %21913 = vmatmul.mubr.msk.f32.vlgmr.msra.gmra.mrb[14].mxu1 %vm1204_vm0, %v23982_v13 }
  0x3e   : > { %1124 = vrot.lane.b32.xlu1 %v924_v7, %s23875_s26  ;;  %21920 = vmatprep.subr.mxu1 %v869_v8  ;;  %v24330_v7 = vld [vmem:[%s23964_s22 + $0x5a0] sm:$0xff] }
  0x3f   : > { %1122 = vrot.lane.b32.xlu0 %v923_v9, %s23875_s26  ;;  %21915 = vmatprep.subr.mxu0 %v868_v10 }
  0x40   : > { %21916 = vmatpush3.msra.mxu0 %v868_v10  ;;  %21917 = vmatprep.mubr.msk.f32.mxu0 %vm1204_vm0, %v23952_v0 }
  0x41   : > { %21921 = vmatpush3.msra.mxu1 %v869_v8  ;;  %21922 = vmatprep.mubr.msk.f32.mxu1 %vm1204_vm0, %v23952_v0  ;;  %v24333_v8 = vld [vmem:[%s23964_s22 + $0x5c8] sm:$0xff] }
  0x42   : > { %21918 = vmatmul.mubr.msk.f32.vlgmr.msra.gmra.mrb[16].mxu0 %vm1204_vm0, %v23982_v13  ;;  %21923 = vmatmul.mubr.msk.f32.vlgmr.msra.gmra.mrb[16].mxu1 %vm1204_vm0, %v23982_v13 }
  0x43   : > { %1000 = vrot.lane.b32.xlu1 %v894_v16, %s23874_s23  ;;  %21930 = vmatprep.subr.mxu1 %v871_v17  ;;  %v928_v16 = vsub.f32 %v24107_v53, %v24104_v52  ;;  %v882_v53 = vadd.f32 %v24333_v8, %v24330_v7 }
  0x44   : > { %998 = vrot.lane.b32.xlu0 %v893_v20, %s23874_s23  ;;  %21925 = vmatprep.subr.mxu0 %v870_v21  ;;  %v927_v20 = vsub.f32 %v24067_v43, %v24064_v42  ;;  %v24362_v42 = vld [vmem:[%s23964_s22 + $0x5d0] sm:$0xff]  ;;  %v24365_v43 = vld [vmem:[%s23964_s22 + $0x5f8] sm:$0xff] }
  0x45   : > { %21926 = vmatpush3.msra.mxu0 %v870_v21  ;;  %21927 = vmatprep.mubr.msk.f32.mxu0 %vm1204_vm0, %v23952_v0  ;;  %v876_v21 = vadd.f32 %v24317_v63, %v24314_v62  ;;  %v883_v52 = vadd.f32 %v24365_v43, %v24362_v42 }
  0x46   : > { %21931 = vmatpush3.msra.mxu1 %v871_v17  ;;  %21932 = vmatprep.mubr.msk.f32.mxu1 %vm1204_vm0, %v23952_v0  ;;  %v877_v17 = vadd.f32 %v24231_v26, %v24228_v25  ;;  %v587_v25 = vld [vmem:[%s27184_s1 + $0x1b8] sm:$0xff] }
  0x47   : > { %21928 = vmatmul.mubr.msk.f32.vlgmr.msra.gmra.mrb[18].mxu0 %vm1204_vm0, %v23982_v13  ;;  %21933 = vmatmul.mubr.msk.f32.vlgmr.msra.gmra.mrb[18].mxu1 %vm1204_vm0, %v23982_v13 }
  0x48   : > { %1128 = vrot.lane.b32.xlu1 %v926_v30, %s23875_s26  ;;  %21940 = vmatprep.subr.mxu1 %v873_v31 }
  0x49   : > { %1126 = vrot.lane.b32.xlu0 %v925_v32, %s23875_s26  ;;  %21935 = vmatprep.subr.mxu0 %v872_v37  ;;  %v898_v32 = vsub.f32 %v24134_v60, %v24137_v61 }
  0x4a   : > { %21936 = vmatpush3.msra.mxu0 %v872_v37  ;;  %21937 = vmatprep.mubr.msk.f32.mxu0 %vm1204_vm0, %v23952_v0  ;;  %v879_v37 = vadd.f32 %v24289_v45, %v24286_v44 }
  0x4b   : > { %21941 = vmatpush3.msra.mxu1 %v873_v31  ;;  %21942 = vmatprep.mubr.msk.f32.mxu1 %vm1204_vm0, %v23952_v0  ;;  %v471_v31 = vld [vmem:[%s24395_s30 + $0x18] sm:$0xff] }
  0x4c   : > { %21938 = vmatmul.mubr.msk.f32.vlgmr.msra.gmra.mrb[20].mxu0 %vm1204_vm0, %v23982_v13  ;;  %21943 = vmatmul.mubr.msk.f32.vlgmr.msra.gmra.mrb[20].mxu1 %vm1204_vm0, %v23982_v13 }
  0x4d   : > { %1004 = vrot.lane.b32.xlu1 %v896_v48, %s23874_s23  ;;  %21950 = vmatprep.subr.mxu1 %v875_v49  ;;  %v897_v48 = vsub.f32 %v24094_v50, %v24097_v51 }
  0x4e   : > { %1002 = vrot.lane.b32.xlu0 %v895_v54, %s23874_s23  ;;  %21945 = vmatprep.subr.mxu0 %v874_v55  ;;  %v930_v54 = vsub.f32 %v24137_v61, %v24134_v60  ;;  %v929_v60 = vsub.f32 %v24097_v51, %v24094_v50  ;;  %v880_v61 = vadd.f32 %v24276_v40, %v24273_v35 }
  0x4f   : > { %21946 = vmatpush3.msra.mxu0 %v874_v55  ;;  %21947 = vmatprep.mubr.msk.f32.mxu0 %vm1204_vm0, %v23952_v0  ;;  %v881_v55 = vadd.f32 %v24327_v2, %v24320_v1 }
  0x50   : > { %21951 = vmatpush3.msra.mxu1 %v875_v49  ;;  %21952 = vmatprep.mubr.msk.f32.mxu1 %vm1204_vm0, %v23952_v0  ;;  %v878_v49 = vadd.f32 %v24257_v36, %v24254_v33 }
  0x51   : > { %21948 = vmatmul.mubr.msk.f32.vlgmr.msra.gmra.mrb[22].mxu0 %vm1204_vm0, %v23982_v13  ;;  %21953 = vmatmul.mubr.msk.f32.vlgmr.msra.gmra.mrb[22].mxu1 %vm1204_vm0, %v23982_v13 }
  0x52   : > { %1132 = vrot.lane.b32.xlu1 %v928_v16, %s23875_s26  ;;  %21960 = vmatprep.subr.mxu1 %v877_v17  ;;  %v532_v16 = vld [vmem:[%s27184_s1] sm:$0xff] }
  0x53   : > { %1130 = vrot.lane.b32.xlu0 %v927_v20, %s23875_s26  ;;  %21955 = vmatprep.subr.mxu0 %v876_v21  ;;  %v534_v20 = vld [vmem:[%s27184_s1 + $0x10] sm:$0xff] }
  0x54   : > { %21956 = vmatpush3.msra.mxu0 %v876_v21  ;;  %21957 = vmatprep.mubr.msk.f32.mxu0 %vm1204_vm0, %v23952_v0  ;;  %v468_v21 = vld [vmem:[%s24395_s30] sm:$0xff] }
  0x55   : > { %21961 = vmatpush3.msra.mxu1 %v877_v17  ;;  %21962 = vmatprep.mubr.msk.f32.mxu1 %vm1204_vm0, %v23952_v0  ;;  %v533_v17 = vld [vmem:[%s27184_s1 + $0x8] sm:$0xff]  ;;  %v596_v50 = vmul.f32 %v532_v16, %v468_v21 }
  0x56   : > { %21958 = vmatmul.mubr.msk.f32.vlgmr.msra.gmra.mrb[24].mxu0 %vm1204_vm0, %v23982_v13  ;;  %21963 = vmatmul.mubr.msk.f32.vlgmr.msra.gmra.mrb[24].mxu1 %vm1204_vm0, %v23982_v13  ;;  %v537_v16 = vld [vmem:[%s27184_s1 + $0x28] sm:$0xff] }
  0x57   : > { %1008 = vrot.lane.b32.xlu1 %v898_v32, %s23874_s23  ;;  %21970 = vmatprep.subr.mxu1 %v879_v37  ;;  %v469_v32 = vld [vmem:[%s24395_s30 + $0x8] sm:$0xff] }
  0x58   : > { %1006 = vrot.lane.b32.xlu0 %v897_v48, %s23874_s23  ;;  %21965 = vmatprep.subr.mxu0 %v878_v49  ;;  %v470_v48 = vld [vmem:[%s24395_s30 + $0x10] sm:$0xff]  ;;  %v597_v51 = vmul.f32 %v533_v17, %v469_v32  ;;  %v900_v17 = vsub.f32 %v24164_v5, %v24167_v6  ;;  %v473_v21 = vld [vmem:[%s24395_s30 + $0x28] sm:$0xff] }
  0x59   : > { %21966 = vmatpush3.msra.mxu0 %v878_v49  ;;  %21967 = vmatprep.mubr.msk.f32.mxu0 %vm1204_vm0, %v23952_v0  ;;  %v535_v49 = vld [vmem:[%s27184_s1 + $0x18] sm:$0xff]  ;;  %v474_v32 = vld [vmem:[%s24395_s30 + $0x30] sm:$0xff]  ;;  %v601_v9 = vmul.f32 %v537_v16, %v473_v21 }
  0x5a   : > { %21971 = vmatpush3.msra.mxu1 %v879_v37  ;;  %21972 = vmatprep.mubr.msk.f32.mxu1 %vm1204_vm0, %v23952_v0  ;;  %v598_v37 = vmul.f32 %v534_v20, %v470_v48  ;;  %v599_v30 = vmul.f32 %v535_v49, %v471_v31  ;;  %v472_v20 = vld [vmem:[%s24395_s30 + $0x20] sm:$0xff]  ;;  %v538_v31 = vld [vmem:[%s27184_s1 + $0x30] sm:$0xff]  ;;  %v475_v48 = vld [vmem:[%s24395_s30 + $0x38] sm:$0xff]  ;;  %v23219_v49 = vpack.c.bf16 %v597_v51, %v596_v50 }
  0x5b   : > { %21968 = vmatmul.mubr.msk.f32.vlgmr.msra.gmra.mrb[26].mxu0 %vm1204_vm0, %v23982_v13  ;;  %21973 = vmatmul.mubr.msk.f32.vlgmr.msra.gmra.mrb[26].mxu1 %vm1204_vm0, %v23982_v13  ;;  %v602_v57 = vmul.f32 %v538_v31, %v474_v32  ;;  %v543_v50 = vld [vmem:[%s27184_s1 + $0x58] sm:$0xff]  ;;  %v932_v51 = vsub.f32 %v24167_v6, %v24164_v5  ;;  %v24503_v5 = vld [vmem:[%s27186_s3 + $0x8] sm:$0xff]  ;;  %v480_v31 = vld [vmem:[%s24395_s30 + $0x60] sm:$0xff] }
  0x5c   : > { %1136 = vrot.lane.b32.xlu1 %v930_v54, %s23875_s26  ;;  %21980 = vmatprep.subr.mxu1 %v881_v55  ;;  %v536_v54 = vld [vmem:[%s27184_s1 + $0x20] sm:$0xff]  ;;  %v479_v16 = vld [vmem:[%s24395_s30 + $0x58] sm:$0xff] }
  0x5d   : > { %1134 = vrot.lane.b32.xlu0 %v929_v60, %s23875_s26  ;;  %21975 = vmatprep.subr.mxu0 %v880_v61  ;;  %v539_v60 = vld [vmem:[%s27184_s1 + $0x38] sm:$0xff]  ;;  %v600_v10 = vmul.f32 %v536_v54, %v472_v20  ;;  %v478_v54 = vld [vmem:[%s24395_s30 + $0x50] sm:$0xff]  ;;  %v607_v20 = vmul.f32 %v543_v50, %v479_v16  ;;  %v484_v50 = vld [vmem:[%s24395_s30 + $0x80] sm:$0xff]  ;;  %v934_v16 = vsub.f32 %v24197_v15, %v24194_v14 }
  0x5e   : > { %21976 = vmatpush3.msra.mxu0 %v880_v61  ;;  %21977 = vmatprep.mubr.msk.f32.mxu0 %vm1204_vm0, %v23952_v0  ;;  %v899_v61 = vsub.f32 %v24124_v58, %v24127_v59  ;;  %v603_v56 = vmul.f32 %v539_v60, %v475_v48  ;;  %v544_v60 = vld [vmem:[%s27184_s1 + $0x60] sm:$0xff]  ;;  %v547_v21 = vld [vmem:[%s27184_s1 + $0x78] sm:$0xff] }
  0x5f   : > { %21981 = vmatpush3.msra.mxu1 %v881_v55  ;;  %21982 = vmatprep.mubr.msk.f32.mxu1 %vm1204_vm0, %v23952_v0  ;;  %v23223_v55 = vpack.c.bf16 %v599_v30, %v598_v37  ;;  %v476_v30 = vld [vmem:[%s24395_s30 + $0x40] sm:$0xff]  ;;  %v477_v37 = vld [vmem:[%s24395_s30 + $0x48] sm:$0xff] }
  0x60   : > { %21978 = vmatmul.mubr.msk.f32.vlgmr.msra.gmra.mrb[28].mxu0 %vm1204_vm0, %v23982_v13  ;;  %21983 = vmatmul.mubr.msk.f32.vlgmr.msra.gmra.mrb[28].mxu1 %vm1204_vm0, %v23982_v13  ;;  %v604_v6 = vmul.f32 %v540_v47, %v476_v30  ;;  %v481_v47 = vld [vmem:[%s24395_s30 + $0x68] sm:$0xff] }
  0x61   : > { %21985 = vmatprep.subr.mxu0 %v882_v53  ;;  %21990 = vmatprep.subr.mxu1 %v883_v52 }
  0x62   : > { %1012 = vrot.lane.b32.xlu1 %v900_v17, %s23874_s23  ;;  %21991 = vmatpush3.msra.mxu1 %v883_v52  ;;  %v542_v52 = vld [vmem:[%s27184_s1 + $0x50] sm:$0xff] }
  0x63   : > { %1010 = vrot.lane.b32.xlu0 %v899_v61, %s23874_s23  ;;  %21986 = vmatpush3.msra.mxu0 %v882_v53  ;;  %v931_v53 = vsub.f32 %v24127_v59, %v24124_v58  ;;  %v23227_v58 = vpack.c.bf16 %v601_v9, %v600_v10  ;;  %v23231_v59 = vpack.c.bf16 %v603_v56, %v602_v57  ;;  %v545_v56 = vld [vmem:[%s27184_s1 + $0x68] sm:$0xff]  ;;  %v482_v57 = vld [vmem:[%s24395_s30 + $0x70] sm:$0xff]  ;;  %v483_v10 = vld [vmem:[%s24395_s30 + $0x78] sm:$0xff] }
  0x64   : > { %21987 = vmatprep.mubr.msk.f32.mxu0 %vm1204_vm0, %v23952_v0  ;;  %21992 = vmatprep.mubr.msk.f32.mxu1 %vm1204_vm0, %v23952_v0  ;;  %v24498_v0 = vld [vmem:[%s27186_s3] sm:$0xff]  ;;  %v606_v17 = vmul.f32 %v542_v52, %v478_v54  ;;  %v901_v9 = vsub.f32 %v24154_v3, %v24157_v4  ;;  %v546_v61 = vld [vmem:[%s27184_s1 + $0x70] sm:$0xff]  ;;  %v611_v52 = vmul.f32 %v547_v21, %v483_v10  ;;  %v491_v10 = vld [vmem:[%s24395_s30 + $0xb8] sm:$0xff] }
  0x65   : > { %23220 = vmatprep.subr.bf16.mxu0 %v23219_v49  ;;  %23224 = vmatprep.subr.bf16.mxu1 %v23223_v55  ;;  %v610_v30 = vmul.f32 %v546_v61, %v482_v57  ;;  %v486_v54 = vld [vmem:[%s24395_s30 + $0x90] sm:$0xff]  ;;  %v555_v21 = vld [vmem:[%s27184_s1 + $0xb8] sm:$0xff] }
  0x66   : > { %21988 = vmatmul.mubr.msk.f32.vlgmr.msra.gmra.mrb[30].mxu0 %vm1204_vm0, %v23982_v13  ;;  %21993 = vmatmul.mubr.msk.f32.vlgmr.msra.gmra.mrb[30].mxu1 %vm1204_vm0, %v23982_v13  ;;  %v605_v13 = vmul.f32 %v541_v46, %v477_v37  ;;  %v902_v46 = vsub.f32 %v24194_v14, %v24197_v15  ;;  %v23239_v48 = vpack.c.bf16 %v607_v20, %v606_v17  ;;  %v549_v37 = vld [vmem:[%s27184_s1 + $0x88] sm:$0xff]  ;;  %v490_v57 = vld [vmem:[%s24395_s30 + $0xb0] sm:$0xff] }
  0x67   : > { %23222 = vmatpush3.bf16.msra.mxu0 %v23219_v49  ;;  %23226 = vmatpush3.bf16.msra.mxu1 %v23223_v55  ;;  %v608_v49 = vmul.f32 %v544_v60, %v480_v31  ;;  %v609_v55 = vmul.f32 %v545_v56, %v481_v47  ;;  %v488_v31 = vld [vmem:[%s24395_s30 + $0xa0] sm:$0xff]  ;;  %v489_v60 = vld [vmem:[%s24395_s30 + $0xa8] sm:$0xff]  ;;  %v554_v61 = vld [vmem:[%s27184_s1 + $0xb0] sm:$0xff] }
  0x68   : > { %1140 = vrot.lane.b32.xlu1 %v932_v51, %s23875_s26  ;;  %1138 = vrot.lane.b32.xlu0 %v931_v53, %s23875_s26  ;;  %v23235_v32 = vpack.c.bf16 %v605_v13, %v604_v6  ;;  %v485_v51 = vld [vmem:[%s24395_s30 + $0x88] sm:$0xff]  ;;  %v548_v53 = vld [vmem:[%s27184_s1 + $0x80] sm:$0xff] }
  0x69   : > { %21999 = vmatprep.mubr.msk.f32.mxu0 %vm4415_vm1, %v24498_v0  ;;  %22006 = vmatprep.mubr.msk.f32.mxu1 %vm4415_vm1, %v24498_v0  ;;  %v550_v6 = vld [vmem:[%s27184_s1 + $0x90] sm:$0xff]  ;;  %v551_v13 = vld [vmem:[%s27184_s1 + $0x98] sm:$0xff]  ;;  %v612_v14 = vmul.f32 %v548_v53, %v484_v50  ;;  %v613_v15 = vmul.f32 %v549_v37, %v485_v51  ;;  %v552_v56 = vld [vmem:[%s27184_s1 + $0xa0] sm:$0xff] }
  0x6a   : > { %23228 = vmatprep.subr.bf16.mxu0 %v23227_v58  ;;  %23232 = vmatprep.subr.bf16.mxu1 %v23231_v59  ;;  %v614_v17 = vmul.f32 %v550_v6, %v486_v54  ;;  %v553_v47 = vld [vmem:[%s27184_s1 + $0xa8] sm:$0xff]  ;;  %v492_v50 = vld [vmem:[%s24395_s30 + $0xc0] sm:$0xff]  ;;  %v494_v54 = vld [vmem:[%s24395_s30 + $0xd0] sm:$0xff] }
  0x6b   : > { %22000 = vmatmul.mubr.msk.f32.vlgmr.msra.gmra.mrb[0].mxu0 %vm4415_vm1, %v24503_v5  ;;  %22007 = vmatmul.mubr.msk.f32.vlgmr.msra.gmra.mrb[0].mxu1 %vm4415_vm1, %v24503_v5  ;;  %v493_v51 = vld [vmem:[%s24395_s30 + $0xc8] sm:$0xff]  ;;  %v556_v53 = vld [vmem:[%s27184_s1 + $0xc0] sm:$0xff]  ;;  %v558_v6 = vld [vmem:[%s27184_s1 + $0xd0] sm:$0xff] }
  0x6c   : > { %23230 = vmatpush3.bf16.msra.mxu0 %v23227_v58  ;;  %23234 = vmatpush3.bf16.msra.mxu1 %v23231_v59  ;;  %v933_v58 = vsub.f32 %v24157_v4, %v24154_v3  ;;  %v487_v59 = vld [vmem:[%s24395_s30 + $0x98] sm:$0xff]  ;;  %v23243_v3 = vpack.c.bf16 %v609_v55, %v608_v49  ;;  %v23247_v4 = vpack.c.bf16 %v611_v52, %v610_v30  ;;  %v557_v37 = vld [vmem:[%s27184_s1 + $0xc8] sm:$0xff] }
  0x6d   : > { %1016 = vrot.lane.b32.xlu1 %v902_v46, %s23874_s23  ;;  %1014 = vrot.lane.b32.xlu0 %v901_v9, %s23874_s23  ;;  %v615_v20 = vmul.f32 %v551_v13, %v487_v59  ;;  %v904_v46 = vsub.f32 %v24238_v27, %v24241_v28  ;;  %v903_v9 = vsub.f32 %v24184_v11, %v24187_v12  ;;  %v495_v59 = vld [vmem:[%s24395_s30 + $0xd8] sm:$0xff] }
  0x6e   : > { %22013 = vmatprep.mubr.msk.f32.mxu0 %vm4415_vm1, %v24498_v0  ;;  %22020 = vmatprep.mubr.msk.f32.mxu1 %vm4415_vm1, %v24498_v0  ;;  %v616_v49 = vmul.f32 %v552_v56, %v488_v31  ;;  %v617_v55 = vmul.f32 %v553_v47, %v489_v60  ;;  %v618_v30 = vmul.f32 %v554_v61, %v490_v57  ;;  %v559_v13 = vld [vmem:[%s27184_s1 + $0xd8] sm:$0xff]  ;;  %v498_v31 = vld [vmem:[%s24395_s30 + $0xf0] sm:$0xff] }
  0x6f   : > { %23236 = vmatprep.subr.bf16.mxu0 %v23235_v32  ;;  %23240 = vmatprep.subr.bf16.mxu1 %v23239_v48  ;;  %v619_v52 = vmul.f32 %v555_v21, %v491_v10  ;;  %v906_v60 = vsub.f32 %v24270_v34, %v24283_v41  ;;  %v905_v56 = vsub.f32 %v24218_v22, %v24225_v24  ;;  %v499_v47 = vld [vmem:[%s24395_s30 + $0xf8] sm:$0xff]  ;;  %v562_v57 = vld [vmem:[%s27184_s1 + $0xf0] sm:$0xff] }
  0x70   : > { %22014 = vmatmul.mubr.msk.f32.vlgmr.msra.gmra.mrb[2].mxu0 %vm4415_vm1, %v24503_v5  ;;  %22021 = vmatmul.mubr.msk.f32.vlgmr.msra.gmra.mrb[2].mxu1 %vm4415_vm1, %v24503_v5 }
  0x71   : > { %23238 = vmatpush3.bf16.msra.mxu0 %v23235_v32  ;;  %23242 = vmatpush3.bf16.msra.mxu1 %v23239_v48  ;;  %v23251_v32 = vpack.c.bf16 %v613_v15, %v612_v14  ;;  %v23255_v48 = vpack.c.bf16 %v615_v20, %v614_v17  ;;  %v496_v14 = vld [vmem:[%s24395_s30 + $0xe0] sm:$0xff]  ;;  %v497_v15 = vld [vmem:[%s24395_s30 + $0xe8] sm:$0xff] }
  0x72   : > { %1144 = vrot.lane.b32.xlu1 %v934_v16, %s23875_s26  ;;  %1142 = vrot.lane.b32.xlu0 %v933_v58, %s23875_s26  ;;  %v936_v16 = vsub.f32 %v24241_v28, %v24238_v27  ;;  %v935_v58 = vsub.f32 %v24187_v12, %v24184_v11  ;;  %v23259_v11 = vpack.c.bf16 %v617_v55, %v616_v49  ;;  %v560_v17 = vld [vmem:[%s27184_s1 + $0xe0] sm:$0xff]  ;;  %v561_v20 = vld [vmem:[%s27184_s1 + $0xe8] sm:$0xff] }
  0x73   : > { %22027 = vmatprep.mubr.msk.f32.mxu0 %vm4415_vm1, %v24498_v0  ;;  %22034 = vmatprep.mubr.msk.f32.mxu1 %vm4415_vm1, %v24498_v0  ;;  %v23263_v12 = vpack.c.bf16 %v619_v52, %v618_v30  ;;  %v620_v27 = vmul.f32 %v556_v53, %v492_v50  ;;  %v621_v28 = vmul.f32 %v557_v37, %v493_v51  ;;  %v500_v49 = vld [vmem:[%s24395_s30 + $0x100] sm:$0xff]  ;;  %v501_v55 = vld [vmem:[%s24395_s30 + $0x108] sm:$0xff]  ;;  %v502_v50 = vld [vmem:[%s24395_s30 + $0x110] sm:$0xff] }
  0x74   : > { %23244 = vmatprep.subr.bf16.mxu0 %v23243_v3  ;;  %23248 = vmatprep.subr.bf16.mxu1 %v23247_v4  ;;  %v624_v61 = vmul.f32 %v560_v17, %v496_v14  ;;  %v625_v21 = vmul.f32 %v561_v20, %v497_v15  ;;  %v564_v30 = vld [vmem:[%s27184_s1 + $0x100] sm:$0xff]  ;;  %v565_v52 = vld [vmem:[%s27184_s1 + $0x108] sm:$0xff]  ;;  %v938_v51 = vsub.f32 %v24283_v41, %v24270_v34  ;;  %v503_v37 = vld [vmem:[%s24395_s30 + $0x118] sm:$0xff] }
  0x75   : > { %22028 = vmatmul.mubr.msk.f32.vlgmr.msra.gmra.mrb[4].mxu0 %vm4415_vm1, %v24503_v5  ;;  %22035 = vmatmul.mubr.msk.f32.vlgmr.msra.gmra.mrb[4].mxu1 %vm4415_vm1, %v24503_v5  ;;  %v937_v53 = vsub.f32 %v24225_v24, %v24218_v22  ;;  %v628_v34 = vmul.f32 %v564_v30, %v500_v49  ;;  %v629_v41 = vmul.f32 %v565_v52, %v501_v55  ;;  %v570_v14 = vld [vmem:[%s27184_s1 + $0x130] sm:$0xff]  ;;  %v571_v15 = vld [vmem:[%s27184_s1 + $0x138] sm:$0xff] }
  0x76   : > { %23246 = vmatpush3.bf16.msra.mxu0 %v23243_v3  ;;  %23250 = vmatpush3.bf16.msra.mxu1 %v23247_v4  ;;  %v622_v3 = vmul.f32 %v558_v6, %v494_v54  ;;  %v623_v4 = vmul.f32 %v559_v13, %v495_v59  ;;  %v566_v54 = vld [vmem:[%s27184_s1 + $0x110] sm:$0xff]  ;;  %v23275_v22 = vpack.c.bf16 %v625_v21, %v624_v61  ;;  %v504_v6 = vld [vmem:[%s24395_s30 + $0x120] sm:$0xff]  ;;  %v505_v13 = vld [vmem:[%s24395_s30 + $0x128] sm:$0xff] }
  0x77   : > { %1020 = vrot.lane.b32.xlu1 %v904_v46, %s23874_s23  ;;  %1018 = vrot.lane.b32.xlu0 %v903_v9, %s23874_s23  ;;  %v563_v46 = vld [vmem:[%s27184_s1 + $0xf8] sm:$0xff]  ;;  %v23267_v9 = vpack.c.bf16 %v621_v28, %v620_v27  ;;  %v506_v27 = vld [vmem:[%s24395_s30 + $0x130] sm:$0xff]  ;;  %v908_v28 = vsub.f32 %v24314_v62, %v24317_v63  ;;  %v23283_v17 = vpack.c.bf16 %v629_v41, %v628_v34 }
  0x78   : > { %22041 = vmatprep.mubr.msk.f32.mxu0 %vm4415_vm1, %v24498_v0  ;;  %22048 = vmatprep.mubr.msk.f32.mxu1 %vm4415_vm1, %v24498_v0  ;;  %v23271_v10 = vpack.c.bf16 %v623_v4, %v622_v3  ;;  %v907_v3 = vsub.f32 %v24206_v18, %v24209_v19  ;;  %v507_v4 = vld [vmem:[%s24395_s30 + $0x138] sm:$0xff]  ;;  %v573_v21 = vld [vmem:[%s27184_s1 + $0x148] sm:$0xff]  ;;  %v574_v55 = vld [vmem:[%s27184_s1 + $0x150] sm:$0xff] }
  0x79   : > { %23252 = vmatprep.subr.bf16.mxu0 %v23251_v32  ;;  %23256 = vmatprep.subr.bf16.mxu1 %v23255_v48  ;;  %v511_v49 = vld [vmem:[%s24395_s30 + $0x158] sm:$0xff]  ;;  %v577_v34 = vld [vmem:[%s27184_s1 + $0x168] sm:$0xff]  ;;  %v514_v41 = vld [vmem:[%s24395_s30 + $0x170] sm:$0xff] }
  0x7a   : > { %22042 = vmatmul.mubr.msk.f32.vlgmr.msra.gmra.mrb[6].mxu0 %vm4415_vm1, %v24503_v5  ;;  %22049 = vmatmul.mubr.msk.f32.vlgmr.msra.gmra.mrb[6].mxu1 %vm4415_vm1, %v24503_v5  ;;  %v575_v30 = vld [vmem:[%s27184_s1 + $0x158] sm:$0xff]  ;;  %v578_v18 = vld [vmem:[%s27184_s1 + $0x170] sm:$0xff] }
  0x7b   : > { %23254 = vmatpush3.bf16.msra.mxu0 %v23251_v32  ;;  %23258 = vmatpush3.bf16.msra.mxu1 %v23255_v48  ;;  %v626_v32 = vmul.f32 %v562_v57, %v498_v31  ;;  %v627_v48 = vmul.f32 %v563_v46, %v499_v47  ;;  %v634_v47 = vmul.f32 %v570_v14, %v506_v27  ;;  %v508_v46 = vld [vmem:[%s24395_s30 + $0x140] sm:$0xff]  ;;  %v579_v19 = vld [vmem:[%s27184_s1 + $0x178] sm:$0xff]  ;;  %v517_v14 = vld [vmem:[%s24395_s30 + $0x188] sm:$0xff] }
  0x7c   : > { %1148 = vrot.lane.b32.xlu1 %v936_v16, %s23875_s26  ;;  %1146 = vrot.lane.b32.xlu0 %v935_v58, %s23875_s26  ;;  %v567_v16 = vld [vmem:[%s27184_s1 + $0x118] sm:$0xff]  ;;  %v630_v58 = vmul.f32 %v566_v54, %v502_v50  ;;  %v635_v57 = vmul.f32 %v571_v15, %v507_v4  ;;  %v639_v54 = vmul.f32 %v575_v30, %v511_v49  ;;  %v516_v4 = vld [vmem:[%s24395_s30 + $0x180] sm:$0xff] }
  0x7d   : > { %22055 = vmatprep.mubr.msk.f32.mxu0 %vm4415_vm1, %v24498_v0  ;;  %22062 = vmatprep.mubr.msk.f32.mxu1 %vm4415_vm1, %v24498_v0  ;;  %v23279_v24 = vpack.c.bf16 %v627_v48, %v626_v32  ;;  %v631_v59 = vmul.f32 %v567_v16, %v503_v37  ;;  %v510_v32 = vld [vmem:[%s24395_s30 + $0x150] sm:$0xff]  ;;  %v940_v48 = vsub.f32 %v24317_v63, %v24314_v62  ;;  %v512_v16 = vld [vmem:[%s24395_s30 + $0x160] sm:$0xff] }
  0x7e   : > { %23260 = vmatprep.subr.bf16.mxu0 %v23259_v11  ;;  %23264 = vmatprep.subr.bf16.mxu1 %v23263_v12  ;;  %v23295_v63 = vpack.c.bf16 %v635_v57, %v634_v47  ;;  %v638_v37 = vmul.f32 %v574_v55, %v510_v32  ;;  %v580_v15 = vld [vmem:[%s27184_s1 + $0x180] sm:$0xff]  ;;  %v521_v55 = vld [vmem:[%s24395_s30 + $0x1a8] sm:$0xff] }
  0x7f   : > { %22056 = vmatmul.mubr.msk.f32.vlgmr.msra.gmra.mrb[8].mxu0 %vm4415_vm1, %v24503_v5  ;;  %22063 = vmatmul.mubr.msk.f32.vlgmr.msra.gmra.mrb[8].mxu1 %vm4415_vm1, %v24503_v5  ;;  %v23287_v20 = vpack.c.bf16 %v631_v59, %v630_v58  ;;  %v910_v58 = vsub.f32 %v24254_v33, %v24257_v36  ;;  %v515_v59 = vld [vmem:[%s24395_s30 + $0x178] sm:$0xff]  ;;  %v520_v49 = vld [vmem:[%s24395_s30 + $0x1a0] sm:$0xff]  ;;  %v586_v33 = vld [vmem:[%s27184_s1 + $0x1b0] sm:$0xff] }
  0x80   : > { %23262 = vmatpush3.bf16.msra.mxu0 %v23259_v11  ;;  %23266 = vmatpush3.bf16.msra.mxu1 %v23263_v12  ;;  %v568_v11 = vld [vmem:[%s27184_s1 + $0x120] sm:$0xff]  ;;  %v569_v12 = vld [vmem:[%s27184_s1 + $0x128] sm:$0xff] }
  0x81   : > { %1024 = vrot.lane.b32.xlu1 %v906_v60, %s23874_s23  ;;  %1022 = vrot.lane.b32.xlu0 %v905_v56, %s23874_s23  ;;  %v632_v31 = vmul.f32 %v568_v11, %v504_v6  ;;  %v633_v56 = vmul.f32 %v569_v12, %v505_v13  ;;  %v23303_v13 = vpack.c.bf16 %v639_v54, %v638_v37  ;;  %v584_v30 = vld [vmem:[%s27184_s1 + $0x1a0] sm:$0xff] }
  0x82   : > { %22069 = vmatprep.mubr.msk.f32.mxu0 %vm4415_vm1, %v24498_v0  ;;  %22076 = vmatprep.mubr.msk.f32.mxu1 %vm4415_vm1, %v24498_v0 }
  0x83   : > { %23268 = vmatprep.subr.bf16.mxu0 %v23267_v9  ;;  %23272 = vmatprep.subr.bf16.mxu1 %v23271_v10  ;;  %v23291_v62 = vpack.c.bf16 %v633_v56, %v632_v31  ;;  %v519_v31 = vld [vmem:[%s24395_s30 + $0x198] sm:$0xff]  ;;  %v582_v56 = vld [vmem:[%s27184_s1 + $0x190] sm:$0xff] }
  0x84   : > { %22070 = vmatmul.mubr.msk.f32.vlgmr.msra.gmra.mrb[10].mxu0 %vm4415_vm1, %v24503_v5  ;;  %22077 = vmatmul.mubr.msk.f32.vlgmr.msra.gmra.mrb[10].mxu1 %vm4415_vm1, %v24503_v5 }
  0x85   : > { %23270 = vmatpush3.bf16.msra.mxu0 %v23267_v9  ;;  %23274 = vmatpush3.bf16.msra.mxu1 %v23271_v10  ;;  %v509_v9 = vld [vmem:[%s24395_s30 + $0x148] sm:$0xff]  ;;  %v572_v10 = vld [vmem:[%s27184_s1 + $0x140] sm:$0xff] }
  0x86   : > { %1152 = vrot.lane.b32.xlu1 %v938_v51, %s23875_s26  ;;  %1150 = vrot.lane.b32.xlu0 %v937_v53, %s23875_s26  ;;  %v636_v50 = vmul.f32 %v572_v10, %v508_v46  ;;  %v637_v53 = vmul.f32 %v573_v21, %v509_v9  ;;  %v644_v9 = vmul.f32 %v580_v15, %v516_v4 }
  0x87   : > { %22083 = vmatprep.mubr.msk.f32.mxu0 %vm4415_vm1, %v24498_v0  ;;  %22090 = vmatprep.mubr.msk.f32.mxu1 %vm4415_vm1, %v24498_v0 }
  0x88   : > { %23276 = vmatprep.subr.bf16.mxu0 %v23275_v22  ;;  %23280 = vmatprep.subr.bf16.mxu1 %v23279_v24  ;;  %v23299_v6 = vpack.c.bf16 %v637_v53, %v636_v50  ;;  %v523_v50 = vld [vmem:[%s24395_s30 + $0x1b8] sm:$0xff] }
  0x89   : > { %22084 = vmatmul.mubr.msk.f32.vlgmr.msra.gmra.mrb[12].mxu0 %vm4415_vm1, %v24503_v5  ;;  %22091 = vmatmul.mubr.msk.f32.vlgmr.msra.gmra.mrb[12].mxu1 %vm4415_vm1, %v24503_v5  ;;  %v24715_v60 = vpop.permute.xlu1 %982 }
  0x8a   : > { %23278 = vmatpush3.bf16.msra.mxu0 %v23275_v22  ;;  %23282 = vmatpush3.bf16.msra.mxu1 %v23279_v24  ;;  %v24722_v61 = vpop.permute.xlu0 %980  ;;  %v513_v22 = vld [vmem:[%s24395_s30 + $0x168] sm:$0xff]  ;;  %v576_v24 = vld [vmem:[%s27184_s1 + $0x160] sm:$0xff] }
  0x8b   : > { %1028 = vrot.lane.b32.xlu1 %v908_v28, %s23874_s23  ;;  %1026 = vrot.lane.b32.xlu0 %v907_v3, %s23874_s23  ;;  %v640_v11 = vmul.f32 %v576_v24, %v512_v16  ;;  %v641_v27 = vmul.f32 %v577_v34, %v513_v22  ;;  %v642_v28 = vmul.f32 %v578_v18, %v514_v41  ;;  %v524_v22 = vld [vmem:[%s24395_s30 + $0x1c0] sm:$0xff]  ;;  %v525_v24 = vld [vmem:[%s24395_s30 + $0x1c8] sm:$0xff] }
  0x8c   : > { %22097 = vmatprep.mubr.msk.f32.mxu0 %vm4415_vm1, %v24498_v0  ;;  %22104 = vmatprep.mubr.msk.f32.mxu1 %vm4415_vm1, %v24498_v0  ;;  %v643_v3 = vmul.f32 %v579_v19, %v515_v59  ;;  %v651_v16 = vmul.f32 %v587_v25, %v523_v50  ;;  %v588_v34 = vld [vmem:[%s27184_s1 + $0x1c0] sm:$0xff]  ;;  %v27194_v41 = vsub.f32 %v24273_v35, %v24276_v40  ;;  %v589_v59 = vld [vmem:[%s27184_s1 + $0x1c8] sm:$0xff]  ;;  %v526_v18 = vld [vmem:[%s24395_s30 + $0x1d0] sm:$0xff] }
  0x8d   : > { %23284 = vmatprep.subr.bf16.mxu0 %v23283_v17  ;;  %23288 = vmatprep.subr.bf16.mxu1 %v23287_v20  ;;  %v24743_v52 = vpop.permute.xlu1 %984  ;;  %v23307_v57 = vpack.c.bf16 %v641_v27, %v640_v11  ;;  %v527_v19 = vld [vmem:[%s24395_s30 + $0x1d8] sm:$0xff]  ;;  %v27199_v50 = vsub.f32 %v24320_v1, %v24327_v2 }
  0x8e   : > { %22098 = vmatmul.mubr.msk.f32.vlgmr.msra.gmra.mrb[14].mxu0 %vm4415_vm1, %v24503_v5  ;;  %22105 = vmatmul.mubr.msk.f32.vlgmr.msra.gmra.mrb[14].mxu1 %vm4415_vm1, %v24503_v5  ;;  %v24749_v51 = vpop.permute.xlu0 %1108  ;;  %v23311_v46 = vpack.c.bf16 %v643_v3, %v642_v28  ;;  %v652_v3 = vmul.f32 %v588_v34, %v524_v22  ;;  %v27202_v22 = vsub.f32 %v24365_v43, %v24362_v42 }
  0x8f   : > { %23286 = vmatpush3.bf16.msra.mxu0 %v23283_v17  ;;  %23290 = vmatpush3.bf16.msra.mxu1 %v23287_v20  ;;  %v581_v17 = vld [vmem:[%s27184_s1 + $0x188] sm:$0xff]  ;;  %v518_v20 = vld [vmem:[%s24395_s30 + $0x190] sm:$0xff] }
  0x90   : > { %1156 = vrot.lane.b32.xlu1 %v940_v48, %s23875_s26  ;;  %1154 = vrot.lane.b32.xlu0 %v939_v23, %s23875_s26  ;;  %v645_v21 = vmul.f32 %v581_v17, %v517_v14  ;;  %v646_v32 = vmul.f32 %v582_v56, %v518_v20  ;;  %v653_v14 = vmul.f32 %v589_v59, %v525_v24  ;;  %v528_v20 = vld [vmem:[%s24395_s30 + $0x1e0] sm:$0xff]  ;;  %v675_v24 = vld [vmem:[%s23964_s22 + $0x78] sm:$0xff] }
  0x91   : > { %22111 = vmatprep.mubr.msk.f32.mxu0 %vm4415_vm1, %v24498_v0  ;;  %22118 = vmatprep.mubr.msk.f32.mxu1 %vm4415_vm1, %v24498_v0  ;;  %v592_v56 = vld [vmem:[%s27184_s1 + $0x1e0] sm:$0xff]  ;;  %v25010_v59 = vld [vmem:[%s27190_s7 + $0x8] sm:$0xff] }
  0x92   : > { %23292 = vmatprep.subr.bf16.mxu0 %v23291_v62  ;;  %23296 = vmatprep.subr.bf16.mxu1 %v23295_v63  ;;  %v24778_v23 = vpop.permute.xlu1 %1112  ;;  %v23315_v36 = vpack.c.bf16 %v645_v21, %v644_v9  ;;  %v530_v9 = vld [vmem:[%s24395_s30 + $0x1f0] sm:$0xff]  ;;  %v531_v21 = vld [vmem:[%s24395_s30 + $0x1f8] sm:$0xff] }
  0x93   : > { %22112 = vmatmul.mubr.msk.f32.vlgmr.msra.gmra.mrb[16].mxu0 %vm4415_vm1, %v24503_v5  ;;  %22119 = vmatmul.mubr.msk.f32.vlgmr.msra.gmra.mrb[16].mxu1 %vm4415_vm1, %v24503_v5  ;;  %v24784_v12 = vpop.permute.xlu0 %1110 }
  0x94   : > { %23294 = vmatpush3.bf16.msra.mxu0 %v23291_v62  ;;  %23298 = vmatpush3.bf16.msra.mxu1 %v23295_v63  ;;  %v585_v62 = vld [vmem:[%s27184_s1 + $0x1a8] sm:$0xff]  ;;  %v522_v63 = vld [vmem:[%s24395_s30 + $0x1b0] sm:$0xff] }
  0x95   : > { %1032 = vrot.lane.b32.xlu1 %v910_v58, %s23874_s23  ;;  %1030 = vrot.lane.b32.xlu0 %v909_v29, %s23874_s23  ;;  %v583_v29 = vld [vmem:[%s27184_s1 + $0x198] sm:$0xff]  ;;  %v649_v37 = vmul.f32 %v585_v62, %v521_v55  ;;  %v650_v54 = vmul.f32 %v586_v33, %v522_v63  ;;  %v27195_v58 = vsub.f32 %v24286_v44, %v24289_v45 }
  0x96   : > { %22125 = vmatprep.mubr.msk.f32.mxu0 %vm4415_vm1, %v24498_v0  ;;  %22132 = vmatprep.mubr.msk.f32.mxu1 %vm4415_vm1, %v24498_v0  ;;  %v647_v48 = vmul.f32 %v583_v29, %v519_v31  ;;  %v529_v31 = vld [vmem:[%s24395_s30 + $0x1e8] sm:$0xff]  ;;  %v27196_v29 = vsub.f32 %v24276_v40, %v24273_v35  ;;  %v594_v35 = vld [vmem:[%s27184_s1 + $0x1f0] sm:$0xff]  ;;  %v595_v40 = vld [vmem:[%s27184_s1 + $0x1f8] sm:$0xff]  ;;  %v27198_v63 = vsub.f32 %v24330_v7, %v24333_v8 }
  0x97   : > { %23300 = vmatprep.subr.bf16.mxu0 %v23299_v6  ;;  %23304 = vmatprep.subr.bf16.mxu1 %v23303_v13  ;;  %v24811_v47 = vpop.permute.xlu1 %988  ;;  %v23327_v28 = vpack.c.bf16 %v651_v16, %v650_v54  ;;  %v659_v62 = vmul.f32 %v595_v40, %v531_v21  ;;  %v1205_v16 = vsel %vm1204_vm0, %v24722_v61, %v24749_v51  ;;  %v674_v51 = vld [vmem:[%s23964_s22 + $0x70] sm:$0xff]  ;;  %v692_v21 = vld [vmem:[%s23964_s22 + $0x100] sm:$0xff] }
  0x98   : > { %22126 = vmatmul.mubr.msk.f32.vlgmr.msra.gmra.mrb[18].mxu0 %vm4415_vm1, %v24503_v5  ;;  %22133 = vmatmul.mubr.msk.f32.vlgmr.msra.gmra.mrb[18].mxu1 %vm4415_vm1, %v24503_v5  ;;  %v24817_v10 = vpop.permute.xlu0 %986 }
  0x99   : > { %23302 = vmatpush3.bf16.msra.mxu0 %v23299_v6  ;;  %23306 = vmatpush3.bf16.msra.mxu1 %v23303_v13  ;;  %v590_v6 = vld [vmem:[%s27184_s1 + $0x1d0] sm:$0xff]  ;;  %v591_v13 = vld [vmem:[%s27184_s1 + $0x1d8] sm:$0xff] }
  0x9a   : > { %1160 = vrot.lane.b32.xlu1 %v942_v38, %s23875_s26  ;;  %1158 = vrot.lane.b32.xlu0 %v941_v39, %s23875_s26  ;;  %v23319_v38 = vpack.c.bf16 %v647_v48, %v646_v32  ;;  %v648_v39 = vmul.f32 %v584_v30, %v520_v49  ;;  %v654_v15 = vmul.f32 %v590_v6, %v526_v18 }
  0x9b   : > { %22139 = vmatprep.mubr.msk.f32.mxu0 %vm4415_vm1, %v24498_v0  ;;  %22146 = vmatprep.mubr.msk.f32.mxu1 %vm4415_vm1, %v24498_v0  ;;  %v655_v17 = vmul.f32 %v591_v13, %v527_v19  ;;  %v656_v48 = vmul.f32 %v592_v56, %v528_v20  ;;  %v658_v30 = vmul.f32 %v594_v35, %v530_v9  ;;  %v686_v13 = vld [vmem:[%s23964_s22 + $0xd0] sm:$0xff]  ;;  %v699_v9 = vld [vmem:[%s23964_s22 + $0x138] sm:$0xff]  ;;  %v693_v35 = vld [vmem:[%s23964_s22 + $0x108] sm:$0xff] }
  0x9c   : > { %23308 = vmatprep.subr.bf16.mxu0 %v23307_v57  ;;  %23312 = vmatprep.subr.bf16.mxu1 %v23311_v46  ;;  %v24847_v26 = vpop.permute.xlu1 %1116  ;;  %v23323_v27 = vpack.c.bf16 %v649_v37, %v648_v39  ;;  %v27200_v39 = vsub.f32 %v24333_v8, %v24330_v7  ;;  %v27201_v37 = vsub.f32 %v24327_v2, %v24320_v1  ;;  %v662_v2 = vld [vmem:[%s23964_s22 + $0x10] sm:$0xff]  ;;  %v663_v7 = vld [vmem:[%s23964_s22 + $0x18] sm:$0xff] }
  0x9d   : > { %22140 = vmatmul.mubr.msk.f32.vlgmr.msra.gmra.mrb[20].mxu0 %vm4415_vm1, %v24503_v5  ;;  %22147 = vmatmul.mubr.msk.f32.vlgmr.msra.gmra.mrb[20].mxu1 %vm4415_vm1, %v24503_v5  ;;  %v24853_v53 = vpop.permute.xlu0 %1114  ;;  %v23335_v32 = vpack.c.bf16 %v655_v17, %v654_v15  ;;  %v1206_v1 = vsel %vm1204_vm0, %v24715_v60, %v24784_v12  ;;  %v27203_v60 = vsub.f32 %v24362_v42, %v24365_v43  ;;  %v24998_v42 = vld [vmem:[%s27190_s7] sm:$0xff]  ;;  %v698_v56 = vld [vmem:[%s23964_s22 + $0x130] sm:$0xff] }
  0x9e   : > { %23310 = vmatpush3.bf16.msra.mxu0 %v23307_v57  ;;  %23314 = vmatpush3.bf16.msra.mxu1 %v23311_v46  ;;  %v27197_v57 = vsub.f32 %v24289_v45, %v24286_v44  ;;  %v593_v46 = vld [vmem:[%s27184_s1 + $0x1e8] sm:$0xff]  ;;  %v23331_v45 = vpack.c.bf16 %v653_v14, %v652_v3  ;;  %v1301_v12 = vsub.f32 %v663_v7, %v662_v2  ;;  %v668_v43 = vld [vmem:[%s23964_s22 + $0x40] sm:$0xff] }
  0x9f   : > { %1036 = vrot.lane.b32.xlu1 %v27194_v41, %s23874_s23  ;;  %1034 = vrot.lane.b32.xlu0 %v27195_v58, %s23874_s23  ;;  %v657_v55 = vmul.f32 %v593_v46, %v529_v31  ;;  %v1269_v61 = vsub.f32 %v662_v2, %v663_v7  ;;  %v669_v41 = vld [vmem:[%s23964_s22 + $0x48] sm:$0xff]  ;;  %v1275_v40 = vsub.f32 %v698_v56, %v699_v9 }
  0xa0   : > { %22153 = vmatprep.mubr.msk.f32.mxu0 %vm4415_vm1, %v24498_v0  ;;  %22160 = vmatprep.mubr.msk.f32.mxu1 %vm4415_vm1, %v24498_v0  ;;  %v1270_v18 = vsub.f32 %v668_v43, %v669_v41  ;;  %v1302_v6 = vsub.f32 %v669_v41, %v668_v43 }
  0xa1   : > { %23316 = vmatprep.subr.bf16.mxu0 %v23315_v36  ;;  %23320 = vmatprep.subr.bf16.mxu1 %v23319_v38  ;;  %v24883_v11 = vpop.permute.xlu1 %992  ;;  %v23339_v25 = vpack.c.bf16 %v657_v55, %v656_v48  ;;  %v1307_v55 = vsub.f32 %v699_v9, %v698_v56 }
  0xa2   : > { %22154 = vmatmul.mubr.msk.f32.vlgmr.msra.gmra.mrb[22].mxu0 %vm4415_vm1, %v24503_v5  ;;  %22161 = vmatmul.mubr.msk.f32.vlgmr.msra.gmra.mrb[22].mxu1 %vm4415_vm1, %v24503_v5  ;;  %v24889_v4 = vpop.permute.xlu0 %990 }
  0xa3   : > { %23318 = vmatpush3.bf16.msra.mxu0 %v23315_v36  ;;  %23322 = vmatpush3.bf16.msra.mxu1 %v23319_v38  ;;  %v23343_v36 = vpack.c.bf16 %v659_v62, %v658_v30  ;;  %v1306_v30 = vsub.f32 %v693_v35, %v692_v21  ;;  %v710_v62 = vld [vmem:[%s23964_s22 + $0x190] sm:$0xff] }
  0xa4   : > { %1164 = vrot.lane.b32.xlu1 %v27196_v29, %s23875_s26  ;;  %1162 = vrot.lane.b32.xlu0 %v27197_v57, %s23875_s26 }
  0xa5   : > { %22167 = vmatprep.mubr.msk.f32.mxu0 %vm4415_vm1, %v24498_v0  ;;  %22174 = vmatprep.mubr.msk.f32.mxu1 %vm4415_vm1, %v24498_v0 }
  0xa6   : > { %23324 = vmatprep.subr.bf16.mxu0 %v23323_v27  ;;  %23328 = vmatprep.subr.bf16.mxu1 %v23327_v28  ;;  %v24919_v44 = vpop.permute.xlu1 %1120 }
  0xa7   : > { %22168 = vmatmul.mubr.msk.f32.vlgmr.msra.gmra.mrb[24].mxu0 %vm4415_vm1, %v24503_v5  ;;  %22175 = vmatmul.mubr.msk.f32.vlgmr.msra.gmra.mrb[24].mxu1 %vm4415_vm1, %v24503_v5  ;;  %v24925_v49 = vpop.permute.xlu0 %1118  ;;  %v1211_v14 = vsel %vm1204_vm0, %v24883_v11, %v24919_v44  ;;  %v1274_v44 = vsub.f32 %v692_v21, %v693_v35  ;;  %v758_v21 = vld [vmem:[%s23964_s22 + $0x310] sm:$0xff]  ;;  %v759_v35 = vld [vmem:[%s23964_s22 + $0x318] sm:$0xff] }
  0xa8   : > { %23326 = vmatpush3.bf16.msra.mxu0 %v23323_v27  ;;  %23330 = vmatpush3.bf16.msra.mxu1 %v23327_v28  ;;  %v681_v27 = vld [vmem:[%s23964_s22 + $0xa8] sm:$0xff]  ;;  %v1210_v28 = vsel %vm1204_vm0, %v24889_v4, %v24925_v49 }
  0xa9   : > { %1040 = vrot.lane.b32.xlu1 %v27198_v63, %s23874_s23  ;;  %1038 = vrot.lane.b32.xlu0 %v27199_v50, %s23874_s23  ;;  %v711_v63 = vld [vmem:[%s23964_s22 + $0x198] sm:$0xff]  ;;  %v704_v50 = vld [vmem:[%s23964_s22 + $0x160] sm:$0xff] }
  0xaa   : > { %22181 = vmatprep.mubr.msk.f32.mxu0 %vm4415_vm1, %v24498_v0  ;;  %22188 = vmatprep.mubr.msk.f32.mxu1 %vm4415_vm1, %v24498_v0 }
  0xab   : > { %23332 = vmatprep.subr.bf16.mxu0 %v23331_v45  ;;  %23336 = vmatprep.subr.bf16.mxu1 %v23335_v32  ;;  %v24939_v33 = vpop.permute.xlu1 %996 }
  0xac   : > { %22182 = vmatmul.mubr.msk.f32.vlgmr.msra.gmra.mrb[26].mxu0 %vm4415_vm1, %v24503_v5  ;;  %22189 = vmatmul.mubr.msk.f32.vlgmr.msra.gmra.mrb[26].mxu1 %vm4415_vm1, %v24503_v5  ;;  %v24945_v38 = vpop.permute.xlu0 %994 }
  0xad   : > { %23334 = vmatpush3.bf16.msra.mxu0 %v23331_v45  ;;  %23338 = vmatpush3.bf16.msra.mxu1 %v23335_v32 }
  0xae   : > { %1168 = vrot.lane.b32.xlu1 %v27200_v39, %s23875_s26  ;;  %1166 = vrot.lane.b32.xlu0 %v27201_v37, %s23875_s26  ;;  %v1277_v37 = vsub.f32 %v710_v62, %v711_v63 }
  0xaf   : > { %22195 = vmatprep.mubr.msk.f32.mxu0 %vm4415_vm1, %v24498_v0  ;;  %22202 = vmatprep.mubr.msk.f32.mxu1 %vm4415_vm1, %v24498_v0 }
  0xb0   : > { %23340 = vmatprep.subr.bf16.mxu0 %v23339_v25  ;;  %23344 = vmatprep.subr.bf16.mxu1 %v23343_v36  ;;  %v24959_v54 = vpop.permute.xlu1 %1124 }
  0xb1   : > { %22196 = vmatmul.mubr.msk.f32.vlgmr.msra.gmra.mrb[28].mxu0 %vm4415_vm1, %v24503_v5  ;;  %22203 = vmatmul.mubr.msk.f32.vlgmr.msra.gmra.mrb[28].mxu1 %vm4415_vm1, %v24503_v5  ;;  %v24970_v8 = vpop.permute.xlu0 %1122  ;;  %v1213_v57 = vsel %vm1204_vm0, %v24939_v33, %v24959_v54  ;;  %v705_v33 = vld [vmem:[%s23964_s22 + $0x168] sm:$0xff] }
  0xb2   : > { %23342 = vmatpush3.bf16.msra.mxu0 %v23339_v25  ;;  %23346 = vmatpush3.bf16.msra.mxu1 %v23343_v36  ;;  %v1212_v29 = vsel %vm1204_vm0, %v24945_v38, %v24970_v8  ;;  %v1276_v54 = vsub.f32 %v704_v50, %v705_v33  ;;  %v1308_v7 = vsub.f32 %v705_v33, %v704_v50  ;;  %v722_v8 = vld [vmem:[%s23964_s22 + $0x1f0] sm:$0xff] }
  0xb3   : > { %22219 = vmatprep.subr.mxu0 %v1205_v16  ;;  %1170 = vrot.lane.b32.xlu1 %v27202_v22, %s23875_s26  ;;  %v1317_v50 = vsub.f32 %v759_v35, %v758_v21 }
  0xb4   : > { %1042 = vrot.lane.b32.xlu0 %v27203_v60, %s23874_s23  ;;  %22224 = vmatprep.subr.mxu1 %v1206_v1 }
  0xb5   : > { %22209 = vmatprep.mubr.msk.f32.mxu0 %vm4415_vm1, %v24498_v0  ;;  %22216 = vmatprep.mubr.msk.f32.mxu1 %vm4415_vm1, %v24498_v0  ;;  %v24989_v34 = vpop.permute.xlu1 %1000  ;;  %v1207_v0 = vsel %vm1204_vm0, %v24743_v52, %v24778_v23  ;;  %v1208_v52 = vsel %vm1204_vm0, %v24817_v10, %v24853_v53  ;;  %v1209_v23 = vsel %vm1204_vm0, %v24811_v47, %v24847_v26  ;;  %v687_v47 = vld [vmem:[%s23964_s22 + $0xd8] sm:$0xff]  ;;  %v680_v26 = vld [vmem:[%s23964_s22 + $0xa0] sm:$0xff] }
  0xb6   : > { %22210 = vmatmul.mubr.msk.f32.vlgmr.msra.gmra.mrb[30].mxu0 %vm4415_vm1, %v24503_v5  ;;  %22217 = vmatmul.mubr.msk.f32.vlgmr.msra.gmra.mrb[30].mxu1 %vm4415_vm1, %v24503_v5  ;;  %v25002_v58 = vpop.permute.xlu0 %998  ;;  %v1271_v5 = vsub.f32 %v674_v51, %v675_v24  ;;  %v1303_v53 = vsub.f32 %v675_v24, %v674_v51  ;;  %v1273_v17 = vsub.f32 %v686_v13, %v687_v47  ;;  %v717_v51 = vld [vmem:[%s23964_s22 + $0x1c8] sm:$0xff] }
  0xb7   : > { %22220 = vmatpush3.msra.mxu0 %v1205_v16  ;;  %22225 = vmatpush3.msra.mxu1 %v1206_v1  ;;  %v1272_v20 = vsub.f32 %v680_v26, %v681_v27  ;;  %v1305_v11 = vsub.f32 %v687_v47, %v686_v13  ;;  %v1304_v31 = vsub.f32 %v681_v27, %v680_v26 }
  0xb8   : > { %22229 = vmatprep.subr.mxu0 %v1207_v0  ;;  %1493 = vrot.lane.b32.xlu1 %v1301_v12, %s23875_s26  ;;  %v1309_v1 = vsub.f32 %v711_v63, %v710_v62  ;;  %v723_v12 = vld [vmem:[%s23964_s22 + $0x1f8] sm:$0xff] }
  0xb9   : > { %1365 = vrot.lane.b32.xlu0 %v1269_v61, %s23874_s23  ;;  %22221 = vmatprep.mubr.msk.f32.mxu0 %vm1204_vm0, %v24998_v42  ;;  %v716_v61 = vld [vmem:[%s23964_s22 + $0x1c0] sm:$0xff]  ;;  %v1279_v24 = vsub.f32 %v722_v8, %v723_v12 }
  0xba   : > { %22226 = vmatprep.mubr.msk.f32.mxu1 %vm1204_vm0, %v24998_v42  ;;  %22222 = vmatmul.mubr.msk.f32.vlgmr.msra.gmra.mrb[0].mxu0 %vm1204_vm0, %v25010_v59  ;;  %v25026_v19 = vpop.permute.xlu1 %1128 }
  0xbb   : > { %22227 = vmatmul.mubr.msk.f32.vlgmr.msra.gmra.mrb[0].mxu1 %vm1204_vm0, %v25010_v59  ;;  %22230 = vmatpush3.msra.mxu0 %v1207_v0  ;;  %v1127_v10 = vpop.permute.xlu0 %1126  ;;  %v1215_v49 = vsel %vm1204_vm0, %v24989_v34, %v25026_v19  ;;  %v1278_v34 = vsub.f32 %v716_v61, %v717_v51  ;;  %v728_v19 = vld [vmem:[%s23964_s22 + $0x220] sm:$0xff] }
  0xbc   : > { %1369 = vrot.lane.b32.xlu1 %v1271_v5, %s23874_s23  ;;  %22234 = vmatprep.subr.mxu1 %v1208_v52  ;;  %v1214_v48 = vsel %vm1204_vm0, %v25002_v58, %v1127_v10  ;;  %v1311_v5 = vsub.f32 %v723_v12, %v722_v8  ;;  %v729_v10 = vld [vmem:[%s23964_s22 + $0x228] sm:$0xff] }
  0xbd   : > { %1367 = vrot.lane.b32.xlu0 %v1270_v18, %s23874_s23  ;;  %22239 = vmatprep.subr.mxu0 %v1209_v23  ;;  %v1310_v18 = vsub.f32 %v717_v51, %v716_v61  ;;  %v1280_v47 = vsub.f32 %v728_v19, %v729_v10  ;;  %v783_v51 = vld [vmem:[%s23964_s22 + $0x3d8] sm:$0xff] }
  0xbe   : > { %22231 = vmatprep.mubr.msk.f32.mxu0 %vm1204_vm0, %v24998_v42  ;;  %22235 = vmatpush3.msra.mxu1 %v1208_v52  ;;  %v734_v52 = vld [vmem:[%s23964_s22 + $0x250] sm:$0xff] }
  0xbf   : > { %22236 = vmatprep.mubr.msk.f32.mxu1 %vm1204_vm0, %v24998_v42  ;;  %22232 = vmatmul.mubr.msk.f32.vlgmr.msra.gmra.mrb[2].mxu0 %vm1204_vm0, %v25010_v59  ;;  %v25045_v3 = vpop.permute.xlu1 %1004 }
  0xc0   : > { %22237 = vmatmul.mubr.msk.f32.vlgmr.msra.gmra.mrb[2].mxu1 %vm1204_vm0, %v25010_v59  ;;  %22240 = vmatpush3.msra.mxu0 %v1209_v23  ;;  %v1003_v15 = vpop.permute.xlu0 %1002  ;;  %v735_v23 = vld [vmem:[%s23964_s22 + $0x258] sm:$0xff] }
  0xc1   : > { %1497 = vrot.lane.b32.xlu1 %v1303_v53, %s23875_s26  ;;  %1495 = vrot.lane.b32.xlu0 %v1302_v6, %s23875_s26  ;;  %v1281_v13 = vsub.f32 %v734_v52, %v735_v23  ;;  %v1313_v26 = vsub.f32 %v735_v23, %v734_v52 }
  0xc2   : > { %22241 = vmatprep.mubr.msk.f32.mxu0 %vm1204_vm0, %v24998_v42  ;;  %22244 = vmatprep.subr.mxu1 %v1210_v28 }
  0xc3   : > { %22242 = vmatmul.mubr.msk.f32.vlgmr.msra.gmra.mrb[4].mxu0 %vm1204_vm0, %v25010_v59  ;;  %22249 = vmatprep.subr.mxu0 %v1211_v14 }
  0xc4   : > { %22245 = vmatpush3.msra.mxu1 %v1210_v28  ;;  %22246 = vmatprep.mubr.msk.f32.mxu1 %vm1204_vm0, %v24998_v42  ;;  %v1133_v4 = vpop.permute.xlu1 %1132 }
  0xc5   : > { %1373 = vrot.lane.b32.xlu1 %v1273_v17, %s23874_s23  ;;  %1371 = vrot.lane.b32.xlu0 %v1272_v20, %s23874_s23  ;;  %v1131_v46 = vpop.permute.xlu0 %1130  ;;  %v1217_v39 = vsel %vm1204_vm0, %v25045_v3, %v1133_v4  ;;  %v1312_v3 = vsub.f32 %v729_v10, %v728_v19  ;;  %v747_v20 = vld [vmem:[%s23964_s22 + $0x2b8] sm:$0xff]  ;;  %v741_v4 = vld [vmem:[%s23964_s22 + $0x288] sm:$0xff] }
  0xc6   : > { %22250 = vmatpush3.msra.mxu0 %v1211_v14  ;;  %22251 = vmatprep.mubr.msk.f32.mxu0 %vm1204_vm0, %v24998_v42  ;;  %v1216_v38 = vsel %vm1204_vm0, %v1003_v15, %v1131_v46  ;;  %v746_v14 = vld [vmem:[%s23964_s22 + $0x2b0] sm:$0xff]  ;;  %v795_v10 = vld [vmem:[%s23964_s22 + $0x438] sm:$0xff] }
  0xc7   : > { %22247 = vmatmul.mubr.msk.f32.vlgmr.msra.gmra.mrb[4].mxu1 %vm1204_vm0, %v25010_v59  ;;  %22252 = vmatmul.mubr.msk.f32.vlgmr.msra.gmra.mrb[6].mxu0 %vm1204_vm0, %v25010_v59  ;;  %v1315_v46 = vsub.f32 %v747_v20, %v746_v14  ;;  %v794_v19 = vld [vmem:[%s23964_s22 + $0x430] sm:$0xff] }
  0xc8   : > { %22254 = vmatprep.subr.mxu1 %v1212_v29  ;;  %22259 = vmatprep.subr.mxu0 %v1213_v57 }
  0xc9   : > { %1501 = vrot.lane.b32.xlu1 %v1305_v11, %s23875_s26  ;;  %1499 = vrot.lane.b32.xlu0 %v1304_v31, %s23875_s26  ;;  %v1009_v45 = vpop.permute.xlu1 %1008  ;;  %v740_v11 = vld [vmem:[%s23964_s22 + $0x280] sm:$0xff]  ;;  %v1283_v31 = vsub.f32 %v746_v14, %v747_v20 }
  0xca   : > { %22255 = vmatpush3.msra.mxu1 %v1212_v29  ;;  %22256 = vmatprep.mubr.msk.f32.mxu1 %vm1204_vm0, %v24998_v42  ;;  %v1007_v32 = vpop.permute.xlu0 %1006  ;;  %v1282_v56 = vsub.f32 %v740_v11, %v741_v4  ;;  %v1314_v9 = vsub.f32 %v741_v4, %v740_v11  ;;  %v807_v4 = vld [vmem:[%s23964_s22 + $0x498] sm:$0xff] }
  0xcb   : > { %22260 = vmatpush3.msra.mxu0 %v1213_v57  ;;  %22261 = vmatprep.mubr.msk.f32.mxu0 %vm1204_vm0, %v24998_v42 }
  0xcc   : > { %22257 = vmatmul.mubr.msk.f32.vlgmr.msra.gmra.mrb[6].mxu1 %vm1204_vm0, %v25010_v59  ;;  %22262 = vmatmul.mubr.msk.f32.vlgmr.msra.gmra.mrb[8].mxu0 %vm1204_vm0, %v25010_v59 }
  0xcd   : > { %1377 = vrot.lane.b32.xlu1 %v1275_v40, %s23874_s23  ;;  %1375 = vrot.lane.b32.xlu0 %v1274_v44, %s23874_s23  ;;  %v752_v40 = vld [vmem:[%s23964_s22 + $0x2e0] sm:$0xff]  ;;  %v753_v44 = vld [vmem:[%s23964_s22 + $0x2e8] sm:$0xff] }
  0xce   : > { %22264 = vmatprep.subr.mxu1 %v1214_v48  ;;  %22269 = vmatprep.subr.mxu0 %v1215_v49  ;;  %v1137_v25 = vpop.permute.xlu1 %1136  ;;  %v1316_v33 = vsub.f32 %v753_v44, %v752_v40 }
  0xcf   : > { %22265 = vmatpush3.msra.mxu1 %v1214_v48  ;;  %22266 = vmatprep.mubr.msk.f32.mxu1 %vm1204_vm0, %v24998_v42  ;;  %v1135_v36 = vpop.permute.xlu0 %1134  ;;  %v1219_v22 = vsel %vm1204_vm0, %v1009_v45, %v1137_v25  ;;  %v770_v25 = vld [vmem:[%s23964_s22 + $0x370] sm:$0xff] }
  0xd0   : > { %22270 = vmatpush3.msra.mxu0 %v1215_v49  ;;  %22271 = vmatprep.mubr.msk.f32.mxu0 %vm1204_vm0, %v24998_v42  ;;  %v1218_v16 = vsel %vm1204_vm0, %v1007_v32, %v1135_v36  ;;  %v771_v36 = vld [vmem:[%s23964_s22 + $0x378] sm:$0xff] }
  0xd1   : > { %1505 = vrot.lane.b32.xlu1 %v1307_v55, %s23875_s26  ;;  %1503 = vrot.lane.b32.xlu0 %v1306_v30, %s23875_s26  ;;  %v1285_v55 = vsub.f32 %v758_v21, %v759_v35  ;;  %v1284_v30 = vsub.f32 %v752_v40, %v753_v44  ;;  %v818_v40 = vld [vmem:[%s23964_s22 + $0x4f0] sm:$0xff] }
  0xd2   : > { %22267 = vmatmul.mubr.msk.f32.vlgmr.msra.gmra.mrb[8].mxu1 %vm1204_vm0, %v25010_v59  ;;  %22272 = vmatmul.mubr.msk.f32.vlgmr.msra.gmra.mrb[10].mxu0 %vm1204_vm0, %v25010_v59 }
  0xd3   : > { %22274 = vmatprep.subr.mxu1 %v1216_v38  ;;  %22279 = vmatprep.subr.mxu0 %v1217_v39 }
  0xd4   : > { %22275 = vmatpush3.msra.mxu1 %v1216_v38  ;;  %22276 = vmatprep.mubr.msk.f32.mxu1 %vm1204_vm0, %v24998_v42  ;;  %v1013_v2 = vpop.permute.xlu1 %1012  ;;  %v764_v38 = vld [vmem:[%s23964_s22 + $0x340] sm:$0xff] }
  0xd5   : > { %1381 = vrot.lane.b32.xlu1 %v1277_v37, %s23874_s23  ;;  %1379 = vrot.lane.b32.xlu0 %v1276_v54, %s23874_s23  ;;  %v1011_v60 = vpop.permute.xlu0 %1010  ;;  %v1287_v37 = vsub.f32 %v770_v25, %v771_v36 }
  0xd6   : > { %22280 = vmatpush3.msra.mxu0 %v1217_v39  ;;  %22281 = vmatprep.mubr.msk.f32.mxu0 %vm1204_vm0, %v24998_v42  ;;  %v765_v39 = vld [vmem:[%s23964_s22 + $0x348] sm:$0xff] }
  0xd7   : > { %22277 = vmatmul.mubr.msk.f32.vlgmr.msra.gmra.mrb[10].mxu1 %vm1204_vm0, %v25010_v59  ;;  %22282 = vmatmul.mubr.msk.f32.vlgmr.msra.gmra.mrb[12].mxu0 %vm1204_vm0, %v25010_v59 }
  0xd8   : > { %22284 = vmatprep.subr.mxu1 %v1218_v16  ;;  %22289 = vmatprep.subr.mxu0 %v1219_v22 }
  0xd9   : > { %1509 = vrot.lane.b32.xlu1 %v1309_v1, %s23875_s26  ;;  %1507 = vrot.lane.b32.xlu0 %v1308_v7, %s23875_s26 }
  0xda   : > { %22285 = vmatpush3.msra.mxu1 %v1218_v16  ;;  %22286 = vmatprep.mubr.msk.f32.mxu1 %vm1204_vm0, %v24998_v42  ;;  %v1141_v43 = vpop.permute.xlu1 %1140  ;;  %v1139_v41 = vpop.permute.xlu0 %1138  ;;  %v1319_v16 = vsub.f32 %v771_v36, %v770_v25 }
  0xdb   : > { %22290 = vmatpush3.msra.mxu0 %v1219_v22  ;;  %22291 = vmatprep.mubr.msk.f32.mxu0 %vm1204_vm0, %v24998_v42  ;;  %v1220_v58 = vsel %vm1204_vm0, %v1011_v60, %v1139_v41  ;;  %v1221_v0 = vsel %vm1204_vm0, %v1013_v2, %v1141_v43  ;;  %v1286_v2 = vsub.f32 %v764_v38, %v765_v39  ;;  %v782_v60 = vld [vmem:[%s23964_s22 + $0x3d0] sm:$0xff] }
  0xdc   : > { %22287 = vmatmul.mubr.msk.f32.vlgmr.msra.gmra.mrb[12].mxu1 %vm1204_vm0, %v25010_v59  ;;  %22292 = vmatmul.mubr.msk.f32.vlgmr.msra.gmra.mrb[14].mxu0 %vm1204_vm0, %v25010_v59  ;;  %v1318_v22 = vsub.f32 %v765_v39, %v764_v38  ;;  %v1289_v43 = vsub.f32 %v782_v60, %v783_v51  ;;  %v1321_v52 = vsub.f32 %v783_v51, %v782_v60  ;;  %v830_v38 = vld [vmem:[%s23964_s22 + $0x550] sm:$0xff]  ;;  %v831_v39 = vld [vmem:[%s23964_s22 + $0x558] sm:$0xff]  ;;  %v25289_v60 = vld [vmem:[%s27188_s5] sm:$0xff] }
  0xdd   : > { %1385 = vrot.lane.b32.xlu1 %v1279_v24, %s23874_s23  ;;  %1383 = vrot.lane.b32.xlu0 %v1278_v34, %s23874_s23  ;;  %v776_v24 = vld [vmem:[%s23964_s22 + $0x3a0] sm:$0xff]  ;;  %v777_v34 = vld [vmem:[%s23964_s22 + $0x3a8] sm:$0xff] }
  0xde   : > { %22294 = vmatprep.subr.mxu1 %v1220_v58  ;;  %22299 = vmatprep.subr.mxu0 %v1221_v0  ;;  %v1288_v41 = vsub.f32 %v776_v24, %v777_v34  ;;  %v1320_v23 = vsub.f32 %v777_v34, %v776_v24  ;;  %v842_v24 = vld [vmem:[%s23964_s22 + $0x5b0] sm:$0xff] }
  0xdf   : > { %22295 = vmatpush3.msra.mxu1 %v1220_v58  ;;  %22296 = vmatprep.mubr.msk.f32.mxu1 %vm1204_vm0, %v24998_v42  ;;  %v1017_v53 = vpop.permute.xlu1 %1016  ;;  %v1015_v6 = vpop.permute.xlu0 %1014 }
  0xe0   : > { %22300 = vmatpush3.msra.mxu0 %v1221_v0  ;;  %22301 = vmatprep.mubr.msk.f32.mxu0 %vm1204_vm0, %v24998_v42 }
  0xe1   : > { %1513 = vrot.lane.b32.xlu1 %v1311_v5, %s23875_s26  ;;  %1511 = vrot.lane.b32.xlu0 %v1310_v18, %s23875_s26 }
  0xe2   : > { %22297 = vmatmul.mubr.msk.f32.vlgmr.msra.gmra.mrb[14].mxu1 %vm1204_vm0, %v25010_v59  ;;  %22302 = vmatmul.mubr.msk.f32.vlgmr.msra.gmra.mrb[16].mxu0 %vm1204_vm0, %v25010_v59 }
  0xe3   : > { %22306 = vmatprep.mubr.msk.f32.mxu1 %vm1204_vm0, %v24998_v42  ;;  %22311 = vmatprep.mubr.msk.f32.mxu0 %vm1204_vm0, %v24998_v42 }
  0xe4   : > { %v1145_v27 = vpop.permute.xlu1 %1144  ;;  %v1143_v28 = vpop.permute.xlu0 %1142 }
  0xe5   : > { %1389 = vrot.lane.b32.xlu1 %v1281_v13, %s23874_s23  ;;  %1387 = vrot.lane.b32.xlu0 %v1280_v47, %s23874_s23  ;;  %v1222_v15 = vsel %vm1204_vm0, %v1015_v6, %v1143_v28  ;;  %v1223_v17 = vsel %vm1204_vm0, %v1017_v53, %v1145_v27  ;;  %v788_v53 = vld [vmem:[%s23964_s22 + $0x400] sm:$0xff]  ;;  %v789_v6 = vld [vmem:[%s23964_s22 + $0x408] sm:$0xff]  ;;  %v1323_v28 = vsub.f32 %v795_v10, %v794_v19 }
  0xe6   : > { %22304 = vmatprep.subr.mxu1 %v1222_v15  ;;  %22309 = vmatprep.subr.mxu0 %v1223_v17  ;;  %v1290_v27 = vsub.f32 %v788_v53, %v789_v6 }
  0xe7   : > { %22305 = vmatpush3.msra.mxu1 %v1222_v15  ;;  %22310 = vmatpush3.msra.mxu0 %v1223_v17  ;;  %v1322_v15 = vsub.f32 %v789_v6, %v788_v53  ;;  %v806_v17 = vld [vmem:[%s23964_s22 + $0x490] sm:$0xff]  ;;  %v25318_v53 = vld [vmem:[%s27188_s5 + $0x8] sm:$0xff]  ;;  %v848_v6 = vld [vmem:[%s23964_s22 + $0x5e0] sm:$0xff] }
  0xe8   : > { %22307 = vmatmul.mubr.msk.f32.vlgmr.msra.gmra.mrb[16].mxu1 %vm1204_vm0, %v25010_v59  ;;  %22312 = vmatmul.mubr.msk.f32.vlgmr.msra.gmra.mrb[18].mxu0 %vm1204_vm0, %v25010_v59  ;;  %v1325_v21 = vsub.f32 %v807_v4, %v806_v17 }
  0xe9   : > { %1517 = vrot.lane.b32.xlu1 %v1313_v26, %s23875_s26  ;;  %1515 = vrot.lane.b32.xlu0 %v1312_v3, %s23875_s26  ;;  %v1021_v29 = vpop.permute.xlu1 %1020  ;;  %v1019_v57 = vpop.permute.xlu0 %1018  ;;  %v1291_v26 = vsub.f32 %v794_v19, %v795_v10 }
  0xea   : > { %22316 = vmatprep.mubr.msk.f32.mxu1 %vm1204_vm0, %v24998_v42  ;;  %22321 = vmatprep.mubr.msk.f32.mxu0 %vm1204_vm0, %v24998_v42 }
  0xed   : > { %1393 = vrot.lane.b32.xlu1 %v1283_v31, %s23874_s23  ;;  %1391 = vrot.lane.b32.xlu0 %v1282_v56, %s23874_s23  ;;  %v800_v31 = vld [vmem:[%s23964_s22 + $0x460] sm:$0xff]  ;;  %v801_v56 = vld [vmem:[%s23964_s22 + $0x468] sm:$0xff] }
  0xee   : > { %v1149_v45 = vpop.permute.xlu1 %1148  ;;  %v1147_v32 = vpop.permute.xlu0 %1146  ;;  %v1324_v35 = vsub.f32 %v801_v56, %v800_v31 }
  0xef   : > { %v1224_v48 = vsel %vm1204_vm0, %v1019_v57, %v1147_v32  ;;  %v1225_v49 = vsel %vm1204_vm0, %v1021_v29, %v1149_v45  ;;  %v1293_v29 = vsub.f32 %v806_v17, %v807_v4  ;;  %v1292_v57 = vsub.f32 %v800_v31, %v801_v56  ;;  %v819_v32 = vld [vmem:[%s23964_s22 + $0x4f8] sm:$0xff] }
  0xf0   : > { %22314 = vmatprep.subr.mxu1 %v1224_v48  ;;  %22319 = vmatprep.subr.mxu0 %v1225_v49  ;;  %v1327_v25 = vsub.f32 %v819_v32, %v818_v40 }
  0xf1   : > { %1521 = vrot.lane.b32.xlu1 %v1315_v46, %s23875_s26  ;;  %1519 = vrot.lane.b32.xlu0 %v1314_v9, %s23875_s26 }
  0xf2   : > { %22315 = vmatpush3.msra.mxu1 %v1224_v48  ;;  %22320 = vmatpush3.msra.mxu0 %v1225_v49  ;;  %v812_v48 = vld [vmem:[%s23964_s22 + $0x4c0] sm:$0xff]  ;;  %v813_v49 = vld [vmem:[%s23964_s22 + $0x4c8] sm:$0xff] }
  0xf3   : > { %v1025_v62 = vpop.permute.xlu1 %1024  ;;  %v1023_v63 = vpop.permute.xlu0 %1022  ;;  %22317 = vmatmul.mubr.msk.f32.vlgmr.msra.gmra.mrb[18].mxu1 %vm1204_vm0, %v25010_v59  ;;  %22322 = vmatmul.mubr.msk.f32.vlgmr.msra.gmra.mrb[20].mxu0 %vm1204_vm0, %v25010_v59  ;;  %v1326_v36 = vsub.f32 %v813_v49, %v812_v48 }
  0xf4   : > { %22326 = vmatprep.mubr.msk.f32.mxu1 %vm1204_vm0, %v24998_v42  ;;  %22331 = vmatprep.mubr.msk.f32.mxu0 %vm1204_vm0, %v24998_v42 }
  0xf5   : > { %1397 = vrot.lane.b32.xlu1 %v1285_v55, %s23874_s23  ;;  %1395 = vrot.lane.b32.xlu0 %v1284_v30, %s23874_s23 }
  0xf8   : > { %v1153_v54 = vpop.permute.xlu1 %1152  ;;  %v1151_v1 = vpop.permute.xlu0 %1150 }
  0xf9   : > { %1525 = vrot.lane.b32.xlu1 %v1317_v50, %s23875_s26  ;;  %1523 = vrot.lane.b32.xlu0 %v1316_v33, %s23875_s26  ;;  %v1226_v7 = vsel %vm1204_vm0, %v1023_v63, %v1151_v1  ;;  %v1227_v8 = vsel %vm1204_vm0, %v1025_v62, %v1153_v54  ;;  %v1295_v62 = vsub.f32 %v818_v40, %v819_v32  ;;  %v825_v54 = vld [vmem:[%s23964_s22 + $0x528] sm:$0xff] }
  0xfa   : > { %22324 = vmatprep.subr.mxu1 %v1226_v7  ;;  %22329 = vmatprep.subr.mxu0 %v1227_v8  ;;  %v1294_v63 = vsub.f32 %v812_v48, %v813_v49  ;;  %v673_v48 = vld [vmem:[%s23964_s22 + $0x68] sm:$0xff]  ;;  %v676_v49 = vld [vmem:[%s23964_s22 + $0x80] sm:$0xff] }
  0xfb   : > { %22325 = vmatpush3.msra.mxu1 %v1226_v7  ;;  %22330 = vmatpush3.msra.mxu0 %v1227_v8  ;;  %v1297_v7 = vsub.f32 %v830_v38, %v831_v39 }
  0xfc   : > { %22327 = vmatmul.mubr.msk.f32.vlgmr.msra.gmra.mrb[20].mxu1 %vm1204_vm0, %v25010_v59  ;;  %22332 = vmatmul.mubr.msk.f32.vlgmr.msra.gmra.mrb[22].mxu0 %vm1204_vm0, %v25010_v59 }
  0xfd   : > { %1401 = vrot.lane.b32.xlu1 %v1287_v37, %s23874_s23  ;;  %1399 = vrot.lane.b32.xlu0 %v1286_v2, %s23874_s23  ;;  %v1029_v12 = vpop.permute.xlu1 %1028  ;;  %v1027_v61 = vpop.permute.xlu0 %1026  ;;  %v824_v37 = vld [vmem:[%s23964_s22 + $0x520] sm:$0xff] }
  0xfe   : > { %22336 = vmatprep.mubr.msk.f32.mxu1 %vm1204_vm0, %v24998_v42  ;;  %22341 = vmatprep.mubr.msk.f32.mxu0 %vm1204_vm0, %v24998_v42  ;;  %v1296_v8 = vsub.f32 %v824_v37, %v825_v54  ;;  %v1328_v51 = vsub.f32 %v825_v54, %v824_v37 }
 0x101   : > { %1529 = vrot.lane.b32.xlu1 %v1319_v16, %s23875_s26  ;;  %1527 = vrot.lane.b32.xlu0 %v1318_v22, %s23875_s26 }
 0x102   : > { %v1157_v58 = vpop.permute.xlu1 %1156  ;;  %v1155_v0 = vpop.permute.xlu0 %1154 }
 0x103   : > { %v1228_v5 = vsel %vm1204_vm0, %v1027_v61, %v1155_v0  ;;  %v1229_v18 = vsel %vm1204_vm0, %v1029_v12, %v1157_v58  ;;  %v1329_v61 = vsub.f32 %v831_v39, %v830_v38  ;;  %v837_v58 = vld [vmem:[%s23964_s22 + $0x588] sm:$0xff]  ;;  %v679_v38 = vld [vmem:[%s23964_s22 + $0x98] sm:$0xff]  ;;  %v682_v39 = vld [vmem:[%s23964_s22 + $0xb0] sm:$0xff] }
 0x104   : > { %22334 = vmatprep.subr.mxu1 %v1228_v5  ;;  %22339 = vmatprep.subr.mxu0 %v1229_v18 }
 0x105   : > { %1405 = vrot.lane.b32.xlu1 %v1289_v43, %s23874_s23  ;;  %1403 = vrot.lane.b32.xlu0 %v1288_v41, %s23874_s23  ;;  %v843_v43 = vld [vmem:[%s23964_s22 + $0x5b8] sm:$0xff]  ;;  %v836_v41 = vld [vmem:[%s23964_s22 + $0x580] sm:$0xff] }
 0x106   : > { %22335 = vmatpush3.msra.mxu1 %v1228_v5  ;;  %22340 = vmatpush3.msra.mxu0 %v1229_v18  ;;  %v1299_v5 = vsub.f32 %v842_v24, %v843_v43  ;;  %v1298_v18 = vsub.f32 %v836_v41, %v837_v58  ;;  %v1331_v19 = vsub.f32 %v843_v43, %v842_v24 }
 0x107   : > { %v1033_v13 = vpop.permute.xlu1 %1032  ;;  %v1031_v47 = vpop.permute.xlu0 %1030  ;;  %22337 = vmatmul.mubr.msk.f32.vlgmr.msra.gmra.mrb[22].mxu1 %vm1204_vm0, %v25010_v59  ;;  %22342 = vmatmul.mubr.msk.f32.vlgmr.msra.gmra.mrb[24].mxu0 %vm1204_vm0, %v25010_v59  ;;  %v1330_v10 = vsub.f32 %v837_v58, %v836_v41 }
 0x108   : > { %22346 = vmatprep.mubr.msk.f32.mxu1 %vm1204_vm0, %v24998_v42  ;;  %22351 = vmatprep.mubr.msk.f32.mxu0 %vm1204_vm0, %v24998_v42 }
 0x109   : > { %1533 = vrot.lane.b32.xlu1 %v1321_v52, %s23875_s26  ;;  %1531 = vrot.lane.b32.xlu0 %v1320_v23, %s23875_s26 }
 0x10c   : > { %v1161_v3 = vpop.permute.xlu1 %1160  ;;  %v1159_v14 = vpop.permute.xlu0 %1158 }
 0x10d   : > { %1409 = vrot.lane.b32.xlu1 %v1291_v26, %s23874_s23  ;;  %1407 = vrot.lane.b32.xlu0 %v1290_v27, %s23874_s23  ;;  %v1230_v20 = vsel %vm1204_vm0, %v1031_v47, %v1159_v14  ;;  %v1231_v11 = vsel %vm1204_vm0, %v1033_v13, %v1161_v3  ;;  %v849_v13 = vld [vmem:[%s23964_s22 + $0x5e8] sm:$0xff] }
 0x10e   : > { %22344 = vmatprep.subr.mxu1 %v1230_v20  ;;  %22349 = vmatprep.subr.mxu0 %v1231_v11  ;;  %v1332_v26 = vsub.f32 %v849_v13, %v848_v6  ;;  %v1300_v27 = vsub.f32 %v848_v6, %v849_v13  ;;  %v661_v14 = vld [vmem:[%s23964_s22 + $0x8] sm:$0xff] }
 0x10f   : > { %22345 = vmatpush3.msra.mxu1 %v1230_v20  ;;  %22350 = vmatpush3.msra.mxu0 %v1231_v11 }
 0x110   : > { %22347 = vmatmul.mubr.msk.f32.vlgmr.msra.gmra.mrb[24].mxu1 %vm1204_vm0, %v25010_v59  ;;  %22352 = vmatmul.mubr.msk.f32.vlgmr.msra.gmra.mrb[26].mxu0 %vm1204_vm0, %v25010_v59 }
 0x111   : > { %1537 = vrot.lane.b32.xlu1 %v1323_v28, %s23875_s26  ;;  %1535 = vrot.lane.b32.xlu0 %v1322_v15, %s23875_s26  ;;  %v1037_v46 = vpop.permute.xlu1 %1036  ;;  %v1035_v9 = vpop.permute.xlu0 %1034  ;;  %v664_v15 = vld [vmem:[%s23964_s22 + $0x20] sm:$0xff] }
 0x112   : > { %22356 = vmatprep.mubr.msk.f32.mxu1 %vm1204_vm0, %v24998_v42  ;;  %22361 = vmatprep.mubr.msk.f32.mxu0 %vm1204_vm0, %v24998_v42  ;;  %v1685_v11 = vsub.f32 %v664_v15, %v661_v14  ;;  %v1653_v4 = vsub.f32 %v661_v14, %v664_v15 }
 0x115   : > { %1413 = vrot.lane.b32.xlu1 %v1293_v29, %s23874_s23  ;;  %1411 = vrot.lane.b32.xlu0 %v1292_v57, %s23874_s23  ;;  %v667_v29 = vld [vmem:[%s23964_s22 + $0x38] sm:$0xff]  ;;  %v670_v57 = vld [vmem:[%s23964_s22 + $0x50] sm:$0xff] }
 0x116   : > { %v1165_v44 = vpop.permute.xlu1 %1164  ;;  %v1163_v45 = vpop.permute.xlu0 %1162  ;;  %v1686_v40 = vsub.f32 %v670_v57, %v667_v29 }
 0x117   : > { %v1232_v55 = vsel %vm1204_vm0, %v1035_v9, %v1163_v45  ;;  %v1233_v30 = vsel %vm1204_vm0, %v1037_v46, %v1165_v44  ;;  %v1654_v44 = vsub.f32 %v667_v29, %v670_v57 }
 0x118   : > { %22354 = vmatprep.subr.mxu1 %v1232_v55  ;;  %22359 = vmatprep.subr.mxu0 %v1233_v30 }
 0x119   : > { %1541 = vrot.lane.b32.xlu1 %v1325_v21, %s23875_s26  ;;  %1539 = vrot.lane.b32.xlu0 %v1324_v35, %s23875_s26 }
 0x11a   : > { %22355 = vmatpush3.msra.mxu1 %v1232_v55  ;;  %22360 = vmatpush3.msra.mxu0 %v1233_v30 }
 0x11b   : > { %v1041_v50 = vpop.permute.xlu1 %1040  ;;  %v1039_v33 = vpop.permute.xlu0 %1038  ;;  %22357 = vmatmul.mubr.msk.f32.vlgmr.msra.gmra.mrb[26].mxu1 %vm1204_vm0, %v25010_v59  ;;  %22362 = vmatmul.mubr.msk.f32.vlgmr.msra.gmra.mrb[28].mxu0 %vm1204_vm0, %v25010_v59 }
 0x11c   : > { %22366 = vmatprep.mubr.msk.f32.mxu1 %vm1204_vm0, %v24998_v42  ;;  %22371 = vmatprep.mubr.msk.f32.mxu0 %vm1204_vm0, %v24998_v42 }
 0x11d   : > { %1417 = vrot.lane.b32.xlu1 %v1295_v62, %s23874_s23  ;;  %1415 = vrot.lane.b32.xlu0 %v1294_v63, %s23874_s23 }
 0x120   : > { %v1169_v1 = vpop.permute.xlu1 %1168  ;;  %v1167_v2 = vpop.permute.xlu0 %1166 }
 0x121   : > { %1545 = vrot.lane.b32.xlu1 %v1327_v25, %s23875_s26  ;;  %1543 = vrot.lane.b32.xlu0 %v1326_v36, %s23875_s26  ;;  %v1234_v16 = vsel %vm1204_vm0, %v1039_v33, %v1167_v2  ;;  %v1235_v22 = vsel %vm1204_vm0, %v1041_v50, %v1169_v1  ;;  %v1687_v50 = vsub.f32 %v676_v49, %v673_v48 }
 0x122   : > { %22364 = vmatprep.subr.mxu1 %v1234_v16  ;;  %22369 = vmatprep.subr.mxu0 %v1235_v22  ;;  %v1655_v33 = vsub.f32 %v673_v48, %v676_v49 }
 0x123   : > { %22365 = vmatpush3.msra.mxu1 %v1234_v16  ;;  %22370 = vmatpush3.msra.mxu0 %v1235_v22 }
 0x124   : > { %22367 = vmatmul.mubr.msk.f32.vlgmr.msra.gmra.mrb[28].mxu1 %vm1204_vm0, %v25010_v59  ;;  %22372 = vmatmul.mubr.msk.f32.vlgmr.msra.gmra.mrb[30].mxu0 %vm1204_vm0, %v25010_v59 }
 0x125   : > { %1421 = vrot.lane.b32.xlu1 %v1297_v7, %s23874_s23  ;;  %1419 = vrot.lane.b32.xlu0 %v1296_v8, %s23874_s23  ;;  %v1171_v12 = vpop.permute.xlu1 %1170  ;;  %v1688_v7 = vsub.f32 %v682_v39, %v679_v38  ;;  %v1656_v8 = vsub.f32 %v679_v38, %v682_v39 }
 0x126   : > { %v1043_v34 = vpop.permute.xlu0 %1042  ;;  %22376 = vmatprep.mubr.msk.f32.mxu1 %vm1204_vm0, %v24998_v42  ;;  %22381 = vmatprep.mubr.msk.f32.mxu0 %vm1204_vm0, %v25289_v60 }
 0x127   : > { %v1236_v0 = vsel %vm1204_vm0, %v1043_v34, %v1171_v12  ;;  %v685_v12 = vld [vmem:[%s23964_s22 + $0xc8] sm:$0xff] }
 0x128   : > { %22374 = vmatprep.subr.mxu1 %v1236_v0 }
 0x129   : > { %1549 = vrot.lane.b32.xlu1 %v1329_v61, %s23875_s26  ;;  %1547 = vrot.lane.b32.xlu0 %v1328_v51, %s23875_s26  ;;  %v688_v61 = vld [vmem:[%s23964_s22 + $0xe0] sm:$0xff] }
 0x12a   : > { %22375 = vmatpush3.msra.mxu1 %v1236_v0  ;;  %v1494_v52 = vpop.permute.xlu1 %1493  ;;  %v1689_v41 = vsub.f32 %v688_v61, %v685_v12  ;;  %v1657_v58 = vsub.f32 %v685_v12, %v688_v61 }
 0x12b   : > { %v1366_v42 = vpop.permute.xlu0 %1365  ;;  %22377 = vmatmul.mubr.msk.f32.vlgmr.msra.gmra.mrb[30].mxu1 %vm1204_vm0, %v25010_v59 }
 0x12c   : > { %v1589_v23 = vsel %vm1204_vm0, %v1366_v42, %v1494_v52  ;;  %22386 = vmatprep.mubr.msk.f32.mxu1 %vm1204_vm0, %v25289_v60  ;;  %v694_v52 = vld [vmem:[%s23964_s22 + $0x110] sm:$0xff] }
 0x12d   : > { %1425 = vrot.lane.b32.xlu1 %v1299_v5, %s23874_s23  ;;  %1423 = vrot.lane.b32.xlu0 %v1298_v18, %s23874_s23  ;;  %v691_v18 = vld [vmem:[%s23964_s22 + $0xf8] sm:$0xff] }
 0x12e   : > { %22379 = vmatprep.subr.mxu0 %v1589_v23  ;;  %v1370_v59 = vpop.permute.xlu1 %1369  ;;  %v1658_v6 = vsub.f32 %v691_v18, %v694_v52 }
 0x12f   : > { %22380 = vmatpush3.msra.mxu0 %v1589_v23  ;;  %v1368_v47 = vpop.permute.xlu0 %1367 }
 0x130   : > { %22382 = vmatmul.mubr.msk.f32.vlgmr.msra.gmra.mrb[32].mxu0 %vm1204_vm0, %v25318_v53 }
 0x131   : > { %1553 = vrot.lane.b32.xlu1 %v1331_v19, %s23875_s26  ;;  %1551 = vrot.lane.b32.xlu0 %v1330_v10, %s23875_s26 }
 0x132   : > { %22391 = vmatprep.mubr.msk.f32.mxu0 %vm1204_vm0, %v25289_v60 }
 0x133   : > { %v1498_v28 = vpop.permute.xlu1 %1497  ;;  %v1496_v3 = vpop.permute.xlu0 %1495 }
 0x134   : > { %v1590_v17 = vsel %vm1204_vm0, %v1368_v47, %v1496_v3  ;;  %v1591_v20 = vsel %vm1204_vm0, %v1370_v59, %v1498_v28  ;;  %v1690_v59 = vsub.f32 %v694_v52, %v691_v18 }
 0x135   : > { %1555 = vrot.lane.b32.xlu1 %v1332_v26, %s23875_s26  ;;  %1427 = vrot.lane.b32.xlu0 %v1300_v27, %s23874_s23  ;;  %v697_v26 = vld [vmem:[%s23964_s22 + $0x128] sm:$0xff]  ;;  %v700_v27 = vld [vmem:[%s23964_s22 + $0x140] sm:$0xff] }
 0x136   : > { %22384 = vmatprep.subr.mxu1 %v1590_v17  ;;  %22389 = vmatprep.subr.mxu0 %v1591_v20 }
 0x137   : > { %22385 = vmatpush3.msra.mxu1 %v1590_v17  ;;  %22390 = vmatpush3.msra.mxu0 %v1591_v20  ;;  %v1374_v31 = vpop.permute.xlu1 %1373  ;;  %v1372_v56 = vpop.permute.xlu0 %1371  ;;  %v1691_v17 = vsub.f32 %v700_v27, %v697_v26  ;;  %v1659_v20 = vsub.f32 %v697_v26, %v700_v27  ;;  %v25514_v26 = vld [vmem:[%s23964_s22 + $0x260] sm:$0xff] }
 0x138   : > { %22387 = vmatmul.mubr.msk.f32.vlgmr.msra.gmra.mrb[32].mxu1 %vm1204_vm0, %v25318_v53  ;;  %22392 = vmatmul.mubr.msk.f32.vlgmr.msra.gmra.mrb[34].mxu0 %vm1204_vm0, %v25318_v53 }
 0x139   : > { %22396 = vmatprep.mubr.msk.f32.mxu1 %vm1204_vm0, %v25289_v60  ;;  %22401 = vmatprep.mubr.msk.f32.mxu0 %vm1204_vm0, %v25289_v60 }
 0x13a   : > { %1877 = vrot.lane.b32.xlu1 %v1685_v11, %s23875_s26  ;;  %1749 = vrot.lane.b32.xlu0 %v1653_v4, %s23874_s23 }
 0x13b   : > { %v1502_v46 = vpop.permute.xlu1 %1501  ;;  %v1500_v9 = vpop.permute.xlu0 %1499 }
 0x13c   : > { %v1592_v21 = vsel %vm1204_vm0, %v1372_v56, %v1500_v9  ;;  %v1593_v35 = vsel %vm1204_vm0, %v1374_v31, %v1502_v46  ;;  %v703_v31 = vld [vmem:[%s23964_s22 + $0x158] sm:$0xff]  ;;  %v706_v56 = vld [vmem:[%s23964_s22 + $0x170] sm:$0xff] }
 0x13d   : > { %22394 = vmatprep.subr.mxu1 %v1592_v21  ;;  %22399 = vmatprep.subr.mxu0 %v1593_v35 }
 0x13e   : > { %22395 = vmatpush3.msra.mxu1 %v1592_v21  ;;  %22400 = vmatpush3.msra.mxu0 %v1593_v35  ;;  %v1692_v21 = vsub.f32 %v706_v56, %v703_v31  ;;  %v1660_v35 = vsub.f32 %v703_v31, %v706_v56 }
 0x13f   : > { %v1378_v45 = vpop.permute.xlu1 %1377  ;;  %v1376_v32 = vpop.permute.xlu0 %1375  ;;  %22397 = vmatmul.mubr.msk.f32.vlgmr.msra.gmra.mrb[34].mxu1 %vm1204_vm0, %v25318_v53  ;;  %22402 = vmatmul.mubr.msk.f32.vlgmr.msra.gmra.mrb[36].mxu0 %vm1204_vm0, %v25318_v53 }
 0x140   : > { %22406 = vmatprep.mubr.msk.f32.mxu1 %vm1204_vm0, %v25289_v60  ;;  %22411 = vmatprep.mubr.msk.f32.mxu0 %vm1204_vm0, %v25289_v60 }
 0x141   : > { %1879 = vrot.lane.b32.xlu1 %v1686_v40, %s23875_s26  ;;  %1751 = vrot.lane.b32.xlu0 %v1654_v44, %s23874_s23 }
 0x143   : > { %v1506_v55 = vpop.permute.xlu1 %1505  ;;  %v1504_v30 = vpop.permute.xlu0 %1503 }
 0x144   : > { %v1594_v62 = vsel %vm1204_vm0, %v1376_v32, %v1504_v30  ;;  %v1595_v63 = vsel %vm1204_vm0, %v1378_v45, %v1506_v55  ;;  %v709_v45 = vld [vmem:[%s23964_s22 + $0x188] sm:$0xff]  ;;  %v712_v32 = vld [vmem:[%s23964_s22 + $0x1a0] sm:$0xff] }
 0x145   : > { %22404 = vmatprep.subr.mxu1 %v1594_v62  ;;  %22409 = vmatprep.subr.mxu0 %v1595_v63 }
 0x146   : > { %22405 = vmatpush3.msra.mxu1 %v1594_v62  ;;  %22410 = vmatpush3.msra.mxu0 %v1595_v63  ;;  %v1693_v62 = vsub.f32 %v712_v32, %v709_v45  ;;  %v1661_v63 = vsub.f32 %v709_v45, %v712_v32 }
 0x147   : > { %v1382_v25 = vpop.permute.xlu1 %1381  ;;  %v1380_v36 = vpop.permute.xlu0 %1379  ;;  %22407 = vmatmul.mubr.msk.f32.vlgmr.msra.gmra.mrb[36].mxu1 %vm1204_vm0, %v25318_v53  ;;  %22412 = vmatmul.mubr.msk.f32.vlgmr.msra.gmra.mrb[38].mxu0 %vm1204_vm0, %v25318_v53 }
 0x148   : > { %22416 = vmatprep.mubr.msk.f32.mxu1 %vm1204_vm0, %v25289_v60  ;;  %22421 = vmatprep.mubr.msk.f32.mxu0 %vm1204_vm0, %v25289_v60 }
 0x149   : > { %1881 = vrot.lane.b32.xlu1 %v1687_v50, %s23875_s26  ;;  %1753 = vrot.lane.b32.xlu0 %v1655_v33, %s23874_s23 }
 0x14b   : > { %v1510_v37 = vpop.permute.xlu1 %1509  ;;  %v1508_v54 = vpop.permute.xlu0 %1507 }
 0x14c   : > { %v1596_v1 = vsel %vm1204_vm0, %v1380_v36, %v1508_v54  ;;  %v1597_v2 = vsel %vm1204_vm0, %v1382_v25, %v1510_v37  ;;  %v715_v25 = vld [vmem:[%s23964_s22 + $0x1b8] sm:$0xff]  ;;  %v718_v36 = vld [vmem:[%s23964_s22 + $0x1d0] sm:$0xff] }
 0x14d   : > { %22414 = vmatprep.subr.mxu1 %v1596_v1  ;;  %22419 = vmatprep.subr.mxu0 %v1597_v2 }
 0x14e   : > { %22415 = vmatpush3.msra.mxu1 %v1596_v1  ;;  %22420 = vmatpush3.msra.mxu0 %v1597_v2  ;;  %v1694_v1 = vsub.f32 %v718_v36, %v715_v25  ;;  %v1662_v2 = vsub.f32 %v715_v25, %v718_v36 }
 0x14f   : > { %v1386_v16 = vpop.permute.xlu1 %1385  ;;  %v1384_v22 = vpop.permute.xlu0 %1383  ;;  %22417 = vmatmul.mubr.msk.f32.vlgmr.msra.gmra.mrb[38].mxu1 %vm1204_vm0, %v25318_v53  ;;  %22422 = vmatmul.mubr.msk.f32.vlgmr.msra.gmra.mrb[40].mxu0 %vm1204_vm0, %v25318_v53 }
 0x150   : > { %22426 = vmatprep.mubr.msk.f32.mxu1 %vm1204_vm0, %v25289_v60  ;;  %22431 = vmatprep.mubr.msk.f32.mxu0 %vm1204_vm0, %v25289_v60 }
 0x151   : > { %1883 = vrot.lane.b32.xlu1 %v1688_v7, %s23875_s26  ;;  %1755 = vrot.lane.b32.xlu0 %v1656_v8, %s23874_s23 }
 0x153   : > { %v1514_v51 = vpop.permute.xlu1 %1513  ;;  %v1512_v24 = vpop.permute.xlu0 %1511 }
 0x154   : > { %v1598_v34 = vsel %vm1204_vm0, %v1384_v22, %v1512_v24  ;;  %v1599_v43 = vsel %vm1204_vm0, %v1386_v16, %v1514_v51  ;;  %v25471_v16 = vld [vmem:[%s23964_s22 + $0x1e8] sm:$0xff]  ;;  %v25474_v22 = vld [vmem:[%s23964_s22 + $0x200] sm:$0xff] }
 0x155   : > { %22424 = vmatprep.subr.mxu1 %v1598_v34  ;;  %22429 = vmatprep.subr.mxu0 %v1599_v43 }
 0x156   : > { %22425 = vmatpush3.msra.mxu1 %v1598_v34  ;;  %22430 = vmatpush3.msra.mxu0 %v1599_v43  ;;  %v1695_v34 = vsub.f32 %v25474_v22, %v25471_v16  ;;  %v1663_v43 = vsub.f32 %v25471_v16, %v25474_v22 }
 0x157   : > { %v1390_v0 = vpop.permute.xlu1 %1389  ;;  %v1388_v5 = vpop.permute.xlu0 %1387  ;;  %22427 = vmatmul.mubr.msk.f32.vlgmr.msra.gmra.mrb[40].mxu1 %vm1204_vm0, %v25318_v53  ;;  %22432 = vmatmul.mubr.msk.f32.vlgmr.msra.gmra.mrb[42].mxu0 %vm1204_vm0, %v25318_v53 }
 0x158   : > { %22436 = vmatprep.mubr.msk.f32.mxu1 %vm1204_vm0, %v25289_v60  ;;  %22441 = vmatprep.mubr.msk.f32.mxu0 %vm1204_vm0, %v25289_v60 }
 0x159   : > { %1885 = vrot.lane.b32.xlu1 %v1689_v41, %s23875_s26  ;;  %1757 = vrot.lane.b32.xlu0 %v1657_v58, %s23874_s23 }
 0x15b   : > { %v1518_v42 = vpop.permute.xlu1 %1517  ;;  %v1516_v23 = vpop.permute.xlu0 %1515 }
 0x15c   : > { %v1600_v19 = vsel %vm1204_vm0, %v1388_v5, %v1516_v23  ;;  %v1601_v10 = vsel %vm1204_vm0, %v1390_v0, %v1518_v42  ;;  %v25493_v0 = vld [vmem:[%s23964_s22 + $0x218] sm:$0xff]  ;;  %v25496_v5 = vld [vmem:[%s23964_s22 + $0x230] sm:$0xff] }
 0x15d   : > { %22434 = vmatprep.subr.mxu1 %v1600_v19  ;;  %22439 = vmatprep.subr.mxu0 %v1601_v10 }
 0x15e   : > { %22435 = vmatpush3.msra.mxu1 %v1600_v19  ;;  %22440 = vmatpush3.msra.mxu0 %v1601_v10  ;;  %v1696_v10 = vsub.f32 %v25496_v5, %v25493_v0 }
 0x15f   : > { %v1394_v13 = vpop.permute.xlu1 %1393  ;;  %v1392_v47 = vpop.permute.xlu0 %1391  ;;  %22437 = vmatmul.mubr.msk.f32.vlgmr.msra.gmra.mrb[42].mxu1 %vm1204_vm0, %v25318_v53  ;;  %22442 = vmatmul.mubr.msk.f32.vlgmr.msra.gmra.mrb[44].mxu0 %vm1204_vm0, %v25318_v53 }
 0x160   : > { %22446 = vmatprep.mubr.msk.f32.mxu1 %vm1204_vm0, %v25289_v60  ;;  %22451 = vmatprep.mubr.msk.f32.mxu0 %vm1204_vm0, %v25289_v60 }
 0x161   : > { %1887 = vrot.lane.b32.xlu1 %v1690_v59, %s23875_s26  ;;  %1759 = vrot.lane.b32.xlu0 %v1658_v6, %s23874_s23  ;;  %v1664_v59 = vsub.f32 %v25493_v0, %v25496_v5 }
 0x163   : > { %v1522_v28 = vpop.permute.xlu1 %1521  ;;  %v1520_v3 = vpop.permute.xlu0 %1519 }
 0x164   : > { %v1602_v14 = vsel %vm1204_vm0, %v1392_v47, %v1520_v3  ;;  %v1603_v15 = vsel %vm1204_vm0, %v1394_v13, %v1522_v28  ;;  %v25511_v47 = vld [vmem:[%s23964_s22 + $0x248] sm:$0xff] }
 0x165   : > { %22444 = vmatprep.subr.mxu1 %v1602_v14  ;;  %22449 = vmatprep.subr.mxu0 %v1603_v15 }
 0x166   : > { %22445 = vmatpush3.msra.mxu1 %v1602_v14  ;;  %22450 = vmatpush3.msra.mxu0 %v1603_v15  ;;  %v1697_v14 = vsub.f32 %v25514_v26, %v25511_v47 }
 0x167   : > { %v1398_v11 = vpop.permute.xlu1 %1397  ;;  %v1396_v4 = vpop.permute.xlu0 %1395  ;;  %22447 = vmatmul.mubr.msk.f32.vlgmr.msra.gmra.mrb[44].mxu1 %vm1204_vm0, %v25318_v53  ;;  %22452 = vmatmul.mubr.msk.f32.vlgmr.msra.gmra.mrb[46].mxu0 %vm1204_vm0, %v25318_v53 }
 0x168   : > { %22456 = vmatprep.mubr.msk.f32.mxu1 %vm1204_vm0, %v25289_v60  ;;  %22461 = vmatprep.mubr.msk.f32.mxu0 %vm1204_vm0, %v25289_v60 }
 0x169   : > { %1889 = vrot.lane.b32.xlu1 %v1691_v17, %s23875_s26  ;;  %1761 = vrot.lane.b32.xlu0 %v1659_v20, %s23874_s23 }
 0x16b   : > { %v1526_v29 = vpop.permute.xlu1 %1525  ;;  %v1524_v57 = vpop.permute.xlu0 %1523 }
 0x16c   : > { %v1604_v46 = vsel %vm1204_vm0, %v1396_v4, %v1524_v57  ;;  %v1605_v9 = vsel %vm1204_vm0, %v1398_v11, %v1526_v29  ;;  %v25535_v11 = vld [vmem:[%s23964_s22 + $0x278] sm:$0xff]  ;;  %v25538_v4 = vld [vmem:[%s23964_s22 + $0x290] sm:$0xff] }
 0x16d   : > { %22454 = vmatprep.subr.mxu1 %v1604_v46  ;;  %22459 = vmatprep.subr.mxu0 %v1605_v9  ;;  %v1666_v32 = vsub.f32 %v25535_v11, %v25538_v4 }
 0x16e   : > { %22455 = vmatpush3.msra.mxu1 %v1604_v46  ;;  %22460 = vmatpush3.msra.mxu0 %v1605_v9  ;;  %v1665_v9 = vsub.f32 %v25511_v47, %v25514_v26 }
 0x16f   : > { %v1402_v40 = vpop.permute.xlu1 %1401  ;;  %v1400_v44 = vpop.permute.xlu0 %1399  ;;  %22457 = vmatmul.mubr.msk.f32.vlgmr.msra.gmra.mrb[46].mxu1 %vm1204_vm0, %v25318_v53  ;;  %22462 = vmatmul.mubr.msk.f32.vlgmr.msra.gmra.mrb[48].mxu0 %vm1204_vm0, %v25318_v53 }
 0x170   : > { %22466 = vmatprep.mubr.msk.f32.mxu1 %vm1204_vm0, %v25289_v60  ;;  %22471 = vmatprep.mubr.msk.f32.mxu0 %vm1204_vm0, %v25289_v60 }
 0x171   : > { %1891 = vrot.lane.b32.xlu1 %v1692_v21, %s23875_s26  ;;  %1763 = vrot.lane.b32.xlu0 %v1660_v35, %s23874_s23  ;;  %v1698_v35 = vsub.f32 %v25538_v4, %v25535_v11 }
 0x173   : > { %v1530_v48 = vpop.permute.xlu1 %1529  ;;  %v1528_v49 = vpop.permute.xlu0 %1527 }
 0x174   : > { %v1606_v55 = vsel %vm1204_vm0, %v1400_v44, %v1528_v49  ;;  %v1607_v30 = vsel %vm1204_vm0, %v1402_v40, %v1530_v48 }
 0x175   : > { %22464 = vmatprep.subr.mxu1 %v1606_v55  ;;  %22469 = vmatprep.subr.mxu0 %v1607_v30 }
 0x176   : > { %22465 = vmatpush3.msra.mxu1 %v1606_v55  ;;  %22470 = vmatpush3.msra.mxu0 %v1607_v30  ;;  %v25572_v55 = vld [vmem:[%s23964_s22 + $0x2a8] sm:$0xff]  ;;  %v25575_v30 = vld [vmem:[%s23964_s22 + $0x2c0] sm:$0xff] }
 0x177   : > { %v1406_v50 = vpop.permute.xlu1 %1405  ;;  %v1404_v33 = vpop.permute.xlu0 %1403  ;;  %22467 = vmatmul.mubr.msk.f32.vlgmr.msra.gmra.mrb[48].mxu1 %vm1204_vm0, %v25318_v53  ;;  %22472 = vmatmul.mubr.msk.f32.vlgmr.msra.gmra.mrb[50].mxu0 %vm1204_vm0, %v25318_v53 }
 0x178   : > { %22476 = vmatprep.mubr.msk.f32.mxu1 %vm1204_vm0, %v25289_v60  ;;  %22481 = vmatprep.mubr.msk.f32.mxu0 %vm1204_vm0, %v25289_v60 }
 0x179   : > { %1893 = vrot.lane.b32.xlu1 %v1693_v62, %s23875_s26  ;;  %1765 = vrot.lane.b32.xlu0 %v1661_v63, %s23874_s23 }
 0x17b   : > { %v1534_v38 = vpop.permute.xlu1 %1533  ;;  %v1532_v39 = vpop.permute.xlu0 %1531 }
 0x17c   : > { %v1608_v37 = vsel %vm1204_vm0, %v1404_v33, %v1532_v39  ;;  %v1609_v54 = vsel %vm1204_vm0, %v1406_v50, %v1534_v38  ;;  %v1699_v38 = vsub.f32 %v25575_v30, %v25572_v55  ;;  %v1667_v39 = vsub.f32 %v25572_v55, %v25575_v30 }
 0x17d   : > { %22474 = vmatprep.subr.mxu1 %v1608_v37  ;;  %22479 = vmatprep.subr.mxu0 %v1609_v54 }
 0x17e   : > { %22475 = vmatpush3.msra.mxu1 %v1608_v37  ;;  %22480 = vmatpush3.msra.mxu0 %v1609_v54  ;;  %v25589_v37 = vld [vmem:[%s23964_s22 + $0x2d8] sm:$0xff]  ;;  %v25592_v54 = vld [vmem:[%s23964_s22 + $0x2f0] sm:$0xff] }
 0x17f   : > { %v1410_v7 = vpop.permute.xlu1 %1409  ;;  %v1408_v8 = vpop.permute.xlu0 %1407  ;;  %22477 = vmatmul.mubr.msk.f32.vlgmr.msra.gmra.mrb[50].mxu1 %vm1204_vm0, %v25318_v53  ;;  %22482 = vmatmul.mubr.msk.f32.vlgmr.msra.gmra.mrb[52].mxu0 %vm1204_vm0, %v25318_v53 }
 0x180   : > { %22486 = vmatprep.mubr.msk.f32.mxu1 %vm1204_vm0, %v25289_v60  ;;  %22491 = vmatprep.mubr.msk.f32.mxu0 %vm1204_vm0, %v25289_v60 }
 0x181   : > { %1895 = vrot.lane.b32.xlu1 %v1694_v1, %s23875_s26  ;;  %1767 = vrot.lane.b32.xlu0 %v1662_v2, %s23874_s23 }
 0x183   : > { %v1538_v12 = vpop.permute.xlu1 %1537  ;;  %v1536_v61 = vpop.permute.xlu0 %1535 }
 0x184   : > { %v1610_v51 = vsel %vm1204_vm0, %v1408_v8, %v1536_v61  ;;  %v1611_v24 = vsel %vm1204_vm0, %v1410_v7, %v1538_v12 }
 0x185   : > { %22484 = vmatprep.subr.mxu1 %v1610_v51  ;;  %22489 = vmatprep.subr.mxu0 %v1611_v24 }
 0x186   : > { %22485 = vmatpush3.msra.mxu1 %v1610_v51  ;;  %22490 = vmatpush3.msra.mxu0 %v1611_v24  ;;  %v1700_v51 = vsub.f32 %v25592_v54, %v25589_v37 }
 0x187   : > { %v1414_v41 = vpop.permute.xlu1 %1413  ;;  %v1412_v58 = vpop.permute.xlu0 %1411  ;;  %22487 = vmatmul.mubr.msk.f32.vlgmr.msra.gmra.mrb[52].mxu1 %vm1204_vm0, %v25318_v53  ;;  %22492 = vmatmul.mubr.msk.f32.vlgmr.msra.gmra.mrb[54].mxu0 %vm1204_vm0, %v25318_v53 }
 0x188   : > { %22496 = vmatprep.mubr.msk.f32.mxu1 %vm1204_vm0, %v25289_v60  ;;  %22501 = vmatprep.mubr.msk.f32.mxu0 %vm1204_vm0, %v25289_v60 }
 0x189   : > { %1897 = vrot.lane.b32.xlu1 %v1695_v34, %s23875_s26  ;;  %1769 = vrot.lane.b32.xlu0 %v1663_v43, %s23874_s23 }
 0x18b   : > { %v1542_v18 = vpop.permute.xlu1 %1541  ;;  %v1540_v52 = vpop.permute.xlu0 %1539 }
 0x18c   : > { %v1612_v42 = vsel %vm1204_vm0, %v1412_v58, %v1540_v52  ;;  %v1613_v23 = vsel %vm1204_vm0, %v1414_v41, %v1542_v18  ;;  %v23766_v41 = vld [vmem:[%s23964_s22 + $0x10] sm:$0xff]  ;;  %v23767_v58 = vld [vmem:[%s23964_s22 + $0x18] sm:$0xff] }
 0x18d   : > { %22494 = vmatprep.subr.mxu1 %v1612_v42  ;;  %22499 = vmatprep.subr.mxu0 %v1613_v23  ;;  %v25500_v19 = vpop.f32.mrb[0].mxu0  ;;  %v1237_v18 = vadd.f32 %v23767_v58, %v23766_v41  ;;  %v23776_v41 = vld [vmem:[%s23964_s22 + $0x100] sm:$0xff]  ;;  %v23777_v58 = vld [vmem:[%s23964_s22 + $0x108] sm:$0xff] }
 0x18e   : > { %27204 = vst [vmem:[#allocation2_spill] sm:$0xff] %v25500_v19  ;;  %v25506_v6 = vpop.f32.mrb[0].mxu1  ;;  %22495 = vmatpush3.msra.mxu1 %v1612_v42  ;;  %22500 = vmatpush3.msra.mxu0 %v1613_v23  ;;  %v25508_v13 = vpop.f32.mrb[1].mxu0  ;;  %v26056_v19 = vld [vmem:[%s23964_s22 + $0x548] sm:$0xff] }
 0x18f   : > { %27205 = vst [vmem:[#allocation3_spill] sm:$0xff] %v25506_v6  ;;  %27206 = vst [vmem:[#allocation4_spill] sm:$0xff] %v25508_v13  ;;  %v1418_v27 = vpop.permute.xlu1 %1417  ;;  %v1416_v28 = vpop.permute.xlu0 %1415  ;;  %22497 = vmatmul.mubr.msk.f32.vlgmr.msra.gmra.mrb[54].mxu1 %vm1204_vm0, %v25318_v53  ;;  %22502 = vmatmul.mubr.msk.f32.vlgmr.msra.gmra.mrb[56].mxu0 %vm1204_vm0, %v25318_v53 }
 0x190   : > { %v25520_v3 = vpop.f32.mrb[1].mxu1  ;;  %22506 = vmatprep.mubr.msk.f32.mxu1 %vm1204_vm0, %v25289_v60  ;;  %22511 = vmatprep.mubr.msk.f32.mxu0 %vm1204_vm0, %v25289_v60 }
 0x191   : > { %27207 = vst [vmem:[#allocation5_spill] sm:$0xff] %v25520_v3  ;;  %1899 = vrot.lane.b32.xlu1 %v1696_v10, %s23875_s26  ;;  %1771 = vrot.lane.b32.xlu0 %v1664_v59, %s23874_s23 }
 0x192   : > { %v25530_v15 = vpop.f32.mrb[2].mxu0 }
 0x193   : > { %27208 = vst [vmem:[#allocation6_spill] sm:$0xff] %v25530_v15  ;;  %v25532_v17 = vpop.f32.mrb[2].mxu1  ;;  %v1546_v20 = vpop.permute.xlu1 %1545  ;;  %v26028_v15 = vld [vmem:[%s23964_s22 + $0x518] sm:$0xff] }
 0x194   : > { %27209 = vst [vmem:[#allocation7_spill] sm:$0xff] %v25532_v17  ;;  %v1544_v31 = vpop.permute.xlu0 %1543  ;;  %v25540_v56 = vpop.f32.mrb[3].mxu0  ;;  %v1615_v29 = vsel %vm1204_vm0, %v1418_v27, %v1546_v20  ;;  %v25639_v20 = vld [vmem:[%s27187_s4 + $0x8] sm:$0xff] }
 0x195   : > { %27210 = vst [vmem:[#allocation8_spill] sm:$0xff] %v25540_v56  ;;  %v25543_v57 = vpop.f32.mrb[3].mxu1  ;;  %v1614_v46 = vsel %vm1204_vm0, %v1416_v28, %v1544_v31  ;;  %22509 = vmatprep.subr.mxu0 %v1615_v29  ;;  %1901 = vrot.lane.b32.xlu1 %v1697_v14, %s23875_s26  ;;  %v25632_v28 = vld [vmem:[%s27187_s4] sm:$0xff]  ;;  %v25996_v17 = vld [vmem:[%s23964_s22 + $0x4e8] sm:$0xff]  ;;  %v23827_v56 = vld [vmem:[%s23964_s22 + $0x5b8] sm:$0xff] }
 0x196   : > { %27211 = vst [vmem:[#allocation9_spill] sm:$0xff] %v25543_v57  ;;  %22504 = vmatprep.subr.mxu1 %v1614_v46  ;;  %v25549_v21 = vpop.f32.mrb[4].mxu0  ;;  %22510 = vmatpush3.msra.mxu0 %v1615_v29  ;;  %v23768_v31 = vld [vmem:[%s23964_s22 + $0x40] sm:$0xff]  ;;  %v23769_v29 = vld [vmem:[%s23964_s22 + $0x48] sm:$0xff] }
 0x197   : > { %27212 = vst [vmem:[#allocation10_spill] sm:$0xff] %v25549_v21  ;;  %22505 = vmatpush3.msra.mxu1 %v1614_v46  ;;  %v1422_v40 = vpop.permute.xlu1 %1421  ;;  %v25553_v44 = vpop.f32.mrb[5].mxu0  ;;  %22512 = vmatmul.mubr.msk.f32.vlgmr.msra.gmra.mrb[58].mxu0 %vm1204_vm0, %v25318_v53  ;;  %v1238_v46 = vadd.f32 %v23769_v29, %v23768_v31  ;;  %v25691_v31 = vld [vmem:[%s23964_s22 + $0x308] sm:$0xff]  ;;  %v25694_v29 = vld [vmem:[%s23964_s22 + $0x320] sm:$0xff] }
 0x198   : > { %27213 = vst [vmem:[#allocation11_spill] sm:$0xff] %v25553_v44  ;;  %v1420_v45 = vpop.permute.xlu0 %1419  ;;  %22507 = vmatmul.mubr.msk.f32.vlgmr.msra.gmra.mrb[56].mxu1 %vm1204_vm0, %v25318_v53  ;;  %22521 = vmatprep.mubr.msk.f32.mxu0 %vm1204_vm0, %v25289_v60 }
 0x199   : > { %22516 = vmatprep.mubr.msk.f32.mxu1 %vm1204_vm0, %v25289_v60  ;;  %1773 = vrot.lane.b32.xlu0 %v1665_v9, %s23874_s23 }
 0x19a   : > { %v25566_v48 = vpop.f32.mrb[4].mxu1  ;;  %v25568_v49 = vpop.f32.mrb[6].mxu0  ;;  %1903 = vrot.lane.b32.xlu1 %v1698_v35, %s23875_s26  ;;  %v23770_v35 = vld [vmem:[%s23964_s22 + $0x70] sm:$0xff] }
 0x19b   : > { %27214 = vst [vmem:[#allocation12_spill] sm:$0xff] %v25566_v48  ;;  %27215 = vst [vmem:[#allocation13_spill] sm:$0xff] %v25568_v49  ;;  %v1550_v62 = vpop.permute.xlu1 %1549  ;;  %v25577_v63 = vpop.f32.mrb[5].mxu1  ;;  %v23819_v48 = vld [vmem:[%s23964_s22 + $0x4f8] sm:$0xff] }
 0x19c   : > { %27216 = vst [vmem:[#allocation14_spill] sm:$0xff] %v25577_v63  ;;  %v1548_v50 = vpop.permute.xlu0 %1547  ;;  %v25579_v33 = vpop.f32.mrb[7].mxu0  ;;  %v1617_v25 = vsel %vm1204_vm0, %v1422_v40, %v1550_v62  ;;  %v23771_v40 = vld [vmem:[%s23964_s22 + $0x78] sm:$0xff] }
 0x19d   : > { %27217 = vst [vmem:[#allocation15_spill] sm:$0xff] %v25579_v33  ;;  %v1616_v36 = vsel %vm1204_vm0, %v1420_v45, %v1548_v50  ;;  %22519 = vmatprep.subr.mxu0 %v1617_v25  ;;  %1775 = vrot.lane.b32.xlu0 %v1666_v32, %s23874_s23  ;;  %v1239_v45 = vadd.f32 %v23771_v40, %v23770_v35  ;;  %v23772_v50 = vld [vmem:[%s23964_s22 + $0xa0] sm:$0xff]  ;;  %v25967_v33 = vld [vmem:[%s23964_s22 + $0x4d0] sm:$0xff] }
 0x19e   : > { %22514 = vmatprep.subr.mxu1 %v1616_v36  ;;  %22520 = vmatpush3.msra.mxu0 %v1617_v25 }
 0x19f   : > { %22515 = vmatpush3.msra.mxu1 %v1616_v36  ;;  %v1426_v1 = vpop.permute.xlu1 %1425  ;;  %v25594_v2 = vpop.f32.mrb[6].mxu1  ;;  %22522 = vmatmul.mubr.msk.f32.vlgmr.msra.gmra.mrb[60].mxu0 %vm1204_vm0, %v25318_v53 }
 0x1a0   : > { %27218 = vst [vmem:[#allocation16_spill] sm:$0xff] %v25594_v2  ;;  %v1424_v7 = vpop.permute.xlu0 %1423  ;;  %v25598_v8 = vpop.f32.mrb[8].mxu0  ;;  %22517 = vmatmul.mubr.msk.f32.vlgmr.msra.gmra.mrb[58].mxu1 %vm1204_vm0, %v25318_v53  ;;  %22531 = vmatprep.mubr.msk.f32.mxu0 %vm1204_vm0, %v25289_v60  ;;  %v25932_v2 = vld [vmem:[%s23964_s22 + $0x488] sm:$0xff] }
 0x1a1   : > { %27219 = vst [vmem:[#allocation17_spill] sm:$0xff] %v25598_v8  ;;  %v25604_v12 = vpop.f32.mrb[7].mxu1  ;;  %v25606_v61 = vpop.f32.mrb[9].mxu0  ;;  %22526 = vmatprep.mubr.msk.f32.mxu1 %vm1204_vm0, %v25289_v60  ;;  %1905 = vrot.lane.b32.xlu1 %v1699_v38, %s23875_s26 }
 0x1a2   : > { %27220 = vst [vmem:[#allocation18_spill] sm:$0xff] %v25604_v12  ;;  %27221 = vst [vmem:[#allocation19_spill] sm:$0xff] %v25606_v61  ;;  %1777 = vrot.lane.b32.xlu0 %v1667_v39, %s23874_s23  ;;  %v23774_v39 = vld [vmem:[%s23964_s22 + $0xd0] sm:$0xff] }
 0x1a3   : > { %v1554_v24 = vpop.permute.xlu1 %1553 }
 0x1a4   : > { %v1552_v34 = vpop.permute.xlu0 %1551  ;;  %v1619_v43 = vsel %vm1204_vm0, %v1426_v1, %v1554_v24  ;;  %v23775_v1 = vld [vmem:[%s23964_s22 + $0xd8] sm:$0xff] }
 0x1a5   : > { %v1618_v52 = vsel %vm1204_vm0, %v1424_v7, %v1552_v34  ;;  %22529 = vmatprep.subr.mxu0 %v1619_v43  ;;  %v25618_v42 = vpop.f32.mrb[8].mxu1  ;;  %v25620_v23 = vpop.f32.mrb[10].mxu0  ;;  %1907 = vrot.lane.b32.xlu1 %v1700_v51, %s23875_s26  ;;  %v1241_v7 = vadd.f32 %v23775_v1, %v23774_v39  ;;  %v23783_v39 = vld [vmem:[%s23964_s22 + $0x198] sm:$0xff] }
 0x1a6   : > { %27222 = vst [vmem:[#allocation20_spill] sm:$0xff] %v25618_v42  ;;  %27223 = vst [vmem:[#allocation21_spill] sm:$0xff] %v25620_v23  ;;  %22524 = vmatprep.subr.mxu1 %v1618_v52  ;;  %22530 = vmatpush3.msra.mxu0 %v1619_v43  ;;  %v25623_v10 = vpop.f32.mrb[9].mxu1  ;;  %v25625_v59 = vpop.f32.mrb[11].mxu0  ;;  %v25872_v23 = vld [vmem:[%s23964_s22 + $0x428] sm:$0xff]  ;;  %v25904_v42 = vld [vmem:[%s23964_s22 + $0x458] sm:$0xff] }
 0x1a7   : > { %27224 = vst [vmem:[#allocation22_spill] sm:$0xff] %v25623_v10  ;;  %27225 = vst [vmem:[#allocation23_spill] sm:$0xff] %v25625_v59  ;;  %22525 = vmatpush3.msra.mxu1 %v1618_v52  ;;  %v1556_v27 = vpop.permute.xlu1 %1555  ;;  %22532 = vmatmul.mubr.msk.f32.vlgmr.msra.gmra.mrb[62].mxu0 %vm1204_vm0, %v25318_v53  ;;  %v23778_v52 = vld [vmem:[%s23964_s22 + $0x130] sm:$0xff]  ;;  %v23811_v10 = vld [vmem:[%s23964_s22 + $0x438] sm:$0xff] }
 0x1a8   : > { %v1428_v14 = vpop.permute.xlu0 %1427  ;;  %22527 = vmatmul.mubr.msk.f32.vlgmr.msra.gmra.mrb[60].mxu1 %vm1204_vm0, %v25318_v53  ;;  %22539 = vmatprep.subr.mxu0 %v1237_v18 }
 0x1a9   : > { %v1620_v9 = vsel %vm1204_vm0, %v1428_v14, %v1556_v27  ;;  %22536 = vmatprep.mubr.msk.f32.mxu1 %vm1204_vm0, %v25289_v60  ;;  %22540 = vmatpush3.msra.mxu0 %v1237_v18  ;;  %v23773_v60 = vld [vmem:[%s23964_s22 + $0xa8] sm:$0xff]  ;;  %v1242_v18 = vadd.f32 %v23777_v58, %v23776_v41  ;;  %v23779_v27 = vld [vmem:[%s23964_s22 + $0x138] sm:$0xff]  ;;  %v25727_v58 = vld [vmem:[%s23964_s22 + $0x350] sm:$0xff] }
 0x1aa   : > { %22534 = vmatprep.subr.mxu1 %v1620_v9  ;;  %22541 = vmatprep.mubr.msk.f32.mxu0 %vm1204_vm0, %v25632_v28  ;;  %v25650_v32 = vpop.f32.mrb[10].mxu1  ;;  %v25652_v62 = vpop.f32.mrb[12].mxu0  ;;  %v1240_v25 = vadd.f32 %v23773_v60, %v23772_v50  ;;  %v1243_v14 = vadd.f32 %v23779_v27, %v23778_v52  ;;  %v23781_v50 = vld [vmem:[%s23964_s22 + $0x168] sm:$0xff]  ;;  %v25724_v41 = vld [vmem:[%s23964_s22 + $0x338] sm:$0xff]  ;;  %v23784_v27 = vld [vmem:[%s23964_s22 + $0x1c0] sm:$0xff] }
 0x1ab   : > { %27226 = vst [vmem:[#allocation24_spill] sm:$0xff] %v25650_v32  ;;  %27227 = vst [vmem:[#allocation25_spill] sm:$0xff] %v25652_v62  ;;  %22535 = vmatpush3.msra.mxu1 %v1620_v9  ;;  %22542 = vmatmul.mubr.msk.f32.vlgmr.msra.gmra.mrb[32].mxu0 %vm1204_vm0, %v25639_v20  ;;  %v25658_v36 = vpop.f32.mrb[11].mxu1  ;;  %v25660_v38 = vpop.f32.mrb[13].mxu0  ;;  %v1669_v9 = vsub.f32 %v25691_v31, %v25694_v29  ;;  %v1670_v52 = vsub.f32 %v25724_v41, %v25727_v58  ;;  %v23803_v62 = vld [vmem:[%s23964_s22 + $0x378] sm:$0xff] }
 0x1ac   : > { %27228 = vst [vmem:[#allocation26_spill] sm:$0xff] %v25658_v36  ;;  %27229 = vst [vmem:[#allocation27_spill] sm:$0xff] %v25660_v38  ;;  %22537 = vmatmul.mubr.msk.f32.vlgmr.msra.gmra.mrb[62].mxu1 %vm1204_vm0, %v25318_v53  ;;  %22544 = vmatprep.subr.mxu1 %v1238_v46  ;;  %v1668_v53 = vsub.f32 %v25589_v37, %v25592_v54 }
 0x1ad   : > { %22549 = vmatprep.subr.mxu0 %v1239_v45  ;;  %22545 = vmatpush3.msra.mxu1 %v1238_v46  ;;  %v1701_v46 = vsub.f32 %v25694_v29, %v25691_v31 }
 0x1ae   : > { %22546 = vmatprep.mubr.msk.f32.mxu1 %vm1204_vm0, %v25632_v28  ;;  %22550 = vmatpush3.msra.mxu0 %v1239_v45  ;;  %v23780_v45 = vld [vmem:[%s23964_s22 + $0x160] sm:$0xff] }
 0x1af   : > { %22551 = vmatprep.mubr.msk.f32.mxu0 %vm1204_vm0, %v25632_v28  ;;  %22554 = vmatprep.subr.mxu1 %v1240_v25  ;;  %v25672_v51 = vpop.f32.mrb[12].mxu1  ;;  %v25674_v24 = vpop.f32.mrb[14].mxu0  ;;  %v1244_v60 = vadd.f32 %v23781_v50, %v23780_v45  ;;  %v23787_v50 = vld [vmem:[%s23964_s22 + $0x1f8] sm:$0xff] }
 0x1b0   : > { %27230 = vst [vmem:[#allocation28_spill] sm:$0xff] %v25672_v51  ;;  %27231 = vst [vmem:[#allocation29_spill] sm:$0xff] %v25674_v24  ;;  %22547 = vmatmul.mubr.msk.f32.vlgmr.msra.gmra.mrb[32].mxu1 %vm1204_vm0, %v25639_v20  ;;  %22552 = vmatmul.mubr.msk.f32.vlgmr.msra.gmra.mrb[34].mxu0 %vm1204_vm0, %v25639_v20  ;;  %v25680_v34 = vpop.f32.mrb[13].mxu1  ;;  %v25682_v43 = vpop.f32.mrb[15].mxu0  ;;  %v25808_v24 = vld [vmem:[%s23964_s22 + $0x3c8] sm:$0xff] }
 0x1b1   : > { %27232 = vst [vmem:[#allocation30_spill] sm:$0xff] %v25680_v34  ;;  %27233 = vst [vmem:[#allocation31_spill] sm:$0xff] %v25682_v43  ;;  %22559 = vmatprep.subr.mxu0 %v1241_v7  ;;  %22555 = vmatpush3.msra.mxu1 %v1240_v25  ;;  %v23782_v25 = vld [vmem:[%s23964_s22 + $0x190] sm:$0xff] }
 0x1b2   : > { %22556 = vmatprep.mubr.msk.f32.mxu1 %vm1204_vm0, %v25632_v28  ;;  %22560 = vmatpush3.msra.mxu0 %v1241_v7  ;;  %v1245_v1 = vadd.f32 %v23783_v39, %v23782_v25  ;;  %v25843_v34 = vld [vmem:[%s23964_s22 + $0x410] sm:$0xff] }
 0x1b3   : > { %22561 = vmatprep.mubr.msk.f32.mxu0 %vm1204_vm0, %v25632_v28  ;;  %1779 = vrot.lane.b32.xlu0 %v1668_v53, %s23874_s23 }
 0x1b4   : > { %22557 = vmatmul.mubr.msk.f32.vlgmr.msra.gmra.mrb[34].mxu1 %vm1204_vm0, %v25639_v20  ;;  %22562 = vmatmul.mubr.msk.f32.vlgmr.msra.gmra.mrb[36].mxu0 %vm1204_vm0, %v25639_v20 }
 0x1b5   : > { %22564 = vmatprep.subr.mxu1 %v1242_v18  ;;  %22569 = vmatprep.subr.mxu0 %v1243_v14  ;;  %v25707_v35 = vpop.f32.mrb[14].mxu1  ;;  %v25709_v40 = vpop.f32.mrb[16].mxu0 }
 0x1b6   : > { %27234 = vst [vmem:[#allocation32_spill] sm:$0xff] %v25707_v35  ;;  %27235 = vst [vmem:[#allocation33_spill] sm:$0xff] %v25709_v40  ;;  %22565 = vmatpush3.msra.mxu1 %v1242_v18  ;;  %22566 = vmatprep.mubr.msk.f32.mxu1 %vm1204_vm0, %v25632_v28  ;;  %v25717_v7 = vpop.f32.mrb[15].mxu1  ;;  %v25719_v53 = vpop.f32.mrb[17].mxu0  ;;  %v1702_v18 = vsub.f32 %v25727_v58, %v25724_v41  ;;  %v25755_v40 = vld [vmem:[%s23964_s22 + $0x380] sm:$0xff] }
 0x1b7   : > { %27236 = vst [vmem:[#allocation34_spill] sm:$0xff] %v25717_v7  ;;  %27237 = vst [vmem:[#allocation35_spill] sm:$0xff] %v25719_v53  ;;  %22570 = vmatpush3.msra.mxu0 %v1243_v14  ;;  %22571 = vmatprep.mubr.msk.f32.mxu0 %vm1204_vm0, %v25632_v28  ;;  %v23785_v14 = vld [vmem:[%s23964_s22 + $0x1c8] sm:$0xff]  ;;  %v25801_v35 = vpop.permute.xlu1 %1877  ;;  %v25803_v7 = vpop.permute.xlu0 %1749 }
 0x1b8   : > { %22567 = vmatmul.mubr.msk.f32.vlgmr.msra.gmra.mrb[36].mxu1 %vm1204_vm0, %v25639_v20  ;;  %22572 = vmatmul.mubr.msk.f32.vlgmr.msra.gmra.mrb[38].mxu0 %vm1204_vm0, %v25639_v20  ;;  %v1246_v45 = vadd.f32 %v23785_v14, %v23784_v27 }
 0x1b9   : > { %1909 = vrot.lane.b32.xlu1 %v1701_v46, %s23875_s26  ;;  %1781 = vrot.lane.b32.xlu0 %v1669_v9, %s23874_s23  ;;  %v23786_v46 = vld [vmem:[%s23964_s22 + $0x1f0] sm:$0xff] }
 0x1ba   : > { %22574 = vmatprep.subr.mxu1 %v1244_v60  ;;  %22579 = vmatprep.subr.mxu0 %v1245_v1  ;;  %v1247_v9 = vadd.f32 %v23787_v50, %v23786_v46  ;;  %v23788_v46 = vld [vmem:[%s23964_s22 + $0x220] sm:$0xff]  ;;  %v23789_v50 = vld [vmem:[%s23964_s22 + $0x228] sm:$0xff] }
 0x1bb   : > { %22575 = vmatpush3.msra.mxu1 %v1244_v60  ;;  %22576 = vmatprep.mubr.msk.f32.mxu1 %vm1204_vm0, %v25632_v28  ;;  %v25745_v25 = vpop.f32.mrb[16].mxu1  ;;  %v25747_v39 = vpop.f32.mrb[18].mxu0  ;;  %v25752_v60 = vld [vmem:[%s23964_s22 + $0x368] sm:$0xff] }
 0x1bc   : > { %27238 = vst [vmem:[#allocation36_spill] sm:$0xff] %v25745_v25  ;;  %27239 = vst [vmem:[#allocation37_spill] sm:$0xff] %v25747_v39  ;;  %22580 = vmatpush3.msra.mxu0 %v1245_v1  ;;  %22581 = vmatprep.mubr.msk.f32.mxu0 %vm1204_vm0, %v25632_v28  ;;  %v25757_v53 = vpop.f32.mrb[17].mxu1  ;;  %v25759_v27 = vpop.f32.mrb[19].mxu0  ;;  %v1703_v1 = vsub.f32 %v25755_v40, %v25752_v60  ;;  %v1671_v14 = vsub.f32 %v25752_v60, %v25755_v40  ;;  %v25780_v25 = vld [vmem:[%s23964_s22 + $0x398] sm:$0xff] }
 0x1bd   : > { %27240 = vst [vmem:[#allocation38_spill] sm:$0xff] %v25757_v53  ;;  %27241 = vst [vmem:[#allocation39_spill] sm:$0xff] %v25759_v27  ;;  %22577 = vmatmul.mubr.msk.f32.vlgmr.msra.gmra.mrb[38].mxu1 %vm1204_vm0, %v25639_v20  ;;  %22582 = vmatmul.mubr.msk.f32.vlgmr.msra.gmra.mrb[40].mxu0 %vm1204_vm0, %v25639_v20  ;;  %v1248_v39 = vadd.f32 %v23789_v50, %v23788_v46  ;;  %v23791_v27 = vld [vmem:[%s23964_s22 + $0x258] sm:$0xff]  ;;  %v23792_v46 = vld [vmem:[%s23964_s22 + $0x280] sm:$0xff] }
 0x1be   : > { %1911 = vrot.lane.b32.xlu1 %v1702_v18, %s23875_s26  ;;  %1783 = vrot.lane.b32.xlu0 %v1670_v52, %s23874_s23  ;;  %v23790_v18 = vld [vmem:[%s23964_s22 + $0x250] sm:$0xff]  ;;  %v23793_v50 = vld [vmem:[%s23964_s22 + $0x288] sm:$0xff] }
 0x1bf   : > { %22584 = vmatprep.subr.mxu1 %v1246_v45  ;;  %22589 = vmatprep.subr.mxu0 %v1247_v9  ;;  %v1249_v52 = vadd.f32 %v23791_v27, %v23790_v18  ;;  %v1250_v18 = vadd.f32 %v23793_v50, %v23792_v46  ;;  %v23795_v53 = vld [vmem:[%s23964_s22 + $0x2b8] sm:$0xff] }
 0x1c0   : > { %22585 = vmatpush3.msra.mxu1 %v1246_v45  ;;  %22586 = vmatprep.mubr.msk.f32.mxu1 %vm1204_vm0, %v25632_v28  ;;  %v25783_v45 = vld [vmem:[%s23964_s22 + $0x3b0] sm:$0xff] }
 0x1c1   : > { %22590 = vmatpush3.msra.mxu0 %v1247_v9  ;;  %22591 = vmatprep.mubr.msk.f32.mxu0 %vm1204_vm0, %v25632_v28  ;;  %v1704_v9 = vsub.f32 %v25783_v45, %v25780_v25  ;;  %v1672_v27 = vsub.f32 %v25780_v25, %v25783_v45 }
 0x1c2   : > { %22587 = vmatmul.mubr.msk.f32.vlgmr.msra.gmra.mrb[40].mxu1 %vm1204_vm0, %v25639_v20  ;;  %22592 = vmatmul.mubr.msk.f32.vlgmr.msra.gmra.mrb[42].mxu0 %vm1204_vm0, %v25639_v20 }
 0x1c3   : > { %1913 = vrot.lane.b32.xlu1 %v1703_v1, %s23875_s26  ;;  %1785 = vrot.lane.b32.xlu0 %v1671_v14, %s23874_s23  ;;  %v23794_v1 = vld [vmem:[%s23964_s22 + $0x2b0] sm:$0xff] }
 0x1c4   : > { %22594 = vmatprep.subr.mxu1 %v1248_v39  ;;  %22599 = vmatprep.subr.mxu0 %v1249_v52  ;;  %v1251_v14 = vadd.f32 %v23795_v53, %v23794_v1 }
 0x1c5   : > { %22595 = vmatpush3.msra.mxu1 %v1248_v39  ;;  %22596 = vmatprep.mubr.msk.f32.mxu1 %vm1204_vm0, %v25632_v28  ;;  %v25811_v39 = vld [vmem:[%s23964_s22 + $0x3e0] sm:$0xff] }
 0x1c6   : > { %22600 = vmatpush3.msra.mxu0 %v1249_v52  ;;  %22601 = vmatprep.mubr.msk.f32.mxu0 %vm1204_vm0, %v25632_v28  ;;  %v25813_v43 = vpop.f32.mrb[18].mxu1  ;;  %v25815_v46 = vpop.f32.mrb[20].mxu0  ;;  %v1705_v50 = vsub.f32 %v25811_v39, %v25808_v24  ;;  %v1673_v1 = vsub.f32 %v25808_v24, %v25811_v39 }
 0x1c7   : > { %27242 = vst [vmem:[#allocation40_spill] sm:$0xff] %v25813_v43  ;;  %27243 = vst [vmem:[#allocation41_spill] sm:$0xff] %v25815_v46  ;;  %22597 = vmatmul.mubr.msk.f32.vlgmr.msra.gmra.mrb[42].mxu1 %vm1204_vm0, %v25639_v20  ;;  %22602 = vmatmul.mubr.msk.f32.vlgmr.msra.gmra.mrb[44].mxu0 %vm1204_vm0, %v25639_v20  ;;  %v25821_v53 = vpop.f32.mrb[19].mxu1  ;;  %v25823_v52 = vpop.f32.mrb[21].mxu0  ;;  %v23796_v46 = vld [vmem:[%s23964_s22 + $0x2e0] sm:$0xff] }
 0x1c8   : > { %27244 = vst [vmem:[#allocation42_spill] sm:$0xff] %v25821_v53  ;;  %27245 = vst [vmem:[#allocation43_spill] sm:$0xff] %v25823_v52  ;;  %1915 = vrot.lane.b32.xlu1 %v1704_v9, %s23875_s26  ;;  %1787 = vrot.lane.b32.xlu0 %v1672_v27, %s23874_s23  ;;  %v23797_v52 = vld [vmem:[%s23964_s22 + $0x2e8] sm:$0xff]  ;;  %v23798_v9 = vld [vmem:[%s23964_s22 + $0x310] sm:$0xff] }
 0x1c9   : > { %22604 = vmatprep.subr.mxu1 %v1250_v18  ;;  %22609 = vmatprep.subr.mxu0 %v1251_v14  ;;  %v1252_v43 = vadd.f32 %v23797_v52, %v23796_v46  ;;  %v23799_v53 = vld [vmem:[%s23964_s22 + $0x318] sm:$0xff]  ;;  %v23800_v52 = vld [vmem:[%s23964_s22 + $0x340] sm:$0xff] }
 0x1ca   : > { %22605 = vmatpush3.msra.mxu1 %v1250_v18  ;;  %22606 = vmatprep.mubr.msk.f32.mxu1 %vm1204_vm0, %v25632_v28  ;;  %v1253_v51 = vadd.f32 %v23799_v53, %v23798_v9  ;;  %v25840_v27 = vld [vmem:[%s23964_s22 + $0x3f8] sm:$0xff]  ;;  %v25851_v18 = vpop.permute.xlu1 %1879  ;;  %v23802_v9 = vld [vmem:[%s23964_s22 + $0x370] sm:$0xff] }
 0x1cb   : > { %22610 = vmatpush3.msra.mxu0 %v1251_v14  ;;  %22611 = vmatprep.mubr.msk.f32.mxu0 %vm1204_vm0, %v25632_v28  ;;  %v25853_v14 = vpop.permute.xlu0 %1751  ;;  %v1706_v46 = vsub.f32 %v25843_v34, %v25840_v27  ;;  %v1674_v53 = vsub.f32 %v25840_v27, %v25843_v34  ;;  %v1255_v38 = vadd.f32 %v23803_v62, %v23802_v9 }
 0x1cc   : > { %22607 = vmatmul.mubr.msk.f32.vlgmr.msra.gmra.mrb[44].mxu1 %vm1204_vm0, %v25639_v20  ;;  %22612 = vmatmul.mubr.msk.f32.vlgmr.msra.gmra.mrb[46].mxu0 %vm1204_vm0, %v25639_v20 }
 0x1cd   : > { %1917 = vrot.lane.b32.xlu1 %v1705_v50, %s23875_s26  ;;  %1789 = vrot.lane.b32.xlu0 %v1673_v1, %s23874_s23  ;;  %v23801_v50 = vld [vmem:[%s23964_s22 + $0x348] sm:$0xff] }
 0x1ce   : > { %22614 = vmatprep.subr.mxu1 %v1252_v43  ;;  %22619 = vmatprep.subr.mxu0 %v1253_v51  ;;  %v1254_v1 = vadd.f32 %v23801_v50, %v23800_v52  ;;  %v25891_v50 = vpop.permute.xlu1 %1881 }
 0x1cf   : > { %22615 = vmatpush3.msra.mxu1 %v1252_v43  ;;  %22616 = vmatprep.mubr.msk.f32.mxu1 %vm1204_vm0, %v25632_v28  ;;  %v25865_v32 = vpop.f32.mrb[20].mxu1  ;;  %v25867_v36 = vpop.f32.mrb[22].mxu0  ;;  %v25875_v43 = vld [vmem:[%s23964_s22 + $0x440] sm:$0xff] }
 0x1d0   : > { %27246 = vst [vmem:[#allocation44_spill] sm:$0xff] %v25865_v32  ;;  %27247 = vst [vmem:[#allocation45_spill] sm:$0xff] %v25867_v36  ;;  %22620 = vmatpush3.msra.mxu0 %v1253_v51  ;;  %22621 = vmatprep.mubr.msk.f32.mxu0 %vm1204_vm0, %v25632_v28  ;;  %v25877_v59 = vpop.f32.mrb[21].mxu1  ;;  %v25879_v52 = vpop.f32.mrb[23].mxu0  ;;  %v1707_v62 = vsub.f32 %v25875_v43, %v25872_v23  ;;  %v1675_v51 = vsub.f32 %v25872_v23, %v25875_v43  ;;  %v23807_v32 = vld [vmem:[%s23964_s22 + $0x3d8] sm:$0xff] }
 0x1d1   : > { %27248 = vst [vmem:[#allocation46_spill] sm:$0xff] %v25877_v59  ;;  %27249 = vst [vmem:[#allocation47_spill] sm:$0xff] %v25879_v52  ;;  %22617 = vmatmul.mubr.msk.f32.vlgmr.msra.gmra.mrb[46].mxu1 %vm1204_vm0, %v25639_v20  ;;  %22622 = vmatmul.mubr.msk.f32.vlgmr.msra.gmra.mrb[48].mxu0 %vm1204_vm0, %v25639_v20  ;;  %v25893_v9 = vpop.permute.xlu0 %1753  ;;  %v23806_v52 = vld [vmem:[%s23964_s22 + $0x3d0] sm:$0xff] }
 0x1d2   : > { %1919 = vrot.lane.b32.xlu1 %v1706_v46, %s23875_s26  ;;  %1791 = vrot.lane.b32.xlu0 %v1674_v53, %s23874_s23  ;;  %v23804_v46 = vld [vmem:[%s23964_s22 + $0x3a0] sm:$0xff]  ;;  %v23805_v53 = vld [vmem:[%s23964_s22 + $0x3a8] sm:$0xff]  ;;  %v1257_v59 = vadd.f32 %v23807_v32, %v23806_v52  ;;  %v25925_v8 = vpop.permute.xlu1 %1883 }
 0x1d3   : > { %22624 = vmatprep.subr.mxu1 %v1254_v1  ;;  %22629 = vmatprep.subr.mxu0 %v1255_v38  ;;  %v1256_v36 = vadd.f32 %v23805_v53, %v23804_v46  ;;  %v23808_v52 = vld [vmem:[%s23964_s22 + $0x400] sm:$0xff]  ;;  %v23809_v46 = vld [vmem:[%s23964_s22 + $0x408] sm:$0xff]  ;;  %27250 = vst [vmem:[#allocation48_spill] sm:$0xff] %v25925_v8 }
 0x1d4   : > { %22625 = vmatpush3.msra.mxu1 %v1254_v1  ;;  %22626 = vmatprep.mubr.msk.f32.mxu1 %vm1204_vm0, %v25632_v28  ;;  %v25907_v1 = vld [vmem:[%s23964_s22 + $0x470] sm:$0xff]  ;;  %v1258_v53 = vadd.f32 %v23809_v46, %v23808_v52 }
 0x1d5   : > { %22630 = vmatpush3.msra.mxu0 %v1255_v38  ;;  %22631 = vmatprep.mubr.msk.f32.mxu0 %vm1204_vm0, %v25632_v28  ;;  %v1708_v32 = vsub.f32 %v25907_v1, %v25904_v42  ;;  %v1676_v38 = vsub.f32 %v25904_v42, %v25907_v1  ;;  %v25927_v61 = vpop.permute.xlu0 %1755 }
 0x1d6   : > { %22627 = vmatmul.mubr.msk.f32.vlgmr.msra.gmra.mrb[48].mxu1 %vm1204_vm0, %v25639_v20  ;;  %22632 = vmatmul.mubr.msk.f32.vlgmr.msra.gmra.mrb[50].mxu0 %vm1204_vm0, %v25639_v20  ;;  %27251 = vst [vmem:[#allocation49_spill] sm:$0xff] %v25927_v61  ;;  %v26130_v61 = vld [vmem:[%s23964_s22 + $0x5a8] sm:$0xff] }
 0x1d7   : > { %1921 = vrot.lane.b32.xlu1 %v1707_v62, %s23875_s26  ;;  %1793 = vrot.lane.b32.xlu0 %v1675_v51, %s23874_s23  ;;  %v23810_v62 = vld [vmem:[%s23964_s22 + $0x430] sm:$0xff] }
 0x1d8   : > { %22634 = vmatprep.subr.mxu1 %v1256_v36  ;;  %22639 = vmatprep.subr.mxu0 %v1257_v59  ;;  %v1259_v51 = vadd.f32 %v23811_v10, %v23810_v62 }
 0x1d9   : > { %22635 = vmatpush3.msra.mxu1 %v1256_v36  ;;  %22636 = vmatprep.mubr.msk.f32.mxu1 %vm1204_vm0, %v25632_v28  ;;  %v25935_v36 = vld [vmem:[%s23964_s22 + $0x4a0] sm:$0xff] }
 0x1da   : > { %22640 = vmatpush3.msra.mxu0 %v1257_v59  ;;  %22641 = vmatprep.mubr.msk.f32.mxu0 %vm1204_vm0, %v25632_v28  ;;  %v25937_v12 = vpop.f32.mrb[22].mxu1  ;;  %v25939_v52 = vpop.f32.mrb[24].mxu0  ;;  %v1709_v46 = vsub.f32 %v25935_v36, %v25932_v2  ;;  %v1677_v62 = vsub.f32 %v25932_v2, %v25935_v36 }
 0x1db   : > { %27252 = vst [vmem:[#allocation50_spill] sm:$0xff] %v25937_v12  ;;  %27253 = vst [vmem:[#allocation51_spill] sm:$0xff] %v25939_v52  ;;  %22637 = vmatmul.mubr.msk.f32.vlgmr.msra.gmra.mrb[50].mxu1 %vm1204_vm0, %v25639_v20  ;;  %22642 = vmatmul.mubr.msk.f32.vlgmr.msra.gmra.mrb[52].mxu0 %vm1204_vm0, %v25639_v20  ;;  %v25945_v10 = vpop.f32.mrb[23].mxu1  ;;  %v25947_v59 = vpop.f32.mrb[25].mxu0  ;;  %v23812_v52 = vld [vmem:[%s23964_s22 + $0x460] sm:$0xff] }
 0x1dc   : > { %27254 = vst [vmem:[#allocation52_spill] sm:$0xff] %v25945_v10  ;;  %27255 = vst [vmem:[#allocation53_spill] sm:$0xff] %v25947_v59  ;;  %1923 = vrot.lane.b32.xlu1 %v1708_v32, %s23875_s26  ;;  %1795 = vrot.lane.b32.xlu0 %v1676_v38, %s23874_s23  ;;  %v23813_v59 = vld [vmem:[%s23964_s22 + $0x468] sm:$0xff]  ;;  %v23814_v32 = vld [vmem:[%s23964_s22 + $0x490] sm:$0xff] }
 0x1dd   : > { %22644 = vmatprep.subr.mxu1 %v1258_v53  ;;  %22649 = vmatprep.subr.mxu0 %v1259_v51  ;;  %v1260_v12 = vadd.f32 %v23813_v59, %v23812_v52  ;;  %v23815_v10 = vld [vmem:[%s23964_s22 + $0x498] sm:$0xff]  ;;  %v23816_v59 = vld [vmem:[%s23964_s22 + $0x4c0] sm:$0xff] }
 0x1de   : > { %22645 = vmatpush3.msra.mxu1 %v1258_v53  ;;  %22646 = vmatprep.mubr.msk.f32.mxu1 %vm1204_vm0, %v25632_v28  ;;  %v1261_v49 = vadd.f32 %v23815_v10, %v23814_v32  ;;  %v25964_v38 = vld [vmem:[%s23964_s22 + $0x4b8] sm:$0xff]  ;;  %v25975_v53 = vpop.permute.xlu1 %1885  ;;  %v23818_v32 = vld [vmem:[%s23964_s22 + $0x4f0] sm:$0xff] }
 0x1df   : > { %22650 = vmatpush3.msra.mxu0 %v1259_v51  ;;  %22651 = vmatprep.mubr.msk.f32.mxu0 %vm1204_vm0, %v25632_v28  ;;  %27256 = vst [vmem:[#allocation54_spill] sm:$0xff] %v25975_v53  ;;  %v25977_v51 = vpop.permute.xlu0 %1757  ;;  %v1710_v52 = vsub.f32 %v25967_v33, %v25964_v38  ;;  %v1678_v10 = vsub.f32 %v25964_v38, %v25967_v33 }
 0x1e0   : > { %22647 = vmatmul.mubr.msk.f32.vlgmr.msra.gmra.mrb[52].mxu1 %vm1204_vm0, %v25639_v20  ;;  %22652 = vmatmul.mubr.msk.f32.vlgmr.msra.gmra.mrb[54].mxu0 %vm1204_vm0, %v25639_v20  ;;  %27257 = vst [vmem:[#allocation55_spill] sm:$0xff] %v25977_v51  ;;  %v1263_v63 = vadd.f32 %v23819_v48, %v23818_v32 }
 0x1e1   : > { %1925 = vrot.lane.b32.xlu1 %v1709_v46, %s23875_s26  ;;  %1797 = vrot.lane.b32.xlu0 %v1677_v62, %s23874_s23  ;;  %v23817_v46 = vld [vmem:[%s23964_s22 + $0x4c8] sm:$0xff] }
 0x1e2   : > { %22654 = vmatprep.subr.mxu1 %v1260_v12  ;;  %22659 = vmatprep.subr.mxu0 %v1261_v49  ;;  %v1262_v62 = vadd.f32 %v23817_v46, %v23816_v59  ;;  %v26015_v46 = vpop.permute.xlu1 %1887 }
 0x1e3   : > { %22655 = vmatpush3.msra.mxu1 %v1260_v12  ;;  %22656 = vmatprep.mubr.msk.f32.mxu1 %vm1204_vm0, %v25632_v28  ;;  %v25989_v21 = vpop.f32.mrb[24].mxu1  ;;  %v25991_v44 = vpop.f32.mrb[26].mxu0  ;;  %v25999_v12 = vld [vmem:[%s23964_s22 + $0x500] sm:$0xff]  ;;  %27262 = vst [vmem:[#allocation60_spill] sm:$0xff] %v26015_v46 }
 0x1e4   : > { %27258 = vst [vmem:[#allocation56_spill] sm:$0xff] %v25989_v21  ;;  %27259 = vst [vmem:[#allocation57_spill] sm:$0xff] %v25991_v44  ;;  %22660 = vmatpush3.msra.mxu0 %v1261_v49  ;;  %22661 = vmatprep.mubr.msk.f32.mxu0 %vm1204_vm0, %v25632_v28  ;;  %v26001_v57 = vpop.f32.mrb[25].mxu1  ;;  %v26003_v59 = vpop.f32.mrb[27].mxu0  ;;  %v1711_v48 = vsub.f32 %v25999_v12, %v25996_v17  ;;  %v1679_v49 = vsub.f32 %v25996_v17, %v25999_v12  ;;  %v23823_v21 = vld [vmem:[%s23964_s22 + $0x558] sm:$0xff] }
 0x1e5   : > { %27260 = vst [vmem:[#allocation58_spill] sm:$0xff] %v26001_v57  ;;  %27261 = vst [vmem:[#allocation59_spill] sm:$0xff] %v26003_v59  ;;  %22657 = vmatmul.mubr.msk.f32.vlgmr.msra.gmra.mrb[54].mxu1 %vm1204_vm0, %v25639_v20  ;;  %22662 = vmatmul.mubr.msk.f32.vlgmr.msra.gmra.mrb[56].mxu0 %vm1204_vm0, %v25639_v20  ;;  %v26017_v32 = vpop.permute.xlu0 %1759  ;;  %v23822_v59 = vld [vmem:[%s23964_s22 + $0x550] sm:$0xff] }
 0x1e6   : > { %1927 = vrot.lane.b32.xlu1 %v1710_v52, %s23875_s26  ;;  %1799 = vrot.lane.b32.xlu0 %v1678_v10, %s23874_s23  ;;  %27263 = vst [vmem:[#allocation61_spill] sm:$0xff] %v26017_v32  ;;  %v23820_v52 = vld [vmem:[%s23964_s22 + $0x520] sm:$0xff]  ;;  %v23821_v10 = vld [vmem:[%s23964_s22 + $0x528] sm:$0xff]  ;;  %v1265_v57 = vadd.f32 %v23823_v21, %v23822_v59  ;;  %v26049_v6 = vpop.permute.xlu1 %1889 }
 0x1e7   : > { %22664 = vmatprep.subr.mxu1 %v1262_v62  ;;  %22669 = vmatprep.subr.mxu0 %v1263_v63  ;;  %v1264_v44 = vadd.f32 %v23821_v10, %v23820_v52  ;;  %v23824_v59 = vld [vmem:[%s23964_s22 + $0x580] sm:$0xff]  ;;  %v23825_v52 = vld [vmem:[%s23964_s22 + $0x588] sm:$0xff]  ;;  %27264 = vst [vmem:[#allocation62_spill] sm:$0xff] %v26049_v6  ;;  %v26091_v6 = vld [vmem:[%s23964_s22 + $0x590] sm:$0xff] }
 0x1e8   : > { %22665 = vmatpush3.msra.mxu1 %v1262_v62  ;;  %22666 = vmatprep.mubr.msk.f32.mxu1 %vm1204_vm0, %v25632_v28  ;;  %v26031_v62 = vld [vmem:[%s23964_s22 + $0x530] sm:$0xff]  ;;  %v1266_v10 = vadd.f32 %v23825_v52, %v23824_v59  ;;  %v23835_v32 = vld [vmem:[%s23964_s22 + $0x80] sm:$0xff] }
 0x1e9   : > { %22670 = vmatpush3.msra.mxu0 %v1263_v63  ;;  %22671 = vmatprep.mubr.msk.f32.mxu0 %vm1204_vm0, %v25632_v28  ;;  %v1712_v21 = vsub.f32 %v26031_v62, %v26028_v15  ;;  %v1680_v63 = vsub.f32 %v26028_v15, %v26031_v62  ;;  %v26051_v3 = vpop.permute.xlu0 %1761 }
 0x1ea   : > { %22667 = vmatmul.mubr.msk.f32.vlgmr.msra.gmra.mrb[56].mxu1 %vm1204_vm0, %v25639_v20  ;;  %22672 = vmatmul.mubr.msk.f32.vlgmr.msra.gmra.mrb[58].mxu0 %vm1204_vm0, %v25639_v20  ;;  %27265 = vst [vmem:[#allocation63_spill] sm:$0xff] %v26051_v3 }
 0x1eb   : > { %1929 = vrot.lane.b32.xlu1 %v1711_v48, %s23875_s26  ;;  %1801 = vrot.lane.b32.xlu0 %v1679_v49, %s23874_s23  ;;  %v23826_v48 = vld [vmem:[%s23964_s22 + $0x5b0] sm:$0xff] }
 0x1ec   : > { %22674 = vmatprep.subr.mxu1 %v1264_v44  ;;  %22679 = vmatprep.subr.mxu0 %v1265_v57  ;;  %v1267_v49 = vadd.f32 %v23827_v56, %v23826_v48 }
 0x1ed   : > { %22675 = vmatpush3.msra.mxu1 %v1264_v44  ;;  %22676 = vmatprep.mubr.msk.f32.mxu1 %vm1204_vm0, %v25632_v28  ;;  %v26059_v44 = vld [vmem:[%s23964_s22 + $0x560] sm:$0xff] }
 0x1ee   : > { %22680 = vmatpush3.msra.mxu0 %v1265_v57  ;;  %22681 = vmatprep.mubr.msk.f32.mxu0 %vm1204_vm0, %v25632_v28  ;;  %v26061_v13 = vpop.f32.mrb[26].mxu1  ;;  %v26063_v59 = vpop.f32.mrb[28].mxu0  ;;  %v1713_v52 = vsub.f32 %v26059_v44, %v26056_v19  ;;  %v1681_v48 = vsub.f32 %v26056_v19, %v26059_v44 }
 0x1ef   : > { %27266 = vst [vmem:[#allocation64_spill] sm:$0xff] %v26061_v13  ;;  %27267 = vst [vmem:[#allocation65_spill] sm:$0xff] %v26063_v59  ;;  %22677 = vmatmul.mubr.msk.f32.vlgmr.msra.gmra.mrb[58].mxu1 %vm1204_vm0, %v25639_v20  ;;  %22682 = vmatmul.mubr.msk.f32.vlgmr.msra.gmra.mrb[60].mxu0 %vm1204_vm0, %v25639_v20  ;;  %v26069_v56 = vpop.f32.mrb[27].mxu1  ;;  %v26071_v57 = vpop.f32.mrb[29].mxu0  ;;  %v23828_v59 = vld [vmem:[%s23964_s22 + $0x5e0] sm:$0xff] }
 0x1f0   : > { %27268 = vst [vmem:[#allocation66_spill] sm:$0xff] %v26069_v56  ;;  %27269 = vst [vmem:[#allocation67_spill] sm:$0xff] %v26071_v57  ;;  %1931 = vrot.lane.b32.xlu1 %v1712_v21, %s23875_s26  ;;  %1803 = vrot.lane.b32.xlu0 %v1680_v63, %s23874_s23  ;;  %v23829_v57 = vld [vmem:[%s23964_s22 + $0x5e8] sm:$0xff]  ;;  %v23831_v56 = vld [vmem:[%s23964_s22 + $0x20] sm:$0xff] }
 0x1f1   : > { %22684 = vmatprep.subr.mxu1 %v1266_v10  ;;  %22689 = vmatprep.subr.mxu0 %v1267_v49  ;;  %v1268_v13 = vadd.f32 %v23829_v57, %v23828_v59  ;;  %v23830_v21 = vld [vmem:[%s23964_s22 + $0x8] sm:$0xff]  ;;  %v26088_v63 = vld [vmem:[%s23964_s22 + $0x578] sm:$0xff]  ;;  %v26106_v59 = vpop.permute.xlu0 %1763 }
 0x1f2   : > { %22685 = vmatpush3.msra.mxu1 %v1266_v10  ;;  %22686 = vmatprep.mubr.msk.f32.mxu1 %vm1204_vm0, %v25632_v28  ;;  %v1621_v3 = vadd.f32 %v23831_v56, %v23830_v21  ;;  %v26102_v10 = vld [vmem:[%s27189_s6] sm:$0xff]  ;;  %27271 = vst [vmem:[#allocation69_spill] sm:$0xff] %v26106_v59  ;;  %v26111_v56 = vld [vmem:[%s27189_s6 + $0x8] sm:$0xff]  ;;  %v1714_v57 = vsub.f32 %v26091_v6, %v26088_v63  ;;  %v23833_v21 = vld [vmem:[%s23964_s22 + $0x50] sm:$0xff] }
 0x1f3   : > { %22690 = vmatpush3.msra.mxu0 %v1267_v49  ;;  %22691 = vmatprep.mubr.msk.f32.mxu0 %vm1204_vm0, %v25632_v28  ;;  %v26104_v49 = vpop.permute.xlu1 %1891 }
 0x1f4   : > { %22687 = vmatmul.mubr.msk.f32.vlgmr.msra.gmra.mrb[60].mxu1 %vm1204_vm0, %v25639_v20  ;;  %22692 = vmatmul.mubr.msk.f32.vlgmr.msra.gmra.mrb[62].mxu0 %vm1204_vm0, %v25639_v20  ;;  %27270 = vst [vmem:[#allocation68_spill] sm:$0xff] %v26104_v49  ;;  %v23834_v49 = vld [vmem:[%s23964_s22 + $0x68] sm:$0xff] }
 0x1f5   : > { %1933 = vrot.lane.b32.xlu1 %v1713_v52, %s23875_s26  ;;  %1805 = vrot.lane.b32.xlu0 %v1681_v48, %s23874_s23  ;;  %v1682_v52 = vsub.f32 %v26088_v63, %v26091_v6  ;;  %v23832_v48 = vld [vmem:[%s23964_s22 + $0x38] sm:$0xff]  ;;  %v1623_v46 = vadd.f32 %v23835_v32, %v23834_v49 }
 0x1f6   : > { %22694 = vmatprep.subr.mxu1 %v1268_v13  ;;  %22699 = vmatprep.subr.mxu0 %v1621_v3  ;;  %v1622_v59 = vadd.f32 %v23833_v21, %v23832_v48 }
 0x1f7   : > { %22695 = vmatpush3.msra.mxu1 %v1268_v13  ;;  %22696 = vmatprep.mubr.msk.f32.mxu1 %vm1204_vm0, %v25632_v28  ;;  %v26123_v51 = vpop.f32.mrb[28].mxu1  ;;  %v26125_v53 = vpop.f32.mrb[30].mxu0  ;;  %v26133_v13 = vld [vmem:[%s23964_s22 + $0x5c0] sm:$0xff] }
 0x1f8   : > { %27272 = vst [vmem:[#allocation70_spill] sm:$0xff] %v26123_v51  ;;  %27273 = vst [vmem:[#allocation71_spill] sm:$0xff] %v26125_v53  ;;  %22700 = vmatpush3.msra.mxu0 %v1621_v3  ;;  %22701 = vmatprep.mubr.msk.f32.mxu0 %vm1204_vm0, %v26102_v10  ;;  %v26135_v28 = vpop.f32.mrb[29].mxu1  ;;  %v26137_v48 = vpop.f32.mrb[31].mxu0  ;;  %v1715_v3 = vsub.f32 %v26133_v13, %v26130_v61  ;;  %v1683_v32 = vsub.f32 %v26130_v61, %v26133_v13  ;;  %v23838_v53 = vld [vmem:[%s23964_s22 + $0xc8] sm:$0xff] }
 0x1f9   : > { %27274 = vst [vmem:[#allocation72_spill] sm:$0xff] %v26135_v28  ;;  %27275 = vst [vmem:[#allocation73_spill] sm:$0xff] %v26137_v48  ;;  %22697 = vmatmul.mubr.msk.f32.vlgmr.msra.gmra.mrb[62].mxu1 %vm1204_vm0, %v25639_v20  ;;  %22702 = vmatmul.mubr.msk.f32.vlgmr.msra.gmra.mrb[32].mxu0 %vm1204_vm0, %v26111_v56  ;;  %v26149_v49 = vpop.permute.xlu1 %1893  ;;  %v26151_v20 = vpop.permute.xlu0 %1765  ;;  %v23839_v48 = vld [vmem:[%s23964_s22 + $0xe0] sm:$0xff]  ;;  %v26162_v28 = vld [vmem:[%s23964_s22 + $0x5d8] sm:$0xff] }
 0x1fa   : > { %1935 = vrot.lane.b32.xlu1 %v1714_v57, %s23875_s26  ;;  %1807 = vrot.lane.b32.xlu0 %v1682_v52, %s23874_s23  ;;  %27276 = vst [vmem:[#allocation74_spill] sm:$0xff] %v26149_v49  ;;  %27277 = vst [vmem:[#allocation75_spill] sm:$0xff] %v26151_v20  ;;  %v23836_v57 = vld [vmem:[%s23964_s22 + $0x98] sm:$0xff]  ;;  %v23837_v52 = vld [vmem:[%s23964_s22 + $0xb0] sm:$0xff]  ;;  %v1625_v51 = vadd.f32 %v23839_v48, %v23838_v53 }
 0x1fb   : > { %22704 = vmatprep.subr.mxu1 %v1622_v59  ;;  %22709 = vmatprep.subr.mxu0 %v1623_v46  ;;  %v1624_v21 = vadd.f32 %v23837_v52, %v23836_v57  ;;  %v26165_v49 = vld [vmem:[%s23964_s22 + $0x5f0] sm:$0xff]  ;;  %v23840_v57 = vld [vmem:[%s23964_s22 + $0xf8] sm:$0xff] }
 0x1fc   : > { %22705 = vmatpush3.msra.mxu1 %v1622_v59  ;;  %22706 = vmatprep.mubr.msk.f32.mxu1 %vm1204_vm0, %v26102_v10  ;;  %v1684_v48 = vsub.f32 %v26162_v28, %v26165_v49  ;;  %v23841_v52 = vld [vmem:[%s23964_s22 + $0x110] sm:$0xff] }
 0x1fd   : > { %22710 = vmatpush3.msra.mxu0 %v1623_v46  ;;  %22711 = vmatprep.mubr.msk.f32.mxu0 %vm1204_vm0, %v26102_v10  ;;  %v1716_v46 = vsub.f32 %v26165_v49, %v26162_v28  ;;  %v26187_v20 = vpop.permute.xlu1 %1895  ;;  %v26189_v8 = vpop.permute.xlu0 %1767 }
 0x1fe   : > { %22707 = vmatmul.mubr.msk.f32.vlgmr.msra.gmra.mrb[32].mxu1 %vm1204_vm0, %v26111_v56  ;;  %22712 = vmatmul.mubr.msk.f32.vlgmr.msra.gmra.mrb[34].mxu0 %vm1204_vm0, %v26111_v56  ;;  %v26171_v59 = vpop.f32.mrb[30].mxu1 }
 0x1ff   : > { %27278 = vst [vmem:[#allocation76_spill] sm:$0xff] %v26171_v59  ;;  %1937 = vrot.lane.b32.xlu1 %v1715_v3, %s23875_s26  ;;  %1809 = vrot.lane.b32.xlu0 %v1683_v32, %s23874_s23  ;;  %v26175_v53 = vpop.f32.mrb[31].mxu1  ;;  %v1626_v3 = vadd.f32 %v23841_v52, %v23840_v57  ;;  %v23842_v32 = vld [vmem:[%s23964_s22 + $0x128] sm:$0xff]  ;;  %v23843_v59 = vld [vmem:[%s23964_s22 + $0x140] sm:$0xff] }
 0x200   : > { %27279 = vst [vmem:[#allocation77_spill] sm:$0xff] %v26175_v53  ;;  %22714 = vmatprep.subr.mxu1 %v1624_v21  ;;  %22719 = vmatprep.subr.mxu0 %v1625_v51  ;;  %v1627_v53 = vadd.f32 %v23843_v59, %v23842_v32  ;;  %v23845_v59 = vld [vmem:[%s23964_s22 + $0x170] sm:$0xff]  ;;  %v23846_v57 = vld [vmem:[%s23964_s22 + $0x188] sm:$0xff]  ;;  %v23847_v52 = vld [vmem:[%s23964_s22 + $0x1a0] sm:$0xff] }
 0x201   : > { %22715 = vmatpush3.msra.mxu1 %v1624_v21  ;;  %22716 = vmatprep.mubr.msk.f32.mxu1 %vm1204_vm0, %v26102_v10  ;;  %v23844_v21 = vld [vmem:[%s23964_s22 + $0x158] sm:$0xff]  ;;  %v1629_v32 = vadd.f32 %v23847_v52, %v23846_v57  ;;  %v1632_v57 = vadd.f32 %v25496_v5, %v25493_v0  ;;  %v1634_v0 = vadd.f32 %v25538_v4, %v25535_v11 }
 0x202   : > { %22720 = vmatpush3.msra.mxu0 %v1625_v51  ;;  %22721 = vmatprep.mubr.msk.f32.mxu0 %vm1204_vm0, %v26102_v10  ;;  %v1628_v51 = vadd.f32 %v23845_v59, %v23844_v21  ;;  %v23849_v21 = vld [vmem:[%s23964_s22 + $0x1d0] sm:$0xff]  ;;  %v1635_v5 = vadd.f32 %v25575_v30, %v25572_v55  ;;  %v1636_v11 = vadd.f32 %v25592_v54, %v25589_v37 }
 0x203   : > { %22717 = vmatmul.mubr.msk.f32.vlgmr.msra.gmra.mrb[34].mxu1 %vm1204_vm0, %v26111_v56  ;;  %22722 = vmatmul.mubr.msk.f32.vlgmr.msra.gmra.mrb[36].mxu0 %vm1204_vm0, %v26111_v56  ;;  %v1637_v4 = vadd.f32 %v25694_v29, %v25691_v31  ;;  %v1638_v55 = vadd.f32 %v25727_v58, %v25724_v41  ;;  %v1639_v30 = vadd.f32 %v25755_v40, %v25752_v60 }
 0x204   : > { %1939 = vrot.lane.b32.xlu1 %v1716_v46, %s23875_s26  ;;  %1811 = vrot.lane.b32.xlu0 %v1684_v48, %s23874_s23  ;;  %v26207_v46 = vpop.permute.xlu1 %1897  ;;  %v26209_v48 = vpop.permute.xlu0 %1769  ;;  %v1640_v31 = vadd.f32 %v25783_v45, %v25780_v25  ;;  %v1641_v29 = vadd.f32 %v25811_v39, %v25808_v24  ;;  %v1642_v24 = vadd.f32 %v25843_v34, %v25840_v27 }
 0x205   : > { %22724 = vmatprep.subr.mxu1 %v1626_v3  ;;  %22729 = vmatprep.subr.mxu0 %v1627_v53  ;;  %v1643_v58 = vadd.f32 %v25875_v43, %v25872_v23  ;;  %v1644_v34 = vadd.f32 %v25907_v1, %v25904_v42  ;;  %v1645_v23 = vadd.f32 %v25935_v36, %v25932_v2 }
 0x206   : > { %22725 = vmatpush3.msra.mxu1 %v1626_v3  ;;  %22726 = vmatprep.mubr.msk.f32.mxu1 %vm1204_vm0, %v26102_v10  ;;  %v23848_v3 = vld [vmem:[%s23964_s22 + $0x1b8] sm:$0xff]  ;;  %v1646_v2 = vadd.f32 %v25967_v33, %v25964_v38  ;;  %v1647_v42 = vadd.f32 %v25999_v12, %v25996_v17  ;;  %v1648_v17 = vadd.f32 %v26031_v62, %v26028_v15  ;;  %v26395_v38 = vld [vmem:[%s27190_s7] sm:$0xff] }
 0x207   : > { %22730 = vmatpush3.msra.mxu0 %v1627_v53  ;;  %22731 = vmatprep.mubr.msk.f32.mxu0 %vm1204_vm0, %v26102_v10  ;;  %v1630_v59 = vadd.f32 %v23849_v21, %v23848_v3  ;;  %v1631_v53 = vadd.f32 %v25474_v22, %v25471_v16  ;;  %v1633_v16 = vadd.f32 %v25514_v26, %v25511_v47  ;;  %v27287_v3 = vld [vmem:[#allocation63_spill] sm:$0xff] }
 0x208   : > { %22727 = vmatmul.mubr.msk.f32.vlgmr.msra.gmra.mrb[36].mxu1 %vm1204_vm0, %v26111_v56  ;;  %22732 = vmatmul.mubr.msk.f32.vlgmr.msra.gmra.mrb[38].mxu0 %vm1204_vm0, %v26111_v56  ;;  %v26231_v22 = vpop.permute.xlu1 %1899  ;;  %v1649_v33 = vadd.f32 %v26059_v44, %v26056_v19  ;;  %v1650_v19 = vadd.f32 %v26091_v6, %v26088_v63  ;;  %v1651_v43 = vadd.f32 %v26133_v13, %v26130_v61  ;;  %v27283_v63 = vld [vmem:[#allocation55_spill] sm:$0xff] }
 0x209   : > { %22734 = vmatprep.subr.mxu1 %v1628_v51  ;;  %22739 = vmatprep.subr.mxu0 %v1629_v32  ;;  %v1652_v6 = vadd.f32 %v26165_v49, %v26162_v28  ;;  %v1973_v36 = vsel %vm1204_vm0, %v25803_v7, %v25801_v35  ;;  %v26400_v35 = vld [vmem:[%s27190_s7 + $0x8] sm:$0xff]  ;;  %v1974_v7 = vsel %vm1204_vm0, %v25853_v14, %v25851_v18  ;;  %v27280_v18 = vld [vmem:[#allocation48_spill] sm:$0xff]  ;;  %v27281_v14 = vld [vmem:[#allocation49_spill] sm:$0xff] }
 0x20a   : > { %22735 = vmatpush3.msra.mxu1 %v1628_v51  ;;  %22736 = vmatprep.mubr.msk.f32.mxu1 %vm1204_vm0, %v26102_v10  ;;  %v26233_v51 = vpop.permute.xlu0 %1771  ;;  %v1975_v12 = vsel %vm1204_vm0, %v25893_v9, %v25891_v50  ;;  %v1976_v50 = vsel %vm1204_vm0, %v27281_v14, %v27280_v18  ;;  %v27282_v9 = vld [vmem:[#allocation54_spill] sm:$0xff]  ;;  %v27284_v28 = vld [vmem:[#allocation60_spill] sm:$0xff]  ;;  %v27285_v49 = vld [vmem:[#allocation61_spill] sm:$0xff] }
 0x20b   : > { %22740 = vmatpush3.msra.mxu0 %v1629_v32  ;;  %22741 = vmatprep.mubr.msk.f32.mxu0 %vm1204_vm0, %v26102_v10  ;;  %v1978_v52 = vsel %vm1204_vm0, %v27285_v49, %v27284_v28  ;;  %v27286_v32 = vld [vmem:[#allocation62_spill] sm:$0xff]  ;;  %v19055_v14 = vld [vmem:[%s27191_s8 + $0x8] sm:$0xff] }
 0x20c   : > { %22737 = vmatmul.mubr.msk.f32.vlgmr.msra.gmra.mrb[38].mxu1 %vm1204_vm0, %v26111_v56  ;;  %22742 = vmatmul.mubr.msk.f32.vlgmr.msra.gmra.mrb[40].mxu0 %vm1204_vm0, %v26111_v56  ;;  %v26251_v47 = vpop.permute.xlu1 %1901  ;;  %v1979_v21 = vsel %vm1204_vm0, %v27287_v3, %v27286_v32  ;;  %v19054_v18 = vld [vmem:[%s27191_s8] sm:$0xff]  ;;  %v19057_v28 = vld [vmem:[%s27192_s9 + $0x8] sm:$0xff]  ;;  %v27294_v32 = vld [vmem:[#allocation5_spill] sm:$0xff] }
 0x20d   : > { %22744 = vmatprep.subr.mxu1 %v1630_v59  ;;  %22749 = vmatprep.subr.mxu0 %v1631_v53  ;;  %v27295_v3 = vld [vmem:[#allocation3_spill] sm:$0xff] }
 0x20e   : > { %22745 = vmatpush3.msra.mxu1 %v1630_v59  ;;  %22746 = vmatprep.mubr.msk.f32.mxu1 %vm1204_vm0, %v26102_v10  ;;  %v26253_v26 = vpop.permute.xlu0 %1773 }
 0x20f   : > { %22750 = vmatpush3.msra.mxu0 %v1631_v53  ;;  %22751 = vmatprep.mubr.msk.f32.mxu0 %vm1204_vm0, %v26102_v10 }
 0x210   : > { %22747 = vmatmul.mubr.msk.f32.vlgmr.msra.gmra.mrb[40].mxu1 %vm1204_vm0, %v26111_v56  ;;  %22752 = vmatmul.mubr.msk.f32.vlgmr.msra.gmra.mrb[42].mxu0 %vm1204_vm0, %v26111_v56  ;;  %v26275_v37 = vpop.permute.xlu1 %1903 }
 0x211   : > { %22754 = vmatprep.subr.mxu1 %v1632_v57  ;;  %22759 = vmatprep.subr.mxu0 %v1633_v16 }
 0x212   : > { %22755 = vmatpush3.msra.mxu1 %v1632_v57  ;;  %22756 = vmatprep.mubr.msk.f32.mxu1 %vm1204_vm0, %v26102_v10  ;;  %v26277_v54 = vpop.permute.xlu0 %1775  ;;  %v27288_v57 = vld [vmem:[#allocation68_spill] sm:$0xff] }
 0x213   : > { %22760 = vmatpush3.msra.mxu0 %v1633_v16  ;;  %22761 = vmatprep.mubr.msk.f32.mxu0 %vm1204_vm0, %v26102_v10  ;;  %v27289_v16 = vld [vmem:[#allocation69_spill] sm:$0xff] }
 0x214   : > { %22757 = vmatmul.mubr.msk.f32.vlgmr.msra.gmra.mrb[42].mxu1 %vm1204_vm0, %v26111_v56  ;;  %22762 = vmatmul.mubr.msk.f32.vlgmr.msra.gmra.mrb[44].mxu0 %vm1204_vm0, %v26111_v56  ;;  %v26295_v40 = vpop.permute.xlu1 %1905 }
 0x215   : > { %22764 = vmatprep.subr.mxu1 %v1634_v0  ;;  %22769 = vmatprep.subr.mxu0 %v1635_v5 }
 0x216   : > { %22765 = vmatpush3.msra.mxu1 %v1634_v0  ;;  %22766 = vmatprep.mubr.msk.f32.mxu1 %vm1204_vm0, %v26102_v10  ;;  %v26297_v41 = vpop.permute.xlu0 %1777  ;;  %v1980_v0 = vsel %vm1204_vm0, %v27289_v16, %v27288_v57  ;;  %v27301_v57 = vld [vmem:[#allocation10_spill] sm:$0xff] }
 0x217   : > { %22770 = vmatpush3.msra.mxu0 %v1635_v5  ;;  %22771 = vmatprep.mubr.msk.f32.mxu0 %vm1204_vm0, %v26102_v10  ;;  %v27290_v5 = vld [vmem:[#allocation74_spill] sm:$0xff] }
 0x218   : > { %22767 = vmatmul.mubr.msk.f32.vlgmr.msra.gmra.mrb[44].mxu1 %vm1204_vm0, %v26111_v56  ;;  %22772 = vmatmul.mubr.msk.f32.vlgmr.msra.gmra.mrb[46].mxu0 %vm1204_vm0, %v26111_v56  ;;  %v26319_v25 = vpop.permute.xlu1 %1907  ;;  %v27302_v16 = vld [vmem:[#allocation14_spill] sm:$0xff] }
 0x219   : > { %22774 = vmatprep.subr.mxu1 %v1636_v11  ;;  %22779 = vmatprep.subr.mxu0 %v1637_v4 }
 0x21a   : > { %22775 = vmatpush3.msra.mxu1 %v1636_v11  ;;  %22776 = vmatprep.mubr.msk.f32.mxu1 %vm1204_vm0, %v26102_v10  ;;  %v27291_v11 = vld [vmem:[#allocation75_spill] sm:$0xff] }
 0x21b   : > { %22780 = vmatpush3.msra.mxu0 %v1637_v4  ;;  %22781 = vmatprep.mubr.msk.f32.mxu0 %vm1204_vm0, %v26102_v10  ;;  %v1981_v4 = vsel %vm1204_vm0, %v27291_v11, %v27290_v5  ;;  %v27304_v5 = vld [vmem:[#allocation15_spill] sm:$0xff]  ;;  %v27305_v11 = vld [vmem:[#allocation13_spill] sm:$0xff] }
 0x21c   : > { %22777 = vmatmul.mubr.msk.f32.vlgmr.msra.gmra.mrb[46].mxu1 %vm1204_vm0, %v26111_v56  ;;  %22782 = vmatmul.mubr.msk.f32.vlgmr.msra.gmra.mrb[48].mxu0 %vm1204_vm0, %v26111_v56 }
 0x21d   : > { %22784 = vmatprep.subr.mxu1 %v1638_v55  ;;  %22789 = vmatprep.subr.mxu0 %v1639_v30 }
 0x21e   : > { %22785 = vmatpush3.msra.mxu1 %v1638_v55  ;;  %22786 = vmatprep.mubr.msk.f32.mxu1 %vm1204_vm0, %v26102_v10 }
 0x21f   : > { %22790 = vmatpush3.msra.mxu0 %v1639_v30  ;;  %22791 = vmatprep.mubr.msk.f32.mxu0 %vm1204_vm0, %v26102_v10 }
 0x220   : > { %22787 = vmatmul.mubr.msk.f32.vlgmr.msra.gmra.mrb[48].mxu1 %vm1204_vm0, %v26111_v56  ;;  %22792 = vmatmul.mubr.msk.f32.vlgmr.msra.gmra.mrb[50].mxu0 %vm1204_vm0, %v26111_v56 }
 0x221   : > { %22794 = vmatprep.subr.mxu1 %v1640_v31  ;;  %22799 = vmatprep.subr.mxu0 %v1641_v29 }
 0x222   : > { %22795 = vmatpush3.msra.mxu1 %v1640_v31  ;;  %22796 = vmatprep.mubr.msk.f32.mxu1 %vm1204_vm0, %v26102_v10  ;;  %v1982_v31 = vsel %vm1204_vm0, %v26189_v8, %v26187_v20  ;;  %v1984_v8 = vsel %vm1204_vm0, %v26233_v51, %v26231_v22  ;;  %v1985_v20 = vsel %vm1204_vm0, %v26253_v26, %v26251_v47 }
 0x223   : > { %22800 = vmatpush3.msra.mxu0 %v1641_v29  ;;  %22801 = vmatprep.mubr.msk.f32.mxu0 %vm1204_vm0, %v26102_v10  ;;  %v1983_v29 = vsel %vm1204_vm0, %v26209_v48, %v26207_v46  ;;  %v1986_v22 = vsel %vm1204_vm0, %v26277_v54, %v26275_v37  ;;  %v1987_v51 = vsel %vm1204_vm0, %v26297_v41, %v26295_v40 }
 0x224   : > { %22797 = vmatmul.mubr.msk.f32.vlgmr.msra.gmra.mrb[50].mxu1 %vm1204_vm0, %v26111_v56  ;;  %22802 = vmatmul.mubr.msk.f32.vlgmr.msra.gmra.mrb[52].mxu0 %vm1204_vm0, %v26111_v56 }
 0x225   : > { %22804 = vmatprep.subr.mxu1 %v1642_v24  ;;  %22809 = vmatprep.subr.mxu0 %v1643_v58  ;;  %v26321_v60 = vpop.permute.xlu0 %1779 }
 0x226   : > { %22805 = vmatpush3.msra.mxu1 %v1642_v24  ;;  %22806 = vmatprep.mubr.msk.f32.mxu1 %vm1204_vm0, %v26102_v10  ;;  %v1988_v37 = vsel %vm1204_vm0, %v26321_v60, %v26319_v25 }
 0x227   : > { %22810 = vmatpush3.msra.mxu0 %v1643_v58  ;;  %22811 = vmatprep.mubr.msk.f32.mxu0 %vm1204_vm0, %v26102_v10 }
 0x228   : > { %22807 = vmatmul.mubr.msk.f32.vlgmr.msra.gmra.mrb[52].mxu1 %vm1204_vm0, %v26111_v56  ;;  %22812 = vmatmul.mubr.msk.f32.vlgmr.msra.gmra.mrb[54].mxu0 %vm1204_vm0, %v26111_v56 }
 0x229   : > { %22814 = vmatprep.subr.mxu1 %v1644_v34  ;;  %22819 = vmatprep.subr.mxu0 %v1645_v23 }
 0x22a   : > { %22815 = vmatpush3.msra.mxu1 %v1644_v34  ;;  %22816 = vmatprep.mubr.msk.f32.mxu1 %vm1204_vm0, %v26102_v10 }
 0x22b   : > { %22820 = vmatpush3.msra.mxu0 %v1645_v23  ;;  %22821 = vmatprep.mubr.msk.f32.mxu0 %vm1204_vm0, %v26102_v10  ;;  %v26339_v45 = vpop.permute.xlu1 %1909  ;;  %v26341_v39 = vpop.permute.xlu0 %1781 }
 0x22c   : > { %22817 = vmatmul.mubr.msk.f32.vlgmr.msra.gmra.mrb[54].mxu1 %vm1204_vm0, %v26111_v56  ;;  %22822 = vmatmul.mubr.msk.f32.vlgmr.msra.gmra.mrb[56].mxu0 %vm1204_vm0, %v26111_v56  ;;  %v1989_v54 = vsel %vm1204_vm0, %v26341_v39, %v26339_v45 }
 0x22d   : > { %22824 = vmatprep.subr.mxu1 %v1646_v2  ;;  %22829 = vmatprep.subr.mxu0 %v1647_v42 }
 0x22e   : > { %22825 = vmatpush3.msra.mxu1 %v1646_v2  ;;  %22826 = vmatprep.mubr.msk.f32.mxu1 %vm1204_vm0, %v26102_v10 }
 0x22f   : > { %22830 = vmatpush3.msra.mxu0 %v1647_v42  ;;  %22831 = vmatprep.mubr.msk.f32.mxu0 %vm1204_vm0, %v26102_v10 }
 0x230   : > { %22827 = vmatmul.mubr.msk.f32.vlgmr.msra.gmra.mrb[56].mxu1 %vm1204_vm0, %v26111_v56  ;;  %22832 = vmatmul.mubr.msk.f32.vlgmr.msra.gmra.mrb[58].mxu0 %vm1204_vm0, %v26111_v56  ;;  %v26359_v27 = vpop.permute.xlu1 %1911  ;;  %v26361_v15 = vpop.permute.xlu0 %1783 }
 0x231   : > { %22834 = vmatprep.subr.mxu1 %v1648_v17  ;;  %22839 = vmatprep.subr.mxu0 %v1649_v33  ;;  %v1990_v24 = vsel %vm1204_vm0, %v26361_v15, %v26359_v27 }
 0x232   : > { %22835 = vmatpush3.msra.mxu1 %v1648_v17  ;;  %22836 = vmatprep.mubr.msk.f32.mxu1 %vm1204_vm0, %v26102_v10 }
 0x233   : > { %22840 = vmatpush3.msra.mxu0 %v1649_v33  ;;  %22841 = vmatprep.mubr.msk.f32.mxu0 %vm1204_vm0, %v26102_v10 }
 0x234   : > { %22837 = vmatmul.mubr.msk.f32.vlgmr.msra.gmra.mrb[58].mxu1 %vm1204_vm0, %v26111_v56  ;;  %22842 = vmatmul.mubr.msk.f32.vlgmr.msra.gmra.mrb[60].mxu0 %vm1204_vm0, %v26111_v56 }
 0x235   : > { %22844 = vmatprep.subr.mxu1 %v1650_v19  ;;  %22849 = vmatprep.subr.mxu0 %v1651_v43  ;;  %v26377_v61 = vpop.permute.xlu1 %1913  ;;  %v26379_v1 = vpop.permute.xlu0 %1785 }
 0x236   : > { %22845 = vmatpush3.msra.mxu1 %v1650_v19  ;;  %22846 = vmatprep.mubr.msk.f32.mxu1 %vm1204_vm0, %v26102_v10  ;;  %v1991_v58 = vsel %vm1204_vm0, %v26379_v1, %v26377_v61 }
 0x237   : > { %22850 = vmatpush3.msra.mxu0 %v1651_v43  ;;  %22851 = vmatprep.mubr.msk.f32.mxu0 %vm1204_vm0, %v26102_v10 }
 0x238   : > { %22847 = vmatmul.mubr.msk.f32.vlgmr.msra.gmra.mrb[60].mxu1 %vm1204_vm0, %v26111_v56  ;;  %22852 = vmatmul.mubr.msk.f32.vlgmr.msra.gmra.mrb[62].mxu0 %vm1204_vm0, %v26111_v56 }
 0x239   : > { %22859 = vmatprep.subr.mxu0 %v1973_v36  ;;  %22854 = vmatprep.subr.mxu1 %v1652_v6 }
 0x23a   : > { %22860 = vmatpush3.msra.mxu0 %v1973_v36  ;;  %22855 = vmatpush3.msra.mxu1 %v1652_v6  ;;  %v26408_v62 = vpop.permute.xlu1 %1915  ;;  %v26410_v44 = vpop.permute.xlu0 %1787 }
 0x23b   : > { %22856 = vmatprep.mubr.msk.f32.mxu1 %vm1204_vm0, %v26102_v10  ;;  %22861 = vmatprep.mubr.msk.f32.mxu0 %vm1204_vm0, %v26395_v38  ;;  %v1977_v10 = vsel %vm1204_vm0, %v27283_v63, %v27282_v9  ;;  %v1992_v25 = vsel %vm1204_vm0, %v26410_v44, %v26408_v62 }
 0x23c   : > { %22857 = vmatmul.mubr.msk.f32.vlgmr.msra.gmra.mrb[62].mxu1 %vm1204_vm0, %v26111_v56  ;;  %22862 = vmatmul.mubr.msk.f32.vlgmr.msra.gmra.mrb[32].mxu0 %vm1204_vm0, %v26400_v35 }
 0x23d   : > { %22864 = vmatprep.subr.mxu1 %v1974_v7  ;;  %22869 = vmatprep.subr.mxu0 %v1975_v12 }
 0x23e   : > { %22865 = vmatpush3.msra.mxu1 %v1974_v7  ;;  %22866 = vmatprep.mubr.msk.f32.mxu1 %vm1204_vm0, %v26395_v38 }
 0x23f   : > { %22870 = vmatpush3.msra.mxu0 %v1975_v12  ;;  %22871 = vmatprep.mubr.msk.f32.mxu0 %vm1204_vm0, %v26395_v38  ;;  %v26430_v56 = vpop.permute.xlu1 %1917  ;;  %v26432_v13 = vpop.permute.xlu0 %1789 }
 0x240   : > { %22867 = vmatmul.mubr.msk.f32.vlgmr.msra.gmra.mrb[32].mxu1 %vm1204_vm0, %v26400_v35  ;;  %22872 = vmatmul.mubr.msk.f32.vlgmr.msra.gmra.mrb[34].mxu0 %vm1204_vm0, %v26400_v35  ;;  %v1993_v60 = vsel %vm1204_vm0, %v26432_v13, %v26430_v56  ;;  %v27292_v56 = vld [vmem:[#allocation4_spill] sm:$0xff]  ;;  %v19056_v13 = vld [vmem:[%s27192_s9] sm:$0xff] }
 0x241   : > { %22874 = vmatprep.subr.mxu1 %v1976_v50  ;;  %22879 = vmatprep.subr.mxu0 %v1977_v10  ;;  %v23347_v49 = vpack.c.bf16 %v19057_v28, %v19056_v13  ;;  %v27354_v13 = vld [vmem:[#allocation77_spill] sm:$0xff]  ;;  %v27355_v28 = vld [vmem:[#allocation76_spill] sm:$0xff] }
 0x242   : > { %22875 = vmatpush3.msra.mxu1 %v1976_v50  ;;  %22876 = vmatprep.mubr.msk.f32.mxu1 %vm1204_vm0, %v26395_v38  ;;  %v23351_v50 = vpack.c.bf16 %v19055_v14, %v19054_v18  ;;  %v27347_v18 = vld [vmem:[#allocation64_spill] sm:$0xff]  ;;  %v27348_v14 = vld [vmem:[#allocation67_spill] sm:$0xff] }
 0x243   : > { %22880 = vmatpush3.msra.mxu0 %v1977_v10  ;;  %22881 = vmatprep.mubr.msk.f32.mxu0 %vm1204_vm0, %v26395_v38 }
 0x244   : > { %22877 = vmatmul.mubr.msk.f32.vlgmr.msra.gmra.mrb[34].mxu1 %vm1204_vm0, %v26400_v35  ;;  %22882 = vmatmul.mubr.msk.f32.vlgmr.msra.gmra.mrb[36].mxu0 %vm1204_vm0, %v26400_v35  ;;  %v26452_v59 = vpop.permute.xlu1 %1919  ;;  %v26454_v53 = vpop.permute.xlu0 %1791 }
 0x245   : > { %22884 = vmatprep.subr.mxu1 %v1978_v52  ;;  %22889 = vmatprep.subr.mxu0 %v1979_v21  ;;  %v1994_v2 = vsel %vm1204_vm0, %v26454_v53, %v26452_v59  ;;  %v27297_v59 = vld [vmem:[#allocation6_spill] sm:$0xff]  ;;  %v27300_v53 = vld [vmem:[#allocation11_spill] sm:$0xff] }
 0x246   : > { %22885 = vmatpush3.msra.mxu1 %v1978_v52  ;;  %22886 = vmatprep.mubr.msk.f32.mxu1 %vm1204_vm0, %v26395_v38  ;;  %v27293_v52 = vld [vmem:[#allocation2_spill] sm:$0xff] }
 0x247   : > { %22890 = vmatpush3.msra.mxu0 %v1979_v21  ;;  %22891 = vmatprep.mubr.msk.f32.mxu0 %vm1204_vm0, %v26395_v38  ;;  %v27296_v21 = vld [vmem:[#allocation8_spill] sm:$0xff] }
 0x248   : > { %22887 = vmatmul.mubr.msk.f32.vlgmr.msra.gmra.mrb[36].mxu1 %vm1204_vm0, %v26400_v35  ;;  %22892 = vmatmul.mubr.msk.f32.vlgmr.msra.gmra.mrb[38].mxu0 %vm1204_vm0, %v26400_v35 }
 0x249   : > { %22894 = vmatprep.subr.mxu1 %v1980_v0  ;;  %22899 = vmatprep.subr.mxu0 %v1981_v4  ;;  %v26470_v55 = vpop.permute.xlu1 %1921  ;;  %v26472_v30 = vpop.permute.xlu0 %1793 }
 0x24a   : > { %22895 = vmatpush3.msra.mxu1 %v1980_v0  ;;  %22896 = vmatprep.mubr.msk.f32.mxu1 %vm1204_vm0, %v26395_v38  ;;  %v1995_v42 = vsel %vm1204_vm0, %v26472_v30, %v26470_v55  ;;  %v27303_v0 = vld [vmem:[#allocation12_spill] sm:$0xff]  ;;  %v27308_v30 = vld [vmem:[#allocation19_spill] sm:$0xff] }
 0x24b   : > { %22900 = vmatpush3.msra.mxu0 %v1981_v4  ;;  %22901 = vmatprep.mubr.msk.f32.mxu0 %vm1204_vm0, %v26395_v38  ;;  %v27306_v4 = vld [vmem:[#allocation18_spill] sm:$0xff]  ;;  %v27307_v55 = vld [vmem:[#allocation16_spill] sm:$0xff] }
 0x24c   : > { %22897 = vmatmul.mubr.msk.f32.vlgmr.msra.gmra.mrb[38].mxu1 %vm1204_vm0, %v26400_v35  ;;  %22902 = vmatmul.mubr.msk.f32.vlgmr.msra.gmra.mrb[40].mxu0 %vm1204_vm0, %v26400_v35 }
 0x24d   : > { %22904 = vmatprep.subr.mxu1 %v1982_v31  ;;  %22909 = vmatprep.subr.mxu0 %v1983_v29 }
 0x24e   : > { %22905 = vmatpush3.msra.mxu1 %v1982_v31  ;;  %22906 = vmatprep.mubr.msk.f32.mxu1 %vm1204_vm0, %v26395_v38  ;;  %v26496_v46 = vpop.permute.xlu1 %1923  ;;  %v26498_v48 = vpop.permute.xlu0 %1795  ;;  %v27309_v31 = vld [vmem:[#allocation17_spill] sm:$0xff] }
 0x24f   : > { %22910 = vmatpush3.msra.mxu0 %v1983_v29  ;;  %22911 = vmatprep.mubr.msk.f32.mxu0 %vm1204_vm0, %v26395_v38  ;;  %v1996_v17 = vsel %vm1204_vm0, %v26498_v48, %v26496_v46  ;;  %v27310_v29 = vld [vmem:[#allocation22_spill] sm:$0xff]  ;;  %v27313_v46 = vld [vmem:[#allocation21_spill] sm:$0xff] }
 0x250   : > { %22907 = vmatmul.mubr.msk.f32.vlgmr.msra.gmra.mrb[40].mxu1 %vm1204_vm0, %v26400_v35  ;;  %22912 = vmatmul.mubr.msk.f32.vlgmr.msra.gmra.mrb[42].mxu0 %vm1204_vm0, %v26400_v35  ;;  %v27314_v48 = vld [vmem:[#allocation26_spill] sm:$0xff] }
 0x251   : > { %22914 = vmatprep.subr.mxu1 %v1984_v8  ;;  %22919 = vmatprep.subr.mxu0 %v1985_v20 }
 0x252   : > { %22915 = vmatpush3.msra.mxu1 %v1984_v8  ;;  %22916 = vmatprep.mubr.msk.f32.mxu1 %vm1204_vm0, %v26395_v38  ;;  %v27311_v8 = vld [vmem:[#allocation20_spill] sm:$0xff] }
 0x253   : > { %22920 = vmatpush3.msra.mxu0 %v1985_v20  ;;  %22921 = vmatprep.mubr.msk.f32.mxu0 %vm1204_vm0, %v26395_v38  ;;  %v1926_v47 = vpop.permute.xlu1 %1925  ;;  %v1798_v26 = vpop.permute.xlu0 %1797  ;;  %v27312_v20 = vld [vmem:[#allocation23_spill] sm:$0xff] }
 0x254   : > { %22917 = vmatmul.mubr.msk.f32.vlgmr.msra.gmra.mrb[42].mxu1 %vm1204_vm0, %v26400_v35  ;;  %22922 = vmatmul.mubr.msk.f32.vlgmr.msra.gmra.mrb[44].mxu0 %vm1204_vm0, %v26400_v35  ;;  %v1997_v33 = vsel %vm1204_vm0, %v1798_v26, %v1926_v47  ;;  %v27317_v47 = vld [vmem:[#allocation25_spill] sm:$0xff]  ;;  %v27318_v26 = vld [vmem:[#allocation30_spill] sm:$0xff] }
 0x255   : > { %22924 = vmatprep.subr.mxu1 %v1986_v22  ;;  %22929 = vmatprep.subr.mxu0 %v1987_v51 }
 0x256   : > { %22925 = vmatpush3.msra.mxu1 %v1986_v22  ;;  %22926 = vmatprep.mubr.msk.f32.mxu1 %vm1204_vm0, %v26395_v38  ;;  %v27315_v22 = vld [vmem:[#allocation24_spill] sm:$0xff] }
 0x257   : > { %22930 = vmatpush3.msra.mxu0 %v1987_v51  ;;  %22931 = vmatprep.mubr.msk.f32.mxu0 %vm1204_vm0, %v26395_v38  ;;  %v27316_v51 = vld [vmem:[#allocation27_spill] sm:$0xff] }
 0x258   : > { %22927 = vmatmul.mubr.msk.f32.vlgmr.msra.gmra.mrb[44].mxu1 %vm1204_vm0, %v26400_v35  ;;  %22932 = vmatmul.mubr.msk.f32.vlgmr.msra.gmra.mrb[46].mxu0 %vm1204_vm0, %v26400_v35  ;;  %v1928_v40 = vpop.permute.xlu1 %1927  ;;  %v1800_v41 = vpop.permute.xlu0 %1799 }
 0x259   : > { %22934 = vmatprep.subr.mxu1 %v1988_v37  ;;  %22939 = vmatprep.subr.mxu0 %v1989_v54  ;;  %v1998_v19 = vsel %vm1204_vm0, %v1800_v41, %v1928_v40  ;;  %v27321_v40 = vld [vmem:[#allocation29_spill] sm:$0xff]  ;;  %v27322_v41 = vld [vmem:[#allocation34_spill] sm:$0xff] }
 0x25a   : > { %22935 = vmatpush3.msra.mxu1 %v1988_v37  ;;  %22936 = vmatprep.mubr.msk.f32.mxu1 %vm1204_vm0, %v26395_v38  ;;  %v27319_v37 = vld [vmem:[#allocation28_spill] sm:$0xff] }
 0x25b   : > { %22940 = vmatpush3.msra.mxu0 %v1989_v54  ;;  %22941 = vmatprep.mubr.msk.f32.mxu0 %vm1204_vm0, %v26395_v38  ;;  %v27320_v54 = vld [vmem:[#allocation31_spill] sm:$0xff] }
 0x25c   : > { %22937 = vmatmul.mubr.msk.f32.vlgmr.msra.gmra.mrb[46].mxu1 %vm1204_vm0, %v26400_v35  ;;  %22942 = vmatmul.mubr.msk.f32.vlgmr.msra.gmra.mrb[48].mxu0 %vm1204_vm0, %v26400_v35 }
 0x25d   : > { %22944 = vmatprep.subr.mxu1 %v1990_v24  ;;  %22949 = vmatprep.subr.mxu0 %v1991_v58  ;;  %v1930_v34 = vpop.permute.xlu1 %1929  ;;  %v1802_v23 = vpop.permute.xlu0 %1801 }
 0x25e   : > { %22945 = vmatpush3.msra.mxu1 %v1990_v24  ;;  %22946 = vmatprep.mubr.msk.f32.mxu1 %vm1204_vm0, %v26395_v38  ;;  %v1999_v43 = vsel %vm1204_vm0, %v1802_v23, %v1930_v34  ;;  %v27323_v24 = vld [vmem:[#allocation32_spill] sm:$0xff]  ;;  %v27325_v34 = vld [vmem:[#allocation33_spill] sm:$0xff]  ;;  %v27326_v23 = vld [vmem:[#allocation38_spill] sm:$0xff] }
 0x25f   : > { %22950 = vmatpush3.msra.mxu0 %v1991_v58  ;;  %22951 = vmatprep.mubr.msk.f32.mxu0 %vm1204_vm0, %v26395_v38  ;;  %v27324_v58 = vld [vmem:[#allocation35_spill] sm:$0xff] }
 0x260   : > { %22947 = vmatmul.mubr.msk.f32.vlgmr.msra.gmra.mrb[48].mxu1 %vm1204_vm0, %v26400_v35  ;;  %22952 = vmatmul.mubr.msk.f32.vlgmr.msra.gmra.mrb[50].mxu0 %vm1204_vm0, %v26400_v35 }
 0x261   : > { %22954 = vmatprep.subr.mxu1 %v1992_v25  ;;  %22959 = vmatprep.subr.mxu0 %v1993_v60 }
 0x262   : > { %22955 = vmatpush3.msra.mxu1 %v1992_v25  ;;  %22956 = vmatprep.mubr.msk.f32.mxu1 %vm1204_vm0, %v26395_v38  ;;  %v1932_v45 = vpop.permute.xlu1 %1931  ;;  %v1804_v39 = vpop.permute.xlu0 %1803  ;;  %v27327_v25 = vld [vmem:[#allocation36_spill] sm:$0xff] }
 0x263   : > { %22960 = vmatpush3.msra.mxu0 %v1993_v60  ;;  %22961 = vmatprep.mubr.msk.f32.mxu0 %vm1204_vm0, %v26395_v38  ;;  %v2000_v1 = vsel %vm1204_vm0, %v1804_v39, %v1932_v45  ;;  %v27328_v60 = vld [vmem:[#allocation39_spill] sm:$0xff]  ;;  %v27331_v45 = vld [vmem:[#allocation40_spill] sm:$0xff] }
 0x264   : > { %22957 = vmatmul.mubr.msk.f32.vlgmr.msra.gmra.mrb[50].mxu1 %vm1204_vm0, %v26400_v35  ;;  %22962 = vmatmul.mubr.msk.f32.vlgmr.msra.gmra.mrb[52].mxu0 %vm1204_vm0, %v26400_v35  ;;  %v27332_v39 = vld [vmem:[#allocation43_spill] sm:$0xff] }
 0x265   : > { %22964 = vmatprep.subr.mxu1 %v1994_v2  ;;  %22969 = vmatprep.subr.mxu0 %v1995_v42 }
 0x266   : > { %22965 = vmatpush3.msra.mxu1 %v1994_v2  ;;  %22966 = vmatprep.mubr.msk.f32.mxu1 %vm1204_vm0, %v26395_v38  ;;  %v27329_v2 = vld [vmem:[#allocation37_spill] sm:$0xff] }
 0x267   : > { %22970 = vmatpush3.msra.mxu0 %v1995_v42  ;;  %22971 = vmatprep.mubr.msk.f32.mxu0 %vm1204_vm0, %v26395_v38  ;;  %v1934_v27 = vpop.permute.xlu1 %1933  ;;  %v1806_v15 = vpop.permute.xlu0 %1805  ;;  %v27330_v42 = vld [vmem:[#allocation42_spill] sm:$0xff] }
 0x268   : > { %22967 = vmatmul.mubr.msk.f32.vlgmr.msra.gmra.mrb[52].mxu1 %vm1204_vm0, %v26400_v35  ;;  %22972 = vmatmul.mubr.msk.f32.vlgmr.msra.gmra.mrb[54].mxu0 %vm1204_vm0, %v26400_v35  ;;  %v2001_v36 = vsel %vm1204_vm0, %v1806_v15, %v1934_v27  ;;  %v27335_v27 = vld [vmem:[#allocation44_spill] sm:$0xff]  ;;  %v27336_v15 = vld [vmem:[#allocation47_spill] sm:$0xff] }
 0x269   : > { %22974 = vmatprep.subr.mxu1 %v1996_v17  ;;  %22979 = vmatprep.subr.mxu0 %v1997_v33 }
 0x26a   : > { %22975 = vmatpush3.msra.mxu1 %v1996_v17  ;;  %22976 = vmatprep.mubr.msk.f32.mxu1 %vm1204_vm0, %v26395_v38  ;;  %v27333_v17 = vld [vmem:[#allocation41_spill] sm:$0xff] }
 0x26b   : > { %22980 = vmatpush3.msra.mxu0 %v1997_v33  ;;  %22981 = vmatprep.mubr.msk.f32.mxu0 %vm1204_vm0, %v26395_v38  ;;  %v27334_v33 = vld [vmem:[#allocation46_spill] sm:$0xff] }
 0x26c   : > { %22977 = vmatmul.mubr.msk.f32.vlgmr.msra.gmra.mrb[54].mxu1 %vm1204_vm0, %v26400_v35  ;;  %22982 = vmatmul.mubr.msk.f32.vlgmr.msra.gmra.mrb[56].mxu0 %vm1204_vm0, %v26400_v35  ;;  %v1936_v6 = vpop.permute.xlu1 %1935  ;;  %v1808_v61 = vpop.permute.xlu0 %1807 }
 0x26d   : > { %22984 = vmatprep.subr.mxu1 %v1998_v19  ;;  %22989 = vmatprep.subr.mxu0 %v1999_v43  ;;  %v2002_v62 = vsel %vm1204_vm0, %v1808_v61, %v1936_v6  ;;  %v27339_v6 = vld [vmem:[#allocation50_spill] sm:$0xff]  ;;  %v27340_v61 = vld [vmem:[#allocation53_spill] sm:$0xff] }
 0x26e   : > { %22985 = vmatpush3.msra.mxu1 %v1998_v19  ;;  %22986 = vmatprep.mubr.msk.f32.mxu1 %vm1204_vm0, %v26395_v38  ;;  %v27337_v19 = vld [vmem:[#allocation45_spill] sm:$0xff] }
 0x26f   : > { %22990 = vmatpush3.msra.mxu0 %v1999_v43  ;;  %22991 = vmatprep.mubr.msk.f32.mxu0 %vm1204_vm0, %v26395_v38  ;;  %v27338_v43 = vld [vmem:[#allocation52_spill] sm:$0xff] }
 0x270   : > { %22987 = vmatmul.mubr.msk.f32.vlgmr.msra.gmra.mrb[56].mxu1 %vm1204_vm0, %v26400_v35  ;;  %22992 = vmatmul.mubr.msk.f32.vlgmr.msra.gmra.mrb[58].mxu0 %vm1204_vm0, %v26400_v35 }
 0x271   : > { %22994 = vmatprep.subr.mxu1 %v2000_v1  ;;  %22999 = vmatprep.subr.mxu0 %v2001_v36  ;;  %v1938_v7 = vpop.permute.xlu1 %1937  ;;  %v1810_v12 = vpop.permute.xlu0 %1809 }
 0x272   : > { %22995 = vmatpush3.msra.mxu1 %v2000_v1  ;;  %22996 = vmatprep.mubr.msk.f32.mxu1 %vm1204_vm0, %v26395_v38  ;;  %v2003_v44 = vsel %vm1204_vm0, %v1810_v12, %v1938_v7  ;;  %v27341_v1 = vld [vmem:[#allocation51_spill] sm:$0xff]  ;;  %v27343_v7 = vld [vmem:[#allocation56_spill] sm:$0xff] }
 0x273   : > { %23000 = vmatpush3.msra.mxu0 %v2001_v36  ;;  %23001 = vmatprep.mubr.msk.f32.mxu0 %vm1204_vm0, %v26395_v38  ;;  %v27342_v36 = vld [vmem:[#allocation58_spill] sm:$0xff]  ;;  %v27344_v12 = vld [vmem:[#allocation59_spill] sm:$0xff] }
 0x274   : > { %22997 = vmatmul.mubr.msk.f32.vlgmr.msra.gmra.mrb[58].mxu1 %vm1204_vm0, %v26400_v35  ;;  %23002 = vmatmul.mubr.msk.f32.vlgmr.msra.gmra.mrb[60].mxu0 %vm1204_vm0, %v26400_v35 }
 0x275   : > { %23004 = vmatprep.subr.mxu1 %v2002_v62  ;;  %23009 = vmatprep.subr.mxu0 %v2003_v44 }
 0x276   : > { %23005 = vmatpush3.msra.mxu1 %v2002_v62  ;;  %23006 = vmatprep.mubr.msk.f32.mxu1 %vm1204_vm0, %v26395_v38  ;;  %v1940_v9 = vpop.permute.xlu1 %1939  ;;  %v1812_v63 = vpop.permute.xlu0 %1811  ;;  %v27345_v62 = vld [vmem:[#allocation57_spill] sm:$0xff] }
 0x277   : > { %23010 = vmatpush3.msra.mxu0 %v2003_v44  ;;  %23011 = vmatprep.mubr.msk.f32.mxu0 %vm1204_vm0, %v26395_v38  ;;  %v2004_v10 = vsel %vm1204_vm0, %v1812_v63, %v1940_v9  ;;  %v27346_v44 = vld [vmem:[#allocation66_spill] sm:$0xff]  ;;  %v27350_v9 = vld [vmem:[#allocation72_spill] sm:$0xff] }
 0x278   : > { %23007 = vmatmul.mubr.msk.f32.vlgmr.msra.gmra.mrb[60].mxu1 %vm1204_vm0, %v26400_v35  ;;  %23012 = vmatmul.mubr.msk.f32.vlgmr.msra.gmra.mrb[62].mxu0 %vm1204_vm0, %v26400_v35  ;;  %v27351_v63 = vld [vmem:[#allocation70_spill] sm:$0xff] }
 0x279   : > { %23352 = vmatprep.subr.bf16.mxu0 %v23351_v50  ;;  %23123 = vmatprep.mubr.msk.f32.mxu0 %vm4415_vm1, %v27292_v56  ;;  %v27353_v56 = vld [vmem:[#allocation71_spill] sm:$0xff] }
 0x27a   : > { %23354 = vmatpush3.bf16.msra.mxu0 %v23351_v50  ;;  %23014 = vmatprep.subr.mxu1 %v2004_v10  ;;  %v27349_v50 = vld [vmem:[#allocation65_spill] sm:$0xff] }
 0x27b   : > { %23015 = vmatpush3.msra.mxu1 %v2004_v10  ;;  %23016 = vmatprep.mubr.msk.f32.mxu1 %vm1204_vm0, %v26395_v38  ;;  %v27298_v38 = vld [vmem:[#allocation9_spill] sm:$0xff] }
 0x27c   : > { %23017 = vmatmul.mubr.msk.f32.vlgmr.msra.gmra.mrb[62].mxu1 %vm1204_vm0, %v26400_v35  ;;  %23348 = vmatprep.subr.bf16.mxu1 %v23347_v49  ;;  %v27299_v35 = vld [vmem:[#allocation7_spill] sm:$0xff]  ;;  %v27352_v10 = vld [vmem:[#allocation73_spill] sm:$0xff] }
 0x27d   : > { %23124 = vmatmul.mubr.msk.f32.vlgmr.msra.gmra.mrb[64].mxu0 %vm4415_vm1, %v27293_v52  ;;  %23350 = vmatpush3.bf16.msra.mxu1 %v23347_v49 }
 0x27e   : > { %23126 = vmatprep.mubr.msk.f32.mxu0 %vm4415_vm1, %v27294_v32 }
 0x281   : > { %23127 = vmatmul.mubr.msk.f32.gmra.mrb[66].mxu0 %vm4415_vm1, %v27295_v3 }
 0x282   : > { %23129 = vmatprep.mubr.msk.f32.mxu0 %vm4415_vm1, %v27296_v21 }
 0x285   : > { %23130 = vmatmul.mubr.msk.f32.gmra.mrb[68].mxu0 %vm4415_vm1, %v27297_v59 }
 0x286   : > { %23132 = vmatprep.mubr.msk.f32.mxu0 %vm4415_vm1, %v27298_v38 }
 0x289   : > { %23133 = vmatmul.mubr.msk.f32.gmra.mrb[70].mxu0 %vm4415_vm1, %v27299_v35 }
 0x28a   : > { %23135 = vmatprep.mubr.msk.f32.mxu0 %vm4415_vm1, %v27300_v53 }
 0x28d   : > { %23136 = vmatmul.mubr.msk.f32.gmra.mrb[72].mxu0 %vm4415_vm1, %v27301_v57 }
 0x28e   : > { %23138 = vmatprep.mubr.msk.f32.mxu0 %vm4415_vm1, %v27302_v16 }
 0x291   : > { %23139 = vmatmul.mubr.msk.f32.gmra.mrb[74].mxu0 %vm4415_vm1, %v27303_v0 }
 0x292   : > { %23141 = vmatprep.mubr.msk.f32.mxu0 %vm4415_vm1, %v27304_v5 }
 0x295   : > { %23142 = vmatmul.mubr.msk.f32.gmra.mrb[76].mxu0 %vm4415_vm1, %v27305_v11 }
 0x296   : > { %23144 = vmatprep.mubr.msk.f32.mxu0 %vm4415_vm1, %v27306_v4 }
 0x299   : > { %23145 = vmatmul.mubr.msk.f32.gmra.mrb[78].mxu0 %vm4415_vm1, %v27307_v55 }
 0x29a   : > { %23147 = vmatprep.mubr.msk.f32.mxu0 %vm4415_vm1, %v27308_v30 }
 0x29d   : > { %23148 = vmatmul.mubr.msk.f32.gmra.mrb[80].mxu0 %vm4415_vm1, %v27309_v31 }
 0x29e   : > { %23150 = vmatprep.mubr.msk.f32.mxu0 %vm4415_vm1, %v27310_v29 }
 0x2a1   : > { %23151 = vmatmul.mubr.msk.f32.gmra.mrb[82].mxu0 %vm4415_vm1, %v27311_v8 }
 0x2a2   : > { %23153 = vmatprep.mubr.msk.f32.mxu0 %vm4415_vm1, %v27312_v20 }
 0x2a5   : > { %23154 = vmatmul.mubr.msk.f32.gmra.mrb[84].mxu0 %vm4415_vm1, %v27313_v46 }
 0x2a6   : > { %23156 = vmatprep.mubr.msk.f32.mxu0 %vm4415_vm1, %v27314_v48 }
 0x2a9   : > { %23157 = vmatmul.mubr.msk.f32.gmra.mrb[86].mxu0 %vm4415_vm1, %v27315_v22 }
 0x2aa   : > { %23159 = vmatprep.mubr.msk.f32.mxu0 %vm4415_vm1, %v27316_v51 }
 0x2ad   : > { %23160 = vmatmul.mubr.msk.f32.gmra.mrb[88].mxu0 %vm4415_vm1, %v27317_v47 }
 0x2ae   : > { %23162 = vmatprep.mubr.msk.f32.mxu0 %vm4415_vm1, %v27318_v26 }
 0x2b1   : > { %23163 = vmatmul.mubr.msk.f32.gmra.mrb[90].mxu0 %vm4415_vm1, %v27319_v37 }
 0x2b2   : > { %23165 = vmatprep.mubr.msk.f32.mxu0 %vm4415_vm1, %v27320_v54 }
 0x2b5   : > { %23166 = vmatmul.mubr.msk.f32.gmra.mrb[92].mxu0 %vm4415_vm1, %v27321_v40 }
 0x2b6   : > { %23168 = vmatprep.mubr.msk.f32.mxu0 %vm4415_vm1, %v27322_v41 }
 0x2b9   : > { %23169 = vmatmul.mubr.msk.f32.gmra.mrb[94].mxu0 %vm4415_vm1, %v27323_v24 }
 0x2ba   : > { %23171 = vmatprep.mubr.msk.f32.mxu0 %vm4415_vm1, %v27324_v58 }
 0x2bd   : > { %23172 = vmatmul.mubr.msk.f32.gmra.mrb[96].mxu0 %vm4415_vm1, %v27325_v34 }
 0x2be   : > { %23174 = vmatprep.mubr.msk.f32.mxu0 %vm4415_vm1, %v27326_v23 }
 0x2c1   : > { %23175 = vmatmul.mubr.msk.f32.gmra.mrb[98].mxu0 %vm4415_vm1, %v27327_v25 }
 0x2c2   : > { %23177 = vmatprep.mubr.msk.f32.mxu0 %vm4415_vm1, %v27328_v60 }
 0x2c5   : > { %23178 = vmatmul.mubr.msk.f32.gmra.mrb[100].mxu0 %vm4415_vm1, %v27329_v2 }
 0x2c6   : > { %23180 = vmatprep.mubr.msk.f32.mxu0 %vm4415_vm1, %v27330_v42 }
 0x2c9   : > { %23181 = vmatmul.mubr.msk.f32.gmra.mrb[102].mxu0 %vm4415_vm1, %v27331_v45 }
 0x2ca   : > { %23183 = vmatprep.mubr.msk.f32.mxu0 %vm4415_vm1, %v27332_v39 }
 0x2cd   : > { %23184 = vmatmul.mubr.msk.f32.gmra.mrb[104].mxu0 %vm4415_vm1, %v27333_v17 }
 0x2ce   : > { %23186 = vmatprep.mubr.msk.f32.mxu0 %vm4415_vm1, %v27334_v33 }
 0x2d1   : > { %23187 = vmatmul.mubr.msk.f32.gmra.mrb[106].mxu0 %vm4415_vm1, %v27335_v27 }
 0x2d2   : > { %23189 = vmatprep.mubr.msk.f32.mxu0 %vm4415_vm1, %v27336_v15 }
 0x2d5   : > { %23190 = vmatmul.mubr.msk.f32.gmra.mrb[108].mxu0 %vm4415_vm1, %v27337_v19 }
 0x2d6   : > { %23192 = vmatprep.mubr.msk.f32.mxu0 %vm4415_vm1, %v27338_v43 }
 0x2d9   : > { %23193 = vmatmul.mubr.msk.f32.gmra.mrb[110].mxu0 %vm4415_vm1, %v27339_v6 }
 0x2da   : > { %23195 = vmatprep.mubr.msk.f32.mxu0 %vm4415_vm1, %v27340_v61 }
 0x2dd   : > { %23196 = vmatmul.mubr.msk.f32.gmra.mrb[112].mxu0 %vm4415_vm1, %v27341_v1 }
 0x2de   : > { %23198 = vmatprep.mubr.msk.f32.mxu0 %vm4415_vm1, %v27342_v36 }
 0x2e1   : > { %23199 = vmatmul.mubr.msk.f32.gmra.mrb[114].mxu0 %vm4415_vm1, %v27343_v7 }
 0x2e2   : > { %23201 = vmatprep.mubr.msk.f32.mxu0 %vm4415_vm1, %v27344_v12 }
 0x2e5   : > { %23202 = vmatmul.mubr.msk.f32.gmra.mrb[116].mxu0 %vm4415_vm1, %v27345_v62 }
 0x2e6   : > { %23204 = vmatprep.mubr.msk.f32.mxu0 %vm4415_vm1, %v27346_v44 }
 0x2e9   : > { %23205 = vmatmul.mubr.msk.f32.gmra.mrb[118].mxu0 %vm4415_vm1, %v27347_v18 }
 0x2ea   : > { %23207 = vmatprep.mubr.msk.f32.mxu0 %vm4415_vm1, %v27348_v14 }
 0x2ed   : > { %23208 = vmatmul.mubr.msk.f32.gmra.mrb[120].mxu0 %vm4415_vm1, %v27349_v50 }
 0x2ee   : > { %23210 = vmatprep.mubr.msk.f32.mxu0 %vm4415_vm1, %v27350_v9 }
 0x2f1   : > { %23211 = vmatmul.mubr.msk.f32.gmra.mrb[122].mxu0 %vm4415_vm1, %v27351_v63 }
 0x2f2   : > { %23213 = vmatprep.mubr.msk.f32.mxu0 %vm4415_vm1, %v27352_v10 }
 0x2f5   : > { %23214 = vmatmul.mubr.msk.f32.gmra.mrb[124].mxu0 %vm4415_vm1, %v27353_v56 }
 0x2f6   : > { %23216 = vmatprep.mubr.msk.f32.mxu0 %vm4415_vm1, %v27354_v13 }
 0x2f9   : > { %23217 = vmatmul.mubr.msk.f32.gmra.mrb[126].mxu0 %vm4415_vm1, %v27355_v28 }
 0x30f   : > { %v22863_v49 = vpop.f32.mrb[32].mxu0 }
 0x310   : > { %v16656_v52 = vpop.f32.mrb[33].mxu0 }
 0x311   : > { %23023 = vmatprep.mubr.msk.f32.mxu1 %vm4415_vm1, %v16656_v52 }
 0x312   : > { %23024 = vmatmul.mubr.msk.f32.vlgmr.msra.gmra.mrb[64].mxu1 %vm4415_vm1, %v22863_v49 }
 0x313   : > { %v22868_v32 = vpop.f32.mrb[32].mxu1  ;;  %v22873_v3 = vpop.f32.mrb[34].mxu0 }
 0x314   : > { %v16731_v21 = vpop.f32.mrb[33].mxu1  ;;  %v16806_v59 = vpop.f32.mrb[35].mxu0 }
 0x315   : > { %23026 = vmatprep.mubr.msk.f32.mxu1 %vm4415_vm1, %v16731_v21 }
 0x316   : > { %23027 = vmatmul.mubr.msk.f32.gmra.mrb[66].mxu1 %vm4415_vm1, %v22868_v32 }
 0x317   : > { %v22878_v38 = vpop.f32.mrb[34].mxu1  ;;  %v22883_v35 = vpop.f32.mrb[36].mxu0  ;;  %23029 = vmatprep.mubr.msk.f32.mxu1 %vm4415_vm1, %v16806_v59 }
 0x318   : > { %v16881_v53 = vpop.f32.mrb[35].mxu1  ;;  %v16956_v57 = vpop.f32.mrb[37].mxu0 }
 0x31a   : > { %23030 = vmatmul.mubr.msk.f32.gmra.mrb[68].mxu1 %vm4415_vm1, %v22873_v3 }
 0x31b   : > { %v22888_v16 = vpop.f32.mrb[36].mxu1  ;;  %v22893_v0 = vpop.f32.mrb[38].mxu0  ;;  %23032 = vmatprep.mubr.msk.f32.mxu1 %vm4415_vm1, %v16881_v53 }
 0x31c   : > { %v17031_v5 = vpop.f32.mrb[37].mxu1  ;;  %v17106_v11 = vpop.f32.mrb[39].mxu0 }
 0x31e   : > { %23033 = vmatmul.mubr.msk.f32.gmra.mrb[70].mxu1 %vm4415_vm1, %v22878_v38 }
 0x31f   : > { %v22898_v4 = vpop.f32.mrb[38].mxu1  ;;  %v22903_v55 = vpop.f32.mrb[40].mxu0  ;;  %23035 = vmatprep.mubr.msk.f32.mxu1 %vm4415_vm1, %v16956_v57 }
 0x320   : > { %v17181_v30 = vpop.f32.mrb[39].mxu1  ;;  %v17256_v31 = vpop.f32.mrb[41].mxu0 }
 0x322   : > { %23036 = vmatmul.mubr.msk.f32.gmra.mrb[72].mxu1 %vm4415_vm1, %v22883_v35 }
 0x323   : > { %v22908_v29 = vpop.f32.mrb[40].mxu1  ;;  %v22913_v8 = vpop.f32.mrb[42].mxu0  ;;  %23038 = vmatprep.mubr.msk.f32.mxu1 %vm4415_vm1, %v17031_v5 }
 0x324   : > { %v17331_v20 = vpop.f32.mrb[41].mxu1  ;;  %v17406_v46 = vpop.f32.mrb[43].mxu0 }
 0x326   : > { %23039 = vmatmul.mubr.msk.f32.gmra.mrb[74].mxu1 %vm4415_vm1, %v22888_v16 }
 0x327   : > { %v22918_v48 = vpop.f32.mrb[42].mxu1  ;;  %v22923_v22 = vpop.f32.mrb[44].mxu0  ;;  %23041 = vmatprep.mubr.msk.f32.mxu1 %vm4415_vm1, %v17106_v11 }
 0x328   : > { %v17481_v51 = vpop.f32.mrb[43].mxu1  ;;  %v17556_v47 = vpop.f32.mrb[45].mxu0 }
 0x32a   : > { %23042 = vmatmul.mubr.msk.f32.gmra.mrb[76].mxu1 %vm4415_vm1, %v22893_v0 }
 0x32b   : > { %v22928_v26 = vpop.f32.mrb[44].mxu1  ;;  %v22933_v37 = vpop.f32.mrb[46].mxu0  ;;  %23044 = vmatprep.mubr.msk.f32.mxu1 %vm4415_vm1, %v17181_v30 }
 0x32c   : > { %v17631_v54 = vpop.f32.mrb[45].mxu1  ;;  %v17706_v40 = vpop.f32.mrb[47].mxu0 }
 0x32e   : > { %23045 = vmatmul.mubr.msk.f32.gmra.mrb[78].mxu1 %vm4415_vm1, %v22898_v4 }
 0x32f   : > { %v22938_v41 = vpop.f32.mrb[46].mxu1  ;;  %v22943_v24 = vpop.f32.mrb[48].mxu0  ;;  %23047 = vmatprep.mubr.msk.f32.mxu1 %vm4415_vm1, %v17256_v31 }
 0x330   : > { %v17781_v58 = vpop.f32.mrb[47].mxu1  ;;  %v17856_v34 = vpop.f32.mrb[49].mxu0 }
 0x332   : > { %23048 = vmatmul.mubr.msk.f32.gmra.mrb[80].mxu1 %vm4415_vm1, %v22903_v55 }
 0x333   : > { %v22948_v23 = vpop.f32.mrb[48].mxu1  ;;  %v22953_v25 = vpop.f32.mrb[50].mxu0  ;;  %23050 = vmatprep.mubr.msk.f32.mxu1 %vm4415_vm1, %v17331_v20 }
 0x334   : > { %v17931_v60 = vpop.f32.mrb[49].mxu1  ;;  %v18006_v2 = vpop.f32.mrb[51].mxu0 }
 0x336   : > { %23051 = vmatmul.mubr.msk.f32.gmra.mrb[82].mxu1 %vm4415_vm1, %v22908_v29 }
 0x337   : > { %v22958_v42 = vpop.f32.mrb[50].mxu1  ;;  %v22963_v45 = vpop.f32.mrb[52].mxu0  ;;  %23053 = vmatprep.mubr.msk.f32.mxu1 %vm4415_vm1, %v17406_v46 }
 0x338   : > { %v18081_v39 = vpop.f32.mrb[51].mxu1  ;;  %v18156_v17 = vpop.f32.mrb[53].mxu0 }
 0x33a   : > { %23054 = vmatmul.mubr.msk.f32.gmra.mrb[84].mxu1 %vm4415_vm1, %v22913_v8 }
 0x33b   : > { %v22968_v33 = vpop.f32.mrb[52].mxu1  ;;  %v22973_v27 = vpop.f32.mrb[54].mxu0  ;;  %23056 = vmatprep.mubr.msk.f32.mxu1 %vm4415_vm1, %v17481_v51 }
 0x33c   : > { %v18231_v15 = vpop.f32.mrb[53].mxu1  ;;  %v18306_v19 = vpop.f32.mrb[55].mxu0 }
 0x33e   : > { %23057 = vmatmul.mubr.msk.f32.gmra.mrb[86].mxu1 %vm4415_vm1, %v22918_v48 }
 0x33f   : > { %v22978_v43 = vpop.f32.mrb[54].mxu1  ;;  %v22983_v6 = vpop.f32.mrb[56].mxu0  ;;  %23059 = vmatprep.mubr.msk.f32.mxu1 %vm4415_vm1, %v17556_v47 }
 0x340   : > { %v18381_v61 = vpop.f32.mrb[55].mxu1  ;;  %v18456_v1 = vpop.f32.mrb[57].mxu0 }
 0x342   : > { %23060 = vmatmul.mubr.msk.f32.gmra.mrb[88].mxu1 %vm4415_vm1, %v22923_v22 }
 0x343   : > { %v22988_v36 = vpop.f32.mrb[56].mxu1  ;;  %v22993_v7 = vpop.f32.mrb[58].mxu0  ;;  %23062 = vmatprep.mubr.msk.f32.mxu1 %vm4415_vm1, %v17631_v54 }
 0x344   : > { %v18531_v12 = vpop.f32.mrb[57].mxu1  ;;  %v18606_v62 = vpop.f32.mrb[59].mxu0 }
 0x346   : > { %23063 = vmatmul.mubr.msk.f32.gmra.mrb[90].mxu1 %vm4415_vm1, %v22928_v26 }
 0x347   : > { %v22998_v44 = vpop.f32.mrb[58].mxu1  ;;  %v26799_v18 = vpop.f32.mrb[60].mxu0  ;;  %23065 = vmatprep.mubr.msk.f32.mxu1 %vm4415_vm1, %v17706_v40 }
 0x348   : > { %v18681_v14 = vpop.f32.mrb[59].mxu1  ;;  %v18756_v50 = vpop.f32.mrb[61].mxu0 }
 0x34a   : > { %23066 = vmatmul.mubr.msk.f32.gmra.mrb[92].mxu1 %vm4415_vm1, %v22933_v37 }
 0x34b   : > { %v26803_v9 = vpop.f32.mrb[60].mxu1  ;;  %v26805_v63 = vpop.f32.mrb[62].mxu0  ;;  %23068 = vmatprep.mubr.msk.f32.mxu1 %vm4415_vm1, %v17781_v58 }
 0x34c   : > { %v18831_v10 = vpop.f32.mrb[61].mxu1  ;;  %v18906_v56 = vpop.f32.mrb[63].mxu0 }
 0x34e   : > { %23069 = vmatmul.mubr.msk.f32.gmra.mrb[94].mxu1 %vm4415_vm1, %v22938_v41 }
 0x34f   : > { %v26809_v13 = vpop.f32.mrb[62].mxu1  ;;  %23071 = vmatprep.mubr.msk.f32.mxu1 %vm4415_vm1, %v17856_v34 }
 0x350   : > { %v26812_v28 = vpop.f32.mrb[64].mxu0  ;;  %v18981_v49 = vpop.f32.mrb[63].mxu1 }
 0x351   : > { %v26814_v52 = vpop.f32.mrb[65].mxu0 }
 0x352   : > { %23072 = vmatmul.mubr.msk.f32.gmra.mrb[96].mxu1 %vm4415_vm1, %v22943_v24 }
 0x353   : > { %23074 = vmatprep.mubr.msk.f32.mxu1 %vm4415_vm1, %v17931_v60 }
 0x354   : > { %v26818_v32 = vpop.f32.mrb[66].mxu0 }
 0x355   : > { %v26820_v3 = vpop.f32.mrb[67].mxu0 }
 0x356   : > { %23075 = vmatmul.mubr.msk.f32.gmra.mrb[98].mxu1 %vm4415_vm1, %v22948_v23 }
 0x357   : > { %23077 = vmatprep.mubr.msk.f32.mxu1 %vm4415_vm1, %v18006_v2 }
 0x358   : > { %v26824_v21 = vpop.f32.mrb[68].mxu0 }
 0x359   : > { %v26826_v59 = vpop.f32.mrb[69].mxu0 }
 0x35a   : > { %23078 = vmatmul.mubr.msk.f32.gmra.mrb[100].mxu1 %vm4415_vm1, %v22953_v25 }
 0x35b   : > { %23080 = vmatprep.mubr.msk.f32.mxu1 %vm4415_vm1, %v18081_v39 }
 0x35c   : > { %v26830_v38 = vpop.f32.mrb[70].mxu0 }
 0x35d   : > { %v26832_v35 = vpop.f32.mrb[71].mxu0 }
 0x35e   : > { %23081 = vmatmul.mubr.msk.f32.gmra.mrb[102].mxu1 %vm4415_vm1, %v22958_v42 }
 0x35f   : > { %23083 = vmatprep.mubr.msk.f32.mxu1 %vm4415_vm1, %v18156_v17 }
 0x360   : > { %v26836_v53 = vpop.f32.mrb[72].mxu0 }
 0x361   : > { %v26838_v57 = vpop.f32.mrb[73].mxu0 }
 0x362   : > { %23084 = vmatmul.mubr.msk.f32.gmra.mrb[104].mxu1 %vm4415_vm1, %v22963_v45 }
 0x363   : > { %23086 = vmatprep.mubr.msk.f32.mxu1 %vm4415_vm1, %v18231_v15 }
 0x364   : > { %v26842_v16 = vpop.f32.mrb[74].mxu0 }
 0x365   : > { %v26844_v0 = vpop.f32.mrb[75].mxu0 }
 0x366   : > { %23087 = vmatmul.mubr.msk.f32.gmra.mrb[106].mxu1 %vm4415_vm1, %v22968_v33 }
 0x367   : > { %23089 = vmatprep.mubr.msk.f32.mxu1 %vm4415_vm1, %v18306_v19 }
 0x368   : > { %v26848_v5 = vpop.f32.mrb[76].mxu0 }
 0x369   : > { %v26850_v11 = vpop.f32.mrb[77].mxu0 }
 0x36a   : > { %23090 = vmatmul.mubr.msk.f32.gmra.mrb[108].mxu1 %vm4415_vm1, %v22973_v27 }
 0x36b   : > { %23092 = vmatprep.mubr.msk.f32.mxu1 %vm4415_vm1, %v18381_v61 }
 0x36c   : > { %v26854_v4 = vpop.f32.mrb[78].mxu0 }
 0x36d   : > { %v26856_v55 = vpop.f32.mrb[79].mxu0 }
 0x36e   : > { %23093 = vmatmul.mubr.msk.f32.gmra.mrb[110].mxu1 %vm4415_vm1, %v22978_v43 }
 0x36f   : > { %23095 = vmatprep.mubr.msk.f32.mxu1 %vm4415_vm1, %v18456_v1 }
 0x370   : > { %v26860_v30 = vpop.f32.mrb[80].mxu0 }
 0x371   : > { %v26862_v31 = vpop.f32.mrb[81].mxu0 }
 0x372   : > { %23096 = vmatmul.mubr.msk.f32.gmra.mrb[112].mxu1 %vm4415_vm1, %v22983_v6 }
 0x373   : > { %23098 = vmatprep.mubr.msk.f32.mxu1 %vm4415_vm1, %v18531_v12 }
 0x374   : > { %v26866_v29 = vpop.f32.mrb[82].mxu0 }
 0x375   : > { %v26868_v8 = vpop.f32.mrb[83].mxu0 }
 0x376   : > { %23099 = vmatmul.mubr.msk.f32.gmra.mrb[114].mxu1 %vm4415_vm1, %v22988_v36 }
 0x377   : > { %23101 = vmatprep.mubr.msk.f32.mxu1 %vm4415_vm1, %v18606_v62 }
 0x378   : > { %v26872_v20 = vpop.f32.mrb[84].mxu0 }
 0x379   : > { %v26874_v46 = vpop.f32.mrb[85].mxu0 }
 0x37a   : > { %23102 = vmatmul.mubr.msk.f32.gmra.mrb[116].mxu1 %vm4415_vm1, %v22993_v7 }
 0x37b   : > { %23104 = vmatprep.mubr.msk.f32.mxu1 %vm4415_vm1, %v18681_v14 }
 0x37c   : > { %v26878_v48 = vpop.f32.mrb[86].mxu0 }
 0x37d   : > { %v26880_v22 = vpop.f32.mrb[87].mxu0 }
 0x37e   : > { %23105 = vmatmul.mubr.msk.f32.gmra.mrb[118].mxu1 %vm4415_vm1, %v22998_v44 }
 0x37f   : > { %23107 = vmatprep.mubr.msk.f32.mxu1 %vm4415_vm1, %v18756_v50 }
 0x380   : > { %v26884_v51 = vpop.f32.mrb[88].mxu0 }
 0x381   : > { %v26886_v47 = vpop.f32.mrb[89].mxu0 }
 0x382   : > { %23108 = vmatmul.mubr.msk.f32.gmra.mrb[120].mxu1 %vm4415_vm1, %v26799_v18 }
 0x383   : > { %23110 = vmatprep.mubr.msk.f32.mxu1 %vm4415_vm1, %v18831_v10 }
 0x384   : > { %v26891_v26 = vpop.f32.mrb[90].mxu0 }
 0x385   : > { %v26893_v37 = vpop.f32.mrb[91].mxu0 }
 0x386   : > { %23111 = vmatmul.mubr.msk.f32.gmra.mrb[122].mxu1 %vm4415_vm1, %v26803_v9 }
 0x387   : > { %23113 = vmatprep.mubr.msk.f32.mxu1 %vm4415_vm1, %v18906_v56 }
 0x388   : > { %v26898_v54 = vpop.f32.mrb[92].mxu0 }
 0x389   : > { %v26900_v40 = vpop.f32.mrb[93].mxu0 }
 0x38a   : > { %23114 = vmatmul.mubr.msk.f32.gmra.mrb[124].mxu1 %vm4415_vm1, %v26805_v63 }
 0x38b   : > { %23116 = vmatprep.mubr.msk.f32.mxu1 %vm4415_vm1, %v18981_v49 }
 0x38c   : > { %v26905_v41 = vpop.f32.mrb[94].mxu0 }
 0x38d   : > { %v26907_v24 = vpop.f32.mrb[95].mxu0 }
 0x38e   : > { %23117 = vmatmul.mubr.msk.f32.gmra.mrb[126].mxu1 %vm4415_vm1, %v26809_v13 }
 0x390   : > { %v26911_v58 = vpop.f32.mrb[96].mxu0 }
 0x391   : > { %v26913_v34 = vpop.f32.mrb[97].mxu0 }
 0x394   : > { %v26915_v23 = vpop.f32.mrb[98].mxu0 }
 0x395   : > { %v26917_v25 = vpop.f32.mrb[99].mxu0 }
 0x398   : > { %v26919_v60 = vpop.f32.mrb[100].mxu0 }
 0x399   : > { %v26921_v2 = vpop.f32.mrb[101].mxu0 }
 0x39c   : > { %v26923_v42 = vpop.f32.mrb[102].mxu0 }
 0x39d   : > { %v26925_v45 = vpop.f32.mrb[103].mxu0 }
 0x3a0   : > { %v26927_v39 = vpop.f32.mrb[104].mxu0 }
 0x3a1   : > { %v26929_v17 = vpop.f32.mrb[105].mxu0 }
 0x3a4   : > { %v26931_v33 = vpop.f32.mrb[106].mxu0 }
 0x3a5   : > { %v26933_v27 = vpop.f32.mrb[107].mxu0 }
 0x3a8   : > { %v26935_v15 = vpop.f32.mrb[108].mxu0 }
 0x3a9   : > { %v26937_v19 = vpop.f32.mrb[109].mxu0 }
 0x3ac   : > { %v26939_v43 = vpop.f32.mrb[110].mxu0 }
 0x3ad   : > { %v26941_v6 = vpop.f32.mrb[111].mxu0 }
 0x3b0   : > { %v26943_v61 = vpop.f32.mrb[112].mxu0 }
 0x3b1   : > { %v26945_v1 = vpop.f32.mrb[113].mxu0 }
 0x3b4   : > { %v26947_v36 = vpop.f32.mrb[114].mxu0 }
 0x3b5   : > { %v26949_v7 = vpop.f32.mrb[115].mxu0 }
 0x3b8   : > { %v26951_v12 = vpop.f32.mrb[116].mxu0 }
 0x3b9   : > { %v26953_v62 = vpop.f32.mrb[117].mxu0 }
 0x3bc   : > { %v26955_v44 = vpop.f32.mrb[118].mxu0 }
 0x3bd   : > { %v26957_v18 = vpop.f32.mrb[119].mxu0 }
 0x3c0   : > { %v26959_v14 = vpop.f32.mrb[120].mxu0 }
 0x3c1   : > { %27356 = vst [vmem:[#allocation48_spill] sm:$0xff] %v26959_v14  ;;  %v26961_v50 = vpop.f32.mrb[121].mxu0 }
 0x3c2   : > { %27357 = vst [vmem:[#allocation49_spill] sm:$0xff] %v26961_v50 }
 0x3c4   : > { %v26963_v9 = vpop.f32.mrb[122].mxu0 }
 0x3c5   : > { %27358 = vst [vmem:[#allocation54_spill] sm:$0xff] %v26963_v9  ;;  %v26965_v63 = vpop.f32.mrb[123].mxu0 }
 0x3c6   : > { %27359 = vst [vmem:[#allocation55_spill] sm:$0xff] %v26965_v63 }
 0x3c8   : > { %v26967_v10 = vpop.f32.mrb[124].mxu0 }
 0x3c9   : > { %27360 = vst [vmem:[#allocation60_spill] sm:$0xff] %v26967_v10  ;;  %v26969_v56 = vpop.f32.mrb[125].mxu0 }
 0x3ca   : > { %27361 = vst [vmem:[#allocation61_spill] sm:$0xff] %v26969_v56 }
 0x3cc   : > { %v26971_v13 = vpop.f32.mrb[126].mxu0 }
 0x3cd   : > { %27362 = vst [vmem:[#allocation62_spill] sm:$0xff] %v26971_v13  ;;  %v26973_v49 = vpop.f32.mrb[127].mxu0 }
 0x3ce   : > { %27363 = vst [vmem:[#allocation63_spill] sm:$0xff] %v26973_v49 }
 0x3e5   : > { %v23025_v9 = vpop.f32.mrb[64].mxu1 }
 0x3e6   : > { %v19899_v10 = vadd.f32 %v26812_v28, %v23025_v9  ;;  %v19316_v56 = vpop.f32.mrb[65].mxu1 }
 0x3e7   : > { %v19894_v13 = vadd.f32 %v26814_v52, %v19316_v56 }
 0x3e8   : > { %20213 = vst.msk [vmem:[%s26980_s17 + $0x8] sm:$0xff] %vm4415_vm1, %v19899_v10 }
 0x3e9   : > { %20212 = vst.msk [vmem:[%s26980_s17] sm:$0xff] %vm4415_vm1, %v19894_v13  ;;  %v23028_v49 = vpop.f32.mrb[66].mxu1 }
 0x3ea   : > { %v19909_v63 = vadd.f32 %v26818_v32, %v23028_v49  ;;  %v19326_v50 = vpop.f32.mrb[67].mxu1 }
 0x3eb   : > { %v19904_v14 = vadd.f32 %v26820_v3, %v19326_v50 }
 0x3ec   : > { %20215 = vst.msk [vmem:[%s26980_s17 + $0x18] sm:$0xff] %vm4415_vm1, %v19909_v63 }
 0x3ed   : > { %20214 = vst.msk [vmem:[%s26980_s17 + $0x10] sm:$0xff] %vm4415_vm1, %v19904_v14  ;;  %v23031_v28 = vpop.f32.mrb[68].mxu1 }
 0x3ee   : > { %v19919_v52 = vadd.f32 %v26824_v21, %v23031_v28  ;;  %v19336_v9 = vpop.f32.mrb[69].mxu1 }
 0x3ef   : > { %v19914_v10 = vadd.f32 %v26826_v59, %v19336_v9 }
 0x3f0   : > { %20217 = vst.msk [vmem:[%s26980_s17 + $0x28] sm:$0xff] %vm4415_vm1, %v19919_v52 }
 0x3f1   : > { %20216 = vst.msk [vmem:[%s26980_s17 + $0x20] sm:$0xff] %vm4415_vm1, %v19914_v10  ;;  %v23034_v32 = vpop.f32.mrb[70].mxu1 }
 0x3f2   : > { %v19929_v3 = vadd.f32 %v26830_v38, %v23034_v32  ;;  %v19346_v50 = vpop.f32.mrb[71].mxu1 }
 0x3f3   : > { %v19924_v14 = vadd.f32 %v26832_v35, %v19346_v50 }
 0x3f4   : > { %20219 = vst.msk [vmem:[%s26980_s17 + $0x38] sm:$0xff] %vm4415_vm1, %v19929_v3 }
 0x3f5   : > { %20218 = vst.msk [vmem:[%s26980_s17 + $0x30] sm:$0xff] %vm4415_vm1, %v19924_v14  ;;  %v23037_v21 = vpop.f32.mrb[72].mxu1 }
 0x3f6   : > { %v19939_v59 = vadd.f32 %v26836_v53, %v23037_v21  ;;  %v19356_v63 = vpop.f32.mrb[73].mxu1 }
 0x3f7   : > { %v19934_v56 = vadd.f32 %v26838_v57, %v19356_v63 }
 0x3f8   : > { %20221 = vst.msk [vmem:[%s26980_s17 + $0x48] sm:$0xff] %vm4415_vm1, %v19939_v59 }
 0x3f9   : > { %20220 = vst.msk [vmem:[%s26980_s17 + $0x40] sm:$0xff] %vm4415_vm1, %v19934_v56  ;;  %v23040_v38 = vpop.f32.mrb[74].mxu1 }
 0x3fa   : > { %v19949_v35 = vadd.f32 %v26842_v16, %v23040_v38  ;;  %v19366_v13 = vpop.f32.mrb[75].mxu1 }
 0x3fb   : > { %v19944_v49 = vadd.f32 %v26844_v0, %v19366_v13 }
 0x3fc   : > { %20223 = vst.msk [vmem:[%s26980_s17 + $0x58] sm:$0xff] %vm4415_vm1, %v19949_v35 }
 0x3fd   : > { %20222 = vst.msk [vmem:[%s26980_s17 + $0x50] sm:$0xff] %vm4415_vm1, %v19944_v49  ;;  %v23043_v53 = vpop.f32.mrb[76].mxu1 }
 0x3fe   : > { %v19959_v57 = vadd.f32 %v26848_v5, %v23043_v53  ;;  %v19376_v28 = vpop.f32.mrb[77].mxu1 }
 0x3ff   : > { %v19954_v52 = vadd.f32 %v26850_v11, %v19376_v28 }
 0x400   : > { %20225 = vst.msk [vmem:[%s26980_s17 + $0x68] sm:$0xff] %vm4415_vm1, %v19959_v57 }
 0x401   : > { %20224 = vst.msk [vmem:[%s26980_s17 + $0x60] sm:$0xff] %vm4415_vm1, %v19954_v52  ;;  %v23046_v16 = vpop.f32.mrb[78].mxu1 }
 0x402   : > { %v19969_v0 = vadd.f32 %v26854_v4, %v23046_v16  ;;  %v19386_v9 = vpop.f32.mrb[79].mxu1 }
 0x403   : > { %v19964_v10 = vadd.f32 %v26856_v55, %v19386_v9 }
 0x404   : > { %20227 = vst.msk [vmem:[%s26980_s17 + $0x78] sm:$0xff] %vm4415_vm1, %v19969_v0 }
 0x405   : > { %20226 = vst.msk [vmem:[%s26980_s17 + $0x70] sm:$0xff] %vm4415_vm1, %v19964_v10  ;;  %v23049_v5 = vpop.f32.mrb[80].mxu1 }
 0x406   : > { %v19979_v11 = vadd.f32 %v26860_v30, %v23049_v5  ;;  %v19396_v32 = vpop.f32.mrb[81].mxu1 }
 0x407   : > { %v19974_v3 = vadd.f32 %v26862_v31, %v19396_v32 }
 0x408   : > { %20229 = vst.msk [vmem:[%s26980_s17 + $0x88] sm:$0xff] %vm4415_vm1, %v19979_v11 }
 0x409   : > { %20228 = vst.msk [vmem:[%s26980_s17 + $0x80] sm:$0xff] %vm4415_vm1, %v19974_v3  ;;  %v23052_v4 = vpop.f32.mrb[82].mxu1 }
 0x40a   : > { %v19989_v55 = vadd.f32 %v26866_v29, %v23052_v4  ;;  %v19406_v50 = vpop.f32.mrb[83].mxu1 }
 0x40b   : > { %v19984_v14 = vadd.f32 %v26868_v8, %v19406_v50 }
 0x40c   : > { %20231 = vst.msk [vmem:[%s26980_s17 + $0x98] sm:$0xff] %vm4415_vm1, %v19989_v55 }
 0x40d   : > { %20230 = vst.msk [vmem:[%s26980_s17 + $0x90] sm:$0xff] %vm4415_vm1, %v19984_v14  ;;  %v23055_v30 = vpop.f32.mrb[84].mxu1 }
 0x40e   : > { %v19999_v31 = vadd.f32 %v26872_v20, %v23055_v30  ;;  %v19416_v21 = vpop.f32.mrb[85].mxu1 }
 0x40f   : > { %v19994_v59 = vadd.f32 %v26874_v46, %v19416_v21 }
 0x410   : > { %20233 = vst.msk [vmem:[%s26980_s17 + $0xa8] sm:$0xff] %vm4415_vm1, %v19999_v31 }
 0x411   : > { %20232 = vst.msk [vmem:[%s26980_s17 + $0xa0] sm:$0xff] %vm4415_vm1, %v19994_v59  ;;  %v23058_v29 = vpop.f32.mrb[86].mxu1 }
 0x412   : > { %v20009_v8 = vadd.f32 %v26878_v48, %v23058_v29  ;;  %v19426_v63 = vpop.f32.mrb[87].mxu1 }
 0x413   : > { %v20004_v56 = vadd.f32 %v26880_v22, %v19426_v63 }
 0x414   : > { %20235 = vst.msk [vmem:[%s26980_s17 + $0xb8] sm:$0xff] %vm4415_vm1, %v20009_v8 }
 0x415   : > { %20234 = vst.msk [vmem:[%s26980_s17 + $0xb0] sm:$0xff] %vm4415_vm1, %v20004_v56  ;;  %v23061_v20 = vpop.f32.mrb[88].mxu1 }
 0x416   : > { %v20019_v46 = vadd.f32 %v26884_v51, %v23061_v20  ;;  %v19436_v38 = vpop.f32.mrb[89].mxu1 }
 0x417   : > { %v20014_v35 = vadd.f32 %v26886_v47, %v19436_v38 }
 0x418   : > { %20237 = vst.msk [vmem:[%s26980_s17 + $0xc8] sm:$0xff] %vm4415_vm1, %v20019_v46 }
 0x419   : > { %20236 = vst.msk [vmem:[%s26980_s17 + $0xc0] sm:$0xff] %vm4415_vm1, %v20014_v35  ;;  %v23064_v48 = vpop.f32.mrb[90].mxu1 }
 0x41a   : > { %v20029_v22 = vadd.f32 %v26891_v26, %v23064_v48  ;;  %v19446_v13 = vpop.f32.mrb[91].mxu1  ;;  %v27364_v48 = vld [vmem:[#allocation48_spill] sm:$0xff] }
 0x41b   : > { %v20024_v49 = vadd.f32 %v26893_v37, %v19446_v13  ;;  %v27365_v13 = vld [vmem:[#allocation49_spill] sm:$0xff] }
 0x41c   : > { %20239 = vst.msk [vmem:[%s26980_s17 + $0xd8] sm:$0xff] %vm4415_vm1, %v20029_v22 }
 0x41d   : > { %20238 = vst.msk [vmem:[%s26980_s17 + $0xd0] sm:$0xff] %vm4415_vm1, %v20024_v49  ;;  %v23067_v51 = vpop.f32.mrb[92].mxu1 }
 0x41e   : > { %v20039_v47 = vadd.f32 %v26898_v54, %v23067_v51  ;;  %v19456_v53 = vpop.f32.mrb[93].mxu1  ;;  %v27366_v51 = vld [vmem:[#allocation54_spill] sm:$0xff] }
 0x41f   : > { %v20034_v57 = vadd.f32 %v26900_v40, %v19456_v53  ;;  %v27367_v53 = vld [vmem:[#allocation55_spill] sm:$0xff] }
 0x420   : > { %20241 = vst.msk [vmem:[%s26980_s17 + $0xe8] sm:$0xff] %vm4415_vm1, %v20039_v47 }
 0x421   : > { %20240 = vst.msk [vmem:[%s26980_s17 + $0xe0] sm:$0xff] %vm4415_vm1, %v20034_v57  ;;  %v23070_v26 = vpop.f32.mrb[94].mxu1 }
 0x422   : > { %v20049_v37 = vadd.f32 %v26905_v41, %v23070_v26  ;;  %v19466_v28 = vpop.f32.mrb[95].mxu1 }
 0x423   : > { %v20044_v52 = vadd.f32 %v26907_v24, %v19466_v28 }
 0x424   : > { %20243 = vst.msk [vmem:[%s26980_s17 + $0xf8] sm:$0xff] %vm4415_vm1, %v20049_v37  ;;  %v27368_v37 = vld [vmem:[#allocation60_spill] sm:$0xff] }
 0x425   : > { %20242 = vst.msk [vmem:[%s26980_s17 + $0xf0] sm:$0xff] %vm4415_vm1, %v20044_v52  ;;  %v23073_v54 = vpop.f32.mrb[96].mxu1 }
 0x426   : > { %v20059_v40 = vadd.f32 %v26911_v58, %v23073_v54  ;;  %v19476_v16 = vpop.f32.mrb[97].mxu1  ;;  %v27369_v54 = vld [vmem:[#allocation61_spill] sm:$0xff] }
 0x427   : > { %v20054_v0 = vadd.f32 %v26913_v34, %v19476_v16 }
 0x428   : > { %20245 = vst.msk [vmem:[%s26980_s17 + $0x108] sm:$0xff] %vm4415_vm1, %v20059_v40 }
 0x429   : > { %20244 = vst.msk [vmem:[%s26980_s17 + $0x100] sm:$0xff] %vm4415_vm1, %v20054_v0  ;;  %v23076_v41 = vpop.f32.mrb[98].mxu1  ;;  %v27370_v0 = vld [vmem:[#allocation62_spill] sm:$0xff] }
 0x42a   : > { %v20069_v24 = vadd.f32 %v26915_v23, %v23076_v41  ;;  %v19486_v9 = vpop.f32.mrb[99].mxu1 }
 0x42b   : > { %v20064_v10 = vadd.f32 %v26917_v25, %v19486_v9  ;;  %v27371_v9 = vld [vmem:[#allocation63_spill] sm:$0xff] }
 0x42c   : > { %20247 = vst.msk [vmem:[%s26980_s17 + $0x118] sm:$0xff] %vm4415_vm1, %v20069_v24 }
 0x42d   : > { %20246 = vst.msk [vmem:[%s26980_s17 + $0x110] sm:$0xff] %vm4415_vm1, %v20064_v10  ;;  %v23079_v58 = vpop.f32.mrb[100].mxu1 }
 0x42e   : > { %v20079_v34 = vadd.f32 %v26919_v60, %v23079_v58  ;;  %v19496_v5 = vpop.f32.mrb[101].mxu1 }
 0x42f   : > { %v20074_v11 = vadd.f32 %v26921_v2, %v19496_v5 }
 0x430   : > { %20249 = vst.msk [vmem:[%s26980_s17 + $0x128] sm:$0xff] %vm4415_vm1, %v20079_v34 }
 0x431   : > { %20248 = vst.msk [vmem:[%s26980_s17 + $0x120] sm:$0xff] %vm4415_vm1, %v20074_v11  ;;  %v23082_v23 = vpop.f32.mrb[102].mxu1 }
 0x432   : > { %v20089_v25 = vadd.f32 %v26923_v42, %v23082_v23  ;;  %v19506_v32 = vpop.f32.mrb[103].mxu1 }
 0x433   : > { %v20084_v3 = vadd.f32 %v26925_v45, %v19506_v32 }
 0x434   : > { %20251 = vst.msk [vmem:[%s26980_s17 + $0x138] sm:$0xff] %vm4415_vm1, %v20089_v25 }
 0x435   : > { %20250 = vst.msk [vmem:[%s26980_s17 + $0x130] sm:$0xff] %vm4415_vm1, %v20084_v3  ;;  %v23085_v60 = vpop.f32.mrb[104].mxu1 }
 0x436   : > { %v20099_v2 = vadd.f32 %v26927_v39, %v23085_v60  ;;  %v19516_v4 = vpop.f32.mrb[105].mxu1 }
 0x437   : > { %v20094_v55 = vadd.f32 %v26929_v17, %v19516_v4 }
 0x438   : > { %20253 = vst.msk [vmem:[%s26980_s17 + $0x148] sm:$0xff] %vm4415_vm1, %v20099_v2 }
 0x439   : > { %20252 = vst.msk [vmem:[%s26980_s17 + $0x140] sm:$0xff] %vm4415_vm1, %v20094_v55  ;;  %v23088_v42 = vpop.f32.mrb[106].mxu1 }
 0x43a   : > { %v20109_v45 = vadd.f32 %v26931_v33, %v23088_v42  ;;  %v19526_v50 = vpop.f32.mrb[107].mxu1 }
 0x43b   : > { %v20104_v14 = vadd.f32 %v26933_v27, %v19526_v50 }
 0x43c   : > { %20255 = vst.msk [vmem:[%s26980_s17 + $0x158] sm:$0xff] %vm4415_vm1, %v20109_v45 }
 0x43d   : > { %20254 = vst.msk [vmem:[%s26980_s17 + $0x150] sm:$0xff] %vm4415_vm1, %v20104_v14  ;;  %v23091_v39 = vpop.f32.mrb[108].mxu1 }
 0x43e   : > { %v20119_v17 = vadd.f32 %v26935_v15, %v23091_v39  ;;  %v19536_v30 = vpop.f32.mrb[109].mxu1 }
 0x43f   : > { %v20114_v31 = vadd.f32 %v26937_v19, %v19536_v30 }
 0x440   : > { %20257 = vst.msk [vmem:[%s26980_s17 + $0x168] sm:$0xff] %vm4415_vm1, %v20119_v17 }
 0x441   : > { %20256 = vst.msk [vmem:[%s26980_s17 + $0x160] sm:$0xff] %vm4415_vm1, %v20114_v31  ;;  %v23094_v33 = vpop.f32.mrb[110].mxu1 }
 0x442   : > { %v20129_v27 = vadd.f32 %v26939_v43, %v23094_v33  ;;  %v19546_v21 = vpop.f32.mrb[111].mxu1 }
 0x443   : > { %v20124_v59 = vadd.f32 %v26941_v6, %v19546_v21 }
 0x444   : > { %20259 = vst.msk [vmem:[%s26980_s17 + $0x178] sm:$0xff] %vm4415_vm1, %v20129_v27 }
 0x445   : > { %20258 = vst.msk [vmem:[%s26980_s17 + $0x170] sm:$0xff] %vm4415_vm1, %v20124_v59  ;;  %v23097_v15 = vpop.f32.mrb[112].mxu1 }
 0x446   : > { %v20139_v19 = vadd.f32 %v26943_v61, %v23097_v15  ;;  %v19556_v29 = vpop.f32.mrb[113].mxu1 }
 0x447   : > { %v20134_v8 = vadd.f32 %v26945_v1, %v19556_v29 }
 0x448   : > { %20261 = vst.msk [vmem:[%s26980_s17 + $0x188] sm:$0xff] %vm4415_vm1, %v20139_v19 }
 0x449   : > { %20260 = vst.msk [vmem:[%s26980_s17 + $0x180] sm:$0xff] %vm4415_vm1, %v20134_v8  ;;  %v23100_v43 = vpop.f32.mrb[114].mxu1 }
 0x44a   : > { %v20149_v6 = vadd.f32 %v26947_v36, %v23100_v43  ;;  %v19566_v63 = vpop.f32.mrb[115].mxu1 }
 0x44b   : > { %v20144_v56 = vadd.f32 %v26949_v7, %v19566_v63 }
 0x44c   : > { %20263 = vst.msk [vmem:[%s26980_s17 + $0x198] sm:$0xff] %vm4415_vm1, %v20149_v6 }
 0x44d   : > { %20262 = vst.msk [vmem:[%s26980_s17 + $0x190] sm:$0xff] %vm4415_vm1, %v20144_v56  ;;  %v23103_v61 = vpop.f32.mrb[116].mxu1 }
 0x44e   : > { %v20159_v1 = vadd.f32 %v26951_v12, %v23103_v61  ;;  %v19576_v20 = vpop.f32.mrb[117].mxu1 }
 0x44f   : > { %v20154_v46 = vadd.f32 %v26953_v62, %v19576_v20 }
 0x450   : > { %20265 = vst.msk [vmem:[%s26980_s17 + $0x1a8] sm:$0xff] %vm4415_vm1, %v20159_v1 }
 0x451   : > { %20264 = vst.msk [vmem:[%s26980_s17 + $0x1a0] sm:$0xff] %vm4415_vm1, %v20154_v46  ;;  %v23106_v36 = vpop.f32.mrb[118].mxu1 }
 0x452   : > { %v20169_v7 = vadd.f32 %v26955_v44, %v23106_v36  ;;  %v19586_v38 = vpop.f32.mrb[119].mxu1 }
 0x453   : > { %v20164_v35 = vadd.f32 %v26957_v18, %v19586_v38 }
 0x454   : > { %20267 = vst.msk [vmem:[%s26980_s17 + $0x1b8] sm:$0xff] %vm4415_vm1, %v20169_v7 }
 0x455   : > { %20266 = vst.msk [vmem:[%s26980_s17 + $0x1b0] sm:$0xff] %vm4415_vm1, %v20164_v35  ;;  %v23109_v12 = vpop.f32.mrb[120].mxu1 }
 0x456   : > { %v20179_v62 = vadd.f32 %v27364_v48, %v23109_v12  ;;  %v19596_v22 = vpop.f32.mrb[121].mxu1 }
 0x457   : > { %v20174_v49 = vadd.f32 %v27365_v13, %v19596_v22 }
 0x458   : > { %20269 = vst.msk [vmem:[%s26980_s17 + $0x1c8] sm:$0xff] %vm4415_vm1, %v20179_v62 }
 0x459   : > { %20268 = vst.msk [vmem:[%s26980_s17 + $0x1c0] sm:$0xff] %vm4415_vm1, %v20174_v49  ;;  %v23112_v44 = vpop.f32.mrb[122].mxu1 }
 0x45a   : > { %v20189_v18 = vadd.f32 %v27366_v51, %v23112_v44  ;;  %v19606_v47 = vpop.f32.mrb[123].mxu1 }
 0x45b   : > { %v20184_v57 = vadd.f32 %v27367_v53, %v19606_v47 }
 0x45c   : > { %20271 = vst.msk [vmem:[%s26980_s17 + $0x1d8] sm:$0xff] %vm4415_vm1, %v20189_v18 }
 0x45d   : > { %20270 = vst.msk [vmem:[%s26980_s17 + $0x1d0] sm:$0xff] %vm4415_vm1, %v20184_v57  ;;  %v23115_v26 = vpop.f32.mrb[124].mxu1 }
 0x45e   : > { %v20199_v28 = vadd.f32 %v27368_v37, %v23115_v26  ;;  %v19616_v52 = vpop.f32.mrb[125].mxu1 }
 0x45f   : > { %v20194_v40 = vadd.f32 %v27369_v54, %v19616_v52 }
 0x460   : > { %20273 = vst.msk [vmem:[%s26980_s17 + $0x1e8] sm:$0xff] %vm4415_vm1, %v20199_v28 }
 0x461   : > { %20272 = vst.msk [vmem:[%s26980_s17 + $0x1e0] sm:$0xff] %vm4415_vm1, %v20194_v40  ;;  %v23118_v16 = vpop.f32.mrb[126].mxu1 }
 0x462   : > { %v20209_v41 = vadd.f32 %v27370_v0, %v23118_v16  ;;  %v19626_v24 = vpop.f32.mrb[127].mxu1 }
 0x463   : > { %v20204_v10 = vadd.f32 %v27371_v9, %v19626_v24 }
 0x464   : > { %20275 = vst.msk [vmem:[%s26980_s17 + $0x1f8] sm:$0xff] %vm4415_vm1, %v20209_v41 }
 0x465   : > { %20274 = vst.msk [vmem:[%s26980_s17 + $0x1f0] sm:$0xff] %vm4415_vm1, %v20204_v10 }
 0x466 PF: > { %s20_s15 = sadd.s32 1, %s23872_s15   ;;  %s27372_s13 = smov %s23868_s14 }
 0x467   : > { %p17_p5 = scmp.ge.s32.totalorder %s20_s15, 4   ;;  %s27373_s14 = smov %s27375_s16 }
 0x469   :  { %19 = sbr.rel (!%p17_p5) target bundleno = 2 (0x2), region = 96 }

</bundles_post_ra>
